<compile_context>
chip_gen: v7x
topology: tpu7x:2x2x1
jax: 0.10.0
libtpu: 0.0.40
codegen_flags: <defaults>
</compile_context>

<pallas_src>
import functools
import numpy as np
import jax
import jax.numpy as jnp
from jax.experimental import pallas as pl
from jax.experimental.pallas import tpu as pltpu


def _round_up(x, m):
  return ((x + m - 1) // m) * m


# ------------------------------------------------------------------ kernel ---
def decoder_step_kernel(
    enc_ref,          # (tb, P_pad, Ep)  bf16 encoder features (resident per batch block)
    attn1_ref,        # (tb, P_pad, Ap)  bf16 precomputed encoder_attn(enc)
    embg_ref,         # (1, tb, 4*Dp)    bf16 per-step emb @ w_ih_emb (streamed over t)
    h0_ref, c0_ref,   # (tb, Dp) f32     precomputed initial LSTM state
    wfull_ref,        # (1, Ap)  f32     full_attn weight (bias dropped: softmax-invariant)
    w_h_ref,          # (Dp, Ap+Ep+4Dp)  bf16 fused [decoder_attn | f_beta | lstm hh]
    b_h_ref,          # (1, Ap+Ep+4Dp)   f32  fused bias (hh slab absorbs b_ih)
    w_awe_ref,        # (Ep, 4Dp)        bf16 awe -> lstm input gates
    h_out_ref,        # out: (1, tb, Dp)    f32 hidden state of this step
    alphas_ref,       # out: (1, tb, P_pad) f32 attention weights of this step
    h_sc, c_sc,       # scratch: (tb, Dp) f32 LSTM state carried across time steps
    *, num_pixels,    # real (unpadded) number of pixels P
):
  t = pl.program_id(1)
  tb, P_pad, Ep = enc_ref.shape
  Ap = attn1_ref.shape[2]
  Dp = h_sc.shape[1]

  # init_hidden_state() -- precomputed in the wrapper; load at t == 0.
  @pl.when(t == 0)
  def _init():
    h_sc[...] = h0_ref[...]
    c_sc[...] = c0_ref[...]

  h = h_sc[...]
  c = c_sc[...]

  # ---- single fused matmul for every h-driven projection (bf16 MXU, f32 acc) ----
  # columns: [0:Ap) decoder_attn, [Ap:Ap+Ep) f_beta logits, [Ap+Ep:) lstm hh gates
  h_proj = (jnp.dot(h.astype(jnp.bfloat16), w_h_ref[...],
                    preferred_element_type=jnp.float32) + b_h_ref[...])
  attn2 = h_proj[:, :Ap]                                   # (tb, Ap)
  gate = jax.nn.sigmoid(h_proj[:, Ap:Ap + Ep])             # (tb, Ep)
  hh_gates = h_proj[:, Ap + Ep:]                           # (tb, 4Dp)

  # ---- Bahdanau attention (attn1 precomputed); elementwise math kept in f32 ----
  score = jnp.maximum(attn1_ref[...] + attn2[:, None, :], 0.0)      # (tb, P_pad, Ap) f32
  logits = jnp.sum(score * wfull_ref[...][None, :, :], axis=-1)     # (tb, P_pad)

  # mask padded pixels out of the softmax
  col = jax.lax.broadcasted_iota(jnp.int32, (1, P_pad), 1)
  logits = logits + jnp.where(col < num_pixels, 0.0, -1e30)

  m = jnp.max(logits, axis=1, keepdims=True)
  e = jnp.exp(logits - m)
  denom = jnp.sum(e, axis=1, keepdims=True)
  alpha = e * pl.reciprocal(denom, approx=True)                     # (tb, P_pad) f32

  # attention-weighted encoding on the MXU (batched contraction over pixels)
  awe = jnp.einsum("bqp,bpe->bqe", alpha[:, None, :].astype(jnp.bfloat16),
                   enc_ref[...], preferred_element_type=jnp.float32)[:, 0, :]  # (tb, Ep)
  awe = gate * awe

  # ---- LSTM cell (PyTorch gate order i, f, g, o); emb @ w_ih hoisted to the wrapper ----
  gates = (jnp.dot(awe.astype(jnp.bfloat16), w_awe_ref[...],
                   preferred_element_type=jnp.float32)
           + embg_ref[0].astype(jnp.float32) + hh_gates)            # (tb, 4Dp)
  i_g = jax.nn.sigmoid(gates[:, 0 * Dp:1 * Dp])
  f_g = jax.nn.sigmoid(gates[:, 1 * Dp:2 * Dp])
  g_g = jnp.tanh(gates[:, 2 * Dp:3 * Dp])
  o_g = jax.nn.sigmoid(gates[:, 3 * Dp:4 * Dp])
  c_new = f_g * c + i_g * g_g
  h_new = o_g * jnp.tanh(c_new)
  h_sc[...] = h_new
  c_sc[...] = c_new

  # vocab projection + decode-length masking are hoisted into the wrapper.
  h_out_ref[0] = h_new
  alphas_ref[0] = alpha


# ---------------------------------------------------------------- wrapper ---
def decoder_forward(params, encoder_out, encoded_captions, caption_lens,
                    batch_tile=None):
  """Mirrors DecoderWithAttention._forward.

  encoder_out:      (B, Himg, Wimg, E) float32
  encoded_captions: (B, T) int32
  caption_lens:     (B, 1) int32
  returns (predictions, sorted_captions, decode_lens, alphas)
  """
  B = encoder_out.shape[0]
  E = encoder_out.shape[-1]
  enc = np.asarray(encoder_out).reshape(B, -1, E)          # (B, P, E)
  P = enc.shape[1]

  lens = np.asarray(caption_lens).reshape(B)
  sort_idx = np.argsort(-lens, kind="stable")              # descending sort
  lens_sorted = lens[sort_idx]
  enc_s = jnp.asarray(enc[sort_idx], jnp.float32)          # (B, P, E) sorted
  caps = np.asarray(encoded_captions)[sort_idx]
  decode_lens = (lens_sorted - 1).astype(np.int32).tolist()
  T_dec = int(max(decode_lens))

  emb_table = params["embedding"]                          # (V, Emb)
  Emb = emb_table.shape[1]
  D = params["w_init_h"].shape[1]
  A = params["w_enc_a"].shape[1]
  V = params["w_fc"].shape[1]

  f32, bf16 = jnp.float32, jnp.bfloat16

  # ---- padded / lane-aligned sizes (every kernel-side slice is 128-aligned) ----
  B_pad = _round_up(B, 8)
  P_pad = _round_up(P, 128)
  Ap = _round_up(A, 128)
  Ep = _round_up(E, 128)
  Dp = _round_up(D, 128)

  if batch_tile is None:
    tb = B_pad
    for cand in range(B_pad - 8, 0, -8):     # largest proper divisor (mult of 8) -> nb >= 2
      if B_pad % cand == 0:
        tb = cand
        break
  else:
    tb = int(batch_tile)
  assert B_pad % tb == 0 and tb % 8 == 0, "batch tile must divide padded batch, mult of 8"
  nb = B_pad // tb

  # ---- step-invariant precompute, hoisted out of the recurrent loop ----
  attn1 = jnp.einsum("bpe,ea->bpa", enc_s, params["w_enc_a"]) + params["b_enc_a"]
  mean_enc = enc_s.mean(axis=1)                            # mean over real pixels only
  h0 = mean_enc @ params["w_init_h"] + params["b_init_h"]
  c0 = mean_enc @ params["w_init_c"] + params["b_init_c"]

  def scatter_gate_cols(w):
    """(rows, 4D) -> (rows, 4Dp) with gate g at columns [g*Dp : g*Dp+D]."""
    out = jnp.zeros((w.shape[0], 4 * Dp), f32)
    for g in range(4):
      out = out.at[:, g * Dp:g * Dp + D].set(w[:, g * D:(g + 1) * D])
    return out

  # input-gate projection of the embeddings: no h dependence -> one big matmul here.
  w_ih_emb = scatter_gate_cols(params["w_ih"][:Emb])       # (Emb, 4Dp)
  emb = emb_table[jnp.asarray(caps)][:, :T_dec, :]         # (B, T_dec, Emb)
  emb_gates = jnp.einsum("bte,ef->btf", emb, w_ih_emb)     # (B, T_dec, 4Dp)
  emb_gates = jnp.transpose(emb_gates, (1, 0, 2))          # (T_dec, B, 4Dp) time-major

  # ---- pad / cast operands (big tensors in bf16, f32 accumulation in-kernel) ----
  enc_p = jnp.zeros((B_pad, P_pad, Ep), bf16).at[:B, :P, :E].set(enc_s.astype(bf16))
  attn1_p = jnp.zeros((B_pad, P_pad, Ap), bf16).at[:B, :P, :A].set(attn1.astype(bf16))
  embg_p = jnp.zeros((T_dec, B_pad, 4 * Dp), bf16).at[:, :B, :].set(emb_gates.astype(bf16))
  h0_p = jnp.zeros((B_pad, Dp), f32).at[:B, :D].set(h0)
  c0_p = jnp.zeros((B_pad, Dp), f32).at[:B, :D].set(c0)
  wfull_p = jnp.zeros((1, Ap), f32).at[:, :A].set(params["w_full"])

  # fused h-driven weights [decoder_attn | f_beta | lstm hh], 128-aligned slabs;
  # the hh bias absorbs b_ih.
  w_dec_p = jnp.zeros((Dp, Ap), f32).at[:D, :A].set(params["w_dec_a"])
  b_dec_p = jnp.zeros((1, Ap), f32).at[:, :A].set(params["b_dec_a"])
  w_beta_p = jnp.zeros((Dp, Ep), f32).at[:D, :E].set(params["w_beta"])
  b_beta_p = jnp.zeros((1, Ep), f32).at[:, :E].set(params["b_beta"])
  w_hh_p = jnp.zeros((Dp, 4 * Dp), f32).at[:D, :].set(scatter_gate_cols(params["w_hh"]))
  b_hh_p = scatter_gate_cols(params["b_hh"] + params["b_ih"])        # (1, 4Dp)
  w_h = jnp.concatenate([w_dec_p, w_beta_p, w_hh_p], axis=1).astype(bf16)
  b_h = jnp.concatenate([b_dec_p, b_beta_p, b_hh_p], axis=1)
  w_awe_p = jnp.zeros((Ep, 4 * Dp), f32).at[:E, :].set(
      scatter_gate_cols(params["w_ih"][Emb:])).astype(bf16)

  in_specs = [
      pl.BlockSpec((tb, P_pad, Ep), lambda b, t: (b, 0, 0)),     # enc
      pl.BlockSpec((tb, P_pad, Ap), lambda b, t: (b, 0, 0)),     # attn1 (precomputed)
      pl.BlockSpec((1, tb, 4 * Dp), lambda b, t: (t, b, 0)),     # emb gates (per-step)
      pl.BlockSpec((tb, Dp), lambda b, t: (b, 0)),               # h0
      pl.BlockSpec((tb, Dp), lambda b, t: (b, 0)),               # c0
      pl.BlockSpec((1, Ap), lambda b, t: (0, 0)),                # w_full
      pl.BlockSpec(w_h.shape, lambda b, t: (0, 0)),              # fused h weights
      pl.BlockSpec(b_h.shape, lambda b, t: (0, 0)),
      pl.BlockSpec((Ep, 4 * Dp), lambda b, t: (0, 0)),           # w_ih (awe part)
  ]
  out_specs = [
      pl.BlockSpec((1, tb, Dp), lambda b, t: (t, b, 0)),         # h per step
      pl.BlockSpec((1, tb, P_pad), lambda b, t: (t, b, 0)),      # alpha per step
  ]

  kernel = functools.partial(decoder_step_kernel, num_pixels=P)

  hs_t, alphas_t = pl.pallas_call(
      kernel,
      out_shape=(
          jax.ShapeDtypeStruct((T_dec, B_pad, Dp), jnp.float32),
          jax.ShapeDtypeStruct((T_dec, B_pad, P_pad), jnp.float32),
      ),
      grid_spec=pltpu.PrefetchScalarGridSpec(
          num_scalar_prefetch=0,
          grid=(nb, T_dec),
          in_specs=in_specs,
          out_specs=out_specs,
          scratch_shapes=[pltpu.VMEM((tb, Dp), jnp.float32),
                          pltpu.VMEM((tb, Dp), jnp.float32)],
      ),
      compiler_params=pltpu.CompilerParams(
          # batch blocks are independent (parallel / megacore-shardable);
          # time carries the LSTM state and must stay sequential.
          dimension_semantics=("parallel", "arbitrary"),
          vmem_limit_bytes=64 * 1024 * 1024),
  )(enc_p, attn1_p, embg_p, h0_p, c0_p, wfull_p, w_h, b_h, w_awe_p)

  # ---- hoisted vocab projection: one (T*B, D) x (D, V) matmul at full utilization ----
  h_flat = hs_t[:, :, :D].reshape(T_dec * B_pad, D)
  preds_t = (h_flat @ params["w_fc"] + params["b_fc"]).reshape(T_dec, B_pad, V)

  # rows whose caption already ended (t >= decode_len) are zero, matching the
  # shrinking-batch behaviour of the PyTorch loop (lengths sorted descending).
  t_idx = jnp.arange(T_dec)[:, None]
  active = (jnp.asarray(decode_lens, jnp.int32)[None, :] > t_idx).astype(jnp.float32)
  predictions = jnp.transpose(preds_t[:, :B, :] * active[:, :, None], (1, 0, 2))
  alphas = jnp.transpose(alphas_t[:, :B, :P] * active[:, :, None], (1, 0, 2))
  return predictions, jnp.asarray(caps), decode_lens, alphas


# ------------------------------------------------------- pure-JAX reference ---
def reference_forward(params, enc, caps, decode_lens):
  B, P, E = enc.shape
  T_dec = int(max(decode_lens))
  emb = params["embedding"][jnp.asarray(caps)]
  mean_enc = enc.mean(axis=1)
  h = mean_enc @ params["w_init_h"] + params["b_init_h"]
  c = mean_enc @ params["w_init_c"] + params["b_init_c"]
  dlen = jnp.asarray(decode_lens, jnp.float32)[:, None]
  preds_list, alpha_list = [], []
  for t in range(T_dec):
    attn1 = jnp.einsum("bpe,ea->bpa", enc, params["w_enc_a"]) + params["b_enc_a"]
    attn2 = h @ params["w_dec_a"] + params["b_dec_a"]
    score = jnp.maximum(attn1 + attn2[:, None, :], 0.0)
    attn = jnp.sum(score * params["w_full"][None, :, :], axis=-1) + params["b_full"][0, 0]
    alpha = jax.nn.softmax(attn, axis=1)
    awe = jnp.sum(enc * alpha[:, :, None], axis=1)
    gate = jax.nn.sigmoid(h @ params["w_beta"] + params["b_beta"])
    awe = gate * awe
    x = jnp.concatenate([emb[:, t, :], awe], axis=1)
    gates = x @ params["w_ih"] + params["b_ih"] + h @ params["w_hh"] + params["b_hh"]
    D = h.shape[1]
    i_g = jax.nn.sigmoid(gates[:, 0:D])
    f_g = jax.nn.sigmoid(gates[:, D:2 * D])
    g_g = jnp.tanh(gates[:, 2 * D:3 * D])
    o_g = jax.nn.sigmoid(gates[:, 3 * D:4 * D])
    c = f_g * c + i_g * g_g
    h = o_g * jnp.tanh(c)
    preds = h @ params["w_fc"] + params["b_fc"]
    mask = (dlen > t).astype(jnp.float32)
    preds_list.append(preds * mask)
    alpha_list.append(alpha * mask)
  return jnp.stack(preds_list, axis=1), jnp.stack(alpha_list, axis=1)


# ------------------------------------------------------------------- setup ---
def init_params(key, vocab_size, embed_dim, encoder_dim, decoder_dim, attention_dim):
  ks = jax.random.split(key, 32)
  it = iter(range(32))

  def lin(fan_in, shape):
    bound = 1.0 / np.sqrt(fan_in)
    return jax.random.uniform(ks[next(it)], shape, jnp.float32, -bound, bound)

  E, D, A, Emb, V = encoder_dim, decoder_dim, attention_dim, embed_dim, vocab_size
  params = {
      # init_weights(): embedding & fc get uniform(-0.1, 0.1); fc bias is zero.
      "embedding": jax.random.uniform(ks[next(it)], (V, Emb), jnp.float32, -0.1, 0.1),
      "w_init_h": lin(E, (E, D)), "b_init_h": lin(E, (1, D)),
      "w_init_c": lin(E, (E, D)), "b_init_c": lin(E, (1, D)),
      "w_enc_a": lin(E, (E, A)), "b_enc_a": lin(E, (1, A)),
      "w_dec_a": lin(D, (D, A)), "b_dec_a": lin(D, (1, A)),
      "w_full": lin(A, (1, A)), "b_full": lin(A, (1, 1)),
      "w_beta": lin(D, (D, E)), "b_beta": lin(D, (1, E)),
      "w_ih": lin(Emb + E, (Emb + E, 4 * D)), "b_ih": lin(Emb + E, (1, 4 * D)),
      "w_hh": lin(D, (D, 4 * D)), "b_hh": lin(D, (1, 4 * D)),
      "w_fc": jax.random.uniform(ks[next(it)], (D, V), jnp.float32, -0.1, 0.1),
      "b_fc": jnp.zeros((1, V), jnp.float32),
  }
  return params


if __name__ == "__main__":
  # small synthetic config (args.d_vf=16, d_model=16, emb_dim=8, d_ff=32, vocab=20)
  B, IMG, E, A, Emb, D, V, T = 2, 4, 16, 16, 8, 32, 20, 8

  key = jax.random.PRNGKey(0)
  k_enc, k_cap, k_par = jax.random.split(key, 3)

  encoder_out = jax.random.normal(k_enc, (B, IMG, IMG, E), jnp.float32)
  encoded_captions = jax.random.randint(k_cap, (B, T), 0, V).astype(jnp.int32)
  caption_lens = jnp.array([[6], [8]], jnp.int32)   # (B, 1)

  params = init_params(k_par, V, Emb, E, D, A)

  preds, sorted_caps, decode_lens, alphas = decoder_forward(
      params, encoder_out, encoded_captions, caption_lens)
  preds = jax.block_until_ready(preds)
  alphas = jax.block_until_ready(alphas)

  # correctness check against a pure-f32 JAX reference of the same math
  # (tolerance covers the bf16 operands and the approximate softmax reciprocal)
  enc_sorted = jnp.asarray(
      np.asarray(encoder_out).reshape(B, -1, E)[np.argsort(-np.asarray(caption_lens).reshape(B),
                                                           kind="stable")])
  ref_preds, ref_alphas = reference_forward(params, enc_sorted, sorted_caps, decode_lens)

  err_p = float(jnp.max(jnp.abs(preds - ref_preds)))
  err_a = float(jnp.max(jnp.abs(alphas - ref_alphas)))
  assert err_p < 5e-2 and err_a < 5e-2, (err_p, err_a)

  print("KERNEL_OK")
</pallas_src>

<mosaic_0001>
module attributes {stable_mosaic.version = 11 : i64} {
  func.func @decoder_step_kernel(%arg0: i32, %arg1: i32, %arg2: memref<8x128x128xbf16, #tpu.memory_space<vmem>>, %arg3: memref<8x128x128xbf16, #tpu.memory_space<vmem>>, %arg4: memref<1x8x512xbf16, #tpu.memory_space<vmem>>, %arg5: memref<8x128xf32, #tpu.memory_space<vmem>>, %arg6: memref<8x128xf32, #tpu.memory_space<vmem>>, %arg7: memref<1x128xf32, #tpu.memory_space<vmem>>, %arg8: memref<128x768xbf16, #tpu.memory_space<vmem>>, %arg9: memref<1x768xf32, #tpu.memory_space<vmem>>, %arg10: memref<128x512xbf16, #tpu.memory_space<vmem>>, %arg11: memref<1x8x128xf32, #tpu.memory_space<vmem>>, %arg12: memref<1x8x128xf32, #tpu.memory_space<vmem>>, %arg13: memref<8x128xf32, #tpu.memory_space<vmem>>, %arg14: memref<8x128xf32, #tpu.memory_space<vmem>>) attributes {dimension_semantics = [#tpu.dimension_semantics<parallel>, #tpu.dimension_semantics<arbitrary>], iteration_bounds = array<i64: 1, 7>, scalar_prefetch = 0 : i64, scratch_operands = 2 : i64, tpu.core_type = #tpu.core_type<tc>, window_params = [{transform_indices = @transform_0, window_bounds = array<i64: 8, 128, 128>}, {transform_indices = @transform_1, window_bounds = array<i64: 8, 128, 128>}, {transform_indices = @transform_2, window_bounds = array<i64: 1, 8, 512>}, {transform_indices = @transform_3, window_bounds = array<i64: 8, 128>}, {transform_indices = @transform_4, window_bounds = array<i64: 8, 128>}, {pipeline_mode = #tpu.pipeline_mode<synchronous>, transform_indices = @transform_5, window_bounds = array<i64: 1, 128>}, {pipeline_mode = #tpu.pipeline_mode<synchronous>, transform_indices = @transform_6, window_bounds = array<i64: 128, 768>}, {pipeline_mode = #tpu.pipeline_mode<synchronous>, transform_indices = @transform_7, window_bounds = array<i64: 1, 768>}, {pipeline_mode = #tpu.pipeline_mode<synchronous>, transform_indices = @transform_8, window_bounds = array<i64: 128, 512>}, {transform_indices = @transform_9, window_bounds = array<i64: 1, 8, 128>}, {transform_indices = @transform_10, window_bounds = array<i64: 1, 8, 128>}]} {
    %c0_i32 = arith.constant 0 : i32
    %0 = arith.cmpi eq, %arg1, %c0_i32 : i32
    %1 = arith.extui %0 : i1 to i32
    %c0_i32_0 = arith.constant 0 : i32
    %2 = arith.cmpi ne, %1, %c0_i32_0 : i32
    scf.if %2 {
      %c0_43 = arith.constant 0 : index
      %c0_44 = arith.constant 0 : index
      %96 = vector.load %arg5[%c0_43, %c0_44] : memref<8x128xf32, #tpu.memory_space<vmem>>, vector<8x128xf32>
      %c0_45 = arith.constant 0 : index
      %c0_46 = arith.constant 0 : index
      %97 = vector.load %arg13[%c0_45, %c0_46] : memref<8x128xf32, #tpu.memory_space<vmem>>, vector<8x128xf32>
      tpu.vector_store %arg13[%c0_45, %c0_46], %96 {strides = array<i32>} : memref<8x128xf32, #tpu.memory_space<vmem>>, vector<8x128xf32>,
      %c0_47 = arith.constant 0 : index
      %c0_48 = arith.constant 0 : index
      %98 = vector.load %arg6[%c0_47, %c0_48] : memref<8x128xf32, #tpu.memory_space<vmem>>, vector<8x128xf32>
      %c0_49 = arith.constant 0 : index
      %c0_50 = arith.constant 0 : index
      %99 = vector.load %arg14[%c0_49, %c0_50] : memref<8x128xf32, #tpu.memory_space<vmem>>, vector<8x128xf32>
      tpu.vector_store %arg14[%c0_49, %c0_50], %98 {strides = array<i32>} : memref<8x128xf32, #tpu.memory_space<vmem>>, vector<8x128xf32>,
    } else {
    }
    %c0 = arith.constant 0 : index
    %c0_1 = arith.constant 0 : index
    %3 = vector.load %arg13[%c0, %c0_1] : memref<8x128xf32, #tpu.memory_space<vmem>>, vector<8x128xf32>
    %c0_2 = arith.constant 0 : index
    %c0_3 = arith.constant 0 : index
    %4 = vector.load %arg14[%c0_2, %c0_3] : memref<8x128xf32, #tpu.memory_space<vmem>>, vector<8x128xf32>
    %5 = arith.truncf %3 : vector<8x128xf32> to vector<8x128xbf16>
    %c0_4 = arith.constant 0 : index
    %c0_5 = arith.constant 0 : index
    %6 = vector.load %arg8[%c0_4, %c0_5] : memref<128x768xbf16, #tpu.memory_space<vmem>>, vector<128x768xbf16>
    %cst = arith.constant dense<0.000000e+00> : vector<8x768xf32>
    %7 = tpu.matmul %5, %6, %cst {dimension_numbers = #tpu.dot_dimension_numbers<[1], [0], [0], [1], [0, 0, 1, 1], [], []>} : vector<8x128xbf16>, vector<128x768xbf16>, vector<8x768xf32> -> vector<8x768xf32>
    %c0_6 = arith.constant 0 : index
    %c0_7 = arith.constant 0 : index
    %8 = vector.load %arg9[%c0_6, %c0_7] : memref<1x768xf32, #tpu.memory_space<vmem>>, vector<1x768xf32>
    %9 = vector.broadcast %8 : vector<1x768xf32> to vector<8x768xf32>
    %10 = arith.addf %7, %9 : vector<8x768xf32>
    %11 = vector.extract_strided_slice %10 {offsets = [0, 0], sizes = [8, 128], strides = [1, 1]} : vector<8x768xf32> to vector<8x128xf32>
    %12 = vector.extract_strided_slice %10 {offsets = [0, 128], sizes = [8, 128], strides = [1, 1]} : vector<8x768xf32> to vector<8x128xf32>
    %13 = arith.negf %12 : vector<8x128xf32>
    %14 = math.exp %13 : vector<8x128xf32>
    %cst_8 = arith.constant 1.000000e+00 : f32
    %15 = vector.broadcast %cst_8 : f32 to vector<8x128xf32>
    %16 = arith.addf %15, %14 : vector<8x128xf32>
    %17 = arith.divf %15, %16 : vector<8x128xf32>
    %18 = vector.extract_strided_slice %10 {offsets = [0, 256], sizes = [8, 512], strides = [1, 1]} : vector<8x768xf32> to vector<8x512xf32>
    %c0_9 = arith.constant 0 : index
    %c0_10 = arith.constant 0 : index
    %c0_11 = arith.constant 0 : index
    %19 = vector.load %arg3[%c0_9, %c0_10, %c0_11] : memref<8x128x128xbf16, #tpu.memory_space<vmem>>, vector<8x128x128xbf16>
    %20 = vector.shape_cast %11 : vector<8x128xf32> to vector<8x1x128xf32>
    %21 = arith.extf %19 : vector<8x128x128xbf16> to vector<8x128x128xf32>
    %22 = vector.broadcast %20 : vector<8x1x128xf32> to vector<8x128x128xf32>
    %23 = arith.addf %21, %22 : vector<8x128x128xf32>
    %cst_12 = arith.constant 0.000000e+00 : f32
    %24 = vector.broadcast %cst_12 : f32 to vector<8x128x128xf32>
    %25 = arith.maximumf %23, %24 : vector<8x128x128xf32>
    %c0_13 = arith.constant 0 : index
    %c0_14 = arith.constant 0 : index
    %26 = vector.load %arg7[%c0_13, %c0_14] : memref<1x128xf32, #tpu.memory_space<vmem>>, vector<1x128xf32>
    %27 = vector.shape_cast %26 : vector<1x128xf32> to vector<1x1x128xf32>
    %28 = vector.broadcast %27 : vector<1x1x128xf32> to vector<8x128x128xf32>
    %29 = arith.mulf %25, %28 : vector<8x128x128xf32>
    %cst_15 = arith.constant dense<0.000000e+00> : vector<8x128xf32>
    %30 = vector.multi_reduction <add>, %29, %cst_15 [2] : vector<8x128x128xf32> to vector<8x128xf32>
    %31 = tpu.iota {dimensions = array<i32: 1>} : vector<1x128xi32>
    %c16_i32 = arith.constant 16 : i32
    %32 = vector.broadcast %c16_i32 : i32 to vector<1x128xi32>
    %33 = arith.cmpi slt, %31, %32 : vector<1x128xi32>
    %cst_16 = arith.constant 0.000000e+00 : f32
    %cst_17 = arith.constant -1.000000e+30 : f32
    %34 = vector.broadcast %cst_16 : f32 to vector<1x128xf32>
    %35 = vector.broadcast %cst_17 : f32 to vector<1x128xf32>
    %36 = arith.select %33, %34, %35 : vector<1x128xi1>, vector<1x128xf32>
    %37 = vector.broadcast %36 : vector<1x128xf32> to vector<8x128xf32>
    %38 = arith.addf %30, %37 : vector<8x128xf32>
    %cst_18 = arith.constant dense<0xFF800000> : vector<8xf32>
    %39 = vector.multi_reduction <maximumf>, %38, %cst_18 [1] : vector<8x128xf32> to vector<8xf32>
    %40 = vector.shape_cast %39 : vector<8xf32> to vector<8x1xf32>
    %41 = vector.broadcast %40 : vector<8x1xf32> to vector<8x128xf32>
    %42 = arith.subf %38, %41 : vector<8x128xf32>
    %43 = math.exp %42 : vector<8x128xf32>
    %cst_19 = arith.constant dense<0.000000e+00> : vector<8xf32>
    %44 = vector.multi_reduction <add>, %43, %cst_19 [1] : vector<8x128xf32> to vector<8xf32>
    %45 = vector.shape_cast %44 : vector<8xf32> to vector<8x1xf32>
    %46 = tpu.reciprocal %45 {approx = true} : vector<8x1xf32> -> vector<8x1xf32>
    %47 = vector.broadcast %46 : vector<8x1xf32> to vector<8x128xf32>
    %48 = arith.mulf %43, %47 : vector<8x128xf32>
    %49 = vector.shape_cast %48 : vector<8x128xf32> to vector<8x1x128xf32>
    %50 = arith.truncf %49 : vector<8x1x128xf32> to vector<8x1x128xbf16>
    %c0_20 = arith.constant 0 : index
    %c0_21 = arith.constant 0 : index
    %c0_22 = arith.constant 0 : index
    %51 = vector.load %arg2[%c0_20, %c0_21, %c0_22] : memref<8x128x128xbf16, #tpu.memory_space<vmem>>, vector<8x128x128xbf16>
    "tpu.trace_start"() <{level = 10 : i32, message = "bqp,bpe->bqe"}> : () -> ()
    %cst_23 = arith.constant dense<0.000000e+00> : vector<8x1x128xf32>
    %52 = tpu.matmul %50, %51, %cst_23 {dimension_numbers = #tpu.dot_dimension_numbers<[2], [1], [1], [2], [0, 0, 0, 1, 1, 2], [0], [0]>} : vector<8x1x128xbf16>, vector<8x128x128xbf16>, vector<8x1x128xf32> -> vector<8x1x128xf32>
    "tpu.trace_stop"() : () -> ()
    %53 = vector.shape_cast %52 : vector<8x1x128xf32> to vector<8x128xf32>
    %54 = arith.mulf %17, %53 : vector<8x128xf32>
    %55 = arith.truncf %54 : vector<8x128xf32> to vector<8x128xbf16>
    %c0_24 = arith.constant 0 : index
    %c0_25 = arith.constant 0 : index
    %56 = vector.load %arg10[%c0_24, %c0_25] : memref<128x512xbf16, #tpu.memory_space<vmem>>, vector<128x512xbf16>
    %cst_26 = arith.constant dense<0.000000e+00> : vector<8x512xf32>
    %57 = tpu.matmul %55, %56, %cst_26 {dimension_numbers = #tpu.dot_dimension_numbers<[1], [0], [0], [1], [0, 0, 1, 1], [], []>} : vector<8x128xbf16>, vector<128x512xbf16>, vector<8x512xf32> -> vector<8x512xf32>
    %c0_27 = arith.constant 0 : index
    %c0_28 = arith.constant 0 : index
    %c0_29 = arith.constant 0 : index
    %58 = vector.load %arg4[%c0_27, %c0_28, %c0_29] : memref<1x8x512xbf16, #tpu.memory_space<vmem>>, vector<1x8x512xbf16>
    %59 = vector.shape_cast %58 : vector<1x8x512xbf16> to vector<8x512xbf16>
    %60 = arith.extf %59 : vector<8x512xbf16> to vector<8x512xf32>
    %61 = arith.addf %57, %60 : vector<8x512xf32>
    %62 = arith.addf %61, %18 : vector<8x512xf32>
    %63 = vector.extract_strided_slice %62 {offsets = [0, 0], sizes = [8, 128], strides = [1, 1]} : vector<8x512xf32> to vector<8x128xf32>
    %64 = arith.negf %63 : vector<8x128xf32>
    %65 = math.exp %64 : vector<8x128xf32>
    %cst_30 = arith.constant 1.000000e+00 : f32
    %66 = vector.broadcast %cst_30 : f32 to vector<8x128xf32>
    %67 = arith.addf %66, %65 : vector<8x128xf32>
    %68 = arith.divf %66, %67 : vector<8x128xf32>
    %69 = vector.extract_strided_slice %62 {offsets = [0, 128], sizes = [8, 128], strides = [1, 1]} : vector<8x512xf32> to vector<8x128xf32>
    %70 = arith.negf %69 : vector<8x128xf32>
    %71 = math.exp %70 : vector<8x128xf32>
    %cst_31 = arith.constant 1.000000e+00 : f32
    %72 = vector.broadcast %cst_31 : f32 to vector<8x128xf32>
    %73 = arith.addf %72, %71 : vector<8x128xf32>
    %74 = arith.divf %72, %73 : vector<8x128xf32>
    %75 = vector.extract_strided_slice %62 {offsets = [0, 256], sizes = [8, 128], strides = [1, 1]} : vector<8x512xf32> to vector<8x128xf32>
    %76 = math.tanh %75 : vector<8x128xf32>
    %77 = vector.extract_strided_slice %62 {offsets = [0, 384], sizes = [8, 128], strides = [1, 1]} : vector<8x512xf32> to vector<8x128xf32>
    %78 = arith.negf %77 : vector<8x128xf32>
    %79 = math.exp %78 : vector<8x128xf32>
    %cst_32 = arith.constant 1.000000e+00 : f32
    %80 = vector.broadcast %cst_32 : f32 to vector<8x128xf32>
    %81 = arith.addf %80, %79 : vector<8x128xf32>
    %82 = arith.divf %80, %81 : vector<8x128xf32>
    %83 = arith.mulf %74, %4 : vector<8x128xf32>
    %84 = arith.mulf %68, %76 : vector<8x128xf32>
    %85 = arith.addf %83, %84 : vector<8x128xf32>
    %86 = math.tanh %85 : vector<8x128xf32>
    %87 = arith.mulf %82, %86 : vector<8x128xf32>
    %c0_33 = arith.constant 0 : index
    %c0_34 = arith.constant 0 : index
    %88 = vector.load %arg13[%c0_33, %c0_34] : memref<8x128xf32, #tpu.memory_space<vmem>>, vector<8x128xf32>
    tpu.vector_store %arg13[%c0_33, %c0_34], %87 {strides = array<i32>} : memref<8x128xf32, #tpu.memory_space<vmem>>, vector<8x128xf32>,
    %c0_35 = arith.constant 0 : index
    %c0_36 = arith.constant 0 : index
    %89 = vector.load %arg14[%c0_35, %c0_36] : memref<8x128xf32, #tpu.memory_space<vmem>>, vector<8x128xf32>
    tpu.vector_store %arg14[%c0_35, %c0_36], %85 {strides = array<i32>} : memref<8x128xf32, #tpu.memory_space<vmem>>, vector<8x128xf32>,
    %c0_37 = arith.constant 0 : index
    %c0_38 = arith.constant 0 : index
    %c0_39 = arith.constant 0 : index
    %90 = vector.load %arg11[%c0_37, %c0_38, %c0_39] : memref<1x8x128xf32, #tpu.memory_space<vmem>>, vector<1x8x128xf32>
    %91 = vector.shape_cast %90 : vector<1x8x128xf32> to vector<8x128xf32>
    %92 = vector.shape_cast %87 : vector<8x128xf32> to vector<1x8x128xf32>
    tpu.vector_store %arg11[%c0_37, %c0_38, %c0_39], %92 {strides = array<i32>} : memref<1x8x128xf32, #tpu.memory_space<vmem>>, vector<1x8x128xf32>,
    %c0_40 = arith.constant 0 : index
    %c0_41 = arith.constant 0 : index
    %c0_42 = arith.constant 0 : index
    %93 = vector.load %arg12[%c0_40, %c0_41, %c0_42] : memref<1x8x128xf32, #tpu.memory_space<vmem>>, vector<1x8x128xf32>
    %94 = vector.shape_cast %93 : vector<1x8x128xf32> to vector<8x128xf32>
    %95 = vector.shape_cast %48 : vector<8x128xf32> to vector<1x8x128xf32>
    tpu.vector_store %arg12[%c0_40, %c0_41, %c0_42], %95 {strides = array<i32>} : memref<1x8x128xf32, #tpu.memory_space<vmem>>, vector<1x8x128xf32>,
    return
  }
  func.func @transform_0(%arg0: i32, %arg1: i32) -> (i32, i32, i32) {
    %c0_i32 = arith.constant 0 : i32
    %c0_i32_0 = arith.constant 0 : i32
    %c0_i32_1 = arith.constant 0 : i32
    return %arg0, %c0_i32, %c0_i32_0 : i32, i32, i32
  }
  func.func @transform_1(%arg0: i32, %arg1: i32) -> (i32, i32, i32) {
    %c0_i32 = arith.constant 0 : i32
    %c0_i32_0 = arith.constant 0 : i32
    %c0_i32_1 = arith.constant 0 : i32
    return %arg0, %c0_i32, %c0_i32_0 : i32, i32, i32
  }
  func.func @transform_2(%arg0: i32, %arg1: i32) -> (i32, i32, i32) {
    %c0_i32 = arith.constant 0 : i32
    %c0_i32_0 = arith.constant 0 : i32
    return %arg1, %arg0, %c0_i32 : i32, i32, i32
  }
  func.func @transform_3(%arg0: i32, %arg1: i32) -> (i32, i32) {
    %c0_i32 = arith.constant 0 : i32
    %c0_i32_0 = arith.constant 0 : i32
    return %arg0, %c0_i32 : i32, i32
  }
  func.func @transform_4(%arg0: i32, %arg1: i32) -> (i32, i32) {
    %c0_i32 = arith.constant 0 : i32
    %c0_i32_0 = arith.constant 0 : i32
    return %arg0, %c0_i32 : i32, i32
  }
  func.func @transform_5(%arg0: i32, %arg1: i32) -> (i32, i32) {
    %c0_i32 = arith.constant 0 : i32
    %c0_i32_0 = arith.constant 0 : i32
    %c0_i32_1 = arith.constant 0 : i32
    return %c0_i32, %c0_i32_0 : i32, i32
  }
  func.func @transform_6(%arg0: i32, %arg1: i32) -> (i32, i32) {
    %c0_i32 = arith.constant 0 : i32
    %c0_i32_0 = arith.constant 0 : i32
    %c0_i32_1 = arith.constant 0 : i32
    return %c0_i32, %c0_i32_0 : i32, i32
  }
  func.func @transform_7(%arg0: i32, %arg1: i32) -> (i32, i32) {
    %c0_i32 = arith.constant 0 : i32
    %c0_i32_0 = arith.constant 0 : i32
    %c0_i32_1 = arith.constant 0 : i32
    return %c0_i32, %c0_i32_0 : i32, i32
  }
  func.func @transform_8(%arg0: i32, %arg1: i32) -> (i32, i32) {
    %c0_i32 = arith.constant 0 : i32
    %c0_i32_0 = arith.constant 0 : i32
    %c0_i32_1 = arith.constant 0 : i32
    return %c0_i32, %c0_i32_0 : i32, i32
  }
  func.func @transform_9(%arg0: i32, %arg1: i32) -> (i32, i32, i32) {
    %c0_i32 = arith.constant 0 : i32
    %c0_i32_0 = arith.constant 0 : i32
    return %arg1, %arg0, %c0_i32 : i32, i32, i32
  }
  func.func @transform_10(%arg0: i32, %arg1: i32) -> (i32, i32, i32) {
    %c0_i32 = arith.constant 0 : i32
    %c0_i32_0 = arith.constant 0 : i32
    return %arg1, %arg0, %c0_i32 : i32, i32, i32
  }
}

</mosaic_0001>

<bundles_post_ra>
// kernel: tpu_custom_call.1
= control target key start
LH: loop header
LB: loop body
LE: loop exit
PB: predicated region body
PF: predicated region fallthrough
CT: control target
= control target key end

     0   :  { %s16575_s0 = inlined_call_operand.hbm [shape: bf16[8,128,128], index: 0, kind: input, shape index: {}]   ;;  %s16576_s1 = inlined_call_operand.hbm [shape: bf16[8,128,128], index: 1, kind: input, shape index: {}]   ;;  %s16577_s2 = inlined_call_operand.hbm [shape: bf16[7,8,512], index: 2, kind: input, shape index: {}]   ;;  %s16578_s3 = inlined_call_operand.hbm [shape: f32[8,128], index: 3, kind: input, shape index: {}]   ;;  %s16579_s4 = inlined_call_operand.hbm [shape: f32[8,128], index: 4, kind: input, shape index: {}]   ;;  %s16580_s5 = inlined_call_operand.hbm [shape: f32[1,128], index: 5, kind: input, shape index: {}]   ;;  %s16581_s6 = inlined_call_operand.hbm [shape: bf16[128,768], index: 6, kind: input, shape index: {}]   ;;  %s16582_s7 = inlined_call_operand.hbm [shape: f32[1,768], index: 7, kind: input, shape index: {}]   ;;  %s16583_s8 = inlined_call_operand.hbm [shape: bf16[128,512], index: 8, kind: input, shape index: {}]   ;;  %s16584_s9 = inlined_call_operand.hbm [shape: f32[7,8,128], index: 9, kind: output, shape index: {0}]   ;;  %s16585_s10 = inlined_call_operand.hbm [shape: f32[7,8,128], index: 10, kind: output, shape index: {1}]  }
   0x1   :  { %17021 = sst [smem:[#allocation231_spill]] %s16575_s0 }
   0x2   :  { %17022 = sst [smem:[#allocation232_spill]] %s16576_s1 }
   0x3   :  { %17023 = sst [smem:[#allocation233_spill]] %s16577_s2 }
   0x4   :  { %17024 = sst [smem:[#allocation234_spill]] %s16584_s9 }
   0x5   :  { %17025 = sst [smem:[#allocation235_spill]] %s16585_s10 }
   0x6   :  { %16 = vsyncpa [#allocation5], 0 }
   0x7   :  { %17 = vsyncpa [#allocation8], 0 }
   0x8   :  { %18 = vsyncpa [#allocation12], 0 }
   0x9   :  { %19 = vsyncpa [#allocation15], 0 }
   0xa   :  { %20 = vsyncpa [#allocation18], 0 }
   0xb   :  { %21 = vsyncpa [#allocation6], 0 }
   0xc   :  { %23 = vsyncpa [#allocation6 + $0x1], 0 }
   0xd   :  { %24 = vsyncpa [#allocation21], 0 }
   0xe   :  { %26 = vsyncpa [#allocation21 + $0x1], 0  ;;  %s10842_s13 = smov 0   ;;  %s10844_s14 = smov 0  }
   0xf   :  { %s10846_s15 = smov 0   ;;  %s10848_s16 = smov 0  }
  0x10   :  { %s10850_s17 = smov 0   ;;  %s10852_s18 = smov 0  }
  0x11 LB: > { %17026 = sst [smem:[#allocation31_spill]] %s10755_s16  ;;  %s10873_s19 = sadd.s32 4294967295, %s10763_s18   ;;  %s10763_s18 = sphi %s10852_s18, %s32_s18   ;;  %s10759_s17 = sphi %s10850_s17, %s18352_s17   ;;  %s10755_s16 = sphi %s10848_s16, %s18351_s16   ;;  %s10751_s15 = sphi %s10846_s15, %s18350_s15   ;;  %s10747_s14 = sphi %s10844_s14, %s18349_s14   ;;  %s10743_s13 = sphi %s10842_s13, %s18348_s13  }
  0x12   : > { %p8997_p0 = scmp.ge.s32.totalorder %s10763_s18, 1  ;;  %p16590_p1 = scmp.eq.s32.totalorder %s10873_s19, 0 }
  0x13   : > { %p321_p2 = scmp.lt.s32.totalorder %s10763_s18, 8  ;;  %s10765_s21 = smov [#allocation4]  }
  0x14   : > { %s337_s22 = sshll.u32 %s10765_s21, 4  ;;  %s10766_s24 = smov [#allocation7]   ;;  %s10882_s22 = int_to_ptr.vmem [resolvable:$true] %s337_s22 }
  0x15   : > { %p10878_p3 = pnand %p8997_p0, %p321_p2  ;;  %s354_s25 = sshll.u32 %s10766_s24, 4  ;;  %s10892_s25 = int_to_ptr.vmem [resolvable:$true] %s354_s25 }
  0x16   : > { %s10767_s26 = smov [#allocation11]   ;;  %s17030_s0 = sld [smem:[#allocation231_spill]] }
  0x17   : > { %s17027_s20 = scalar_select %p10878_p3, 1, 0 }
  0x18   : > { %p9784_p4 = pneg %p10878_p3  ;;  %s10894_s27 = sshll.u32 %s10767_s26, 4  ;;  %s384_s27 = int_to_ptr.vmem [resolvable:$true] %s10894_s27 }
  0x19   : > { %17028 = sst [smem:[#allocation32_spill]] %s17027_s20 }
  0x1a   : > { %p10888_p5 = pnand %p9784_p4, %p16590_p1 }
  0x1c   : > { %s10371_s30 = scalar_lea.hbm %s17030_s0, 8192  ;;  %p10904_p7 = pneg %p10888_p5 }
  0x1d   : > { %p10372_p6 = scmp.ne.s32.totalorder %s17030_s0, %s10371_s30  ;;  %p10378_p10 = scmp.lt.u32.totalorder %s10371_s30, %s17030_s0 }
  0x1f   : > { %p10374_p8 = pnand %p10904_p7, %p10372_p6 }
  0x21   : > { %p10375_p9 = pneg %p10374_p8 }
  0x23   : > { %p10380_p11 = pnand %p10378_p10, %p10375_p9 }
  0x25   : > { %10383 = shalt.err (!%p10380_p11)
}
  0x26   : > { %s10384_s28 = scalar_lea.vmem %s10882_s22, 8192  ;;  %p10392_p2 = scmp.lt.s32.totalorder %s10882_s22, %s10882_s22 }
  0x27   : > { %p10385_p12 = scmp.ne.s32.totalorder %s10882_s22, %s10384_s28  ;;  %p10393_p4 = scmp.lt.s32.totalorder %s10384_s28, %s10384_s28 }
  0x29   : > { %p10387_p13 = pnand %p10385_p12, %p10904_p7  ;;  %p10394_p6 = por %p10393_p4, %p10392_p2 }
  0x2b   : > { %p10388_p0 = pneg %p10387_p13 }
  0x2d   : > { %p10395_p8 = pnand %p10394_p6, %p10388_p0 }
  0x2f   : > { %10398 = shalt.err (!%p10395_p8)
}
  0x30   : > { %s10768_s29 = smov 64   ;;  %s10769_s30 = smov 4  }
  0x31   : > { %9787 = dma.hbm_to_vmem [thread:$0]  (!%p10888_p5), %s17030_s0, 8192, %s10882_s22, [#allocation5], %s10768_s29, %s10768_s29, %s10769_s30  }
  0x32   : > { %s17032_s1 = sld [smem:[#allocation232_spill]] }
  0x38   : > { %s10399_s9 = scalar_lea.hbm %s17032_s1, 8192 }
  0x39   : > { %p10400_p9 = scmp.ne.s32.totalorder %s17032_s1, %s10399_s9  ;;  %p10406_p12 = scmp.lt.u32.totalorder %s10399_s9, %s17032_s1 }
  0x3b   : > { %p10402_p10 = pnand %p10400_p9, %p10904_p7 }
  0x3d   : > { %p10403_p11 = pneg %p10402_p10 }
  0x3f   : > { %p10408_p13 = pnand %p10406_p12, %p10403_p11 }
  0x41   : > { %10411 = shalt.err (!%p10408_p13)
}
  0x42   : > { %s10412_s22 = scalar_lea.vmem %s10892_s25, 8192  ;;  %p10420_p6 = scmp.lt.s32.totalorder %s10892_s25, %s10892_s25 }
  0x43   : > { %p10413_p0 = scmp.ne.s32.totalorder %s10892_s25, %s10412_s22  ;;  %p10421_p8 = scmp.lt.s32.totalorder %s10412_s22, %s10412_s22 }
  0x45   : > { %p10415_p2 = pnand %p10413_p0, %p10904_p7  ;;  %p10422_p9 = por %p10421_p8, %p10420_p6 }
  0x47   : > { %p10416_p4 = pneg %p10415_p2 }
  0x49   : > { %p10423_p10 = pnand %p10422_p9, %p10416_p4 }
  0x4b   : > { %10426 = shalt.err (!%p10423_p10)
}
  0x4c   : > { %9790 = dma.hbm_to_vmem [thread:$0]  (!%p10888_p5), %s17032_s1, 8192, %s10892_s25, [#allocation8], %s10768_s29, %s10768_s29, %s10769_s30  }
  0x4d   : > { %s10427_s11 = scalar_lea.hbm %s16579_s4, 128 }
  0x4e   : > { %p10428_p11 = scmp.ne.s32.totalorder %s16579_s4, %s10427_s11  ;;  %p10434_p0 = scmp.lt.u32.totalorder %s10427_s11, %s16579_s4 }
  0x50   : > { %p10430_p12 = pnand %p10428_p11, %p10904_p7 }
  0x52   : > { %p10431_p13 = pneg %p10430_p12 }
  0x54   : > { %p10436_p2 = pnand %p10434_p0, %p10431_p13 }
  0x56   : > { %10439 = shalt.err (!%p10436_p2)
}
  0x57   : > { %s10440_s22 = scalar_lea.vmem %s384_s27, 128  ;;  %p10448_p9 = scmp.lt.s32.totalorder %s384_s27, %s384_s27 }
  0x58   : > { %p10441_p4 = scmp.ne.s32.totalorder %s384_s27, %s10440_s22  ;;  %p10449_p10 = scmp.lt.s32.totalorder %s10440_s22, %s10440_s22 }
  0x5a   : > { %p10443_p6 = pnand %p10441_p4, %p10904_p7  ;;  %p10450_p1 = por %p10449_p10, %p10448_p9 }
  0x5c   : > { %p10444_p8 = pneg %p10443_p6 }
  0x5e   : > { %p10451_p3 = pnand %p10450_p1, %p10444_p8 }
  0x60   : > { %10454 = shalt.err (!%p10451_p3)
}
  0x61   : > { %9796 = dma.hbm_to_vmem [thread:$0]  (!%p10888_p5), %s16579_s4, 128, %s384_s27, [#allocation12]  }
  0x62   : > { %s10770_s30 = smov [#allocation14]   ;;  %s10455_s20 = scalar_lea.hbm %s16581_s6, 6144 }
  0x63   : > { %s404_s9 = sshll.u32 %s10770_s30, 4  ;;  %p10456_p11 = scmp.ne.s32.totalorder %s16581_s6, %s10455_s20  ;;  %s405_s9 = int_to_ptr.vmem [resolvable:$true] %s404_s9 }
  0x64   : > { %p10462_p12 = scmp.lt.u32.totalorder %s10455_s20, %s16581_s6 }
  0x65   : > { %p10458_p1 = pnand %p10456_p11, %p10904_p7 }
  0x67   : > { %p10459_p3 = pneg %p10458_p1 }
  0x69   : > { %p10464_p13 = pnand %p10462_p12, %p10459_p3 }
  0x6b   : > { %10467 = shalt.err (!%p10464_p13)
}
  0x6c   : > { %s10468_s27 = scalar_lea.vmem %s405_s9, 6144  ;;  %p10476_p6 = scmp.lt.s32.totalorder %s405_s9, %s405_s9 }
  0x6d   : > { %p10469_p0 = scmp.ne.s32.totalorder %s405_s9, %s10468_s27  ;;  %p10477_p8 = scmp.lt.s32.totalorder %s10468_s27, %s10468_s27 }
  0x6f   : > { %p10471_p2 = pnand %p10469_p0, %p10904_p7  ;;  %p10478_p9 = por %p10477_p8, %p10476_p6 }
  0x71   : > { %p10472_p4 = pneg %p10471_p2 }
  0x73   : > { %p10479_p10 = pnand %p10478_p9, %p10472_p4 }
  0x75   : > { %10482 = shalt.err (!%p10479_p10)
}
  0x76   : > { %s10771_s28 = smov 384   ;;  %s10772_s22 = smov 24  }
  0x77   : > { %9802 = dma.hbm_to_vmem [thread:$0]  (!%p10888_p5), %s16581_s6, 6144, %s405_s9, [#allocation15], %s10771_s28, %s10771_s28, %s10772_s22  }
  0x78   : > { %s10773_s30 = smov [#allocation10]   ;;  %s10774_s16 = smov [#allocation13]  }
  0x79   : > { %s370_s10 = sshll.u32 %s10773_s30, 4  ;;  %s394_s20 = sshll.u32 %s10774_s16, 4  ;;  %s371_s10 = int_to_ptr.vmem [resolvable:$true] %s370_s10  ;;  %s10985_s20 = int_to_ptr.vmem [resolvable:$true] %s394_s20 }
  0x7a   : > { %s10483_s24 = scalar_lea.hbm %s16578_s3, 128 }
  0x7b   : > { %p10484_p11 = scmp.ne.s32.totalorder %s16578_s3, %s10483_s24  ;;  %p10490_p12 = scmp.lt.u32.totalorder %s10483_s24, %s16578_s3 }
  0x7d   : > { %p10486_p1 = pnand %p10484_p11, %p10904_p7 }
  0x7f   : > { %p10487_p3 = pneg %p10486_p1 }
  0x81   : > { %p10492_p13 = pnand %p10490_p12, %p10487_p3 }
  0x83   : > { %10495 = shalt.err (!%p10492_p13)
}
  0x84   : > { %s10496_s28 = scalar_lea.vmem %s371_s10, 128  ;;  %p10504_p6 = scmp.lt.s32.totalorder %s371_s10, %s371_s10 }
  0x85   : > { %p10497_p0 = scmp.ne.s32.totalorder %s371_s10, %s10496_s28  ;;  %p10505_p8 = scmp.lt.s32.totalorder %s10496_s28, %s10496_s28 }
  0x87   : > { %p10499_p2 = pnand %p10497_p0, %p10904_p7  ;;  %p10506_p9 = por %p10505_p8, %p10504_p6 }
  0x89   : > { %p10500_p4 = pneg %p10499_p2 }
  0x8b   : > { %p10507_p10 = pnand %p10506_p9, %p10500_p4 }
  0x8d   : > { %10510 = shalt.err (!%p10507_p10)
}
  0x8e   : > { %9793 = dma.hbm_to_vmem [thread:$0]  (!%p10888_p5), %s16578_s3, 128, %s371_s10, [#allocation8]  }
  0x8f   : > { %s10511_s11 = scalar_lea.hbm %s16580_s5, 16 }
  0x90   : > { %p10512_p11 = scmp.ne.s32.totalorder %s16580_s5, %s10511_s11  ;;  %p10518_p12 = scmp.lt.u32.totalorder %s10511_s11, %s16580_s5 }
  0x92   : > { %p10514_p1 = pnand %p10512_p11, %p10904_p7 }
  0x94   : > { %p10515_p3 = pneg %p10514_p1 }
  0x96   : > { %p10520_p13 = pnand %p10518_p12, %p10515_p3 }
  0x98   : > { %10523 = shalt.err (!%p10520_p13)
}
  0x99   : > { %s10524_s10 = scalar_lea.vmem %s10985_s20, 16  ;;  %s10531_s25 = scalar_lea.vmem %s10985_s20, 32 }
  0x9a   : > { %p10525_p0 = scmp.ne.s32.totalorder %s10985_s20, %s10524_s10  ;;  %p10532_p6 = scmp.lt.s32.totalorder %s10985_s20, %s10985_s20 }
  0x9b   : > { %p10533_p8 = scmp.lt.s32.totalorder %s10531_s25, %s10524_s10 }
  0x9c   : > { %p10527_p2 = pnand %p10525_p0, %p10904_p7 }
  0x9d   : > { %p10534_p9 = por %p10533_p8, %p10532_p6 }
  0x9e   : > { %p10528_p4 = pneg %p10527_p2 }
  0xa0   : > { %p10535_p10 = pnand %p10534_p9, %p10528_p4 }
  0xa2   : > { %10538 = shalt.err (!%p10535_p10)
}
  0xa3   : > { %9799 = dma.hbm_to_vmem [thread:$0]  (!%p10888_p5), %s16580_s5, 16, %s10985_s20, [#allocation12]  }
  0xa4   : > { %s10775_s22 = smov [#allocation16]   ;;  %s10776_s30 = smov [#allocation17]  }
  0xa5   : > { %s418_s29 = sshll.u32 %s10775_s22, 4  ;;  %s428_s16 = sshll.u32 %s10776_s30, 4  ;;  %s419_s29 = int_to_ptr.vmem [resolvable:$true] %s418_s29  ;;  %s11029_s16 = int_to_ptr.vmem [resolvable:$true] %s428_s16 }
  0xa6   : > { %s10539_s24 = scalar_lea.hbm %s16582_s7, 96 }
  0xa7   : > { %p10540_p11 = scmp.ne.s32.totalorder %s16582_s7, %s10539_s24  ;;  %p10546_p12 = scmp.lt.u32.totalorder %s10539_s24, %s16582_s7 }
  0xa9   : > { %p10542_p1 = pnand %p10540_p11, %p10904_p7 }
  0xab   : > { %p10543_p3 = pneg %p10542_p1 }
  0xad   : > { %p10548_p13 = pnand %p10546_p12, %p10543_p3 }
  0xaf   : > { %10551 = shalt.err (!%p10548_p13)
}
  0xb0   : > { %s10552_s25 = scalar_lea.vmem %s419_s29, 96  ;;  %p10560_p6 = scmp.lt.s32.totalorder %s419_s29, %s419_s29 }
  0xb1   : > { %p10553_p0 = scmp.ne.s32.totalorder %s419_s29, %s10552_s25  ;;  %p10561_p8 = scmp.lt.s32.totalorder %s10552_s25, %s10552_s25 }
  0xb3   : > { %p10555_p2 = pnand %p10553_p0, %p10904_p7  ;;  %p10562_p9 = por %p10561_p8, %p10560_p6 }
  0xb5   : > { %p10556_p4 = pneg %p10555_p2 }
  0xb7   : > { %p10563_p10 = pnand %p10562_p9, %p10556_p4 }
  0xb9   : > { %10566 = shalt.err (!%p10563_p10)
}
  0xba   : > { %9805 = dma.hbm_to_vmem [thread:$0]  (!%p10888_p5), %s16582_s7, 96, %s419_s29, [#allocation15]  }
  0xbb   : > { %s10567_s11 = scalar_lea.hbm %s16583_s8, 4096 }
  0xbc   : > { %p10568_p11 = scmp.ne.s32.totalorder %s16583_s8, %s10567_s11  ;;  %p10574_p12 = scmp.lt.u32.totalorder %s10567_s11, %s16583_s8 }
  0xbe   : > { %p10570_p1 = pnand %p10568_p11, %p10904_p7 }
  0xc0   : > { %p10571_p3 = pneg %p10570_p1 }
  0xc2   : > { %p10576_p13 = pnand %p10574_p12, %p10571_p3 }
  0xc4   : > { %10579 = shalt.err (!%p10576_p13)
}
  0xc5   : > { %s10580_s29 = scalar_lea.vmem %s11029_s16, 4096  ;;  %p10588_p6 = scmp.lt.s32.totalorder %s11029_s16, %s11029_s16 }
  0xc6   : > { %p10581_p0 = scmp.ne.s32.totalorder %s11029_s16, %s10580_s29  ;;  %p10589_p8 = scmp.lt.s32.totalorder %s10580_s29, %s10580_s29 }
  0xc8   : > { %p10583_p2 = pnand %p10581_p0, %p10904_p7  ;;  %p10590_p9 = por %p10589_p8, %p10588_p6 }
  0xca   : > { %p10584_p4 = pneg %p10583_p2 }
  0xcc   : > { %p10591_p10 = pnand %p10590_p9, %p10584_p4 }
  0xce   : > { %10594 = shalt.err (!%p10591_p10)
}
  0xcf   : > { %s10777_s10 = smov 256   ;;  %s10778_s21 = smov 16  }
  0xd0   : > { %9808 = dma.hbm_to_vmem [thread:$0]  (!%p10888_p5), %s16583_s8, 4096, %s11029_s16, [#allocation18], %s10777_s10, %s10777_s10, %s10778_s21  }
  0xd1   : > { %s8996_s9 = sadd.s32 4294967294, %s10763_s18   ;;  %s41_s28 = sadd.s32 1, %s10759_s17 }
  0xd2   : > { %p42_p7 = scmp.ge.s32.totalorder %s41_s28, 7  ;;  %s105_s22 = sadd.s32 1, %s10751_s15 }
  0xd3   : > { %p112_p11 = scmp.ne.s32.totalorder %s10751_s15, %s10747_s14  ;;  %p113_p1 = scmp.eq.s32.totalorder %s10763_s18, 0 }
  0xd4   : > { %s18354_s28 = smov (%p42_p7, %s41_s28), 0  ;;  %p118_p12 = scmp.ne.s32.totalorder %s10747_s14, %s10743_s13 }
  0xd5   : > { %p11080_p3 = por %p113_p1, %p112_p11  ;;  %s100_s16 = ssub.s32 %s10759_s17, %s18354_s28 }
  0xd6   : > { %p280_p5 = scmp.eq.s32.totalorder %s10873_s19, 6  ;;  %p103_p13 = scmp.eq.s32.totalorder %s100_s16, 0 }
  0xd7   : > { %p17034_p0 = scmp.eq.s32.totalorder %s10873_s19, 0  ;;  %p286_p6 = scmp.eq.s32.totalorder %s8996_s9, 6 }
  0xd8   : > { %p11095_p4 = por %p280_p5, %p112_p11  ;;  %p9828_p9 = scmp.lt.s32.totalorder %s10763_s18, 7 }
  0xd9   : > { %p11091_p2 = por %p17034_p0, %p118_p12  ;;  %p11102_p8 = por %p286_p6, %p118_p12 }
  0xda   : > { %s17036_s11 = scalar_select %p11095_p4, 1, 0 }
  0xdb   : > { %s11100_s12 = scalar_select %p103_p13, %s10751_s15, %s105_s22  }
  0xdc   : > { %s17037_s24 = scalar_select %p11102_p8, 1, 0 }
  0xdd   : > { %s442_s26 = sand.u32 1, %s10763_s18   ;;  %s444_s27 = sand.u32 1, %s10751_s15  }
  0xde   : > { %s9007_s29 = sshll.u32 %s444_s27, 4  ;;  %s9178_s10 = sshll.u32 %s10759_s17, 8 }
  0xdf   : > { %s17038_s2 = sld [smem:[#allocation233_spill]]  ;;  %s446_s9 = scalar_lea.vmem [#allocation9], %s9007_s29 }
  0xe0   : > { %s456_s22 = sshll.u32 %s446_s9, 4  ;;  %p11119_p10 = pnand %p9828_p9, %p11080_p3  ;;  %s11115_s22 = int_to_ptr.vmem [resolvable:$true] %s456_s22 }
  0xe1   : > { %s443_s27 = scalar_lea.sflag [#allocation5], %s442_s26 }
  0xe2   : > { %p10597_p11 = pneg %p11119_p10 }
  0xe5   : > { %s11113_s25 = scalar_lea.hbm %s17038_s2, %s9178_s10  ;;  %s10600_s21 = scalar_lea.hbm %s17038_s2, 1792 }
  0xe6   : > { %s10595_s0 = scalar_lea.hbm %s11113_s25, 256  ;;  %p10601_p3 = scmp.lt.u32.totalorder %s11113_s25, %s17038_s2 }
  0xe7   : > { %p10596_p7 = scmp.ne.s32.totalorder %s11113_s25, %s10595_s0  ;;  %p10602_p5 = scmp.lt.u32.totalorder %s10600_s21, %s10595_s0 }
  0xe8   : > { %p10604_p0 = scmp.lt.u32.totalorder %s10595_s0, %s11113_s25 }
  0xe9   : > { %p10598_p1 = pnand %p10597_p11, %p10596_p7  ;;  %p10603_p13 = por %p10602_p5, %p10601_p3 }
  0xeb   : > { %p10599_p12 = pneg %p10598_p1  ;;  %p10605_p6 = por %p10604_p0, %p10603_p13 }
  0xed   : > { %p10606_p9 = pnand %p10605_p6, %p10599_p12 }
  0xef   : > { %10609 = shalt.err (!%p10606_p9)
}
  0xf0   : > { %s10610_s26 = scalar_lea.vmem %s11115_s22, 256  ;;  %s10779_s9 = smov [#allocation9]  }
  0xf1   : > { %p10611_p7 = scmp.ne.s32.totalorder %s11115_s22, %s10610_s26  ;;  %s10615_s29 = sshll.u32 %s10779_s9, 4  ;;  %s10616_s29 = int_to_ptr.vmem [resolvable:$false] %s10615_s29 }
  0xf2   : > { %s10617_s10 = scalar_lea.vmem %s10616_s29, 512  ;;  %p10618_p4 = scmp.lt.s32.totalorder %s11115_s22, %s10616_s29 }
  0xf3   : > { %p10613_p1 = pnand %p10611_p7, %p10597_p11  ;;  %p10619_p3 = scmp.lt.s32.totalorder %s10617_s10, %s10610_s26 }
  0xf5   : > { %p10614_p8 = pneg %p10613_p1  ;;  %p10620_p5 = por %p10619_p3, %p10618_p4 }
  0xf7   : > { %p10621_p13 = pnand %p10620_p5, %p10614_p8 }
  0xf9   : > { %10624 = shalt.err (!%p10621_p13)
}
  0xfa   : > { %9812 = dma.hbm_to_vmem [thread:$0]  (!%p11119_p10), %s11113_s25, 256, %s11115_s22, %s443_s27  }
  0xfb   : > { %s17040_s0 = sld [smem:[#allocation32_spill]] }
 0x101   : > { %p17041_p12 = scmp.ne.s32.totalorder %s17040_s0, 0 }
 0x103   : > { %465 = sbr.rel (%p17041_p12) target bundleno = 2984 (0xba8), region = 56 }
 0x10a   : > { %p17042_p11 = scmp.eq.s32.totalorder %s10873_s19, 0 }
 0x10c   : > { %10706 = dma.done.wait (%p17042_p11), [#allocation5], 8192   ;;  %p17043_p0 = pmov %p17042_p11 }
 0x10e   : > { %10708 = vsyncadd (%p17043_p0), [#allocation5], 4294959104  ;;  %p17044_p6 = pmov %p17043_p0 }
 0x10f   : > { %p17045_p4 = pmov %p17043_p0 }
 0x110   : > { %10710 = dma.done.wait (%p17044_p6), [#allocation8], 8192  }
 0x111   : > { %10712 = vsyncadd (%p17045_p4), [#allocation8], 4294959104  ;;  %s475_s16 = sand.u32 1, %s10873_s19   ;;  %s11160_s25 = sand.u32 1, %s10747_s14  }
 0x112   : > { %s9013_s22 = sshll.u32 %s11160_s25, 4  ;;  %s476_s27 = scalar_lea.sflag [#allocation5], %s475_s16 }
 0x113   : > { %s11163_s21 = scalar_lea.vmem [#allocation9], %s9013_s22 }
 0x114   : > { %10714 = dma.done.wait (%p11091_p2), %s476_s27, 256  }
 0x115   : > { %10716 = vsyncadd (%p11091_p2), %s476_s27, 4294967040  ;;  %p17046_p8 = pmov %p17043_p0 }
 0x116   : > { %p17047_p10 = pmov %p17043_p0 }
 0x117   : > { %10718 = dma.done.wait (%p17046_p8), [#allocation8], 128  }
 0x118   : > { %10720 = vsyncadd (%p17047_p10), [#allocation8], 4294967168  ;;  %p17048_p9 = pmov %p17043_p0 }
 0x119   : > { %p17049_p7 = pmov %p17043_p0 }
 0x11a   : > { %10722 = dma.done.wait (%p17048_p9), [#allocation12], 144  }
 0x11b   : > { %10724 = vsyncadd (%p17049_p7), [#allocation12], 4294967152  ;;  %p17050_p1 = pmov %p17043_p0 }
 0x11c   : > { %p17051_p3 = pmov %p17043_p0 }
 0x11d   : > { %10726 = dma.done.wait (%p17050_p1), [#allocation15], 6240  }
 0x11e   : > { %10728 = vsyncadd (%p17051_p3), [#allocation15], 4294961056  ;;  %p17052_p2 = pmov %p17043_p0 }
 0x11f   : > { %p17053_p5 = pmov %p17043_p0 }
 0x120   : > { %10730 = dma.done.wait (%p17052_p2), [#allocation18], 4096  }
 0x121   : > { %10732 = vsyncadd (%p17053_p5), [#allocation18], 4294963200  ;;  %s9020_s30 = sshll.u32 %s11160_s25, 3  ;;  %s17054_s26 = sld [smem:[#allocation31_spill]] }
 0x122   : > { %s11186_s23 = scalar_lea.vmem [#allocation19], %s9020_s30  ;;  %s11188_s20 = scalar_lea.vmem [#allocation20], %s9020_s30 }
 0x127   : > { %p9022_p13 = scmp.ne.s32.totalorder %s17054_s26, 0 }
 0x128   : > { %v552_v0 = vld [vmem:[#allocation10] sm:$0xff] (!%p9022_p13)  ;;  %v554_v1 = vld [vmem:[#allocation11] sm:$0xff] (!%p9022_p13) }
 0x129   : > { %551 = sbr.rel (%p9022_p13) target bundleno = 304 (0x130), region = 96  ;;  %553 = vst [vmem:[#allocation2] sm:$0xff] (!%p9022_p13), %v552_v0  ;;  %555 = vst [vmem:[#allocation3] sm:$0xff] (!%p9022_p13), %v554_v1 }
 0x130 PF: > { %v9907_v2 = vld [vmem:[#allocation14 + $0x4] ss:$24 sps:$4 sm:$0xff]   ;;  %v9909_v3 = vld [vmem:[#allocation14] ss:$24 sps:$4 sm:$0xff]   ;;  %v16593_v4 = vmov 0   ;;  %v16595_v21 = vlaneseq  ;;  %v9180_v38 = vld [vmem:[#allocation7] sm:$0xff]  }
 0x131   : > { %911 = vmatprep.mubr.bf16.mxu0 %v16593_v4  ;;  %9906 = vset.pattern.permute.xlu1 %v16593_v4  ;;  %v9910_v5 = vld [vmem:[#allocation14 + $0x34] ss:$24 sps:$4 sm:$0xff]   ;;  %v9912_v6 = vld [vmem:[#allocation14 + $0x30] ss:$24 sps:$4 sm:$0xff]   ;;  %v9913_v7 = vld [vmem:[#allocation14 + $0x64] ss:$24 sps:$4 sm:$0xff]   ;;  %v9181_v42 = vunpack.c.l.bf16 %v9180_v38  ;;  %v9182_v48 = vunpack.c.h.bf16 %v9180_v38 }
 0x132   : > { %879 = vmatprep.subr.bf16.mxu0 %v9907_v2  ;;  %9905 = vset.pattern.permute.xlu0 %v16593_v4  ;;  %v9915_v8 = vld [vmem:[#allocation14 + $0x60] ss:$24 sps:$4 sm:$0xff]   ;;  %v9916_v9 = vld [vmem:[#allocation14 + $0x94] ss:$24 sps:$4 sm:$0xff]   ;;  %v9918_v10 = vld [vmem:[#allocation14 + $0x90] ss:$24 sps:$4 sm:$0xff]  }
 0x133   : > { %880 = vmatpush1.bf16.msra.mxu0 %v9909_v3  ;;  %952 = vmatprep.mubr.bf16.mxu1 %v16593_v4  ;;  %v9919_v11 = vld [vmem:[#allocation14 + $0xc4] ss:$24 sps:$4 sm:$0xff]   ;;  %v9921_v12 = vld [vmem:[#allocation14 + $0xc0] ss:$24 sps:$4 sm:$0xff]   ;;  %v9922_v13 = vld [vmem:[#allocation14 + $0xf4] ss:$24 sps:$4 sm:$0xff]  }
 0x134   : > { %881 = vmatprep.subr.bf16.mxu0 %v9910_v5  ;;  %v9924_v14 = vld [vmem:[#allocation14 + $0xf0] ss:$24 sps:$4 sm:$0xff]   ;;  %v9925_v15 = vld [vmem:[#allocation14 + $0x124] ss:$24 sps:$4 sm:$0xff]   ;;  %v9927_v16 = vld [vmem:[#allocation14 + $0x120] ss:$24 sps:$4 sm:$0xff]  }
 0x135   : > { %v9928_v17 = vld [vmem:[#allocation14 + $0x154] ss:$24 sps:$4 sm:$0xff]   ;;  %v9930_v18 = vld [vmem:[#allocation14 + $0x150] ss:$24 sps:$4 sm:$0xff]   ;;  %v556_v19 = vld [vmem:[#allocation2] sm:$0xff]  ;;  %v11200_v22 = vshrl.u32 %v16595_v21, 7 }
 0x136   : > { %v11195_v20 = vpack.c.bf16 %v556_v19, %v556_v19  ;;  %v10781_v23 = vmov 1966171168   ;;  %v607_v26 = vld [vmem:[#allocation16] sm:$0x3f]  ;;  %v9435_v37 = vld [vmem:[#allocation7 + $0x8] sm:$0xff]   ;;  %v9437_v54 = vld [vmem:[#allocation7 + $0x18] sm:$0xff]  }
 0x137   : > { %882 = vmatpush1.bf16.msra.mxu0 %v9912_v6  ;;  %17056 = vst [vmem:[#allocation34_spill] sm:$0xff] %v11200_v22  ;;  %v1139_v24 = vunpack.c.l.s4 %v10781_v23  ;;  %v11203_v25 = vsub.s32 0, %v11200_v22  ;;  %v9185_v41 = vunpack.c.l.bf16 %v9435_v37  ;;  %v9436_v43 = vld [vmem:[#allocation7 + $0x10] sm:$0xff]   ;;  %v9186_v47 = vunpack.c.h.bf16 %v9435_v37  ;;  %v9438_v5 = vld [vmem:[#allocation7 + $0x20] sm:$0xff]   ;;  %s18335_s19 = sld [smem:[#allocation31_spill]]  ;;  %s18339_s0 = sld [smem:[#allocation235_spill]] }
 0x138   : > { %883 = vmatprep.subr.bf16.mxu0 %v9913_v7  ;;  %17055 = vst [vmem:[#allocation33_spill] sm:$0xff] %v11195_v20  ;;  %v9190_v50 = vunpack.c.h.bf16 %v9436_v43  ;;  %v9189_v51 = vunpack.c.l.bf16 %v9436_v43  ;;  %v11231_v55 = vld [vmem:[#allocation13] ss:$0 sm:$0xff]  ;;  %v9194_v62 = vunpack.c.h.bf16 %v9437_v54  ;;  %v9193_v63 = vunpack.c.l.bf16 %v9437_v54  ;;  %s8796_s22 = sshll.u32 %s11188_s20, 4  ;;  %s8768_s27 = scalar_lea.sflag [#allocation21], %s11160_s25  ;;  %s8797_s22 = int_to_ptr.vmem [resolvable:$true] %s8796_s22 }
 0x139   : > { %17057 = vst [vmem:[#allocation35_spill] sm:$0xff] %v11203_v25  ;;  %v1140_v27 = vunpack.c.0.s8 %v1139_v24  ;;  %v612_v28 = vrot.slane %v607_v26, %v11203_v25  ;;  %v9440_v19 = vld [vmem:[#allocation7 + $0x30] sm:$0xff]   ;;  %vm2734_vm1 = vcmask 130112   ;;  %vm2741_vm2 = vcmask 195712   ;;  %s10625_s30 = scalar_lea.vmem %s8797_s22, 128  ;;  %p18340_p11 = scmp.ne.s32.totalorder %s17036_s11, 0 }
 0x13a   : > { %vm2748_vm3 = vcmask 261312   ;;  %vm2755_vm4 = vcmask 326912   ;;  %vm16895_vm5 = vcmask 392512   ;;  %vm16734_vm6 = vcmask 458112   ;;  %p10626_p12 = scmp.ne.s32.totalorder %s8797_s22, %s10625_s30  ;;  %s10785_s26 = smov [#allocation20]  }
 0x13b   : > { %884 = vmatpush1.bf16.msra.mxu0 %v9915_v8  ;;  %v11207_v29 = vsub.s32 %v1140_v27, %v11200_v22  ;;  %v9198_v8 = vunpack.c.h.bf16 %v9438_v5  ;;  %vm2776_vm7 = vcmask 523712   ;;  %vm2783_vm8 = vcmask 589312   ;;  %s10629_s1 = sshll.u32 %s10785_s26, 4  ;;  %s10630_s1 = int_to_ptr.vmem [resolvable:$false] %s10629_s1 }
 0x13c   : > { %885 = vmatprep.subr.bf16.mxu0 %v9916_v9  ;;  %v9197_v9 = vunpack.c.l.bf16 %v9438_v5  ;;  %vm16738_vm9 = vcmask 654912   ;;  %vm16737_vm10 = vcmask 720512   ;;  %vm16735_vm11 = vcmask 786112   ;;  %p10627_p0 = pnand %p10626_p12, %p18340_p11  ;;  %s10631_s2 = scalar_lea.vmem %s10630_s1, 256 }
 0x13d   : > { %vm2811_vm12 = vcmask 851712   ;;  %vm2818_vm13 = vcmask 917312   ;;  %vm2825_vm14 = vcmask 982912   ;;  %vm2832_vm15 = vcmask 1048512   ;;  %s17020_s9 = sshll.u32 %s18335_s19, 7  ;;  %p10632_p4 = scmp.lt.s32.totalorder %s8797_s22, %s10630_s1 }
 0x13e   : > { %s16489_s16 = scalar_lea.hbm %s18339_s0, %s17020_s9  ;;  %p10628_p6 = pneg %p10627_p0 }
 0x13f   : > { %886 = vmatpush1.bf16.msra.mxu0 %v9918_v10  ;;  %p10633_p8 = scmp.lt.s32.totalorder %s10631_s2, %s10625_s30 }
 0x140   : > { %887 = vmatprep.subr.bf16.mxu0 %v9919_v11 }
 0x141   : > { %p10634_p10 = por %p10633_p8, %p10632_p4 }
 0x143   : > { %888 = vmatpush1.bf16.msra.mxu0 %v9921_v12  ;;  %p10635_p9 = pnand %p10634_p10, %p10628_p6 }
 0x144   : > { %889 = vmatprep.subr.bf16.mxu0 %v9922_v13 }
 0x147   : > { %890 = vmatpush1.bf16.msra.mxu0 %v9924_v14  ;;  %v9439_v14 = vld [vmem:[#allocation7 + $0x28] sm:$0xff]  }
 0x148   : > { %891 = vmatprep.subr.bf16.mxu0 %v9925_v15 }
 0x14b   : > { %892 = vmatpush1.bf16.msra.mxu0 %v9927_v16 }
 0x14c   : > { %893 = vmatprep.subr.bf16.mxu0 %v9928_v17  ;;  %v9202_v17 = vunpack.c.h.bf16 %v9439_v14 }
 0x14f   : > { %894 = vmatpush1.bf16.msra.mxu0 %v9930_v18  ;;  %v9201_v18 = vunpack.c.l.bf16 %v9439_v14 }
 0x152   : > { %912 = vmatmul.mubr.bf16.vlgmr.msra.gmra.mrb[0].mxu0 %v11195_v20 }
 0x153   : > { %993 = vmatprep.mubr.bf16.mxu0 %v16593_v4 }
 0x225   : > { %v913_v30 = vpop.f32.mrb[0].mxu0 }
 0x226   : > { %v914_v31 = vadd.f32 %v913_v30, %v612_v28  ;;  %v11209_v32 = vpop.f32.mrb[1].mxu0  ;;  %v9206_v28 = vunpack.c.h.bf16 %v9440_v19 }
 0x227   : > { %17058 = vst [vmem:[#allocation36_spill] sm:$0xff] %v11209_v32  ;;  %v917_v33 = vpop.f32.mrb[2].mxu0 }
 0x228   : > { %v1137_v34 = vcombine.high %v914_v31, %v914_v31  ;;  %v11212_v35 = vrot.slane %v914_v31, %v11207_v29  ;;  %v918_v36 = vpop.f32.mrb[3].mxu0 }
 0x229   : > { %v9441_v36 = vld [vmem:[#allocation7 + $0x38] sm:$0xff]  }
 0x22a   : > { %v1151_v39 = vrot.slane %v1137_v34, %v11207_v29  ;;  %v11217_v40 = vrot.slane %v11212_v35, %v11207_v29  ;;  %v1152_v30 = vcombine.high %v11212_v35, %v11212_v35  ;;  %v9205_v34 = vunpack.c.l.bf16 %v9440_v19 }
 0x22c   : > { %v1153_v44 = vcombine.high %v1151_v39, %v1151_v39  ;;  %v11220_v45 = vrot.slane %v1151_v39, %v11207_v29  ;;  %v11224_v46 = vrot.slane %v11217_v40, %v11203_v25  ;;  %v11254_v43 = vrot.slane %v1152_v30, %v11207_v29 }
 0x22e   : > { %v11227_v49 = vrot.slane %v1153_v44, %v11207_v29  ;;  %v1356_v52 = vadd.f32 %v9185_v41, %v11224_v46  ;;  %v1354_v53 = vadd.f32 %v9181_v42, %v11224_v46  ;;  %v1357_v58 = vadd.f32 %v9186_v47, %v11224_v46 }
 0x22f   : > { %v1355_v59 = vadd.f32 %v9182_v48, %v11224_v46  ;;  %v1359_v60 = vadd.f32 %v9190_v50, %v11224_v46  ;;  %v1358_v61 = vadd.f32 %v9189_v51, %v11224_v46  ;;  %v1361_v7 = vadd.f32 %v9194_v62, %v11224_v46  ;;  %v9442_v48 = vld [vmem:[#allocation7 + $0x40] sm:$0xff]  }
 0x230   : > { %v1484_v56 = vmax.f32 %v1356_v52, 0.0  ;;  %v1482_v57 = vmax.f32 %v1354_v53, 0.0  ;;  %v1485_v2 = vmax.f32 %v1357_v58, 0.0  ;;  %v1360_v13 = vadd.f32 %v9193_v63, %v11224_v46  ;;  %v9443_v63 = vld [vmem:[#allocation7 + $0x48] sm:$0xff]  }
 0x231   : > { %v1483_v3 = vmax.f32 %v1355_v59, 0.0  ;;  %v1487_v6 = vmax.f32 %v1359_v60, 0.0  ;;  %v1486_v12 = vmax.f32 %v1358_v61, 0.0  ;;  %v1489_v15 = vmax.f32 %v1361_v7, 0.0 }
 0x232   : > { %v1619_v0 = vmul.f32 %v11231_v55, %v1484_v56  ;;  %v1617_v1 = vmul.f32 %v11231_v55, %v1482_v57  ;;  %v1620_v10 = vmul.f32 %v11231_v55, %v1485_v2  ;;  %v1363_v16 = vadd.f32 %v9198_v8, %v11224_v46 }
 0x233   : > { %v1618_v11 = vmul.f32 %v11231_v55, %v1483_v3  ;;  %v1622_v23 = vmul.f32 %v11231_v55, %v1487_v6  ;;  %v1621_v24 = vmul.f32 %v11231_v55, %v1486_v12  ;;  %v1488_v26 = vmax.f32 %v1360_v13, 0.0 }
 0x234   : > { %1749 = vadd.xlane.f32.xlu1 %v1619_v0  ;;  %1745 = vadd.xlane.f32.xlu0 %v1617_v1  ;;  %v1362_v27 = vadd.f32 %v9197_v9, %v11224_v46  ;;  %v1624_v31 = vmul.f32 %v11231_v55, %v1489_v15  ;;  %v1491_v33 = vmax.f32 %v1363_v16, 0.0  ;;  %v1365_v39 = vadd.f32 %v9202_v17, %v11224_v46  ;;  %v9444_v9 = vld [vmem:[#allocation7 + $0x50] sm:$0xff]   ;;  %v9445_v17 = vld [vmem:[#allocation7 + $0x58] sm:$0xff]  }
 0x235   : > { %v1623_v37 = vmul.f32 %v11231_v55, %v1488_v26  ;;  %v1364_v41 = vadd.f32 %v9201_v18, %v11224_v46  ;;  %v9210_v42 = vunpack.c.h.bf16 %v9441_v36  ;;  %v1367_v35 = vadd.f32 %v9206_v28, %v11224_v46 }
 0x236   : > { %v1490_v38 = vmax.f32 %v1362_v27, 0.0  ;;  %v1366_v44 = vadd.f32 %v9205_v34, %v11224_v46  ;;  %v9209_v47 = vunpack.c.l.bf16 %v9441_v36  ;;  %v1626_v50 = vmul.f32 %v11231_v55, %v1491_v33 }
 0x237   : > { %v1493_v52 = vmax.f32 %v1365_v39, 0.0  ;;  %v1492_v53 = vmax.f32 %v1364_v41, 0.0  ;;  %v9214_v54 = vunpack.c.h.bf16 %v9442_v48  ;;  %v11262_v56 = vrot.slane %v11254_v43, %v11203_v25 }
 0x238   : > { %1751 = vadd.xlane.f32.xlu1 %v1620_v10  ;;  %1747 = vadd.xlane.f32.xlu0 %v1618_v11  ;;  %v1625_v51 = vmul.f32 %v11231_v55, %v1490_v38  ;;  %v1495_v29 = vmax.f32 %v1367_v35, 0.0  ;;  %v1494_v57 = vmax.f32 %v1366_v44, 0.0  ;;  %v9213_v58 = vunpack.c.l.bf16 %v9442_v48  ;;  %v9447_v35 = vld [vmem:[#allocation7 + $0x68] sm:$0xff]  }
 0x239   : > { %v1628_v59 = vmul.f32 %v11231_v55, %v1493_v52  ;;  %v1627_v60 = vmul.f32 %v11231_v55, %v1492_v53  ;;  %v1369_v61 = vadd.f32 %v9210_v42, %v11224_v46  ;;  %v1368_v62 = vadd.f32 %v9209_v47, %v11224_v46 }
 0x23a   : > { %v1630_v0 = vmul.f32 %v11231_v55, %v1495_v29  ;;  %v1371_v1 = vadd.f32 %v9214_v54, %v11262_v56  ;;  %v9218_v2 = vunpack.c.h.bf16 %v9443_v63  ;;  %v9217_v3 = vunpack.c.l.bf16 %v9443_v63  ;;  %v9448_v29 = vld [vmem:[#allocation7 + $0x70] sm:$0xff]  }
 0x23b   : > { %v1629_v5 = vmul.f32 %v11231_v55, %v1494_v57  ;;  %v1497_v6 = vmax.f32 %v1369_v61, 0.0  ;;  %v1496_v7 = vmax.f32 %v1368_v62, 0.0  ;;  %v1370_v8 = vadd.f32 %v9213_v58, %v11262_v56  ;;  %v9449_v61 = vld [vmem:[#allocation7 + $0x78] sm:$0xff]  }
 0x23c   : > { %1755 = vadd.xlane.f32.xlu1 %v1622_v23  ;;  %1753 = vadd.xlane.f32.xlu0 %v1621_v24  ;;  %v1499_v10 = vmax.f32 %v1371_v1, 0.0  ;;  %v1373_v46 = vadd.f32 %v9218_v2, %v11262_v56  ;;  %v9222_v11 = vunpack.c.h.bf16 %v9444_v9  ;;  %v9221_v12 = vunpack.c.l.bf16 %v9444_v9 }
 0x23d   : > { %v1632_v13 = vmul.f32 %v11231_v55, %v1497_v6  ;;  %v1631_v14 = vmul.f32 %v11231_v55, %v1496_v7  ;;  %v1498_v15 = vmax.f32 %v1370_v8, 0.0  ;;  %v1372_v16 = vadd.f32 %v9217_v3, %v11262_v56  ;;  %v9450_v8 = vld [vmem:[#allocation7 + $0x80] sm:$0xff]  }
 0x23e   : > { %v1375_v18 = vadd.f32 %v9222_v11, %v11262_v56  ;;  %v1374_v19 = vadd.f32 %v9221_v12, %v11262_v56  ;;  %v9226_v23 = vunpack.c.h.bf16 %v9445_v17  ;;  %v9225_v24 = vunpack.c.l.bf16 %v9445_v17 }
 0x23f   : > { %v1634_v26 = vmul.f32 %v11231_v55, %v1499_v10  ;;  %v1633_v27 = vmul.f32 %v11231_v55, %v1498_v15  ;;  %v1501_v28 = vmax.f32 %v1373_v46, 0.0  ;;  %v1500_v30 = vmax.f32 %v1372_v16, 0.0 }
 0x240   : > { %1759 = vadd.xlane.f32.xlu1 %v1624_v31  ;;  %1757 = vadd.xlane.f32.xlu0 %v1623_v37  ;;  %v9446_v31 = vld [vmem:[#allocation7 + $0x60] sm:$0xff]   ;;  %v1503_v33 = vmax.f32 %v1375_v18, 0.0  ;;  %v1377_v34 = vadd.f32 %v9226_v23, %v11262_v56  ;;  %v1502_v41 = vmax.f32 %v1374_v19, 0.0  ;;  %v1376_v42 = vadd.f32 %v9225_v24, %v11262_v56  ;;  %v9451_v23 = vld [vmem:[#allocation7 + $0x88] sm:$0xff]  }
 0x241   : > { %v9230_v36 = vunpack.c.h.bf16 %v9446_v31  ;;  %v9229_v37 = vunpack.c.l.bf16 %v9446_v31  ;;  %v1636_v38 = vmul.f32 %v11231_v55, %v1501_v28  ;;  %v1635_v39 = vmul.f32 %v11231_v55, %v1500_v30 }
 0x242   : > { %v1638_v44 = vmul.f32 %v11231_v55, %v1503_v33  ;;  %v1505_v47 = vmax.f32 %v1377_v34, 0.0  ;;  %v9234_v48 = vunpack.c.h.bf16 %v9447_v35  ;;  %v1504_v52 = vmax.f32 %v1376_v42, 0.0 }
 0x243   : > { %v1379_v53 = vadd.f32 %v9230_v36, %v11262_v56  ;;  %v1378_v54 = vadd.f32 %v9229_v37, %v11262_v56  ;;  %v9242_v2 = vunpack.c.h.bf16 %v9449_v61  ;;  %v1182_v3 = vcombine.high %v11217_v40, %v11217_v40  ;;  %v9452_v36 = vld [vmem:[#allocation7 + $0x90] sm:$0xff]  }
 0x244   : > { %1763 = vadd.xlane.f32.xlu1 %v1626_v50  ;;  %1761 = vadd.xlane.f32.xlu0 %v1625_v51  ;;  %v9233_v50 = vunpack.c.l.bf16 %v9447_v35  ;;  %v1637_v51 = vmul.f32 %v11231_v55, %v1502_v41  ;;  %v1640_v57 = vmul.f32 %v11231_v55, %v1505_v47  ;;  %v1381_v58 = vadd.f32 %v9234_v48, %v11262_v56  ;;  %v9453_v47 = vld [vmem:[#allocation7 + $0x98] sm:$0xff]  }
 0x245   : > { %v1639_v62 = vmul.f32 %v11231_v55, %v1504_v52  ;;  %v1507_v63 = vmax.f32 %v1379_v53, 0.0  ;;  %v9241_v7 = vunpack.c.l.bf16 %v9449_v61  ;;  %v9246_v12 = vunpack.c.h.bf16 %v9450_v8 }
 0x246   : > { %v1380_v1 = vadd.f32 %v9233_v50, %v11262_v56  ;;  %v1509_v46 = vmax.f32 %v1381_v58, 0.0  ;;  %v1385_v40 = vadd.f32 %v9242_v2, %v11262_v56  ;;  %v9245_v15 = vunpack.c.l.bf16 %v9450_v8  ;;  %v9454_v58 = vld [vmem:[#allocation7 + $0xa0] sm:$0xff]  }
 0x247   : > { %v1642_v9 = vmul.f32 %v11231_v55, %v1507_v63  ;;  %v1384_v19 = vadd.f32 %v9241_v7, %v11262_v56  ;;  %v9249_v28 = vunpack.c.l.bf16 %v9451_v23  ;;  %v9257_v52 = vunpack.c.l.bf16 %v9453_v47 }
 0x248   : > { %1767 = vadd.xlane.f32.xlu1 %v1628_v59  ;;  %1765 = vadd.xlane.f32.xlu0 %v1627_v60  ;;  %v9238_v59 = vunpack.c.h.bf16 %v9448_v29  ;;  %v9237_v60 = vunpack.c.l.bf16 %v9448_v29  ;;  %v1508_v11 = vmax.f32 %v1380_v1, 0.0  ;;  %v1644_v16 = vmul.f32 %v11231_v55, %v1509_v46 }
 0x249   : > { %v1512_v31 = vmax.f32 %v1384_v19, 0.0  ;;  %v9262_v61 = vunpack.c.h.bf16 %v9454_v58 }
 0x24a   : > { %v1382_v6 = vadd.f32 %v9237_v60, %v11262_v56  ;;  %v1643_v17 = vmul.f32 %v11231_v55, %v1508_v11 }
 0x24b   : > { %v1647_v41 = vmul.f32 %v11231_v55, %v1512_v31  ;;  %v9466_v31 = vld [vmem:[#allocation7 + $0x100] sm:$0xff]  }
 0x24c   : > { %1771 = vadd.xlane.f32.xlu1 %v1630_v0  ;;  %1769 = vadd.xlane.f32.xlu0 %v1629_v5  ;;  %v1506_v0 = vmax.f32 %v1378_v54, 0.0  ;;  %v1383_v5 = vadd.f32 %v9238_v59, %v11262_v56  ;;  %v1510_v18 = vmax.f32 %v1382_v6, 0.0 }
 0x24e   : > { %v1641_v10 = vmul.f32 %v11231_v55, %v1506_v0  ;;  %v1645_v30 = vmul.f32 %v11231_v55, %v1510_v18 }
 0x250   : > { %1775 = vadd.xlane.f32.xlu1 %v1632_v13  ;;  %1773 = vadd.xlane.f32.xlu0 %v1631_v14  ;;  %v11299_v13 = vrot.slane %v1182_v3, %v11203_v25  ;;  %v1511_v14 = vmax.f32 %v1383_v5, 0.0  ;;  %v9455_v3 = vld [vmem:[#allocation7 + $0xa8] sm:$0xff]  }
 0x251   : > { %v9266_v7 = vunpack.c.h.bf16 %v9455_v3  ;;  %v9265_v8 = vunpack.c.l.bf16 %v9455_v3 }
 0x252   : > { %v1646_v24 = vmul.f32 %v11231_v55, %v1511_v14  ;;  %v1387_v33 = vadd.f32 %v9246_v12, %v11299_v13  ;;  %v1386_v34 = vadd.f32 %v9245_v15, %v11299_v13  ;;  %v1392_v2 = vadd.f32 %v9257_v52, %v11299_v13  ;;  %v9456_v12 = vld [vmem:[#allocation7 + $0xb0] sm:$0xff]  }
 0x253   : > { %v1395_v46 = vadd.f32 %v9262_v61, %v11299_v13  ;;  %v9270_v15 = vunpack.c.h.bf16 %v9456_v12 }
 0x254   : > { %1779 = vadd.xlane.f32.xlu1 %v1634_v26  ;;  %1777 = vadd.xlane.f32.xlu0 %v1633_v27  ;;  %v1513_v26 = vmax.f32 %v1385_v40, 0.0  ;;  %v9250_v27 = vunpack.c.h.bf16 %v9451_v23  ;;  %v1515_v42 = vmax.f32 %v1387_v33, 0.0  ;;  %v1514_v35 = vmax.f32 %v1386_v34, 0.0 }
 0x255   : > { %v1397_v40 = vadd.f32 %v9266_v7, %v11299_v13  ;;  %v1523_v18 = vmax.f32 %v1395_v46, 0.0  ;;  %v1396_v23 = vadd.f32 %v9265_v8, %v11299_v13 }
 0x256   : > { %v1648_v56 = vmul.f32 %v11231_v55, %v1513_v26  ;;  %v1389_v37 = vadd.f32 %v9250_v27, %v11299_v13  ;;  %v1650_v53 = vmul.f32 %v11231_v55, %v1515_v42  ;;  %v1649_v54 = vmul.f32 %v11231_v55, %v1514_v35 }
 0x257   : > { %v1399_v26 = vadd.f32 %v9270_v15, %v11299_v13  ;;  %v1658_v33 = vmul.f32 %v11231_v55, %v1523_v18  ;;  %v9309_v42 = vunpack.c.l.bf16 %v9466_v31 }
 0x258   : > { %1783 = vadd.xlane.f32.xlu1 %v1636_v38  ;;  %1781 = vadd.xlane.f32.xlu0 %v1635_v39  ;;  %v9254_v38 = vunpack.c.h.bf16 %v9452_v36  ;;  %v9253_v39 = vunpack.c.l.bf16 %v9452_v36  ;;  %v1517_v29 = vmax.f32 %v1389_v37, 0.0  ;;  %v1525_v36 = vmax.f32 %v1397_v40, 0.0 }
 0x259   : > { %v9310_v37 = vunpack.c.h.bf16 %v9466_v31 }
 0x25a   : > { %v1391_v48 = vadd.f32 %v9254_v38, %v11299_v13  ;;  %v1390_v50 = vadd.f32 %v9253_v39, %v11299_v13  ;;  %v1652_v63 = vmul.f32 %v11231_v55, %v1517_v29  ;;  %v11335_v38 = vrot.slane %v11220_v45, %v11203_v25 }
 0x25b   : > { %v1527_v39 = vmax.f32 %v1399_v26, 0.0  ;;  %v1660_v35 = vmul.f32 %v11231_v55, %v1525_v36  ;;  %v9471_v26 = vld [vmem:[#allocation7 + $0x128] sm:$0xff]  }
 0x25c   : > { %1787 = vadd.xlane.f32.xlu1 %v1638_v44  ;;  %1785 = vadd.xlane.f32.xlu0 %v1637_v51  ;;  %v1388_v44 = vadd.f32 %v9249_v28, %v11299_v13  ;;  %v9258_v51 = vunpack.c.h.bf16 %v9453_v47  ;;  %v1519_v59 = vmax.f32 %v1391_v48, 0.0  ;;  %v1518_v1 = vmax.f32 %v1390_v50, 0.0  ;;  %v9467_v50 = vld [vmem:[#allocation7 + $0x108] sm:$0xff]  }
 0x25d   : > { %v9329_v31 = vunpack.c.l.bf16 %v9471_v26 }
 0x25e   : > { %v1393_v60 = vadd.f32 %v9258_v51, %v11299_v13  ;;  %v1654_v5 = vmul.f32 %v11231_v55, %v1519_v59  ;;  %v1662_v51 = vmul.f32 %v11231_v55, %v1527_v39  ;;  %v1418_v59 = vadd.f32 %v9309_v42, %v11335_v38 }
 0x260   : > { %1791 = vadd.xlane.f32.xlu1 %v1640_v57  ;;  %1789 = vadd.xlane.f32.xlu0 %v1639_v62  ;;  %v1516_v57 = vmax.f32 %v1388_v44, 0.0  ;;  %v9261_v62 = vunpack.c.l.bf16 %v9454_v58  ;;  %v1521_v6 = vmax.f32 %v1393_v60, 0.0  ;;  %v1419_v58 = vadd.f32 %v9310_v37, %v11335_v38  ;;  %v9468_v60 = vld [vmem:[#allocation7 + $0x110] sm:$0xff]  }
 0x261   : > { %v9472_v37 = vld [vmem:[#allocation7 + $0x130] sm:$0xff]  }
 0x262   : > { %v1651_v0 = vmul.f32 %v11231_v55, %v1516_v57  ;;  %v1394_v11 = vadd.f32 %v9261_v62, %v11299_v13  ;;  %v1656_v14 = vmul.f32 %v11231_v55, %v1521_v6  ;;  %v9318_v62 = vunpack.c.h.bf16 %v9468_v60 }
 0x263   : > { %v9334_v42 = vunpack.c.h.bf16 %v9472_v37 }
 0x264   : > { %1795 = vadd.xlane.f32.xlu1 %v1642_v9  ;;  %1793 = vadd.xlane.f32.xlu0 %v1641_v10  ;;  %v1653_v9 = vmul.f32 %v11231_v55, %v1518_v1  ;;  %v1520_v10 = vmax.f32 %v1392_v2, 0.0  ;;  %v1522_v19 = vmax.f32 %v1394_v11, 0.0  ;;  %v1547_v1 = vmax.f32 %v1419_v58, 0.0  ;;  %v9458_v58 = vld [vmem:[#allocation7 + $0xc0] sm:$0xff]  }
 0x265   : > { %v1546_v2 = vmax.f32 %v1418_v59, 0.0  ;;  %v1423_v6 = vadd.f32 %v9318_v62, %v11335_v38  ;;  %v9278_v62 = vunpack.c.h.bf16 %v9458_v58 }
 0x266   : > { %v1657_v34 = vmul.f32 %v11231_v55, %v1522_v19 }
 0x267   : > { %v1681_v46 = vmul.f32 %v11231_v55, %v1546_v2  ;;  %v1551_v40 = vmax.f32 %v1423_v6, 0.0 }
 0x268   : > { %1799 = vadd.xlane.f32.xlu1 %v1644_v16  ;;  %1797 = vadd.xlane.f32.xlu0 %v1643_v17  ;;  %v9269_v16 = vunpack.c.l.bf16 %v9456_v12  ;;  %v1655_v17 = vmul.f32 %v11231_v55, %v1520_v10  ;;  %v1682_v10 = vmul.f32 %v11231_v55, %v1547_v1  ;;  %v9277_v1 = vunpack.c.l.bf16 %v9458_v58 }
 0x26a   : > { %v1398_v27 = vadd.f32 %v9269_v16, %v11299_v13 }
 0x26c   : > { %1803 = vadd.xlane.f32.xlu1 %v1646_v24  ;;  %1801 = vadd.xlane.f32.xlu0 %v1645_v30  ;;  %v9457_v24 = vld [vmem:[#allocation7 + $0xb8] sm:$0xff]   ;;  %v1526_v47 = vmax.f32 %v1398_v27, 0.0  ;;  %v1686_v27 = vmul.f32 %v11231_v55, %v1551_v40 }
 0x26d   : > { %v9274_v28 = vunpack.c.h.bf16 %v9457_v24  ;;  %v9273_v30 = vunpack.c.l.bf16 %v9457_v24 }
 0x26e   : > { %v1661_v29 = vmul.f32 %v11231_v55, %v1526_v47 }
 0x26f   : > { %v1400_v48 = vadd.f32 %v9273_v30, %v11299_v13  ;;  %v9330_v30 = vunpack.c.h.bf16 %v9471_v26 }
 0x270   : > { %1807 = vadd.xlane.f32.xlu1 %v1648_v56  ;;  %1805 = vadd.xlane.f32.xlu0 %v1647_v41  ;;  %v1524_v56 = vmax.f32 %v1396_v23, 0.0  ;;  %v1401_v41 = vadd.f32 %v9274_v28, %v11299_v13 }
 0x271   : > { %v1528_v57 = vmax.f32 %v1400_v48, 0.0 }
 0x272   : > { %v1659_v44 = vmul.f32 %v11231_v55, %v1524_v56  ;;  %v1529_v52 = vmax.f32 %v1401_v41, 0.0  ;;  %v1429_v41 = vadd.f32 %v9330_v30, %v11335_v38 }
 0x274   : > { %1811 = vadd.xlane.f32.xlu1 %v1650_v53  ;;  %1809 = vadd.xlane.f32.xlu0 %v1649_v54  ;;  %v9314_v53 = vunpack.c.h.bf16 %v9467_v50  ;;  %v9313_v54 = vunpack.c.l.bf16 %v9467_v50  ;;  %v1664_v13 = vmul.f32 %v11231_v55, %v1529_v52 }
 0x276   : > { %v1421_v61 = vadd.f32 %v9314_v53, %v11335_v38  ;;  %v1420_v3 = vadd.f32 %v9313_v54, %v11335_v38  ;;  %v1184_v53 = vcombine.high %v11254_v43, %v11254_v43  ;;  %v1431_v54 = vadd.f32 %v9334_v42, %v11335_v38 }
 0x278   : > { %1815 = vadd.xlane.f32.xlu1 %v1652_v63  ;;  %1813 = vadd.xlane.f32.xlu0 %v1651_v0  ;;  %v9317_v63 = vunpack.c.l.bf16 %v9468_v60  ;;  %v1663_v0 = vmul.f32 %v11231_v55, %v1528_v57  ;;  %v1549_v11 = vmax.f32 %v1421_v61, 0.0  ;;  %v1548_v12 = vmax.f32 %v1420_v3, 0.0 }
 0x27a   : > { %v1422_v7 = vadd.f32 %v9317_v63, %v11335_v38  ;;  %v1684_v18 = vmul.f32 %v11231_v55, %v1549_v11  ;;  %v1683_v19 = vmul.f32 %v11231_v55, %v1548_v12  ;;  %v11372_v63 = vrot.slane %v1184_v53, %v11203_v25 }
 0x27c   : > { %1819 = vadd.xlane.f32.xlu1 %v1654_v5  ;;  %1817 = vadd.xlane.f32.xlu0 %v1653_v9  ;;  %v9469_v5 = vld [vmem:[#allocation7 + $0x118] sm:$0xff]   ;;  %v1550_v23 = vmax.f32 %v1422_v7, 0.0  ;;  %v9459_v7 = vld [vmem:[#allocation7 + $0xc8] sm:$0xff]   ;;  %v1402_v40 = vadd.f32 %v9277_v1, %v11372_v63 }
 0x27d   : > { %v9322_v8 = vunpack.c.h.bf16 %v9469_v5  ;;  %v9321_v9 = vunpack.c.l.bf16 %v9469_v5 }
 0x27f   : > { %v1425_v15 = vadd.f32 %v9322_v8, %v11335_v38  ;;  %v1424_v24 = vadd.f32 %v9321_v9, %v11335_v38 }
 0x280   : > { %1823 = vadd.xlane.f32.xlu1 %v1656_v14  ;;  %1821 = vadd.xlane.f32.xlu0 %v1655_v17  ;;  %v9470_v14 = vld [vmem:[#allocation7 + $0x120] sm:$0xff]  }
 0x281   : > { %v9326_v16 = vunpack.c.h.bf16 %v9470_v14  ;;  %v9325_v17 = vunpack.c.l.bf16 %v9470_v14  ;;  %v1553_v28 = vmax.f32 %v1425_v15, 0.0  ;;  %v1403_v14 = vadd.f32 %v9278_v62, %v11372_v63  ;;  %v9460_v15 = vld [vmem:[#allocation7 + $0xd0] sm:$0xff]  }
 0x283   : > { %v1427_v36 = vadd.f32 %v9326_v16, %v11335_v38  ;;  %v1426_v56 = vadd.f32 %v9325_v17, %v11335_v38  ;;  %v1688_v39 = vmul.f32 %v11231_v55, %v1553_v28  ;;  %v9286_v17 = vunpack.c.h.bf16 %v9460_v15 }
 0x284   : > { %1827 = vadd.xlane.f32.xlu1 %v1658_v33  ;;  %1825 = vadd.xlane.f32.xlu0 %v1657_v34  ;;  %v1685_v33 = vmul.f32 %v11231_v55, %v1550_v23  ;;  %v1552_v34 = vmax.f32 %v1424_v24, 0.0  ;;  %v1531_v23 = vmax.f32 %v1403_v14, 0.0  ;;  %v1530_v24 = vmax.f32 %v1402_v40, 0.0  ;;  %v9474_v14 = vld [vmem:[#allocation7 + $0x140] sm:$0xff]  }
 0x285   : > { %v1555_v48 = vmax.f32 %v1427_v36, 0.0  ;;  %v1554_v50 = vmax.f32 %v1426_v56, 0.0  ;;  %v1407_v28 = vadd.f32 %v9286_v17, %v11372_v63  ;;  %v9342_v17 = vunpack.c.h.bf16 %v9474_v14 }
 0x286   : > { %v1687_v47 = vmul.f32 %v11231_v55, %v1552_v34  ;;  %v1666_v34 = vmul.f32 %v11231_v55, %v1531_v23  ;;  %v1665_v36 = vmul.f32 %v11231_v55, %v1530_v24 }
 0x287   : > { %v1690_v59 = vmul.f32 %v11231_v55, %v1555_v48  ;;  %v1689_v60 = vmul.f32 %v11231_v55, %v1554_v50 }
 0x288   : > { %1831 = vadd.xlane.f32.xlu1 %v1660_v35  ;;  %1829 = vadd.xlane.f32.xlu0 %v1659_v44  ;;  %v9333_v35 = vunpack.c.l.bf16 %v9472_v37  ;;  %v9473_v44 = vld [vmem:[#allocation7 + $0x138] sm:$0xff]  }
 0x289   : > { %v9338_v52 = vunpack.c.h.bf16 %v9473_v44  ;;  %v9337_v57 = vunpack.c.l.bf16 %v9473_v44 }
 0x28b   : > { %v1433_v43 = vadd.f32 %v9338_v52, %v11335_v38  ;;  %v1432_v6 = vadd.f32 %v9337_v57, %v11335_v38  ;;  %v9463_v52 = vld [vmem:[#allocation7 + $0xe8] sm:$0xff]  }
 0x28c   : > { %1835 = vadd.xlane.f32.xlu1 %v1662_v51  ;;  %1833 = vadd.xlane.f32.xlu0 %v1661_v29  ;;  %v1428_v51 = vadd.f32 %v9329_v31, %v11335_v38  ;;  %v1430_v29 = vadd.f32 %v9333_v35, %v11335_v38  ;;  %v9297_v57 = vunpack.c.l.bf16 %v9463_v52 }
 0x28d   : > { %v1561_v9 = vmax.f32 %v1433_v43, 0.0  ;;  %v1560_v12 = vmax.f32 %v1432_v6, 0.0 }
 0x28e   : > { %v1556_v61 = vmax.f32 %v1428_v51, 0.0  ;;  %v1558_v5 = vmax.f32 %v1430_v29, 0.0  ;;  %v9298_v29 = vunpack.c.h.bf16 %v9463_v52  ;;  %v1412_v6 = vadd.f32 %v9297_v57, %v11372_v63 }
 0x28f   : > { %v1696_v38 = vmul.f32 %v11231_v55, %v1561_v9 }
 0x290   : > { %1839 = vadd.xlane.f32.xlu1 %v1664_v13  ;;  %1837 = vadd.xlane.f32.xlu0 %v1663_v0  ;;  %v1557_v13 = vmax.f32 %v1429_v41, 0.0  ;;  %v1559_v0 = vmax.f32 %v1431_v54, 0.0  ;;  %v1691_v3 = vmul.f32 %v11231_v55, %v1556_v61  ;;  %v1693_v11 = vmul.f32 %v11231_v55, %v1558_v5  ;;  %v9464_v61 = vld [vmem:[#allocation7 + $0xf0] sm:$0xff]  }
 0x291   : > { %v1535_v41 = vmax.f32 %v1407_v28, 0.0  ;;  %v9302_v43 = vunpack.c.h.bf16 %v9464_v61  ;;  %v9301_v1 = vunpack.c.l.bf16 %v9464_v61 }
 0x292   : > { %v1692_v2 = vmul.f32 %v11231_v55, %v1557_v13  ;;  %v1694_v8 = vmul.f32 %v11231_v55, %v1559_v0  ;;  %v1413_v0 = vadd.f32 %v9298_v29, %v11372_v63 }
 0x293   : > { %v1670_v53 = vmul.f32 %v11231_v55, %v1535_v41 }
 0x294   : > { %1875 = vadd.xlane.f32.xlu1 %v1682_v10  ;;  %1873 = vadd.xlane.f32.xlu0 %v1681_v46  ;;  %v9282_v10 = vunpack.c.h.bf16 %v9459_v7  ;;  %v9281_v46 = vunpack.c.l.bf16 %v9459_v7  ;;  %v9465_v7 = vld [vmem:[#allocation7 + $0xf8] sm:$0xff]  }
 0x296   : > { %v1405_v16 = vadd.f32 %v9282_v10, %v11372_v63  ;;  %v1404_v26 = vadd.f32 %v9281_v46, %v11372_v63  ;;  %v1415_v10 = vadd.f32 %v9302_v43, %v11372_v63  ;;  %v1414_v46 = vadd.f32 %v9301_v1, %v11372_v63 }
 0x298   : > { %1879 = vadd.xlane.f32.xlu1 %v1684_v18  ;;  %1877 = vadd.xlane.f32.xlu0 %v1683_v19  ;;  %v9285_v18 = vunpack.c.l.bf16 %v9460_v15  ;;  %v1695_v19 = vmul.f32 %v11231_v55, %v1560_v12  ;;  %v1533_v56 = vmax.f32 %v1405_v16, 0.0  ;;  %v1532_v37 = vmax.f32 %v1404_v26, 0.0 }
 0x299   : > { %v9305_v12 = vunpack.c.l.bf16 %v9465_v7  ;;  %v1540_v16 = vmax.f32 %v1412_v6, 0.0  ;;  %v1543_v24 = vmax.f32 %v1415_v10, 0.0  ;;  %v9478_v10 = vld [vmem:[#allocation7 + $0x160] sm:$0xff]  }
 0x29a   : > { %v1406_v30 = vadd.f32 %v9285_v18, %v11372_v63  ;;  %v1667_v48 = vmul.f32 %v11231_v55, %v1532_v37  ;;  %v11412_v18 = vrot.slane %v11227_v49, %v11203_v25 }
 0x29b   : > { %v1678_v37 = vmul.f32 %v11231_v55, %v1543_v24 }
 0x29c   : > { %1883 = vadd.xlane.f32.xlu1 %v1686_v27  ;;  %1881 = vadd.xlane.f32.xlu0 %v1685_v33  ;;  %v9461_v27 = vld [vmem:[#allocation7 + $0xd8] sm:$0xff]   ;;  %v1534_v50 = vmax.f32 %v1406_v30, 0.0  ;;  %v1675_v30 = vmul.f32 %v11231_v55, %v1540_v16 }
 0x29d   : > { %v9290_v31 = vunpack.c.h.bf16 %v9461_v27  ;;  %v9289_v33 = vunpack.c.l.bf16 %v9461_v27  ;;  %v9341_v27 = vunpack.c.l.bf16 %v9474_v14 }
 0x29e   : > { %v1669_v58 = vmul.f32 %v11231_v55, %v1534_v50 }
 0x29f   : > { %v1409_v42 = vadd.f32 %v9290_v31, %v11372_v63  ;;  %v1408_v51 = vadd.f32 %v9289_v33, %v11372_v63  ;;  %v1542_v31 = vmax.f32 %v1414_v46, 0.0  ;;  %v1416_v33 = vadd.f32 %v9305_v12, %v11372_v63 }
 0x2a0   : > { %1887 = vadd.xlane.f32.xlu1 %v1688_v39  ;;  %1885 = vadd.xlane.f32.xlu0 %v1687_v47  ;;  %v9462_v39 = vld [vmem:[#allocation7 + $0xe0] sm:$0xff]   ;;  %v1668_v47 = vmul.f32 %v11231_v55, %v1533_v56 }
 0x2a1   : > { %v9294_v35 = vunpack.c.h.bf16 %v9462_v39  ;;  %v9293_v44 = vunpack.c.l.bf16 %v9462_v39  ;;  %v1537_v54 = vmax.f32 %v1409_v42, 0.0 }
 0x2a3   : > { %v1410_v13 = vadd.f32 %v9293_v44, %v11372_v63  ;;  %v1672_v62 = vmul.f32 %v11231_v55, %v1537_v54  ;;  %v1544_v44 = vmax.f32 %v1416_v33, 0.0 }
 0x2a4   : > { %1891 = vadd.xlane.f32.xlu1 %v1690_v59  ;;  %1889 = vadd.xlane.f32.xlu0 %v1689_v60  ;;  %v1536_v59 = vmax.f32 %v1408_v51, 0.0  ;;  %v1411_v60 = vadd.f32 %v9294_v35, %v11372_v63  ;;  %v1677_v35 = vmul.f32 %v11231_v55, %v1542_v31 }
 0x2a5   : > { %v1538_v5 = vmax.f32 %v1410_v13, 0.0  ;;  %v1679_v57 = vmul.f32 %v11231_v55, %v1544_v44  ;;  %v9477_v13 = vld [vmem:[#allocation7 + $0x158] sm:$0xff]  }
 0x2a6   : > { %v9354_v1 = vunpack.c.h.bf16 %v9477_v13 }
 0x2a7   : > { %v1673_v15 = vmul.f32 %v11231_v55, %v1538_v5 }
 0x2a8   : > { %1895 = vadd.xlane.f32.xlu1 %v1692_v2  ;;  %1893 = vadd.xlane.f32.xlu0 %v1691_v3  ;;  %v1671_v2 = vmul.f32 %v11231_v55, %v1536_v59  ;;  %v1539_v3 = vmax.f32 %v1411_v60, 0.0  ;;  %v1441_v14 = vadd.f32 %v9354_v1, %v11412_v18 }
 0x2aa   : > { %v1674_v40 = vmul.f32 %v11231_v55, %v1539_v3  ;;  %v1569_v31 = vmax.f32 %v1441_v14, 0.0 }
 0x2ac   : > { %1899 = vadd.xlane.f32.xlu1 %v1694_v8  ;;  %1897 = vadd.xlane.f32.xlu0 %v1693_v11  ;;  %v9306_v11 = vunpack.c.h.bf16 %v9465_v7 }
 0x2ae   : > { %v1417_v26 = vadd.f32 %v9306_v11, %v11372_v63  ;;  %v9476_v63 = vld [vmem:[#allocation7 + $0x150] sm:$0xff]  }
 0x2af   : > { %v9350_v54 = vunpack.c.h.bf16 %v9476_v63  ;;  %v9349_v29 = vunpack.c.l.bf16 %v9476_v63 }
 0x2b0   : > { %1903 = vadd.xlane.f32.xlu1 %v1696_v38  ;;  %1901 = vadd.xlane.f32.xlu0 %v1695_v19  ;;  %v1541_v38 = vmax.f32 %v1413_v0, 0.0  ;;  %v1545_v39 = vmax.f32 %v1417_v26, 0.0  ;;  %v9479_v26 = vld [vmem:[#allocation7 + $0x168] sm:$0xff]  }
 0x2b1   : > { %v1439_v0 = vadd.f32 %v9350_v54, %v11412_v18  ;;  %v1438_v43 = vadd.f32 %v9349_v29, %v11412_v18  ;;  %v9362_v33 = vunpack.c.h.bf16 %v9479_v26  ;;  %v9481_v54 = vld [vmem:[#allocation7 + $0x178] sm:$0xff]  }
 0x2b2   : > { %v1676_v28 = vmul.f32 %v11231_v55, %v1541_v38  ;;  %v1680_v52 = vmul.f32 %v11231_v55, %v1545_v39 }
 0x2b3   : > { %v1567_v12 = vmax.f32 %v1439_v0, 0.0  ;;  %v1445_v63 = vadd.f32 %v9362_v33, %v11412_v18  ;;  %v9483_v33 = vld [vmem:[#allocation7 + $0x188] sm:$0xff]  }
 0x2b4   : > { %1843 = vadd.xlane.f32.xlu1 %v1666_v34  ;;  %1841 = vadd.xlane.f32.xlu0 %v1665_v36  ;;  %v9475_v34 = vld [vmem:[#allocation7 + $0x148] sm:$0xff]  }
 0x2b5   : > { %v9346_v41 = vunpack.c.h.bf16 %v9475_v34  ;;  %v9345_v42 = vunpack.c.l.bf16 %v9475_v34  ;;  %v9361_v34 = vunpack.c.l.bf16 %v9479_v26 }
 0x2b7   : > { %v1436_v60 = vadd.f32 %v9345_v42, %v11412_v18 }
 0x2b8   : > { %1847 = vadd.xlane.f32.xlu1 %v1668_v47  ;;  %1845 = vadd.xlane.f32.xlu0 %v1667_v48  ;;  %v1435_v47 = vadd.f32 %v9342_v17, %v11412_v18  ;;  %v1434_v48 = vadd.f32 %v9341_v27, %v11412_v18  ;;  %v1566_v17 = vmax.f32 %v1438_v43, 0.0 }
 0x2b9   : > { %v1564_v7 = vmax.f32 %v1436_v60, 0.0  ;;  %v9370_v60 = vunpack.c.h.bf16 %v9481_v54 }
 0x2ba   : > { %v1562_v59 = vmax.f32 %v1434_v48, 0.0  ;;  %v1704_v48 = vmul.f32 %v11231_v55, %v1569_v31 }
 0x2bb   : > { %v1699_v16 = vmul.f32 %v11231_v55, %v1564_v7 }
 0x2bc   : > { %1851 = vadd.xlane.f32.xlu1 %v1670_v53  ;;  %1849 = vadd.xlane.f32.xlu0 %v1669_v58  ;;  %v1437_v53 = vadd.f32 %v9346_v41, %v11412_v18  ;;  %v1563_v58 = vmax.f32 %v1435_v47, 0.0  ;;  %v1697_v5 = vmul.f32 %v11231_v55, %v1562_v59  ;;  %v1444_v59 = vadd.f32 %v9361_v34, %v11412_v18 }
 0x2be   : > { %v1698_v3 = vmul.f32 %v11231_v55, %v1563_v58  ;;  %v1565_v6 = vmax.f32 %v1437_v53, 0.0 }
 0x2c0   : > { %1855 = vadd.xlane.f32.xlu1 %v1672_v62  ;;  %1853 = vadd.xlane.f32.xlu0 %v1671_v2  ;;  %v9353_v2 = vunpack.c.l.bf16 %v9477_v13  ;;  %v1700_v38 = vmul.f32 %v11231_v55, %v1565_v6  ;;  %v1183_v13 = vcombine.high %v11220_v45, %v11220_v45 }
 0x2c1   : > { %v11402_v8 = vpop.xlane.xlu1 %1749  ;;  %v11404_v9 = vpop.xlane.xlu0 %1745 }
 0x2c2   : > { %v1440_v24 = vadd.f32 %v9353_v2, %v11412_v18  ;;  %v11483_v14 = vrot.slane %v1183_v13, %v11203_v25 }
 0x2c4   : > { %1859 = vadd.xlane.f32.xlu1 %v1674_v40  ;;  %1857 = vadd.xlane.f32.xlu0 %v1673_v15  ;;  %v9358_v40 = vunpack.c.h.bf16 %v9478_v10  ;;  %v9357_v15 = vunpack.c.l.bf16 %v9478_v10  ;;  %v1568_v39 = vmax.f32 %v1440_v24, 0.0  ;;  %v1573_v10 = vmax.f32 %v1445_v63, 0.0 }
 0x2c5   : > { %v11414_v19 = vpop.xlane.xlu1 %1751  ;;  %v11416_v23 = vpop.xlane.xlu0 %1747 }
 0x2c6   : > { %v1443_v41 = vadd.f32 %v9358_v40, %v11412_v18  ;;  %v1442_v42 = vadd.f32 %v9357_v15, %v11412_v18  ;;  %v1703_v29 = vmul.f32 %v11231_v55, %v1568_v39 }
 0x2c8   : > { %1863 = vadd.xlane.f32.xlu1 %v1676_v28  ;;  %1861 = vadd.xlane.f32.xlu0 %v1675_v30  ;;  %v1702_v30 = vmul.f32 %v11231_v55, %v1567_v12  ;;  %v1570_v58 = vmax.f32 %v1442_v42, 0.0  ;;  %v1572_v12 = vmax.f32 %v1444_v59, 0.0  ;;  %v9378_v42 = vunpack.c.h.bf16 %v9483_v33 }
 0x2c9   : > { %v11422_v36 = vpop.xlane.xlu1 %1755  ;;  %v11424_v56 = vpop.xlane.xlu0 %1753 }
 0x2cc   : > { %1867 = vadd.xlane.f32.xlu1 %v1678_v37  ;;  %1865 = vadd.xlane.f32.xlu0 %v1677_v35  ;;  %v1701_v37 = vmul.f32 %v11231_v55, %v1566_v17  ;;  %v9480_v35 = vld [vmem:[#allocation7 + $0x170] sm:$0xff]   ;;  %v9482_v55 = vld [vmem:[#allocation7 + $0x180] sm:$0xff]  }
 0x2cd   : > { %v11430_v50 = vpop.xlane.xlu1 %1759  ;;  %v11432_v51 = vpop.xlane.xlu0 %1757  ;;  %v9365_v53 = vunpack.c.l.bf16 %v9480_v35  ;;  %v9374_v45 = vunpack.c.h.bf16 %v9482_v55  ;;  %v9373_v17 = vunpack.c.l.bf16 %v9482_v55  ;;  %v9485_v55 = vld [vmem:[#allocation7 + $0x198] sm:$0xff]  }
 0x2cf   : > { %v1446_v2 = vadd.f32 %v9365_v53, %v11412_v18  ;;  %v1450_v53 = vadd.f32 %v9373_v17, %v11483_v14 }
 0x2d0   : > { %1871 = vadd.xlane.f32.xlu1 %v1680_v52  ;;  %1869 = vadd.xlane.f32.xlu0 %v1679_v57  ;;  %v9366_v52 = vunpack.c.h.bf16 %v9480_v35  ;;  %v1571_v57 = vmax.f32 %v1443_v41, 0.0  ;;  %v9377_v35 = vunpack.c.l.bf16 %v9483_v33 }
 0x2d1   : > { %v11438_v61 = vpop.xlane.xlu1 %1763  ;;  %v11440_v62 = vpop.xlane.xlu0 %1761 }
 0x2d2   : > { %v1447_v1 = vadd.f32 %v9366_v52, %v11412_v18  ;;  %v1451_v52 = vadd.f32 %v9374_v45, %v11483_v14  ;;  %v9386_v45 = vunpack.c.h.bf16 %v9485_v55 }
 0x2d4   : > { %1907 = vadd.xlane.f32.xlu1 %v1698_v3  ;;  %1905 = vadd.xlane.f32.xlu0 %v1697_v5  ;;  %v9369_v3 = vunpack.c.l.bf16 %v9481_v54  ;;  %v11478_v5 = vld [vmem:[#allocation13] ss:$0 sm:$0xff] }
 0x2d5   : > { %v11446_v46 = vpop.xlane.xlu1 %1767  ;;  %v11448_v11 = vpop.xlane.xlu0 %1765  ;;  %v1706_v6 = vmul.f32 %v11478_v5, %v1571_v57  ;;  %v1705_v7 = vmul.f32 %v11478_v5, %v1570_v58  ;;  %v1708_v24 = vmul.f32 %v11478_v5, %v1573_v10  ;;  %v1707_v26 = vmul.f32 %v11478_v5, %v1572_v12 }
 0x2d6   : > { %v1448_v31 = vadd.f32 %v9369_v3, %v11412_v18  ;;  %v1453_v58 = vadd.f32 %v9378_v42, %v11483_v14  ;;  %v1452_v3 = vadd.f32 %v9377_v35, %v11483_v14 }
 0x2d8   : > { %1911 = vadd.xlane.f32.xlu1 %v1700_v38  ;;  %1909 = vadd.xlane.f32.xlu0 %v1699_v16  ;;  %v1575_v38 = vmax.f32 %v1447_v1, 0.0  ;;  %v1449_v16 = vadd.f32 %v9370_v60, %v11412_v18  ;;  %v1576_v63 = vmax.f32 %v1448_v31, 0.0  ;;  %v9484_v18 = vld [vmem:[#allocation7 + $0x190] sm:$0xff]   ;;  %v1579_v1 = vmax.f32 %v1451_v52, 0.0 }
 0x2d9   : > { %v11454_v27 = vpop.xlane.xlu1 %1771  ;;  %v11456_v28 = vpop.xlane.xlu0 %1769  ;;  %v9382_v59 = vunpack.c.h.bf16 %v9484_v18  ;;  %v9381_v60 = vunpack.c.l.bf16 %v9484_v18  ;;  %v9487_v18 = vld [vmem:[#allocation7 + $0x1a8] sm:$0xff]  }
 0x2da   : > { %v1710_v39 = vmul.f32 %v11478_v5, %v1575_v38  ;;  %v1577_v41 = vmax.f32 %v1449_v16, 0.0  ;;  %v1711_v13 = vmul.f32 %v11478_v5, %v1576_v63  ;;  %v9385_v38 = vunpack.c.l.bf16 %v9485_v55 }
 0x2db   : > { %v1455_v10 = vadd.f32 %v9382_v59, %v11483_v14  ;;  %v1454_v12 = vadd.f32 %v9381_v60, %v11483_v14  ;;  %v1714_v16 = vmul.f32 %v11478_v5, %v1579_v1  ;;  %v9393_v1 = vunpack.c.l.bf16 %v9487_v18 }
 0x2dc   : > { %1915 = vadd.xlane.f32.xlu1 %v1702_v30  ;;  %1913 = vadd.xlane.f32.xlu0 %v1701_v37  ;;  %v1574_v30 = vmax.f32 %v1446_v2, 0.0  ;;  %v1712_v57 = vmul.f32 %v11478_v5, %v1577_v41  ;;  %v1578_v2 = vmax.f32 %v1450_v53, 0.0  ;;  %v1457_v41 = vadd.f32 %v9386_v45, %v11483_v14 }
 0x2dd   : > { %v11462_v44 = vpop.xlane.xlu1 %1775  ;;  %v11464_v47 = vpop.xlane.xlu0 %1773  ;;  %v1582_v52 = vmax.f32 %v1454_v12, 0.0  ;;  %v1456_v53 = vadd.f32 %v9385_v38, %v11483_v14  ;;  %v9488_v12 = vld [vmem:[#allocation7 + $0x1b0] sm:$0xff]  }
 0x2de   : > { %v1713_v17 = vmul.f32 %v11478_v5, %v1578_v2  ;;  %v1585_v60 = vmax.f32 %v1457_v41, 0.0 }
 0x2df   : > { %v1717_v2 = vmul.f32 %v11478_v5, %v1582_v52 }
 0x2e0   : > { %1919 = vadd.xlane.f32.xlu1 %v1704_v48  ;;  %1917 = vadd.xlane.f32.xlu0 %v1703_v29  ;;  %v1709_v48 = vmul.f32 %v11478_v5, %v1574_v30  ;;  %v9486_v30 = vld [vmem:[#allocation7 + $0x1a0] sm:$0xff]  }
 0x2e1   : > { %v11472_v0 = vpop.xlane.xlu1 %1779  ;;  %v11474_v43 = vpop.xlane.xlu0 %1777  ;;  %v9390_v42 = vunpack.c.h.bf16 %v9486_v30  ;;  %v9389_v35 = vunpack.c.l.bf16 %v9486_v30  ;;  %v9489_v30 = vld [vmem:[#allocation7 + $0x1b8] sm:$0xff]  }
 0x2e3   : > { %v1459_v55 = vadd.f32 %v9390_v42, %v11483_v14 }
 0x2e4   : > { %1923 = vadd.xlane.f32.xlu1 %v1706_v6  ;;  %1921 = vadd.xlane.f32.xlu0 %v1705_v7 }
 0x2e5   : > { %v11485_v40 = vpop.xlane.xlu1 %1783  ;;  %v11487_v15 = vpop.xlane.xlu0 %1781  ;;  %v1587_v41 = vmax.f32 %v1459_v55, 0.0 }
 0x2e8   : > { %1927 = vadd.xlane.f32.xlu1 %v1708_v24  ;;  %1925 = vadd.xlane.f32.xlu0 %v1707_v26  ;;  %v1581_v24 = vmax.f32 %v1453_v58, 0.0  ;;  %v1580_v26 = vmax.f32 %v1452_v3, 0.0  ;;  %v1584_v3 = vmax.f32 %v1456_v53, 0.0 }
 0x2e9   : > { %v11493_v34 = vpop.xlane.xlu1 %1787  ;;  %v11495_v37 = vpop.xlane.xlu0 %1785 }
 0x2ea   : > { %v1715_v63 = vmul.f32 %v11478_v5, %v1580_v26  ;;  %v9397_v26 = vunpack.c.l.bf16 %v9488_v12 }
 0x2ec   : > { %1931 = vadd.xlane.f32.xlu1 %v1710_v39  ;;  %1929 = vadd.xlane.f32.xlu0 %v1709_v48  ;;  %v1583_v39 = vmax.f32 %v1455_v10, 0.0  ;;  %v1716_v48 = vmul.f32 %v11478_v5, %v1581_v24  ;;  %v1458_v10 = vadd.f32 %v9389_v35, %v11483_v14  ;;  %v9398_v24 = vunpack.c.h.bf16 %v9488_v12 }
 0x2ed   : > { %v11501_v54 = vpop.xlane.xlu1 %1791  ;;  %v11503_v29 = vpop.xlane.xlu0 %1789  ;;  %v1460_v35 = vadd.f32 %v9393_v1, %v11483_v14 }
 0x2ee   : > { %v1718_v59 = vmul.f32 %v11478_v5, %v1583_v39  ;;  %v1719_v39 = vmul.f32 %v11478_v5, %v1584_v3  ;;  %v1586_v42 = vmax.f32 %v1458_v10, 0.0 }
 0x2ef   : > { %v1588_v55 = vmax.f32 %v1460_v35, 0.0  ;;  %v9491_v35 = vld [vmem:[#allocation7 + $0x1c8] sm:$0xff]  }
 0x2f0   : > { %1935 = vadd.xlane.f32.xlu1 %v1712_v57  ;;  %1933 = vadd.xlane.f32.xlu0 %v1711_v13  ;;  %v9394_v13 = vunpack.c.h.bf16 %v9487_v18  ;;  %v1463_v18 = vadd.f32 %v9398_v24, %v11483_v14  ;;  %v1721_v1 = vmul.f32 %v11478_v5, %v1586_v42  ;;  %v9410_v4 = vunpack.c.h.bf16 %v9491_v35 }
 0x2f1   : > { %v11509_v6 = vpop.xlane.xlu1 %1795  ;;  %v11511_v7 = vpop.xlane.xlu0 %1793 }
 0x2f2   : > { %v1591_v24 = vmax.f32 %v1463_v18, 0.0 }
 0x2f4   : > { %1939 = vadd.xlane.f32.xlu1 %v1714_v16  ;;  %1937 = vadd.xlane.f32.xlu0 %v1713_v17  ;;  %v1720_v16 = vmul.f32 %v11478_v5, %v1585_v60  ;;  %v1461_v17 = vadd.f32 %v9394_v13, %v11483_v14  ;;  %v9401_v60 = vunpack.c.l.bf16 %v9489_v30  ;;  %v9490_v13 = vld [vmem:[#allocation7 + $0x1c0] sm:$0xff]  }
 0x2f5   : > { %v11517_v31 = vpop.xlane.xlu1 %1799  ;;  %v11519_v33 = vpop.xlane.xlu0 %1797  ;;  %v9406_v10 = vunpack.c.h.bf16 %v9490_v13 }
 0x2f6   : > { %v1589_v3 = vmax.f32 %v1461_v17, 0.0  ;;  %v1464_v42 = vadd.f32 %v9401_v60, %v11483_v14 }
 0x2f8   : > { %1943 = vadd.xlane.f32.xlu1 %v1716_v48  ;;  %1941 = vadd.xlane.f32.xlu0 %v1715_v63  ;;  %v9402_v48 = vunpack.c.h.bf16 %v9489_v30  ;;  %v1185_v63 = vcombine.high %v11227_v49, %v11227_v49  ;;  %v9405_v30 = vunpack.c.l.bf16 %v9490_v13 }
 0x2f9   : > { %v11525_v57 = vpop.xlane.xlu1 %1803  ;;  %v11527_v58 = vpop.xlane.xlu0 %1801 }
 0x2fa   : > { %v11552_v49 = vrot.slane %v1185_v63, %v11203_v25 }
 0x2fc   : > { %1947 = vadd.xlane.f32.xlu1 %v1718_v59  ;;  %1945 = vadd.xlane.f32.xlu0 %v1717_v2  ;;  %v1462_v59 = vadd.f32 %v9397_v26, %v11483_v14  ;;  %v1722_v2 = vmul.f32 %v11478_v5, %v1587_v41  ;;  %v1465_v26 = vadd.f32 %v9402_v48, %v11483_v14  ;;  %v9409_v48 = vunpack.c.l.bf16 %v9491_v35  ;;  %v9492_v14 = vld [vmem:[#allocation7 + $0x1d0] sm:$0xff]  }
 0x2fd   : > { %v11533_v45 = vpop.xlane.xlu1 %1807  ;;  %v11535_v38 = vpop.xlane.xlu0 %1805  ;;  %v1723_v41 = vmul.f32 %v11478_v5, %v1588_v55  ;;  %v1467_v55 = vadd.f32 %v9406_v10, %v11552_v49  ;;  %v9413_v35 = vunpack.c.l.bf16 %v9492_v14 }
 0x2fe   : > { %v1590_v17 = vmax.f32 %v1462_v59, 0.0  ;;  %v1593_v18 = vmax.f32 %v1465_v26, 0.0  ;;  %v1466_v59 = vadd.f32 %v9405_v30, %v11552_v49  ;;  %v9414_v26 = vunpack.c.h.bf16 %v9492_v14  ;;  %v9493_v30 = vld [vmem:[#allocation7 + $0x1d8] sm:$0xff]  }
 0x2ff   : > { %v1468_v10 = vadd.f32 %v9409_v48, %v11552_v49  ;;  %v9417_v20 = vunpack.c.l.bf16 %v9493_v30  ;;  %v9494_v48 = vld [vmem:[#allocation7 + $0x1e0] sm:$0xff]  }
 0x300   : > { %1951 = vadd.xlane.f32.xlu1 %v1720_v16  ;;  %1949 = vadd.xlane.f32.xlu0 %v1719_v39  ;;  %v1724_v39 = vmul.f32 %v11478_v5, %v1589_v3  ;;  %v1725_v13 = vmul.f32 %v11478_v5, %v1590_v17  ;;  %v1592_v3 = vmax.f32 %v1464_v42, 0.0  ;;  %v1595_v42 = vmax.f32 %v1467_v55, 0.0 }
 0x301   : > { %v11543_v52 = vpop.xlane.xlu1 %1811  ;;  %v11545_v53 = vpop.xlane.xlu0 %1809  ;;  %v1594_v21 = vmax.f32 %v1466_v59, 0.0  ;;  %v1471_v32 = vadd.f32 %v9414_v26, %v11552_v49  ;;  %v1596_v59 = vmax.f32 %v1468_v10, 0.0  ;;  %v9422_v22 = vunpack.c.h.bf16 %v9494_v48 }
 0x302   : > { %v1727_v17 = vmul.f32 %v11478_v5, %v1592_v3  ;;  %v1730_v14 = vmul.f32 %v11478_v5, %v1595_v42 }
 0x303   : > { %v1729_v3 = vmul.f32 %v11478_v5, %v1594_v21  ;;  %v1599_v25 = vmax.f32 %v1471_v32, 0.0  ;;  %v1731_v42 = vmul.f32 %v11478_v5, %v1596_v59  ;;  %v1472_v21 = vadd.f32 %v9417_v20, %v11552_v49  ;;  %v9496_v20 = vld [vmem:[#allocation7 + $0x1f0] sm:$0xff]  }
 0x304   : > { %1955 = vadd.xlane.f32.xlu1 %v1722_v2  ;;  %1953 = vadd.xlane.f32.xlu0 %v1721_v1  ;;  %v1726_v1 = vmul.f32 %v11478_v5, %v1591_v24  ;;  %v1469_v24 = vadd.f32 %v9410_v4, %v11552_v49  ;;  %v9418_v4 = vunpack.c.h.bf16 %v9493_v30  ;;  %v1475_v59 = vadd.f32 %v9422_v22, %v11552_v49 }
 0x305   : > { %v11554_v12 = vpop.xlane.xlu1 %1815  ;;  %v11556_v16 = vpop.xlane.xlu0 %1813  ;;  %v1734_v32 = vmul.f32 %v11478_v5, %v1599_v25 }
 0x306   : > { %v1597_v55 = vmax.f32 %v1469_v24, 0.0  ;;  %v1473_v26 = vadd.f32 %v9418_v4, %v11552_v49  ;;  %v9495_v24 = vld [vmem:[#allocation7 + $0x1e8] sm:$0xff]  }
 0x307   : > { %v9426_v4 = vunpack.c.h.bf16 %v9495_v24 }
 0x308   : > { %1959 = vadd.xlane.f32.xlu1 %v1724_v39  ;;  %1957 = vadd.xlane.f32.xlu0 %v1723_v41  ;;  %v1728_v41 = vmul.f32 %v11478_v5, %v1593_v18  ;;  %v1470_v18 = vadd.f32 %v9413_v35, %v11552_v49  ;;  %v9421_v35 = vunpack.c.l.bf16 %v9494_v48  ;;  %v1732_v30 = vmul.f32 %v11478_v5, %v1597_v55 }
 0x309   : > { %v11562_v63 = vpop.xlane.xlu1 %1819  ;;  %v11564_v2 = vpop.xlane.xlu0 %1817  ;;  %v1600_v55 = vmax.f32 %v1472_v21, 0.0  ;;  %v1477_v25 = vadd.f32 %v9426_v4, %v11552_v49  ;;  %v1603_v21 = vmax.f32 %v1475_v59, 0.0 }
 0x30c   : > { %1963 = vadd.xlane.f32.xlu1 %v1726_v1  ;;  %1961 = vadd.xlane.f32.xlu0 %v1725_v13 }
 0x30d   : > { %v11570_v60 = vpop.xlane.xlu1 %1823  ;;  %v11572_v39 = vpop.xlane.xlu0 %1821 }
 0x310   : > { %1967 = vadd.xlane.f32.xlu1 %v1728_v41  ;;  %1965 = vadd.xlane.f32.xlu0 %v1727_v17 }
 0x311   : > { %v11578_v1 = vpop.xlane.xlu1 %1827  ;;  %v11580_v13 = vpop.xlane.xlu0 %1825 }
 0x312   : > { %17059 = vst [vmem:[#allocation37_spill] sm:$0xff] %v11578_v1  ;;  %v1598_v1 = vmax.f32 %v1470_v18, 0.0  ;;  %v1474_v18 = vadd.f32 %v9421_v35, %v11552_v49  ;;  %v9497_v35 = vld [vmem:[#allocation7 + $0x1f8] sm:$0xff]  }
 0x313   : > { %v9433_v4 = vunpack.c.l.bf16 %v9497_v35 }
 0x314   : > { %1971 = vadd.xlane.f32.xlu1 %v1730_v14  ;;  %1969 = vadd.xlane.f32.xlu0 %v1729_v3  ;;  %v1601_v3 = vmax.f32 %v1473_v26, 0.0  ;;  %v1733_v48 = vmul.f32 %v11478_v5, %v1598_v1  ;;  %v9430_v26 = vunpack.c.h.bf16 %v9496_v20  ;;  %v1735_v1 = vmul.f32 %v11478_v5, %v1600_v55 }
 0x315   : > { %v11586_v41 = vpop.xlane.xlu1 %1831  ;;  %v11588_v17 = vpop.xlane.xlu0 %1829 }
 0x316   : > { %17060 = vst [vmem:[#allocation38_spill] sm:$0xff] %v11586_v41  ;;  %v9425_v41 = vunpack.c.l.bf16 %v9495_v24  ;;  %v9429_v24 = vunpack.c.l.bf16 %v9496_v20  ;;  %v1738_v20 = vmul.f32 %v11478_v5, %v1603_v21  ;;  %v1480_v21 = vadd.f32 %v9433_v4, %v11552_v49 }
 0x318   : > { %1975 = vadd.xlane.f32.xlu1 %v1732_v30  ;;  %1973 = vadd.xlane.f32.xlu0 %v1731_v42  ;;  %v1476_v22 = vadd.f32 %v9425_v41, %v11552_v49 }
 0x319   : > { %v11594_v10 = vpop.xlane.xlu1 %1835  ;;  %v11596_v14 = vpop.xlane.xlu0 %1833 }
 0x31a   : > { %17061 = vst [vmem:[#allocation39_spill] sm:$0xff] %v11594_v10  ;;  %17062 = vst [vmem:[#allocation40_spill] sm:$0xff] %v11596_v14  ;;  %v1736_v10 = vmul.f32 %v11478_v5, %v1601_v3  ;;  %v1602_v14 = vmax.f32 %v1474_v18, 0.0  ;;  %v1479_v3 = vadd.f32 %v9430_v26, %v11552_v49  ;;  %v1604_v59 = vmax.f32 %v1476_v22, 0.0 }
 0x31b   : > { %v1478_v18 = vadd.f32 %v9429_v24, %v11552_v49 }
 0x31c   : > { %1979 = vadd.xlane.f32.xlu1 %v1734_v32  ;;  %1977 = vadd.xlane.f32.xlu0 %v1733_v48  ;;  %v1737_v55 = vmul.f32 %v11478_v5, %v1602_v14 }
 0x31d   : > { %v11602_v30 = vpop.xlane.xlu1 %1839  ;;  %v11604_v42 = vpop.xlane.xlu0 %1837 }
 0x31e   : > { %17063 = vst [vmem:[#allocation41_spill] sm:$0xff] %v11602_v30  ;;  %17064 = vst [vmem:[#allocation42_spill] sm:$0xff] %v11604_v42  ;;  %v1605_v30 = vmax.f32 %v1477_v25, 0.0  ;;  %v9434_v42 = vunpack.c.h.bf16 %v9497_v35  ;;  %v1739_v35 = vmul.f32 %v11478_v5, %v1604_v59 }
 0x320   : > { %1983 = vadd.xlane.f32.xlu1 %v1736_v10  ;;  %1981 = vadd.xlane.f32.xlu0 %v1735_v1  ;;  %v1607_v1 = vmax.f32 %v1479_v3, 0.0  ;;  %v1481_v25 = vadd.f32 %v9434_v42, %v11552_v49  ;;  %v1740_v26 = vmul.f32 %v11478_v5, %v1605_v30 }
 0x321   : > { %v11610_v32 = vpop.xlane.xlu1 %1875  ;;  %v11612_v48 = vpop.xlane.xlu0 %1873 }
 0x322   : > { %17065 = vst [vmem:[#allocation43_spill] sm:$0xff] %v11610_v32  ;;  %17066 = vst [vmem:[#allocation44_spill] sm:$0xff] %v11612_v48  ;;  %v1606_v32 = vmax.f32 %v1478_v18, 0.0  ;;  %v1742_v22 = vmul.f32 %v11478_v5, %v1607_v1  ;;  %v1609_v3 = vmax.f32 %v1481_v25, 0.0  ;;  %v17077_v25 = vlaneseq }
 0x324   : > { %1987 = vadd.xlane.f32.xlu1 %v1738_v20  ;;  %1985 = vadd.xlane.f32.xlu0 %v1737_v55  ;;  %v1741_v20 = vmul.f32 %v11478_v5, %v1606_v32  ;;  %v1608_v55 = vmax.f32 %v1480_v21, 0.0  ;;  %v1744_v49 = vmul.f32 %v11478_v5, %v1609_v3 }
 0x325   : > { %v11618_v41 = vpop.xlane.xlu1 %1879  ;;  %v11620_v10 = vpop.xlane.xlu0 %1877 }
 0x326   : > { %17067 = vst [vmem:[#allocation45_spill] sm:$0xff] %v11618_v41  ;;  %17068 = vst [vmem:[#allocation46_spill] sm:$0xff] %v11620_v10  ;;  %v1743_v4 = vmul.f32 %v11478_v5, %v1608_v55 }
 0x328   : > { %1991 = vadd.xlane.f32.xlu1 %v1740_v26  ;;  %1989 = vadd.xlane.f32.xlu0 %v1739_v35  ;;  %v11647_v26 = vand.u32 127, %v17077_v25 }
 0x329   : > { %v11626_v14 = vpop.xlane.xlu1 %1883  ;;  %v11628_v24 = vpop.xlane.xlu0 %1881 }
 0x32a   : > { %17069 = vst [vmem:[#allocation47_spill] sm:$0xff] %v11626_v14  ;;  %17070 = vst [vmem:[#allocation48_spill] sm:$0xff] %v11628_v24  ;;  %vm2003_vm0 = vcmp.lt.s32.totalorder %v11647_v26, 16 }
 0x32b   : > { %17078 = vst [vmem:[#allocation55_spill] sm:$0xff] %v11647_v26 }
 0x32c   : > { %1995 = vadd.xlane.f32.xlu1 %v1742_v22  ;;  %1993 = vadd.xlane.f32.xlu0 %v1741_v20  ;;  %v10782_v20 = vmov -1e+30  }
 0x32d   : > { %v11632_v30 = vpop.xlane.xlu1 %1887  ;;  %v11634_v42 = vpop.xlane.xlu0 %1885  ;;  %v2004_v3 = vsel %vm2003_vm0, 0.0, %v10782_v20  ;;  %vm16733_vm0 = vcmask 1041409  }
 0x32e   : > { %17071 = vst [vmem:[#allocation49_spill] sm:$0xff] %v11632_v30  ;;  %17072 = vst [vmem:[#allocation50_spill] sm:$0xff] %v11634_v42 }
 0x330   : > { %1999 = vadd.xlane.f32.xlu1 %v1744_v49  ;;  %1997 = vadd.xlane.f32.xlu0 %v1743_v4 }
 0x331   : > { %v11638_v59 = vpop.xlane.xlu1 %1891  ;;  %v11640_v18 = vpop.xlane.xlu0 %1889 }
 0x332   : > { %17073 = vst [vmem:[#allocation51_spill] sm:$0xff] %v11638_v59  ;;  %17074 = vst [vmem:[#allocation52_spill] sm:$0xff] %v11640_v18 }
 0x335   : > { %v11642_v1 = vpop.xlane.xlu1 %1895  ;;  %v11644_v32 = vpop.xlane.xlu0 %1893 }
 0x336   : > { %17075 = vst [vmem:[#allocation53_spill] sm:$0xff] %v11642_v1  ;;  %17076 = vst [vmem:[#allocation54_spill] sm:$0xff] %v11644_v32 }
 0x339   : > { %v11649_v35 = vpop.xlane.xlu1 %1899  ;;  %v11651_v21 = vpop.xlane.xlu0 %1897 }
 0x33a   : > { %17079 = vst [vmem:[#allocation56_spill] sm:$0xff] %v11649_v35  ;;  %17080 = vst [vmem:[#allocation57_spill] sm:$0xff] %v11651_v21 }
 0x33d   : > { %v11654_v5 = vpop.xlane.xlu1 %1903  ;;  %v11656_v22 = vpop.xlane.xlu0 %1901 }
 0x33e   : > { %17081 = vst [vmem:[#allocation58_spill] sm:$0xff] %v11654_v5  ;;  %17082 = vst [vmem:[#allocation59_spill] sm:$0xff] %v11656_v22 }
 0x341   : > { %v11658_v55 = vpop.xlane.xlu1 %1843  ;;  %v11660_v49 = vpop.xlane.xlu0 %1841  ;;  %2011 = vbcast.lane.b32.xlu1 %v2004_v3, 264 }
 0x345   : > { %v11662_v4 = vpop.xlane.xlu1 %1847  ;;  %v11664_v25 = vpop.xlane.xlu0 %1845  ;;  %2015 = vbcast.lane.b32.xlu1 %v2004_v3, 272 }
 0x346   : > { %2007 = vbcast.lane.b32.xlu0 %v2004_v3, 256 }
 0x349   : > { %v11666_v35 = vpop.xlane.xlu1 %1851  ;;  %v11668_v26 = vpop.xlane.xlu0 %1849  ;;  %2019 = vbcast.lane.b32.xlu1 %v2004_v3, 280 }
 0x34a   : > { %2023 = vbcast.lane.b32.xlu0 %v2004_v3, 288 }
 0x34d   : > { %v11670_v5 = vpop.xlane.xlu1 %1855  ;;  %v11672_v20 = vpop.xlane.xlu0 %1853  ;;  %2027 = vbcast.lane.b32.xlu1 %v2004_v3, 296 }
 0x34e   : > { %2031 = vbcast.lane.b32.xlu0 %v2004_v3, 304 }
 0x351   : > { %v11674_v22 = vpop.xlane.xlu1 %1859  ;;  %v11676_v21 = vpop.xlane.xlu0 %1857  ;;  %2035 = vbcast.lane.b32.xlu1 %v2004_v3, 312 }
 0x352   : > { %2039 = vbcast.lane.b32.xlu0 %v2004_v3, 320 }
 0x355   : > { %v11678_v1 = vpop.xlane.xlu1 %1863  ;;  %v11680_v32 = vpop.xlane.xlu0 %1861  ;;  %2043 = vbcast.lane.b32.xlu1 %v2004_v3, 328 }
 0x356   : > { %17083 = vst [vmem:[#allocation60_spill] sm:$0xff] %v11678_v1  ;;  %2047 = vbcast.lane.b32.xlu0 %v2004_v3, 336 }
 0x359   : > { %v11682_v59 = vpop.xlane.xlu1 %1867  ;;  %v11684_v18 = vpop.xlane.xlu0 %1865  ;;  %2051 = vbcast.lane.b32.xlu1 %v2004_v3, 344 }
 0x35a   : > { %17084 = vst [vmem:[#allocation61_spill] sm:$0xff] %v11682_v59  ;;  %17085 = vst [vmem:[#allocation62_spill] sm:$0xff] %v11684_v18  ;;  %2055 = vbcast.lane.b32.xlu0 %v2004_v3, 352 }
 0x35d   : > { %v11686_v30 = vpop.xlane.xlu1 %1871  ;;  %v11688_v42 = vpop.xlane.xlu0 %1869  ;;  %2059 = vbcast.lane.b32.xlu1 %v2004_v3, 360 }
 0x35e   : > { %17086 = vst [vmem:[#allocation63_spill] sm:$0xff] %v11686_v30  ;;  %17087 = vst [vmem:[#allocation64_spill] sm:$0xff] %v11688_v42  ;;  %2063 = vbcast.lane.b32.xlu0 %v2004_v3, 368 }
 0x361   : > { %v11690_v14 = vpop.xlane.xlu1 %1907  ;;  %v11692_v24 = vpop.xlane.xlu0 %1905  ;;  %2067 = vbcast.lane.b32.xlu1 %v2004_v3, 376 }
 0x362   : > { %17088 = vst [vmem:[#allocation65_spill] sm:$0xff] %v11690_v14  ;;  %17089 = vst [vmem:[#allocation66_spill] sm:$0xff] %v11692_v24 }
 0x365   : > { %v11694_v41 = vpop.xlane.xlu1 %1911  ;;  %v11696_v10 = vpop.xlane.xlu0 %1909 }
 0x366   : > { %17090 = vst [vmem:[#allocation67_spill] sm:$0xff] %v11694_v41  ;;  %17091 = vst [vmem:[#allocation68_spill] sm:$0xff] %v11696_v10 }
 0x369   : > { %v11698_v48 = vpop.xlane.xlu1 %1915  ;;  %v11700_v59 = vpop.xlane.xlu0 %1913 }
 0x36a   : > { %17092 = vst [vmem:[#allocation69_spill] sm:$0xff] %v11698_v48  ;;  %17093 = vst [vmem:[#allocation70_spill] sm:$0xff] %v11700_v59 }
 0x36d   : > { %v11702_v18 = vpop.xlane.xlu1 %1919  ;;  %v11704_v30 = vpop.xlane.xlu0 %1917 }
 0x36e   : > { %17094 = vst [vmem:[#allocation71_spill] sm:$0xff] %v11702_v18  ;;  %17095 = vst [vmem:[#allocation72_spill] sm:$0xff] %v11704_v30 }
 0x371   : > { %v11706_v42 = vpop.xlane.xlu1 %1923  ;;  %v11708_v1 = vpop.xlane.xlu0 %1921 }
 0x372   : > { %17096 = vst [vmem:[#allocation73_spill] sm:$0xff] %v11706_v42  ;;  %17097 = vst [vmem:[#allocation74_spill] sm:$0xff] %v11708_v1 }
 0x375   : > { %v11710_v14 = vpop.xlane.xlu1 %1927  ;;  %v11712_v24 = vpop.xlane.xlu0 %1925 }
 0x376   : > { %17098 = vst [vmem:[#allocation75_spill] sm:$0xff] %v11710_v14  ;;  %17099 = vst [vmem:[#allocation76_spill] sm:$0xff] %v11712_v24 }
 0x379   : > { %v11714_v3 = vpop.xlane.xlu1 %1931  ;;  %v11716_v41 = vpop.xlane.xlu0 %1929 }
 0x37a   : > { %17100 = vst [vmem:[#allocation77_spill] sm:$0xff] %v11714_v3  ;;  %17101 = vst [vmem:[#allocation78_spill] sm:$0xff] %v11716_v41 }
 0x37d   : > { %v11718_v10 = vpop.xlane.xlu1 %1935  ;;  %v11720_v48 = vpop.xlane.xlu0 %1933 }
 0x37e   : > { %17102 = vst [vmem:[#allocation79_spill] sm:$0xff] %v11718_v10  ;;  %17103 = vst [vmem:[#allocation80_spill] sm:$0xff] %v11720_v48 }
 0x381   : > { %v11722_v59 = vpop.xlane.xlu1 %1939  ;;  %v11724_v18 = vpop.xlane.xlu0 %1937 }
 0x382   : > { %17104 = vst [vmem:[#allocation81_spill] sm:$0xff] %v11722_v59  ;;  %17105 = vst [vmem:[#allocation82_spill] sm:$0xff] %v11724_v18 }
 0x385   : > { %v11726_v30 = vpop.xlane.xlu1 %1943  ;;  %v11728_v42 = vpop.xlane.xlu0 %1941 }
 0x386   : > { %17106 = vst [vmem:[#allocation83_spill] sm:$0xff] %v11726_v30  ;;  %17107 = vst [vmem:[#allocation84_spill] sm:$0xff] %v11728_v42 }
 0x389   : > { %v11730_v1 = vpop.xlane.xlu1 %1947  ;;  %v11732_v14 = vpop.xlane.xlu0 %1945 }
 0x38a   : > { %17108 = vst [vmem:[#allocation85_spill] sm:$0xff] %v11730_v1  ;;  %17109 = vst [vmem:[#allocation86_spill] sm:$0xff] %v11732_v14 }
 0x38d   : > { %v11734_v24 = vpop.xlane.xlu1 %1951  ;;  %v11736_v3 = vpop.xlane.xlu0 %1949 }
 0x38e   : > { %17110 = vst [vmem:[#allocation87_spill] sm:$0xff] %v11734_v24  ;;  %17111 = vst [vmem:[#allocation88_spill] sm:$0xff] %v11736_v3 }
 0x391   : > { %v11738_v41 = vpop.xlane.xlu1 %1955  ;;  %v11740_v10 = vpop.xlane.xlu0 %1953 }
 0x392   : > { %17112 = vst [vmem:[#allocation89_spill] sm:$0xff] %v11738_v41  ;;  %17113 = vst [vmem:[#allocation90_spill] sm:$0xff] %v11740_v10 }
 0x395   : > { %v11742_v48 = vpop.xlane.xlu1 %1959  ;;  %v11744_v59 = vpop.xlane.xlu0 %1957 }
 0x396   : > { %17114 = vst [vmem:[#allocation91_spill] sm:$0xff] %v11742_v48  ;;  %17115 = vst [vmem:[#allocation92_spill] sm:$0xff] %v11744_v59 }
 0x399   : > { %v11746_v18 = vpop.xlane.xlu1 %1963  ;;  %v11748_v30 = vpop.xlane.xlu0 %1961 }
 0x39a   : > { %17116 = vst [vmem:[#allocation93_spill] sm:$0xff] %v11746_v18  ;;  %17117 = vst [vmem:[#allocation94_spill] sm:$0xff] %v11748_v30 }
 0x39d   : > { %v11750_v42 = vpop.xlane.xlu1 %1967  ;;  %v11752_v1 = vpop.xlane.xlu0 %1965 }
 0x39e   : > { %17118 = vst [vmem:[#allocation95_spill] sm:$0xff] %v11750_v42  ;;  %17119 = vst [vmem:[#allocation96_spill] sm:$0xff] %v11752_v1 }
 0x3a1   : > { %v11754_v14 = vpop.xlane.xlu1 %1971  ;;  %v11756_v24 = vpop.xlane.xlu0 %1969 }
 0x3a2   : > { %17120 = vst [vmem:[#allocation97_spill] sm:$0xff] %v11754_v14  ;;  %17121 = vst [vmem:[#allocation98_spill] sm:$0xff] %v11756_v24 }
 0x3a5   : > { %v11758_v3 = vpop.xlane.xlu1 %1975  ;;  %v11760_v41 = vpop.xlane.xlu0 %1973 }
 0x3a6   : > { %17122 = vst [vmem:[#allocation99_spill] sm:$0xff] %v11758_v3  ;;  %17123 = vst [vmem:[#allocation100_spill] sm:$0xff] %v11760_v41 }
 0x3a9   : > { %v11762_v10 = vpop.xlane.xlu1 %1979  ;;  %v11764_v48 = vpop.xlane.xlu0 %1977 }
 0x3aa   : > { %17124 = vst [vmem:[#allocation101_spill] sm:$0xff] %v11762_v10  ;;  %17125 = vst [vmem:[#allocation102_spill] sm:$0xff] %v11764_v48 }
 0x3ad   : > { %v11766_v59 = vpop.xlane.xlu1 %1983  ;;  %v11768_v18 = vpop.xlane.xlu0 %1981 }
 0x3ae   : > { %17126 = vst [vmem:[#allocation103_spill] sm:$0xff] %v11766_v59 }
 0x3b1   : > { %v11770_v30 = vpop.xlane.xlu1 %1987  ;;  %v11772_v42 = vpop.xlane.xlu0 %1985 }
 0x3b2   : > { %17127 = vst [vmem:[#allocation104_spill] sm:$0xff] %v11770_v30 }
 0x3b5   : > { %v11774_v1 = vpop.xlane.xlu1 %1991  ;;  %v11776_v14 = vpop.xlane.xlu0 %1989 }
 0x3b6   : > { %17128 = vst [vmem:[#allocation105_spill] sm:$0xff] %v11774_v1 }
 0x3b9   : > { %v11778_v24 = vpop.xlane.xlu1 %1995  ;;  %v11780_v3 = vpop.xlane.xlu0 %1993 }
 0x3ba   : > { %17129 = vst [vmem:[#allocation106_spill] sm:$0xff] %v11778_v24  ;;  %17130 = vst [vmem:[#allocation107_spill] sm:$0xff] %v11780_v3 }
 0x3bd   : > { %v11782_v41 = vpop.xlane.xlu1 %1999  ;;  %v11784_v10 = vpop.xlane.xlu0 %1997 }
 0x3be   : > { %17131 = vst [vmem:[#allocation108_spill] sm:$0xff] %v11782_v41  ;;  %17132 = vst [vmem:[#allocation109_spill] sm:$0xff] %v11784_v10 }
 0x3c1   : > { %v11786_v48 = vpop.permute.xlu1 %2011  ;;  %v11788_v59 = vpop.permute.xlu0 %2007 }
 0x3c2   : > { %v11792_v30 = vadd.f32 %v11786_v48, %v11416_v23  ;;  %v11796_v1 = vadd.f32 %v11788_v59, %v11404_v9 }
 0x3c4   : > { %17133 = vst [vmem:[#allocation110_spill] sm:$0xff] %v11792_v30  ;;  %17134 = vst [vmem:[#allocation111_spill] sm:$0xff] %v11796_v1  ;;  %2345 = vperm.xlu1 %9906, %v11792_v30   ;;  %2342 = vperm.xlu0 %9905, %v11796_v1  }
 0x3c5   : > { %v11800_v24 = vpop.permute.xlu1 %2015  ;;  %v11802_v41 = vpop.permute.xlu0 %2023 }
 0x3c6   : > { %v11806_v10 = vadd.f32 %v11800_v24, %v11402_v8  ;;  %v11819_v30 = vadd.f32 %v11802_v41, %v11424_v56 }
 0x3c8   : > { %17135 = vst [vmem:[#allocation112_spill] sm:$0xff] %v11806_v10  ;;  %2348 = vperm.xlu1 %9906, %v11806_v10   ;;  %17137 = vst [vmem:[#allocation114_spill] sm:$0xff] %v11819_v30 }
 0x3c9   : > { %v11809_v23 = vpop.permute.xlu1 %2019  ;;  %v11811_v3 = vpop.permute.xlu0 %2031 }
 0x3ca   : > { %v11815_v9 = vadd.f32 %v11809_v23, %v11414_v19  ;;  %v11833_v19 = vadd.f32 %v11811_v3, %v11432_v51 }
 0x3cc   : > { %17136 = vst [vmem:[#allocation113_spill] sm:$0xff] %v11815_v9  ;;  %2351 = vperm.xlu0 %9905, %v11815_v9   ;;  %2354 = vperm.xlu1 %9906, %v11819_v30   ;;  %17139 = vst [vmem:[#allocation116_spill] sm:$0xff] %v11833_v19 }
 0x3cd   : > { %v11823_v8 = vpop.permute.xlu1 %2027  ;;  %v11825_v1 = vpop.permute.xlu0 %2039 }
 0x3ce   : > { %v11829_v10 = vadd.f32 %v11823_v8, %v11422_v36  ;;  %v11847_v36 = vadd.f32 %v11825_v1, %v11440_v62 }
 0x3d0   : > { %17138 = vst [vmem:[#allocation115_spill] sm:$0xff] %v11829_v10  ;;  %2357 = vperm.xlu0 %9905, %v11829_v10   ;;  %2360 = vperm.xlu1 %9906, %v11833_v19   ;;  %17141 = vst [vmem:[#allocation118_spill] sm:$0xff] %v11847_v36 }
 0x3d1   : > { %v11837_v56 = vpop.permute.xlu1 %2035  ;;  %v11839_v9 = vpop.permute.xlu0 %2047 }
 0x3d2   : > { %v11843_v30 = vadd.f32 %v11837_v56, %v11430_v50  ;;  %v11861_v50 = vadd.f32 %v11839_v9, %v11448_v11 }
 0x3d4   : > { %17140 = vst [vmem:[#allocation117_spill] sm:$0xff] %v11843_v30  ;;  %2363 = vperm.xlu0 %9905, %v11843_v30   ;;  %2366 = vperm.xlu1 %9906, %v11847_v36   ;;  %17143 = vst [vmem:[#allocation120_spill] sm:$0xff] %v11861_v50 }
 0x3d5   : > { %v11851_v51 = vpop.permute.xlu1 %2043  ;;  %v11853_v10 = vpop.permute.xlu0 %2055 }
 0x3d6   : > { %v11857_v19 = vadd.f32 %v11851_v51, %v11438_v61  ;;  %v11873_v30 = vadd.f32 %v11853_v10, %v11456_v28 }
 0x3d8   : > { %17142 = vst [vmem:[#allocation119_spill] sm:$0xff] %v11857_v19  ;;  %2369 = vperm.xlu0 %9905, %v11857_v19   ;;  %2372 = vperm.xlu1 %9906, %v11861_v50   ;;  %17145 = vst [vmem:[#allocation122_spill] sm:$0xff] %v11873_v30 }
 0x3d9   : > { %v11865_v62 = vpop.permute.xlu1 %2051  ;;  %v11875_v61 = vpop.permute.xlu0 %2063 }
 0x3da   : > { %v11869_v36 = vadd.f32 %v11865_v62, %v11446_v46  ;;  %v11887_v46 = vadd.f32 %v11875_v61, %v11464_v47  ;;  %v11909_v47 = vadd.f32 %v11800_v24, %v11487_v15  ;;  %v11929_v15 = vadd.f32 %v11811_v3, %v11503_v29 }
 0x3db   : > { %v11949_v29 = vadd.f32 %v11839_v9, %v11519_v33  ;;  %v11969_v33 = vadd.f32 %v11875_v61, %v11535_v38  ;;  %v11989_v38 = vadd.f32 %v11800_v24, %v11556_v16  ;;  %v12009_v16 = vadd.f32 %v11811_v3, %v11572_v39 }
 0x3dc   : > { %17144 = vst [vmem:[#allocation121_spill] sm:$0xff] %v11869_v36  ;;  %2375 = vperm.xlu0 %9905, %v11869_v36   ;;  %2378 = vperm.xlu1 %9906, %v11873_v30   ;;  %17147 = vst [vmem:[#allocation124_spill] sm:$0xff] %v11887_v46  ;;  %v11899_v30 = vadd.f32 %v11788_v59, %v11474_v43  ;;  %v11919_v43 = vadd.f32 %v11802_v41, %v11495_v37 }
 0x3dd   : > { %v11879_v11 = vpop.permute.xlu1 %2059  ;;  %17151 = vst [vmem:[#allocation128_spill] sm:$0xff] %v11909_v47  ;;  %17155 = vst [vmem:[#allocation132_spill] sm:$0xff] %v11929_v15  ;;  %v11939_v37 = vadd.f32 %v11825_v1, %v11511_v7  ;;  %v11959_v7 = vadd.f32 %v11853_v10, %v11527_v58  ;;  %v11979_v58 = vadd.f32 %v11788_v59, %v11545_v53 }
 0x3de   : > { %v11883_v50 = vadd.f32 %v11879_v11, %v11454_v27  ;;  %17149 = vst [vmem:[#allocation126_spill] sm:$0xff] %v11899_v30  ;;  %v11905_v27 = vadd.f32 %v11786_v48, %v11472_v0  ;;  %17153 = vst [vmem:[#allocation130_spill] sm:$0xff] %v11919_v43  ;;  %v11925_v0 = vadd.f32 %v11823_v8, %v11493_v34 }
 0x3df   : > { %17157 = vst [vmem:[#allocation134_spill] sm:$0xff] %v11939_v37  ;;  %v11945_v34 = vadd.f32 %v11851_v51, %v11509_v6  ;;  %17159 = vst [vmem:[#allocation136_spill] sm:$0xff] %v11949_v29  ;;  %v11965_v6 = vadd.f32 %v11879_v11, %v11525_v57  ;;  %v11985_v57 = vadd.f32 %v11786_v48, %v11543_v52 }
 0x3e0   : > { %17146 = vst [vmem:[#allocation123_spill] sm:$0xff] %v11883_v50  ;;  %2381 = vperm.xlu0 %9905, %v11883_v50   ;;  %2384 = vperm.xlu1 %9906, %v11887_v46   ;;  %17150 = vst [vmem:[#allocation127_spill] sm:$0xff] %v11905_v27  ;;  %v11999_v53 = vadd.f32 %v11802_v41, %v11564_v2  ;;  %v12005_v52 = vadd.f32 %v11823_v8, %v11562_v63  ;;  %v17174_v63 = vld [vmem:[#allocation37_spill] sm:$0xff]  ;;  %v17258_v46 = vld [vmem:[#allocation71_spill] sm:$0xff] }
 0x3e1   : > { %v11891_v28 = vpop.permute.xlu1 %2067  ;;  %17154 = vst [vmem:[#allocation131_spill] sm:$0xff] %v11925_v0  ;;  %17158 = vst [vmem:[#allocation135_spill] sm:$0xff] %v11945_v34  ;;  %v12019_v2 = vadd.f32 %v11825_v1, %v11580_v13  ;;  %v12025_v39 = vadd.f32 %v11851_v51, %v17174_v63  ;;  %v17181_v63 = vld [vmem:[#allocation39_spill] sm:$0xff]  ;;  %v17262_v50 = vld [vmem:[#allocation73_spill] sm:$0xff] }
 0x3e2   : > { %v11895_v36 = vadd.f32 %v11891_v28, %v11462_v44  ;;  %v11915_v44 = vadd.f32 %v11809_v23, %v11485_v40  ;;  %v11935_v40 = vadd.f32 %v11837_v56, %v11501_v54  ;;  %v11955_v54 = vadd.f32 %v11865_v62, %v11517_v31  ;;  %17161 = vst [vmem:[#allocation138_spill] sm:$0xff] %v11959_v7 }
 0x3e3   : > { %17162 = vst [vmem:[#allocation139_spill] sm:$0xff] %v11965_v6  ;;  %17163 = vst [vmem:[#allocation140_spill] sm:$0xff] %v11969_v33  ;;  %v11975_v31 = vadd.f32 %v11891_v28, %v11533_v45  ;;  %v11995_v45 = vadd.f32 %v11809_v23, %v11554_v12  ;;  %v12015_v12 = vadd.f32 %v11837_v56, %v11570_v60  ;;  %v17177_v60 = vld [vmem:[#allocation38_spill] sm:$0xff] }
 0x3e4   : > { %17148 = vst [vmem:[#allocation125_spill] sm:$0xff] %v11895_v36  ;;  %2387 = vperm.xlu0 %9905, %v11895_v36   ;;  %2390 = vperm.xlu1 %9906, %v11899_v30   ;;  %17152 = vst [vmem:[#allocation129_spill] sm:$0xff] %v11915_v44  ;;  %v12035_v13 = vadd.f32 %v11865_v62, %v17177_v60  ;;  %v17185_v60 = vld [vmem:[#allocation41_spill] sm:$0xff]  ;;  %v17290_v36 = vld [vmem:[#allocation88_spill] sm:$0xff] }
 0x3e5   : > { %17156 = vst [vmem:[#allocation133_spill] sm:$0xff] %v11935_v40  ;;  %17160 = vst [vmem:[#allocation137_spill] sm:$0xff] %v11955_v54  ;;  %v17254_v30 = vld [vmem:[#allocation69_spill] sm:$0xff] }
 0x3e6   : > { %17164 = vst [vmem:[#allocation141_spill] sm:$0xff] %v11975_v31  ;;  %17165 = vst [vmem:[#allocation142_spill] sm:$0xff] %v11979_v58 }
 0x3e7   : > { %17166 = vst [vmem:[#allocation143_spill] sm:$0xff] %v11985_v57  ;;  %17167 = vst [vmem:[#allocation144_spill] sm:$0xff] %v11989_v38 }
 0x3e8   : > { %2393 = vperm.xlu0 %9905, %v11905_v27   ;;  %2396 = vperm.xlu1 %9906, %v11909_v47   ;;  %17168 = vst [vmem:[#allocation145_spill] sm:$0xff] %v11995_v45  ;;  %17169 = vst [vmem:[#allocation146_spill] sm:$0xff] %v11999_v53  ;;  %v17250_v47 = vld [vmem:[#allocation67_spill] sm:$0xff] }
 0x3e9   : > { %17170 = vst [vmem:[#allocation147_spill] sm:$0xff] %v12005_v52  ;;  %17171 = vst [vmem:[#allocation148_spill] sm:$0xff] %v12009_v16 }
 0x3ea   : > { %17172 = vst [vmem:[#allocation149_spill] sm:$0xff] %v12015_v12  ;;  %17173 = vst [vmem:[#allocation150_spill] sm:$0xff] %v12019_v2 }
 0x3eb   : > { %17175 = vst [vmem:[#allocation37_spill] sm:$0xff] %v12025_v39  ;;  %17178 = vst [vmem:[#allocation38_spill] sm:$0xff] %v12035_v13 }
 0x3ec   : > { %2399 = vperm.xlu0 %9905, %v11915_v44   ;;  %2402 = vperm.xlu1 %9906, %v11919_v43   ;;  %v17246_v43 = vld [vmem:[#allocation65_spill] sm:$0xff]  ;;  %v17286_v44 = vld [vmem:[#allocation86_spill] sm:$0xff] }
 0x3f0   : > { %2405 = vperm.xlu0 %9905, %v11925_v0   ;;  %2408 = vperm.xlu1 %9906, %v11929_v15   ;;  %v17241_v15 = vld [vmem:[#allocation58_spill] sm:$0xff] }
 0x3f4   : > { %2411 = vperm.xlu0 %9905, %v11935_v40   ;;  %2414 = vperm.xlu1 %9906, %v11939_v37   ;;  %v17235_v37 = vld [vmem:[#allocation56_spill] sm:$0xff] }
 0x3f5   : > { %v17282_v40 = vld [vmem:[#allocation84_spill] sm:$0xff] }
 0x3f8   : > { %2417 = vperm.xlu0 %9905, %v11945_v34   ;;  %2420 = vperm.xlu1 %9906, %v11949_v29   ;;  %v17230_v29 = vld [vmem:[#allocation53_spill] sm:$0xff] }
 0x3fc   : > { %2423 = vperm.xlu0 %9905, %v11955_v54   ;;  %2426 = vperm.xlu1 %9906, %v11959_v7   ;;  %v17226_v7 = vld [vmem:[#allocation51_spill] sm:$0xff] }
 0x3fd   : > { %v17277_v54 = vld [vmem:[#allocation79_spill] sm:$0xff] }
 0x400   : > { %2429 = vperm.xlu0 %9905, %v11965_v6   ;;  %2432 = vperm.xlu1 %9906, %v11969_v33   ;;  %v17222_v33 = vld [vmem:[#allocation49_spill] sm:$0xff] }
 0x404   : > { %2435 = vperm.xlu0 %9905, %v11975_v31   ;;  %2438 = vperm.xlu1 %9906, %v11979_v58   ;;  %v17271_v31 = vld [vmem:[#allocation77_spill] sm:$0xff] }
 0x408   : > { %2441 = vperm.xlu0 %9905, %v11985_v57   ;;  %2444 = vperm.xlu1 %9906, %v11989_v38  }
 0x40c   : > { %2447 = vperm.xlu0 %9905, %v11995_v45   ;;  %2450 = vperm.xlu1 %9906, %v11999_v53   ;;  %v12029_v53 = vadd.f32 %v11839_v9, %v11588_v17  ;;  %v12045_v17 = vadd.f32 %v11879_v11, %v17181_v63  ;;  %v12069_v63 = vadd.f32 %v11800_v24, %v11664_v25  ;;  %v17266_v45 = vld [vmem:[#allocation75_spill] sm:$0xff] }
 0x40d   : > { %v12089_v25 = vadd.f32 %v11811_v3, %v11672_v20  ;;  %v12109_v20 = vadd.f32 %v11839_v9, %v11680_v32 }
 0x40e   : > { %17176 = vst [vmem:[#allocation151_spill] sm:$0xff] %v12029_v53  ;;  %17182 = vst [vmem:[#allocation39_spill] sm:$0xff] %v12045_v17 }
 0x40f   : > { %17189 = vst [vmem:[#allocation154_spill] sm:$0xff] %v12069_v63  ;;  %17193 = vst [vmem:[#allocation158_spill] sm:$0xff] %v12089_v25 }
 0x410   : > { %2453 = vperm.xlu0 %9905, %v12005_v52   ;;  %2456 = vperm.xlu1 %9906, %v12009_v16   ;;  %v17179_v16 = vld [vmem:[#allocation40_spill] sm:$0xff]  ;;  %17197 = vst [vmem:[#allocation162_spill] sm:$0xff] %v12109_v20 }
 0x411   : > { %v12039_v38 = vadd.f32 %v11853_v10, %v17179_v16  ;;  %v12055_v16 = vadd.f32 %v11891_v28, %v17185_v60  ;;  %v12079_v60 = vadd.f32 %v11802_v41, %v11668_v26  ;;  %v12095_v26 = vadd.f32 %v11837_v56, %v11670_v5  ;;  %v17198_v5 = vld [vmem:[#allocation60_spill] sm:$0xff] }
 0x413   : > { %17180 = vst [vmem:[#allocation40_spill] sm:$0xff] %v12039_v38  ;;  %17186 = vst [vmem:[#allocation41_spill] sm:$0xff] %v12055_v16 }
 0x414   : > { %2459 = vperm.xlu0 %9905, %v12015_v12   ;;  %2462 = vperm.xlu1 %9906, %v12019_v2   ;;  %v17183_v2 = vld [vmem:[#allocation42_spill] sm:$0xff]  ;;  %17191 = vst [vmem:[#allocation156_spill] sm:$0xff] %v12079_v60  ;;  %17194 = vst [vmem:[#allocation159_spill] sm:$0xff] %v12095_v26 }
 0x415   : > { %v12049_v58 = vadd.f32 %v11875_v61, %v17183_v2  ;;  %v12065_v2 = vadd.f32 %v11786_v48, %v11658_v55  ;;  %v12085_v55 = vadd.f32 %v11823_v8, %v11666_v35  ;;  %v12105_v35 = vadd.f32 %v11851_v51, %v11674_v22  ;;  %v17202_v22 = vld [vmem:[#allocation61_spill] sm:$0xff] }
 0x416   : > { %v12125_v32 = vadd.f32 %v11879_v11, %v17202_v22 }
 0x417   : > { %17184 = vst [vmem:[#allocation42_spill] sm:$0xff] %v12049_v58  ;;  %17188 = vst [vmem:[#allocation153_spill] sm:$0xff] %v12065_v2 }
 0x418   : > { %2465 = vperm.xlu0 %9905, %v12025_v39   ;;  %2468 = vperm.xlu1 %9906, %v12029_v53   ;;  %v12059_v53 = vadd.f32 %v11788_v59, %v11660_v49  ;;  %v12075_v49 = vadd.f32 %v11809_v23, %v11662_v4  ;;  %17192 = vst [vmem:[#allocation157_spill] sm:$0xff] %v12085_v55  ;;  %17196 = vst [vmem:[#allocation161_spill] sm:$0xff] %v12105_v35 }
 0x419   : > { %v12099_v4 = vadd.f32 %v11825_v1, %v11676_v21  ;;  %v12115_v21 = vadd.f32 %v11865_v62, %v17198_v5  ;;  %17203 = vst [vmem:[#allocation61_spill] sm:$0xff] %v12125_v32  ;;  %v17206_v5 = vld [vmem:[#allocation63_spill] sm:$0xff] }
 0x41a   : > { %17187 = vst [vmem:[#allocation152_spill] sm:$0xff] %v12059_v53  ;;  %17190 = vst [vmem:[#allocation155_spill] sm:$0xff] %v12075_v49 }
 0x41b   : > { %17195 = vst [vmem:[#allocation160_spill] sm:$0xff] %v12099_v4  ;;  %17199 = vst [vmem:[#allocation60_spill] sm:$0xff] %v12115_v21 }
 0x41c   : > { %2471 = vperm.xlu0 %9905, %v12035_v13   ;;  %2474 = vperm.xlu1 %9906, %v12039_v38  }
 0x420   : > { %2477 = vperm.xlu0 %9905, %v12045_v17   ;;  %2480 = vperm.xlu1 %9906, %v12049_v58   ;;  %v17212_v58 = vld [vmem:[#allocation46_spill] sm:$0xff] }
 0x424   : > { %2483 = vperm.xlu0 %9905, %v12055_v16   ;;  %2486 = vperm.xlu1 %9906, %v12059_v53  }
 0x428   : > { %2489 = vperm.xlu0 %9905, %v12065_v2   ;;  %2492 = vperm.xlu1 %9906, %v12069_v63  }
 0x42c   : > { %2495 = vperm.xlu0 %9905, %v12075_v49   ;;  %2498 = vperm.xlu1 %9906, %v12079_v60  }
 0x430   : > { %2501 = vperm.xlu0 %9905, %v12085_v55   ;;  %2504 = vperm.xlu1 %9906, %v12089_v25   ;;  %v17200_v25 = vld [vmem:[#allocation62_spill] sm:$0xff] }
 0x431   : > { %v12119_v60 = vadd.f32 %v11853_v10, %v17200_v25  ;;  %v12135_v25 = vadd.f32 %v11891_v28, %v17206_v5 }
 0x433   : > { %17201 = vst [vmem:[#allocation62_spill] sm:$0xff] %v12119_v60  ;;  %17207 = vst [vmem:[#allocation63_spill] sm:$0xff] %v12135_v25 }
 0x434   : > { %2507 = vperm.xlu0 %9905, %v12095_v26   ;;  %2510 = vperm.xlu1 %9906, %v12099_v4   ;;  %v17204_v4 = vld [vmem:[#allocation64_spill] sm:$0xff] }
 0x435   : > { %v12129_v63 = vadd.f32 %v11875_v61, %v17204_v4  ;;  %v17210_v4 = vld [vmem:[#allocation43_spill] sm:$0xff] }
 0x436   : > { %v12147_v22 = vadd.f32 %v11786_v48, %v17210_v4 }
 0x437   : > { %17205 = vst [vmem:[#allocation64_spill] sm:$0xff] %v12129_v63 }
 0x438   : > { %2513 = vperm.xlu0 %9905, %v12105_v35   ;;  %2516 = vperm.xlu1 %9906, %v12109_v20   ;;  %v17208_v20 = vld [vmem:[#allocation44_spill] sm:$0xff]  ;;  %17211 = vst [vmem:[#allocation43_spill] sm:$0xff] %v12147_v22 }
 0x439   : > { %v12139_v53 = vadd.f32 %v11788_v59, %v17208_v20  ;;  %v17214_v20 = vld [vmem:[#allocation45_spill] sm:$0xff] }
 0x43b   : > { %17209 = vst [vmem:[#allocation44_spill] sm:$0xff] %v12139_v53 }
 0x43c   : > { %2519 = vperm.xlu0 %9905, %v12115_v21   ;;  %2522 = vperm.xlu1 %9906, %v12119_v60   ;;  %v17218_v21 = vld [vmem:[#allocation47_spill] sm:$0xff] }
 0x440   : > { %2525 = vperm.xlu0 %9905, %v12125_v32   ;;  %2528 = vperm.xlu1 %9906, %v12129_v63   ;;  %v12151_v63 = vadd.f32 %v11800_v24, %v17212_v58 }
 0x442   : > { %17213 = vst [vmem:[#allocation46_spill] sm:$0xff] %v12151_v63 }
 0x443   : > { %v12141_v60 = vpop.permute.xlu1 %2345  ;;  %v12153_v5 = vpop.permute.xlu0 %2342 }
 0x444   : > { %2531 = vperm.xlu0 %9905, %v12135_v25   ;;  %2534 = vperm.xlu1 %9906, %v12139_v53   ;;  %v12161_v25 = vadd.f32 %v11809_v23, %v17214_v20  ;;  %v17216_v53 = vld [vmem:[#allocation48_spill] sm:$0xff] }
 0x445   : > { %v12165_v4 = vadd.f32 %v11802_v41, %v17216_v53 }
 0x446   : > { %17215 = vst [vmem:[#allocation45_spill] sm:$0xff] %v12161_v25 }
 0x447   : > { %v12155_v38 = vpop.permute.xlu1 %2348  ;;  %17217 = vst [vmem:[#allocation48_spill] sm:$0xff] %v12165_v4 }
 0x448   : > { %2537 = vperm.xlu0 %9905, %v12147_v22   ;;  %2540 = vperm.xlu1 %9906, %v12151_v63   ;;  %v12175_v22 = vadd.f32 %v11823_v8, %v17218_v21  ;;  %v17220_v63 = vld [vmem:[#allocation50_spill] sm:$0xff] }
 0x449   : > { %v12179_v20 = vadd.f32 %v11811_v3, %v17220_v63 }
 0x44a   : > { %17219 = vst [vmem:[#allocation47_spill] sm:$0xff] %v12175_v22 }
 0x44b   : > { %v12167_v32 = vpop.permute.xlu1 %2354  ;;  %v12169_v58 = vpop.permute.xlu0 %2351  ;;  %17221 = vst [vmem:[#allocation50_spill] sm:$0xff] %v12179_v20 }
 0x44c   : > { %2543 = vperm.xlu0 %9905, %v12161_v25   ;;  %2546 = vperm.xlu1 %9906, %v12165_v4   ;;  %v12189_v25 = vadd.f32 %v11837_v56, %v17222_v33  ;;  %v17224_v4 = vld [vmem:[#allocation52_spill] sm:$0xff] }
 0x44d   : > { %v12193_v21 = vadd.f32 %v11825_v1, %v17224_v4 }
 0x44e   : > { %17223 = vst [vmem:[#allocation49_spill] sm:$0xff] %v12189_v25 }
 0x44f   : > { %v12181_v35 = vpop.permute.xlu1 %2360  ;;  %v12183_v53 = vpop.permute.xlu0 %2357  ;;  %17225 = vst [vmem:[#allocation52_spill] sm:$0xff] %v12193_v21 }
 0x450   : > { %2549 = vperm.xlu0 %9905, %v12175_v22   ;;  %2552 = vperm.xlu1 %9906, %v12179_v20   ;;  %v12203_v22 = vadd.f32 %v11851_v51, %v17226_v7  ;;  %v17228_v20 = vld [vmem:[#allocation54_spill] sm:$0xff] }
 0x451   : > { %v12207_v33 = vadd.f32 %v11839_v9, %v17228_v20 }
 0x452   : > { %17227 = vst [vmem:[#allocation51_spill] sm:$0xff] %v12203_v22 }
 0x453   : > { %v12195_v26 = vpop.permute.xlu1 %2366  ;;  %v12197_v63 = vpop.permute.xlu0 %2363  ;;  %17229 = vst [vmem:[#allocation54_spill] sm:$0xff] %v12207_v33 }
 0x454   : > { %2555 = vperm.xlu0 %9905, %v12189_v25   ;;  %2558 = vperm.xlu1 %9906, %v12193_v21   ;;  %v12217_v25 = vadd.f32 %v11865_v62, %v17230_v29  ;;  %v17232_v21 = vld [vmem:[#allocation57_spill] sm:$0xff] }
 0x455   : > { %v12221_v7 = vadd.f32 %v11853_v10, %v17232_v21 }
 0x456   : > { %17231 = vst [vmem:[#allocation53_spill] sm:$0xff] %v12217_v25 }
 0x457   : > { %v12209_v55 = vpop.permute.xlu1 %2372  ;;  %v12211_v4 = vpop.permute.xlu0 %2369  ;;  %17233 = vst [vmem:[#allocation57_spill] sm:$0xff] %v12221_v7 }
 0x458   : > { %2561 = vperm.xlu0 %9905, %v12203_v22   ;;  %2564 = vperm.xlu1 %9906, %v12207_v33   ;;  %v12231_v22 = vadd.f32 %v11879_v11, %v17235_v37  ;;  %v17237_v33 = vld [vmem:[#allocation59_spill] sm:$0xff] }
 0x459   : > { %v12235_v29 = vadd.f32 %v11875_v61, %v17237_v33 }
 0x45a   : > { %17236 = vst [vmem:[#allocation56_spill] sm:$0xff] %v12231_v22 }
 0x45b   : > { %v12223_v49 = vpop.permute.xlu1 %2378  ;;  %v12225_v20 = vpop.permute.xlu0 %2375  ;;  %17238 = vst [vmem:[#allocation59_spill] sm:$0xff] %v12235_v29 }
 0x45c   : > { %17234 = vst [vmem:[#allocation163_spill] sm:$0xff] %v12223_v49  ;;  %2567 = vperm.xlu0 %9905, %v12217_v25   ;;  %2570 = vperm.xlu1 %9906, %v12221_v7   ;;  %v12245_v25 = vadd.f32 %v11891_v28, %v17241_v15  ;;  %v17243_v7 = vld [vmem:[#allocation66_spill] sm:$0xff] }
 0x45d   : > { %v12249_v37 = vadd.f32 %v11788_v59, %v17243_v7 }
 0x45e   : > { %17242 = vst [vmem:[#allocation58_spill] sm:$0xff] %v12245_v25 }
 0x45f   : > { %v12237_v2 = vpop.permute.xlu1 %2384  ;;  %v12239_v21 = vpop.permute.xlu0 %2381  ;;  %17244 = vst [vmem:[#allocation66_spill] sm:$0xff] %v12249_v37 }
 0x460   : > { %17239 = vst [vmem:[#allocation164_spill] sm:$0xff] %v12237_v2  ;;  %17240 = vst [vmem:[#allocation165_spill] sm:$0xff] %v12239_v21  ;;  %2573 = vperm.xlu0 %9905, %v12231_v22   ;;  %2576 = vperm.xlu1 %9906, %v12235_v29   ;;  %v12259_v22 = vadd.f32 %v11786_v48, %v17246_v43  ;;  %v17248_v29 = vld [vmem:[#allocation68_spill] sm:$0xff] }
 0x461   : > { %v12263_v15 = vadd.f32 %v11800_v24, %v17248_v29 }
 0x462   : > { %17247 = vst [vmem:[#allocation65_spill] sm:$0xff] %v12259_v22 }
 0x463   : > { %v12251_v16 = vpop.permute.xlu1 %2390  ;;  %v12253_v33 = vpop.permute.xlu0 %2387  ;;  %17249 = vst [vmem:[#allocation68_spill] sm:$0xff] %v12263_v15 }
 0x464   : > { %17245 = vst [vmem:[#allocation166_spill] sm:$0xff] %v12253_v33  ;;  %2579 = vperm.xlu0 %9905, %v12245_v25   ;;  %2582 = vperm.xlu1 %9906, %v12249_v37   ;;  %v12273_v25 = vadd.f32 %v11809_v23, %v17250_v47  ;;  %v17252_v37 = vld [vmem:[#allocation70_spill] sm:$0xff]  ;;  %v17298_v33 = vld [vmem:[#allocation92_spill] sm:$0xff] }
 0x465   : > { %v12277_v43 = vadd.f32 %v11802_v41, %v17252_v37 }
 0x466   : > { %17251 = vst [vmem:[#allocation67_spill] sm:$0xff] %v12273_v25 }
 0x467   : > { %v12265_v17 = vpop.permute.xlu1 %2396  ;;  %v12267_v7 = vpop.permute.xlu0 %2393  ;;  %17253 = vst [vmem:[#allocation70_spill] sm:$0xff] %v12277_v43 }
 0x468   : > { %2585 = vperm.xlu0 %9905, %v12259_v22   ;;  %2588 = vperm.xlu1 %9906, %v12263_v15   ;;  %v12287_v22 = vadd.f32 %v11823_v8, %v17254_v30  ;;  %v17256_v15 = vld [vmem:[#allocation72_spill] sm:$0xff] }
 0x469   : > { %v12291_v47 = vadd.f32 %v11811_v3, %v17256_v15 }
 0x46a   : > { %17255 = vst [vmem:[#allocation69_spill] sm:$0xff] %v12287_v22 }
 0x46b   : > { %v12279_v13 = vpop.permute.xlu1 %2402  ;;  %v12281_v29 = vpop.permute.xlu0 %2399  ;;  %17257 = vst [vmem:[#allocation72_spill] sm:$0xff] %v12291_v47 }
 0x46c   : > { %2591 = vperm.xlu0 %9905, %v12273_v25   ;;  %2594 = vperm.xlu1 %9906, %v12277_v43   ;;  %v12301_v25 = vadd.f32 %v11837_v56, %v17258_v46  ;;  %v17260_v43 = vld [vmem:[#allocation74_spill] sm:$0xff] }
 0x46d   : > { %v12305_v30 = vadd.f32 %v11825_v1, %v17260_v43 }
 0x46e   : > { %17259 = vst [vmem:[#allocation71_spill] sm:$0xff] %v12301_v25 }
 0x46f   : > { %v12293_v39 = vpop.permute.xlu1 %2408  ;;  %v12295_v37 = vpop.permute.xlu0 %2405  ;;  %17261 = vst [vmem:[#allocation74_spill] sm:$0xff] %v12305_v30 }
 0x470   : > { %2597 = vperm.xlu0 %9905, %v12287_v22   ;;  %2600 = vperm.xlu1 %9906, %v12291_v47   ;;  %v12315_v22 = vadd.f32 %v11851_v51, %v17262_v50  ;;  %v17264_v47 = vld [vmem:[#allocation76_spill] sm:$0xff] }
 0x471   : > { %v12319_v46 = vadd.f32 %v11839_v9, %v17264_v47 }
 0x472   : > { %17263 = vst [vmem:[#allocation73_spill] sm:$0xff] %v12315_v22 }
 0x473   : > { %v12307_v12 = vpop.permute.xlu1 %2414  ;;  %v12309_v15 = vpop.permute.xlu0 %2411  ;;  %17265 = vst [vmem:[#allocation76_spill] sm:$0xff] %v12319_v46 }
 0x474   : > { %2603 = vperm.xlu0 %9905, %v12301_v25   ;;  %2606 = vperm.xlu1 %9906, %v12305_v30   ;;  %v12329_v25 = vadd.f32 %v11865_v62, %v17266_v45  ;;  %v17268_v30 = vld [vmem:[#allocation78_spill] sm:$0xff] }
 0x475   : > { %v12333_v50 = vadd.f32 %v11853_v10, %v17268_v30 }
 0x476   : > { %17267 = vst [vmem:[#allocation75_spill] sm:$0xff] %v12329_v25 }
 0x477   : > { %v12321_v52 = vpop.permute.xlu1 %2420  ;;  %v12323_v43 = vpop.permute.xlu0 %2417  ;;  %17269 = vst [vmem:[#allocation78_spill] sm:$0xff] %v12333_v50 }
 0x478   : > { %2609 = vperm.xlu0 %9905, %v12315_v22   ;;  %2612 = vperm.xlu1 %9906, %v12319_v46   ;;  %v12343_v22 = vadd.f32 %v11879_v11, %v17271_v31  ;;  %v17273_v46 = vld [vmem:[#allocation80_spill] sm:$0xff] }
 0x479   : > { %v12347_v45 = vadd.f32 %v11875_v61, %v17273_v46 }
 0x47a   : > { %17272 = vst [vmem:[#allocation77_spill] sm:$0xff] %v12343_v22 }
 0x47b   : > { %v12335_v57 = vpop.permute.xlu1 %2426  ;;  %v12337_v47 = vpop.permute.xlu0 %2423  ;;  %17274 = vst [vmem:[#allocation80_spill] sm:$0xff] %v12347_v45 }
 0x47c   : > { %17270 = vst [vmem:[#allocation167_spill] sm:$0xff] %v12335_v57  ;;  %2615 = vperm.xlu0 %9905, %v12329_v25   ;;  %2618 = vperm.xlu1 %9906, %v12333_v50   ;;  %v12357_v25 = vadd.f32 %v11891_v28, %v17277_v54  ;;  %v17279_v50 = vld [vmem:[#allocation82_spill] sm:$0xff] }
 0x47d   : > { %v12361_v31 = vadd.f32 %v11788_v59, %v17279_v50 }
 0x47e   : > { %17278 = vst [vmem:[#allocation79_spill] sm:$0xff] %v12357_v25 }
 0x47f   : > { %v12349_v6 = vpop.permute.xlu1 %2432  ;;  %v12351_v30 = vpop.permute.xlu0 %2429  ;;  %17280 = vst [vmem:[#allocation82_spill] sm:$0xff] %v12361_v31 }
 0x480   : > { %17275 = vst [vmem:[#allocation168_spill] sm:$0xff] %v12349_v6  ;;  %17276 = vst [vmem:[#allocation169_spill] sm:$0xff] %v12351_v30  ;;  %2621 = vperm.xlu0 %9905, %v12343_v22   ;;  %2624 = vperm.xlu1 %9906, %v12347_v45   ;;  %v12371_v22 = vadd.f32 %v11800_v24, %v17282_v40  ;;  %v17284_v45 = vld [vmem:[#allocation81_spill] sm:$0xff]  ;;  %v17303_v30 = vld [vmem:[#allocation94_spill] sm:$0xff] }
 0x481   : > { %v12375_v54 = vadd.f32 %v11786_v48, %v17284_v45 }
 0x482   : > { %17283 = vst [vmem:[#allocation84_spill] sm:$0xff] %v12371_v22 }
 0x483   : > { %v12363_v34 = vpop.permute.xlu1 %2438  ;;  %v12365_v46 = vpop.permute.xlu0 %2435  ;;  %17285 = vst [vmem:[#allocation81_spill] sm:$0xff] %v12375_v54 }
 0x484   : > { %17281 = vst [vmem:[#allocation170_spill] sm:$0xff] %v12365_v46  ;;  %2627 = vperm.xlu0 %9905, %v12357_v25   ;;  %2630 = vperm.xlu1 %9906, %v12361_v31   ;;  %v12385_v25 = vadd.f32 %v11802_v41, %v17286_v44  ;;  %v17288_v31 = vld [vmem:[#allocation83_spill] sm:$0xff]  ;;  %v17294_v46 = vld [vmem:[#allocation90_spill] sm:$0xff] }
 0x485   : > { %v12389_v40 = vadd.f32 %v11809_v23, %v17288_v31 }
 0x486   : > { %17287 = vst [vmem:[#allocation86_spill] sm:$0xff] %v12385_v25 }
 0x487   : > { %v12377_v0 = vpop.permute.xlu1 %2444  ;;  %v12379_v50 = vpop.permute.xlu0 %2441  ;;  %17289 = vst [vmem:[#allocation83_spill] sm:$0xff] %v12389_v40 }
 0x488   : > { %2636 = vperm.xlu1 %9906, %v12371_v22   ;;  %2633 = vperm.xlu0 %9905, %v12375_v54   ;;  %v12399_v22 = vadd.f32 %v11811_v3, %v17290_v36  ;;  %v17292_v54 = vld [vmem:[#allocation85_spill] sm:$0xff] }
 0x489   : > { %v12403_v44 = vadd.f32 %v11823_v8, %v17292_v54 }
 0x48a   : > { %17291 = vst [vmem:[#allocation88_spill] sm:$0xff] %v12399_v22 }
 0x48b   : > { %v12391_v27 = vpop.permute.xlu1 %2450  ;;  %v12393_v45 = vpop.permute.xlu0 %2447  ;;  %17293 = vst [vmem:[#allocation85_spill] sm:$0xff] %v12403_v44 }
 0x48c   : > { %2642 = vperm.xlu1 %9906, %v12385_v25   ;;  %2639 = vperm.xlu0 %9905, %v12389_v40   ;;  %v12413_v25 = vadd.f32 %v11825_v1, %v17294_v46  ;;  %v17296_v40 = vld [vmem:[#allocation87_spill] sm:$0xff] }
 0x48d   : > { %v12417_v36 = vadd.f32 %v11837_v56, %v17296_v40 }
 0x48e   : > { %17295 = vst [vmem:[#allocation90_spill] sm:$0xff] %v12413_v25 }
 0x48f   : > { %v12405_v19 = vpop.permute.xlu1 %2456  ;;  %v12407_v31 = vpop.permute.xlu0 %2453  ;;  %17297 = vst [vmem:[#allocation87_spill] sm:$0xff] %v12417_v36 }
 0x490   : > { %2648 = vperm.xlu1 %9906, %v12399_v22   ;;  %2645 = vperm.xlu0 %9905, %v12403_v44   ;;  %v12427_v22 = vadd.f32 %v11839_v9, %v17298_v33  ;;  %v17300_v44 = vld [vmem:[#allocation89_spill] sm:$0xff] }
 0x491   : > { %v12431_v46 = vadd.f32 %v11851_v51, %v17300_v44 }
 0x492   : > { %17299 = vst [vmem:[#allocation92_spill] sm:$0xff] %v12427_v22 }
 0x493   : > { %v12419_v6 = vpop.permute.xlu1 %2462  ;;  %v12421_v54 = vpop.permute.xlu0 %2459  ;;  %17301 = vst [vmem:[#allocation89_spill] sm:$0xff] %v12431_v46 }
 0x494   : > { %2654 = vperm.xlu1 %9906, %v12413_v25   ;;  %2651 = vperm.xlu0 %9905, %v12417_v36   ;;  %v12441_v25 = vadd.f32 %v11853_v10, %v17303_v30  ;;  %v17305_v36 = vld [vmem:[#allocation91_spill] sm:$0xff] }
 0x495   : > { %v12445_v33 = vadd.f32 %v11865_v62, %v17305_v36 }
 0x496   : > { %17304 = vst [vmem:[#allocation94_spill] sm:$0xff] %v12441_v25 }
 0x497   : > { %v12433_v2 = vpop.permute.xlu1 %2468  ;;  %v12435_v40 = vpop.permute.xlu0 %2465  ;;  %17306 = vst [vmem:[#allocation91_spill] sm:$0xff] %v12445_v33 }
 0x498   : > { %17302 = vst [vmem:[#allocation171_spill] sm:$0xff] %v12433_v2  ;;  %2660 = vperm.xlu1 %9906, %v12427_v22   ;;  %2657 = vperm.xlu0 %9905, %v12431_v46   ;;  %v17309_v2 = vld [vmem:[#allocation96_spill] sm:$0xff]  ;;  %v17311_v46 = vld [vmem:[#allocation93_spill] sm:$0xff] }
 0x499   : > { %v12455_v22 = vadd.f32 %v11875_v61, %v17309_v2  ;;  %v12459_v30 = vadd.f32 %v11879_v11, %v17311_v46 }
 0x49b   : > { %v12447_v57 = vpop.permute.xlu1 %2474  ;;  %v12449_v44 = vpop.permute.xlu0 %2471  ;;  %17310 = vst [vmem:[#allocation96_spill] sm:$0xff] %v12455_v22  ;;  %17312 = vst [vmem:[#allocation93_spill] sm:$0xff] %v12459_v30 }
 0x49c   : > { %17307 = vst [vmem:[#allocation172_spill] sm:$0xff] %v12447_v57  ;;  %17308 = vst [vmem:[#allocation173_spill] sm:$0xff] %v12449_v44  ;;  %2666 = vperm.xlu1 %9906, %v12441_v25   ;;  %2663 = vperm.xlu0 %9905, %v12445_v33   ;;  %v17315_v57 = vld [vmem:[#allocation98_spill] sm:$0xff]  ;;  %v17317_v33 = vld [vmem:[#allocation95_spill] sm:$0xff] }
 0x49d   : > { %v12469_v25 = vadd.f32 %v11788_v59, %v17315_v57  ;;  %v12473_v2 = vadd.f32 %v11891_v28, %v17317_v33 }
 0x49f   : > { %v12461_v21 = vpop.permute.xlu1 %2480  ;;  %v12463_v36 = vpop.permute.xlu0 %2477  ;;  %17316 = vst [vmem:[#allocation98_spill] sm:$0xff] %v12469_v25  ;;  %17318 = vst [vmem:[#allocation95_spill] sm:$0xff] %v12473_v2 }
 0x4a0   : > { %17313 = vst [vmem:[#allocation174_spill] sm:$0xff] %v12461_v21  ;;  %17314 = vst [vmem:[#allocation175_spill] sm:$0xff] %v12463_v36  ;;  %2672 = vperm.xlu1 %9906, %v12455_v22   ;;  %2669 = vperm.xlu0 %9905, %v12459_v30   ;;  %v17320_v21 = vld [vmem:[#allocation100_spill] sm:$0xff]  ;;  %v17322_v30 = vld [vmem:[#allocation97_spill] sm:$0xff] }
 0x4a1   : > { %v12483_v22 = vadd.f32 %v11800_v24, %v17320_v21  ;;  %v12487_v59 = vadd.f32 %v11786_v48, %v17322_v30  ;;  %v12511_v30 = vadd.f32 %v11811_v3, %v11768_v18 }
 0x4a3   : > { %v12475_v44 = vpop.permute.xlu1 %2486  ;;  %v12477_v46 = vpop.permute.xlu0 %2483  ;;  %17321 = vst [vmem:[#allocation100_spill] sm:$0xff] %v12483_v22  ;;  %17323 = vst [vmem:[#allocation97_spill] sm:$0xff] %v12487_v59 }
 0x4a4   : > { %17319 = vst [vmem:[#allocation176_spill] sm:$0xff] %v12477_v46  ;;  %2678 = vperm.xlu1 %9906, %v12469_v25   ;;  %2675 = vperm.xlu0 %9905, %v12473_v2   ;;  %v17324_v46 = vld [vmem:[#allocation102_spill] sm:$0xff]  ;;  %v17326_v2 = vld [vmem:[#allocation99_spill] sm:$0xff]  ;;  %17329 = vst [vmem:[#allocation178_spill] sm:$0xff] %v12511_v30 }
 0x4a5   : > { %v12497_v25 = vadd.f32 %v11802_v41, %v17324_v46  ;;  %v12501_v24 = vadd.f32 %v11809_v23, %v17326_v2  ;;  %v12525_v2 = vadd.f32 %v11825_v1, %v11772_v42 }
 0x4a7   : > { %v12489_v57 = vpop.permute.xlu1 %2492  ;;  %v12491_v33 = vpop.permute.xlu0 %2489  ;;  %17325 = vst [vmem:[#allocation102_spill] sm:$0xff] %v12497_v25  ;;  %17327 = vst [vmem:[#allocation99_spill] sm:$0xff] %v12501_v24 }
 0x4a8   : > { %2684 = vperm.xlu1 %9906, %v12483_v22   ;;  %2681 = vperm.xlu0 %9905, %v12487_v59   ;;  %v17330_v22 = vld [vmem:[#allocation101_spill] sm:$0xff]  ;;  %17334 = vst [vmem:[#allocation181_spill] sm:$0xff] %v12525_v2 }
 0x4a9   : > { %v12515_v41 = vadd.f32 %v11823_v8, %v17330_v22  ;;  %v12539_v22 = vadd.f32 %v11839_v9, %v11776_v14 }
 0x4ab   : > { %v12503_v21 = vpop.permute.xlu1 %2498  ;;  %v12505_v48 = vpop.permute.xlu0 %2495  ;;  %17331 = vst [vmem:[#allocation101_spill] sm:$0xff] %v12515_v41  ;;  %17339 = vst [vmem:[#allocation184_spill] sm:$0xff] %v12539_v22 }
 0x4ac   : > { %17328 = vst [vmem:[#allocation177_spill] sm:$0xff] %v12503_v21  ;;  %2690 = vperm.xlu1 %9906, %v12497_v25   ;;  %2687 = vperm.xlu0 %9905, %v12501_v24   ;;  %v17335_v25 = vld [vmem:[#allocation103_spill] sm:$0xff] }
 0x4ad   : > { %v12529_v18 = vadd.f32 %v11837_v56, %v17335_v25  ;;  %v17344_v25 = vld [vmem:[#allocation107_spill] sm:$0xff] }
 0x4af   : > { %v12517_v46 = vpop.permute.xlu1 %2504  ;;  %v12519_v23 = vpop.permute.xlu0 %2501  ;;  %17336 = vst [vmem:[#allocation103_spill] sm:$0xff] %v12529_v18 }
 0x4b0   : > { %17332 = vst [vmem:[#allocation179_spill] sm:$0xff] %v12517_v46  ;;  %17333 = vst [vmem:[#allocation180_spill] sm:$0xff] %v12519_v23  ;;  %2696 = vperm.xlu1 %9906, %v12511_v30   ;;  %2693 = vperm.xlu0 %9905, %v12515_v41   ;;  %v17340_v30 = vld [vmem:[#allocation104_spill] sm:$0xff] }
 0x4b1   : > { %v12543_v42 = vadd.f32 %v11851_v51, %v17340_v30  ;;  %v17350_v30 = vld [vmem:[#allocation109_spill] sm:$0xff] }
 0x4b3   : > { %v12531_v3 = vpop.permute.xlu1 %2510  ;;  %v12533_v8 = vpop.permute.xlu0 %2507  ;;  %17341 = vst [vmem:[#allocation104_spill] sm:$0xff] %v12543_v42 }
 0x4b4   : > { %17337 = vst [vmem:[#allocation182_spill] sm:$0xff] %v12531_v3  ;;  %17338 = vst [vmem:[#allocation183_spill] sm:$0xff] %v12533_v8  ;;  %2702 = vperm.xlu1 %9906, %v12525_v2   ;;  %2699 = vperm.xlu0 %9905, %v12529_v18   ;;  %v12553_v2 = vadd.f32 %v11853_v10, %v17344_v25  ;;  %v17346_v18 = vld [vmem:[#allocation105_spill] sm:$0xff] }
 0x4b5   : > { %v12557_v14 = vadd.f32 %v11865_v62, %v17346_v18  ;;  %v17356_v18 = vld [vmem:[#allocation108_spill] sm:$0xff] }
 0x4b6   : > { %17345 = vst [vmem:[#allocation107_spill] sm:$0xff] %v12553_v2 }
 0x4b7   : > { %v12545_v1 = vpop.permute.xlu1 %2516  ;;  %v12547_v56 = vpop.permute.xlu0 %2513  ;;  %17347 = vst [vmem:[#allocation105_spill] sm:$0xff] %v12557_v14 }
 0x4b8   : > { %17342 = vst [vmem:[#allocation185_spill] sm:$0xff] %v12545_v1  ;;  %17343 = vst [vmem:[#allocation186_spill] sm:$0xff] %v12547_v56  ;;  %2708 = vperm.xlu1 %9906, %v12539_v22   ;;  %2705 = vperm.xlu0 %9905, %v12543_v42   ;;  %v12567_v22 = vadd.f32 %v11875_v61, %v17350_v30  ;;  %v17352_v42 = vld [vmem:[#allocation106_spill] sm:$0xff] }
 0x4b9   : > { %v12571_v10 = vadd.f32 %v11879_v11, %v17352_v42 }
 0x4ba   : > { %17351 = vst [vmem:[#allocation109_spill] sm:$0xff] %v12567_v22 }
 0x4bb   : > { %v12559_v9 = vpop.permute.xlu1 %2522  ;;  %v12561_v51 = vpop.permute.xlu0 %2519  ;;  %17353 = vst [vmem:[#allocation106_spill] sm:$0xff] %v12571_v10 }
 0x4bc   : > { %17348 = vst [vmem:[#allocation187_spill] sm:$0xff] %v12559_v9  ;;  %17349 = vst [vmem:[#allocation188_spill] sm:$0xff] %v12561_v51  ;;  %2714 = vperm.xlu1 %9906, %v12553_v2   ;;  %2711 = vperm.xlu0 %9905, %v12557_v14   ;;  %v12581_v2 = vadd.f32 %v11891_v28, %v17356_v18  ;;  %v17387_v51 = vld [vmem:[#allocation34_spill] sm:$0xff] }
 0x4be   : > { %17357 = vst [vmem:[#allocation108_spill] sm:$0xff] %v12581_v2 }
 0x4bf   : > { %v12573_v25 = vpop.permute.xlu1 %2528  ;;  %v12575_v62 = vpop.permute.xlu0 %2525 }
 0x4c0   : > { %17354 = vst [vmem:[#allocation189_spill] sm:$0xff] %v12573_v25  ;;  %17355 = vst [vmem:[#allocation190_spill] sm:$0xff] %v12575_v62  ;;  %2720 = vperm.xlu1 %9906, %v12567_v22   ;;  %2717 = vperm.xlu0 %9905, %v12571_v10  }
 0x4c3   : > { %v12583_v14 = vpop.permute.xlu1 %2534  ;;  %v12585_v61 = vpop.permute.xlu0 %2531 }
 0x4c4   : > { %17358 = vst [vmem:[#allocation191_spill] sm:$0xff] %v12583_v14  ;;  %17359 = vst [vmem:[#allocation192_spill] sm:$0xff] %v12585_v61  ;;  %2723 = vperm.xlu0 %9905, %v12581_v2  }
 0x4c7   : > { %v12588_v11 = vpop.permute.xlu1 %2540  ;;  %v12590_v42 = vpop.permute.xlu0 %2537 }
 0x4c8   : > { %17360 = vst [vmem:[#allocation193_spill] sm:$0xff] %v12588_v11  ;;  %17361 = vst [vmem:[#allocation194_spill] sm:$0xff] %v12590_v42 }
 0x4cb   : > { %v12592_v30 = vpop.permute.xlu1 %2546  ;;  %v12594_v41 = vpop.permute.xlu0 %2543 }
 0x4cc   : > { %17362 = vst [vmem:[#allocation195_spill] sm:$0xff] %v12592_v30  ;;  %17363 = vst [vmem:[#allocation196_spill] sm:$0xff] %v12594_v41 }
 0x4cf   : > { %v12596_v22 = vpop.permute.xlu1 %2552  ;;  %v12598_v10 = vpop.permute.xlu0 %2549 }
 0x4d0   : > { %17364 = vst [vmem:[#allocation197_spill] sm:$0xff] %v12596_v22  ;;  %17365 = vst [vmem:[#allocation198_spill] sm:$0xff] %v12598_v10 }
 0x4d3   : > { %v12600_v28 = vpop.permute.xlu1 %2558  ;;  %v12602_v18 = vpop.permute.xlu0 %2555 }
 0x4d4   : > { %17366 = vst [vmem:[#allocation199_spill] sm:$0xff] %v12600_v28  ;;  %17367 = vst [vmem:[#allocation200_spill] sm:$0xff] %v12602_v18 }
 0x4d7   : > { %v12604_v24 = vpop.permute.xlu1 %2564  ;;  %v12606_v59 = vpop.permute.xlu0 %2561 }
 0x4d8   : > { %17368 = vst [vmem:[#allocation201_spill] sm:$0xff] %v12604_v24  ;;  %17369 = vst [vmem:[#allocation202_spill] sm:$0xff] %v12606_v59 }
 0x4db   : > { %v12608_v2 = vpop.permute.xlu1 %2570  ;;  %v12610_v61 = vpop.permute.xlu0 %2567 }
 0x4dc   : > { %17370 = vst [vmem:[#allocation203_spill] sm:$0xff] %v12608_v2  ;;  %17371 = vst [vmem:[#allocation204_spill] sm:$0xff] %v12610_v61 }
 0x4df   : > { %v12612_v62 = vpop.permute.xlu1 %2576  ;;  %v12614_v25 = vpop.permute.xlu0 %2573 }
 0x4e0   : > { %17372 = vst [vmem:[#allocation205_spill] sm:$0xff] %v12612_v62  ;;  %17373 = vst [vmem:[#allocation206_spill] sm:$0xff] %v12614_v25  ;;  %v17384_v25 = vld [vmem:[#allocation55_spill] sm:$0xff] }
 0x4e1   : > { %v2785_v14 = vadd.s32 4294967224, %v17384_v25  ;;  %v2806_v3 = vadd.s32 4294967200, %v17384_v25 }
 0x4e3   : > { %v12616_v9 = vpop.permute.xlu1 %2582  ;;  %v12618_v22 = vpop.permute.xlu0 %2579 }
 0x4e4   : > { %17374 = vst [vmem:[#allocation207_spill] sm:$0xff] %v12616_v9  ;;  %17375 = vst [vmem:[#allocation208_spill] sm:$0xff] %v12618_v22  ;;  %v2729_v9 = vadd.s32 4294967288, %v17384_v25 }
 0x4e7   : > { %v12620_v10 = vpop.permute.xlu1 %2588  ;;  %v12622_v28 = vpop.permute.xlu0 %2585 }
 0x4e8   : > { %17376 = vst [vmem:[#allocation209_spill] sm:$0xff] %v12620_v10  ;;  %17377 = vst [vmem:[#allocation210_spill] sm:$0xff] %v12622_v28  ;;  %v2736_v10 = vadd.s32 4294967280, %v17384_v25  ;;  %v12650_v28 = vsub.s32 %v17384_v25, %v17387_v51 }
 0x4ea   : > { %v12660_v41 = vsub.s32 %v2736_v10, %v17387_v51  ;;  %v2728_v42 = vrot.slane %v12153_v5, %v12650_v28  ;;  %v2837_v46 = vrot.slane %v12251_v16, %v12650_v28 }
 0x4eb   : > { %v12624_v18 = vpop.permute.xlu1 %2594  ;;  %v12626_v24 = vpop.permute.xlu0 %2591 }
 0x4ec   : > { %17378 = vst [vmem:[#allocation211_spill] sm:$0xff] %v12624_v18  ;;  %17379 = vst [vmem:[#allocation212_spill] sm:$0xff] %v12626_v24  ;;  %v2743_v18 = vadd.s32 4294967272, %v17384_v25  ;;  %v2750_v24 = vadd.s32 4294967264, %v17384_v25  ;;  %v2846_v5 = vrot.slane %v12265_v17, %v12660_v41 }
 0x4ee   : > { %v12663_v11 = vsub.s32 %v2743_v18, %v17387_v51  ;;  %v12667_v56 = vsub.s32 %v2750_v24, %v17387_v51  ;;  %v2799_v18 = vadd.s32 4294967208, %v17384_v25 }
 0x4ef   : > { %v12628_v59 = vpop.permute.xlu1 %2600  ;;  %v12630_v2 = vpop.permute.xlu0 %2597 }
 0x4f0   : > { %17380 = vst [vmem:[#allocation213_spill] sm:$0xff] %v12628_v59  ;;  %17381 = vst [vmem:[#allocation214_spill] sm:$0xff] %v12630_v2  ;;  %v2757_v59 = vadd.s32 4294967256, %v17384_v25  ;;  %v2764_v2 = vadd.s32 4294967248, %v17384_v25  ;;  %v12714_v16 = vsub.s32 %v2799_v18, %v17387_v51 }
 0x4f2   : > { %v12670_v36 = vsub.s32 %v2757_v59, %v17387_v51  ;;  %v2813_v59 = vadd.s32 4294967192, %v17384_v25 }
 0x4f3   : > { %v12632_v61 = vpop.permute.xlu1 %2606  ;;  %v12634_v62 = vpop.permute.xlu0 %2603 }
 0x4f4   : > { %17382 = vst [vmem:[#allocation215_spill] sm:$0xff] %v12632_v61  ;;  %17383 = vst [vmem:[#allocation216_spill] sm:$0xff] %v12634_v62  ;;  %v2771_v61 = vadd.s32 4294967240, %v17384_v25  ;;  %v2778_v62 = vadd.s32 4294967232, %v17384_v25  ;;  %v12726_v21 = vsub.s32 %v2813_v59, %v17387_v51 }
 0x4f6   : > { %v12680_v10 = vsub.s32 %v2778_v62, %v17387_v51  ;;  %v12696_v62 = vsub.s32 %v2785_v14, %v17387_v51  ;;  %v2820_v14 = vadd.s32 4294967184, %v17384_v25 }
 0x4f7   : > { %v12637_v30 = vpop.permute.xlu1 %2612  ;;  %v12639_v22 = vpop.permute.xlu0 %2609 }
 0x4f8   : > { %17385 = vst [vmem:[#allocation55_spill] sm:$0xff] %v12637_v30  ;;  %17386 = vst [vmem:[#allocation217_spill] sm:$0xff] %v12639_v22  ;;  %v12653_v30 = vsub.s32 %v2729_v9, %v17387_v51  ;;  %v12673_v9 = vsub.s32 %v2764_v2, %v17387_v51 }
 0x4fa   : > { %v2841_v24 = vrot.slane %v12267_v7, %v12653_v30  ;;  %v2733_v2 = vrot.slane %v12141_v60, %v12653_v30  ;;  %v2740_v7 = vrot.slane %v12155_v38, %v12660_v41  ;;  %v2747_v60 = vrot.slane %v12169_v58, %v12663_v11 }
 0x4fb   : > { %v12655_v22 = vpop.permute.xlu1 %2618  ;;  %v12657_v1 = vpop.permute.xlu0 %2615  ;;  %v2851_v38 = vrot.slane %v12281_v29, %v12663_v11  ;;  %v2920_v29 = vrot.slane %v12379_v50, %v12653_v30  ;;  %v2916_v50 = vrot.slane %v12363_v34, %v12650_v28  ;;  %v2930_v34 = vrot.slane %v12393_v45, %v12663_v11 }
 0x4fc   : > { %17388 = vst [vmem:[#allocation218_spill] sm:$0xff] %v12655_v22  ;;  %17389 = vst [vmem:[#allocation219_spill] sm:$0xff] %v12657_v1  ;;  %v2792_v22 = vadd.s32 4294967216, %v17384_v25  ;;  %v12677_v1 = vsub.s32 %v2771_v61, %v17387_v51  ;;  %v2735_v58 = vsel %vm2734_vm1, %v2733_v2, %v2728_v42  ;;  %v2856_v42 = vrot.slane %v12279_v13, %v12667_v56 }
 0x4fd   : > { %v2861_v2 = vrot.slane %v12295_v37, %v12670_v36  ;;  %v2925_v13 = vrot.slane %v12377_v0, %v12660_v41  ;;  %v2921_v37 = vsel %vm2734_vm1, %v2920_v29, %v2916_v50 }
 0x4fe   : > { %v12703_v23 = vsub.s32 %v2792_v22, %v17387_v51  ;;  %v12717_v22 = vsub.s32 %v2806_v3, %v17387_v51  ;;  %v2754_v3 = vrot.slane %v12167_v32, %v12667_v56  ;;  %v12745_v32 = vsub.s32 %v2820_v14, %v17387_v51 }
 0x4ff   : > { %v12691_v61 = vpop.permute.xlu1 %2624  ;;  %v12693_v8 = vpop.permute.xlu0 %2621  ;;  %v2871_v45 = vrot.slane %v12309_v15, %v12677_v1  ;;  %v2782_v15 = vrot.slane %v12195_v26, %v12680_v10  ;;  %v2881_v26 = vrot.slane %v12323_v43, %v12696_v62  ;;  %v3004_v43 = vrot.slane %v12489_v57, %v12660_v41 }
 0x500   : > { %17390 = vst [vmem:[#allocation220_spill] sm:$0xff] %v12691_v61  ;;  %17391 = vst [vmem:[#allocation221_spill] sm:$0xff] %v12693_v8  ;;  %v2842_v61 = vsel %vm2734_vm1, %v2841_v24, %v2837_v46  ;;  %v2827_v8 = vadd.s32 4294967176, %v17384_v25  ;;  %v2742_v46 = vsel %vm2741_vm2, %v2740_v7, %v2735_v58  ;;  %v2761_v24 = vrot.slane %v12183_v53, %v12670_v36 }
 0x501   : > { %v2749_v25 = vsel %vm2748_vm3, %v2747_v60, %v2742_v46  ;;  %v2847_v18 = vsel %vm2741_vm2, %v2846_v5, %v2842_v61  ;;  %17392 = vst [vmem:[#allocation222_spill] sm:$0xff] %v12745_v32  ;;  %v2768_v60 = vrot.slane %v12181_v35, %v12673_v9  ;;  %v2866_v5 = vrot.slane %v12293_v39, %v12673_v9 }
 0x502   : > { %v2852_v59 = vsel %vm2748_vm3, %v2851_v38, %v2847_v18  ;;  %v12748_v7 = vsub.s32 %v2827_v8, %v17387_v51  ;;  %v2756_v8 = vsel %vm2755_vm4, %v2754_v3, %v2749_v25  ;;  %v2775_v38 = vrot.slane %v12197_v63, %v12677_v1 }
 0x503   : > { %v12721_v49 = vpop.permute.xlu1 %2630  ;;  %v12723_v17 = vpop.permute.xlu0 %2627  ;;  %v2857_v0 = vsel %vm2755_vm4, %v2856_v42, %v2852_v59  ;;  %v2763_v14 = vsel %vm16895_vm5, %v2761_v24, %v2756_v8  ;;  %v2935_v35 = vrot.slane %v12391_v27, %v12667_v56  ;;  %v2926_v46 = vsel %vm2741_vm2, %v2925_v13, %v2921_v37 }
 0x504   : > { %17393 = vst [vmem:[#allocation223_spill] sm:$0xff] %v12748_v7  ;;  %v2862_v58 = vsel %vm16895_vm5, %v2861_v2, %v2857_v0  ;;  %v2931_v63 = vsel %vm2748_vm3, %v2930_v34, %v2926_v46  ;;  %v2940_v3 = vrot.slane %v12407_v31, %v12670_v36  ;;  %v2770_v25 = vsel %vm16734_vm6, %v2768_v60, %v2763_v14  ;;  %v17395_v46 = vld [vmem:[#allocation163_spill] sm:$0xff] }
 0x505   : > { %v2867_v27 = vsel %vm16734_vm6, %v2866_v5, %v2862_v58  ;;  %v2999_v42 = vrot.slane %v12491_v33, %v12653_v30  ;;  %v2777_v18 = vsel %vm2776_vm7, %v2775_v38, %v2770_v25  ;;  %v2789_v24 = vrot.slane %v12211_v4, %v12696_v62 }
 0x506   : > { %v2876_v59 = vrot.slane %v12307_v12, %v12680_v10  ;;  %v2872_v31 = vsel %vm2776_vm7, %v2871_v45, %v2867_v27  ;;  %v2945_v2 = vrot.slane %v12405_v19, %v12673_v9  ;;  %v2936_v50 = vsel %vm2755_vm4, %v2935_v35, %v2931_v63  ;;  %v17394_v45 = vld [vmem:[#allocation177_spill] sm:$0xff] }
 0x507   : > { %v12752_v61 = vpop.permute.xlu1 %2636  ;;  %v12754_v53 = vpop.permute.xlu0 %2633  ;;  %v2995_v33 = vrot.slane %v12475_v44, %v12650_v28  ;;  %v2941_v12 = vsel %vm16895_vm5, %v2940_v3, %v2936_v50  ;;  %v2950_v37 = vrot.slane %v12421_v54, %v12677_v1  ;;  %v2796_v19 = vrot.slane %v12209_v55, %v12703_v23  ;;  %v17400_v50 = vld [vmem:[#allocation171_spill] sm:$0xff] }
 0x508   : > { %v2784_v34 = vsel %vm2783_vm8, %v2782_v15, %v2777_v18  ;;  %v3009_v60 = vrot.slane %v12505_v48, %v12663_v11  ;;  %v2803_v5 = vrot.slane %v12225_v20, %v12714_v16  ;;  %v2886_v54 = vrot.slane %v12321_v52, %v12703_v23  ;;  %v17396_v15 = vld [vmem:[#allocation180_spill] sm:$0xff]  ;;  %v17398_v18 = vld [vmem:[#allocation167_spill] sm:$0xff] }
 0x509   : > { %v3000_v44 = vsel %vm2734_vm1, %v2999_v42, %v2995_v33  ;;  %v2791_v8 = vsel %vm16738_vm9, %v2789_v24, %v2784_v34  ;;  %v2877_v57 = vsel %vm2783_vm8, %v2876_v59, %v2872_v31  ;;  %v2891_v55 = vrot.slane %v12337_v47, %v12714_v16  ;;  %v17397_v42 = vld [vmem:[#allocation165_spill] sm:$0xff] }
 0x50a   : > { %v2882_v0 = vsel %vm16738_vm9, %v2881_v26, %v2877_v57  ;;  %v2955_v14 = vrot.slane %v12419_v6, %v12680_v10  ;;  %v2946_v48 = vsel %vm16734_vm6, %v2945_v2, %v2941_v12  ;;  %v2960_v52 = vrot.slane %v12435_v40, %v12696_v62  ;;  %v17399_v26 = vld [vmem:[#allocation169_spill] sm:$0xff] }
 0x50b   : > { %v12774_v39 = vpop.permute.xlu1 %2642  ;;  %v12776_v29 = vpop.permute.xlu0 %2639  ;;  %v2951_v20 = vsel %vm2776_vm7, %v2950_v37, %v2946_v48  ;;  %v3014_v35 = vrot.slane %v17394_v45, %v12667_v56  ;;  %v3005_v47 = vsel %vm2741_vm2, %v3004_v43, %v3000_v44  ;;  %v2810_v6 = vrot.slane %v17395_v46, %v12717_v22  ;;  %v17401_v34 = vld [vmem:[#allocation173_spill] sm:$0xff] }
 0x50c   : > { %v2798_v63 = vsel %vm16737_vm10, %v2796_v19, %v2791_v8  ;;  %v3010_v3 = vsel %vm2748_vm3, %v3009_v60, %v3005_v47  ;;  %v3019_v25 = vrot.slane %v17396_v15, %v12670_v36  ;;  %v2817_v40 = vrot.slane %v17397_v42, %v12726_v21  ;;  %v17402_v60 = vld [vmem:[#allocation179_spill] sm:$0xff]  ;;  %v17406_v47 = vld [vmem:[#allocation168_spill] sm:$0xff] }
 0x50d   : > { %v2805_v27 = vsel %vm16735_vm11, %v2803_v5, %v2798_v63  ;;  %v2896_v24 = vrot.slane %v17398_v18, %v12717_v22  ;;  %v2887_v59 = vsel %vm16737_vm10, %v2886_v54, %v2882_v0  ;;  %v2901_v2 = vrot.slane %v17399_v26, %v12726_v21  ;;  %v17403_v54 = vld [vmem:[#allocation164_spill] sm:$0xff] }
 0x50e   : > { %v2892_v31 = vsel %vm16735_vm11, %v2891_v55, %v2887_v59  ;;  %v2965_v33 = vrot.slane %v17400_v50, %v12703_v23  ;;  %v2956_v12 = vsel %vm2783_vm8, %v2955_v14, %v2951_v20  ;;  %v2970_v44 = vrot.slane %v17401_v34, %v12714_v16  ;;  %v17404_v14 = vld [vmem:[#allocation183_spill] sm:$0xff]  ;;  %v17409_v18 = vld [vmem:[#allocation172_spill] sm:$0xff] }
 0x50f   : > { %v12800_v13 = vpop.permute.xlu1 %2648  ;;  %v12802_v4 = vpop.permute.xlu0 %2645  ;;  %v2961_v19 = vsel %vm16738_vm9, %v2960_v52, %v2956_v12  ;;  %v3024_v8 = vrot.slane %v17402_v60, %v12673_v9  ;;  %v3015_v5 = vsel %vm2755_vm4, %v3014_v35, %v3010_v3  ;;  %v2824_v57 = vrot.slane %v17403_v54, %v12745_v32  ;;  %v17405_v52 = vld [vmem:[#allocation166_spill] sm:$0xff]  ;;  %v17411_v50 = vld [vmem:[#allocation175_spill] sm:$0xff] }
 0x510   : > { %v2812_v0 = vsel %vm2811_vm12, %v2810_v6, %v2805_v27  ;;  %v3020_v55 = vsel %vm16895_vm5, %v3019_v25, %v3015_v5  ;;  %v3029_v48 = vrot.slane %v17404_v14, %v12677_v1  ;;  %v2831_v45 = vrot.slane %v17405_v52, %v12748_v7  ;;  %v17407_v3 = vld [vmem:[#allocation170_spill] sm:$0xff]  ;;  %v17413_v60 = vld [vmem:[#allocation191_spill] sm:$0xff] }
 0x511   : > { %v2819_v20 = vsel %vm2818_vm13, %v2817_v40, %v2812_v0  ;;  %v2906_v46 = vrot.slane %v17406_v47, %v12745_v32  ;;  %v2897_v35 = vsel %vm2811_vm12, %v2896_v24, %v2892_v31  ;;  %v2911_v6 = vrot.slane %v17407_v3, %v12748_v7  ;;  %v17408_v25 = vld [vmem:[#allocation194_spill] sm:$0xff] }
 0x512   : > { %v2902_v63 = vsel %vm2818_vm13, %v2901_v2, %v2897_v35  ;;  %v2966_v15 = vsel %vm16737_vm10, %v2965_v33, %v2961_v19  ;;  %v3078_v27 = vrot.slane %v17408_v25, %v12653_v30  ;;  %v2975_v59 = vrot.slane %v17409_v18, %v12717_v22  ;;  %v17410_v24 = vld [vmem:[#allocation182_spill] sm:$0xff] }
 0x513   : > { %v12827_v38 = vpop.permute.xlu1 %2654  ;;  %v12829_v58 = vpop.permute.xlu0 %2651  ;;  %v2971_v26 = vsel %vm16735_vm11, %v2970_v44, %v2966_v15  ;;  %v3034_v31 = vrot.slane %v17410_v24, %v12680_v10  ;;  %v3025_v2 = vsel %vm16734_vm6, %v3024_v8, %v3020_v55  ;;  %v2980_v33 = vrot.slane %v17411_v50, %v12726_v21  ;;  %v17412_v19 = vld [vmem:[#allocation186_spill] sm:$0xff]  ;;  %v17414_v44 = vld [vmem:[#allocation193_spill] sm:$0xff]  ;;  %v17419_v50 = vld [vmem:[#allocation188_spill] sm:$0xff] }
 0x514   : > { %v3030_v12 = vsel %vm2776_vm7, %v3029_v48, %v3025_v2  ;;  %v3039_v34 = vrot.slane %v17412_v19, %v12696_v62  ;;  %v3074_v5 = vrot.slane %v17413_v60, %v12650_v28  ;;  %v2907_v54 = vsel %vm2825_vm14, %v2906_v46, %v2902_v63  ;;  %v17415_v48 = vld [vmem:[#allocation196_spill] sm:$0xff]  ;;  %v17416_v3 = vld [vmem:[#allocation174_spill] sm:$0xff]  ;;  %v17417_v15 = vld [vmem:[#allocation185_spill] sm:$0xff] }
 0x515   : > { %v3083_v0 = vrot.slane %v17414_v44, %v12660_v41  ;;  %v2826_v8 = vsel %vm2825_vm14, %v2824_v57, %v2819_v20  ;;  %v2912_v55 = vsel %vm2832_vm15, %v2911_v6, %v2907_v54  ;;  %v3088_v52 = vrot.slane %v17415_v48, %v12663_v11  ;;  %v17418_v18 = vld [vmem:[#allocation210_spill] sm:$0xff] }
 0x516   : > { %v3079_v14 = vsel %vm2734_vm1, %v3078_v27, %v3074_v5  ;;  %v2985_v46 = vrot.slane %v17416_v3, %v12745_v32  ;;  %v2976_v63 = vsel %vm2811_vm12, %v2975_v59, %v2971_v26  ;;  %v3044_v25 = vrot.slane %v17417_v15, %v12703_v23  ;;  %v17420_v26 = vld [vmem:[#allocation195_spill] sm:$0xff] }
 0x517   : > { %v12855_v37 = vpop.permute.xlu1 %2660  ;;  %v12857_v43 = vpop.permute.xlu0 %2657  ;;  %v3035_v57 = vsel %vm2783_vm8, %v3034_v31, %v3030_v12  ;;  %v2833_v20 = vsel %vm2832_vm15, %v2831_v45, %v2826_v8  ;;  %v2981_v6 = vsel %vm2818_vm13, %v2980_v33, %v2976_v63  ;;  %v3157_v24 = vrot.slane %v17418_v18, %v12653_v30  ;;  %v17421_v33 = vld [vmem:[#allocation198_spill] sm:$0xff]  ;;  %v17425_v3 = vld [vmem:[#allocation187_spill] sm:$0xff] }
 0x518   : > { %v3040_v27 = vsel %vm16738_vm9, %v3039_v34, %v3035_v57  ;;  %v12924_v2 = vsel %vm16733_vm0, %v2912_v55, %v2833_v20  ;;  %v3049_v59 = vrot.slane %v17419_v50, %v12714_v16  ;;  %v3093_v19 = vrot.slane %v17420_v26, %v12667_v56  ;;  %v17422_v34 = vld [vmem:[#allocation207_spill] sm:$0xff]  ;;  %v17423_v55 = vld [vmem:[#allocation176_spill] sm:$0xff] }
 0x519   : > { %v3084_v31 = vsel %vm2741_vm2, %v3083_v0, %v3079_v14  ;;  %v3098_v12 = vrot.slane %v17421_v33, %v12670_v36  ;;  %v3153_v60 = vrot.slane %v17422_v34, %v12650_v28  ;;  %v3236_v5 = vrot.slane %v12754_v53, %v12653_v30  ;;  %v17424_v14 = vld [vmem:[#allocation209_spill] sm:$0xff]  ;;  %v17426_v53 = vld [vmem:[#allocation212_spill] sm:$0xff]  ;;  %v17429_v34 = vld [vmem:[#allocation211_spill] sm:$0xff] }
 0x51a   : > { %v3089_v45 = vsel %vm2748_vm3, %v3088_v52, %v3084_v31  ;;  %v2986_v8 = vsel %vm2825_vm14, %v2985_v46, %v2981_v6  ;;  %v2990_v48 = vrot.slane %v17423_v55, %v12748_v7  ;;  %v3045_v0 = vsel %vm16737_vm10, %v3044_v25, %v3040_v27  ;;  %v17427_v6 = vld [vmem:[#allocation197_spill] sm:$0xff] }
 0x51b   : > { %v12883_v42 = vpop.permute.xlu1 %2666  ;;  %v12885_v40 = vpop.permute.xlu0 %2663  ;;  %v3162_v52 = vrot.slane %v17424_v14, %v12660_v41  ;;  %v3054_v63 = vrot.slane %v17425_v3, %v12717_v22  ;;  %v3158_v15 = vsel %vm2734_vm1, %v3157_v24, %v3153_v60  ;;  %v3167_v57 = vrot.slane %v17426_v53, %v12663_v11  ;;  %v17428_v24 = vld [vmem:[#allocation200_spill] sm:$0xff] }
 0x51c   : > { %v3232_v20 = vrot.slane %v12721_v49, %v12650_v28  ;;  %v3050_v46 = vsel %vm16735_vm11, %v3049_v59, %v3045_v0  ;;  %v3103_v18 = vrot.slane %v17427_v6, %v12673_v9  ;;  %v3094_v25 = vsel %vm2755_vm4, %v3093_v19, %v3089_v45 }
 0x51d   : > { %v3241_v27 = vrot.slane %v12752_v61, %v12660_v41  ;;  %v3099_v50 = vsel %vm16895_vm5, %v3098_v12, %v3094_v25  ;;  %v3108_v26 = vrot.slane %v17428_v24, %v12677_v1  ;;  %v3246_v49 = vrot.slane %v12776_v29, %v12663_v11 }
 0x51e   : > { %v3237_v31 = vsel %vm2734_vm1, %v3236_v5, %v3232_v20  ;;  %v3172_v60 = vrot.slane %v17429_v34, %v12667_v56  ;;  %v3163_v19 = vsel %vm2741_vm2, %v3162_v52, %v3158_v15  ;;  %v12971_v12 = vsel %vm2832_vm15, %v2990_v48, %v2986_v8  ;;  %v17430_v5 = vld [vmem:[#allocation214_spill] sm:$0xff]  ;;  %v17431_v15 = vld [vmem:[#allocation199_spill] sm:$0xff] }
 0x51f   : > { %v12908_v47 = vpop.permute.xlu1 %2672  ;;  %v12910_v35 = vpop.permute.xlu0 %2669  ;;  %v3168_v55 = vsel %vm2748_vm3, %v3167_v57, %v3163_v19  ;;  %v3177_v0 = vrot.slane %v17430_v5, %v12670_v36  ;;  %v3055_v14 = vsel %vm2811_vm12, %v3054_v63, %v3050_v46  ;;  %v3251_v3 = vrot.slane %v12774_v39, %v12667_v56  ;;  %v17432_v39 = vld [vmem:[#allocation213_spill] sm:$0xff] }
 0x520   : > { %v3242_v52 = vsel %vm2741_vm2, %v3241_v27, %v3237_v31  ;;  %v3113_v8 = vrot.slane %v17431_v15, %v12680_v10  ;;  %v3104_v48 = vsel %vm16734_vm6, %v3103_v18, %v3099_v50  ;;  %v3256_v57 = vrot.slane %v12802_v4, %v12670_v36  ;;  %v17433_v18 = vld [vmem:[#allocation216_spill] sm:$0xff] }
 0x521   : > { %v3247_v53 = vsel %vm2748_vm3, %v3246_v49, %v3242_v52  ;;  %v3109_v63 = vsel %vm2776_vm7, %v3108_v26, %v3104_v48  ;;  %v3182_v46 = vrot.slane %v17432_v39, %v12673_v9  ;;  %v3173_v25 = vsel %vm2755_vm4, %v3172_v60, %v3168_v55  ;;  %v17434_v49 = vld [vmem:[#allocation189_spill] sm:$0xff]  ;;  %v17435_v60 = vld [vmem:[#allocation190_spill] sm:$0xff] }
 0x522   : > { %v3178_v24 = vsel %vm16895_vm5, %v3177_v0, %v3173_v25  ;;  %v3187_v50 = vrot.slane %v17433_v18, %v12677_v1  ;;  %v3261_v26 = vrot.slane %v12800_v13, %v12673_v9  ;;  %v3059_v19 = vrot.slane %v17435_v60, %v12726_v21  ;;  %v17437_v13 = vld [vmem:[#allocation215_spill] sm:$0xff] }
 0x523   : > { %v2679_v54 = vpop.permute.xlu1 %2678  ;;  %v12938_v44 = vpop.permute.xlu0 %2675  ;;  %v3266_v5 = vrot.slane %v12829_v58, %v12677_v1  ;;  %v3114_v52 = vsel %vm2783_vm8, %v3113_v8, %v3109_v63  ;;  %v3271_v8 = vrot.slane %v12827_v38, %v12680_v10  ;;  %vm16736_vm0 = vcmask 1042434   ;;  %v17441_v38 = vld [vmem:[#allocation55_spill] sm:$0xff] }
 0x524   : > { %v3311_v45 = vrot.slane %v2679_v54, %v12650_v28 }
 0x527   : > { %v2685_v33 = vpop.permute.xlu1 %2684  ;;  %v2682_v59 = vpop.permute.xlu0 %2681 }
 0x528   : > { %v3315_v61 = vrot.slane %v2682_v59, %v12653_v30  ;;  %v3320_v29 = vrot.slane %v2685_v33, %v12660_v41  ;;  %v3064_v33 = vrot.slane %v17434_v49, %v12745_v32  ;;  %v3252_v59 = vsel %vm2755_vm4, %v3251_v3, %v3247_v53  ;;  %v17438_v53 = vld [vmem:[#allocation217_spill] sm:$0xff] }
 0x529   : > { %v3257_v55 = vsel %vm16895_vm5, %v3256_v57, %v3252_v59  ;;  %v3192_v3 = vrot.slane %v17437_v13, %v12680_v10  ;;  %v3060_v59 = vsel %vm2818_vm13, %v3059_v19, %v3055_v14  ;;  %v3281_v14 = vrot.slane %v12855_v37, %v12703_v23 }
 0x52a   : > { %v3316_v54 = vsel %vm2734_vm1, %v3315_v61, %v3311_v45  ;;  %v17436_v45 = vld [vmem:[#allocation202_spill] sm:$0xff]  ;;  %v3262_v63 = vsel %vm16734_vm6, %v3261_v26, %v3257_v55  ;;  %v3202_v26 = vrot.slane %v17441_v38, %v12703_v23 }
 0x52b   : > { %v2691_v20 = vpop.permute.xlu1 %2690  ;;  %v2688_v6 = vpop.permute.xlu0 %2687  ;;  %v3321_v4 = vsel %vm2741_vm2, %v3320_v29, %v3316_v54  ;;  %v3118_v61 = vrot.slane %v17436_v45, %v12696_v62  ;;  %v3183_v54 = vsel %vm16734_vm6, %v3182_v46, %v3178_v24  ;;  %v3267_v18 = vsel %vm2776_vm7, %v3266_v5, %v3262_v63  ;;  %v17446_v63 = vld [vmem:[#allocation221_spill] sm:$0xff] }
 0x52c   : > { %v3325_v27 = vrot.slane %v2688_v6, %v12663_v11  ;;  %v3330_v31 = vrot.slane %v2691_v20, %v12667_v56  ;;  %v3188_v48 = vsel %vm2776_vm7, %v3187_v50, %v3183_v54  ;;  %v3197_v20 = vrot.slane %v17438_v53, %v12696_v62  ;;  %v17439_v6 = vld [vmem:[#allocation201_spill] sm:$0xff] }
 0x52d   : > { %v3123_v39 = vrot.slane %v17439_v6, %v12703_v23  ;;  %v3119_v25 = vsel %vm16738_vm9, %v3118_v61, %v3114_v52  ;;  %v3276_v50 = vrot.slane %v12857_v43, %v12696_v62  ;;  %v17442_v61 = vld [vmem:[#allocation219_spill] sm:$0xff]  ;;  %v3272_v19 = vsel %vm2783_vm8, %v3271_v8, %v3267_v18 }
 0x52e   : > { %v3326_v34 = vsel %vm2748_vm3, %v3325_v27, %v3321_v4  ;;  %v17440_v27 = vld [vmem:[#allocation204_spill] sm:$0xff]  ;;  %v3207_v55 = vrot.slane %v17442_v61, %v12714_v16  ;;  %v17443_v52 = vld [vmem:[#allocation203_spill] sm:$0xff]  ;;  %v3291_v18 = vrot.slane %v12883_v42, %v12717_v22 }
 0x52f   : > { %v2697_v0 = vpop.permute.xlu1 %2696  ;;  %v2694_v29 = vpop.permute.xlu0 %2693  ;;  %v3331_v58 = vsel %vm2755_vm4, %v3330_v31, %v3326_v34  ;;  %v3128_v24 = vrot.slane %v17440_v27, %v12714_v16  ;;  %v3193_v34 = vsel %vm2783_vm8, %v3192_v3, %v3188_v48  ;;  %v3133_v13 = vrot.slane %v17443_v52, %v12717_v22  ;;  %v17447_v27 = vld [vmem:[#allocation192_spill] sm:$0xff] }
 0x530   : > { %v3335_v15 = vrot.slane %v2694_v29, %v12670_v36  ;;  %v3340_v57 = vrot.slane %v2697_v0, %v12673_v9  ;;  %v3198_v45 = vsel %vm16738_vm9, %v3197_v20, %v3193_v34  ;;  %v3124_v0 = vsel %vm16737_vm10, %v3123_v39, %v3119_v25  ;;  %v17444_v20 = vld [vmem:[#allocation206_spill] sm:$0xff]  ;;  %v17449_v42 = vld [vmem:[#allocation208_spill] sm:$0xff] }
 0x531   : > { %v3129_v3 = vsel %vm16735_vm11, %v3128_v24, %v3124_v0  ;;  %v3277_v54 = vsel %vm16738_vm9, %v3276_v50, %v3272_v19  ;;  %v3138_v37 = vrot.slane %v17444_v20, %v12726_v21  ;;  %v3203_v6 = vsel %vm16737_vm10, %v3202_v26, %v3198_v45 }
 0x532   : > { %v3336_v46 = vsel %vm16895_vm5, %v3335_v15, %v3331_v58  ;;  %v3286_v15 = vrot.slane %v12885_v40, %v12714_v16  ;;  %v3208_v8 = vsel %vm16735_vm11, %v3207_v55, %v3203_v6  ;;  %v3069_v24 = vrot.slane %v17447_v27, %v12748_v7 }
 0x533   : > { %v2703_v31 = vpop.permute.xlu1 %2702  ;;  %v2700_v4 = vpop.permute.xlu0 %2699  ;;  %v3341_v43 = vsel %vm16734_vm6, %v3340_v57, %v3336_v46  ;;  %vm3391_vm6 = vcmask 1043459   ;;  %v17445_v57 = vld [vmem:[#allocation218_spill] sm:$0xff]  ;;  %v3217_v46 = vrot.slane %v17446_v63, %v12726_v21  ;;  %v3282_v50 = vsel %vm16737_vm10, %v3281_v14, %v3277_v54  ;;  %v17450_v14 = vld [vmem:[#allocation220_spill] sm:$0xff] }
 0x534   : > { %v3345_v60 = vrot.slane %v2700_v4, %v12677_v1  ;;  %v3350_v5 = vrot.slane %v2703_v31, %v12680_v10  ;;  %v3212_v58 = vrot.slane %v17445_v57, %v12717_v22  ;;  %v17448_v4 = vld [vmem:[#allocation205_spill] sm:$0xff]  ;;  %v3134_v26 = vsel %vm2811_vm12, %v3133_v13, %v3129_v3 }
 0x535   : > { %v3143_v38 = vrot.slane %v17448_v4, %v12745_v32  ;;  %v3287_v34 = vsel %vm16735_vm11, %v3286_v15, %v3282_v50  ;;  %v3139_v55 = vsel %vm2818_vm13, %v3138_v37, %v3134_v26  ;;  %v3222_v19 = vrot.slane %v17450_v14, %v12745_v32  ;;  %v17452_v26 = vld [vmem:[#allocation35_spill] sm:$0xff] }
 0x536   : > { %v3346_v29 = vsel %vm2776_vm7, %v3345_v60, %v3341_v43  ;;  %v3296_v60 = vrot.slane %v12910_v35, %v12726_v21  ;;  %v3213_v43 = vsel %vm2811_vm12, %v3212_v58, %v3208_v8  ;;  %v3227_v13 = vrot.slane %v12723_v17, %v12748_v7 }
 0x537   : > { %v2709_v48 = vpop.permute.xlu1 %2708  ;;  %v2706_v53 = vpop.permute.xlu0 %2705  ;;  %v3351_v25 = vsel %vm2783_vm8, %v3350_v5, %v3346_v29  ;;  %v3148_v5 = vrot.slane %v17449_v42, %v12748_v7  ;;  %v3218_v29 = vsel %vm2818_vm13, %v3217_v46, %v3213_v43  ;;  %v3301_v3 = vrot.slane %v12908_v47, %v12745_v32 }
 0x538   : > { %v3355_v39 = vrot.slane %v2706_v53, %v12696_v62  ;;  %v3360_v40 = vrot.slane %v2709_v48, %v12703_v23  ;;  %v3292_v54 = vsel %vm2811_vm12, %v3291_v18, %v3287_v34  ;;  %v3390_v48 = vsel %vm16736_vm0, %v12971_v12, %v12924_v2 }
 0x539   : > { %v3065_v53 = vsel %vm2825_vm14, %v3064_v33, %v3060_v59  ;;  %v3297_v20 = vsel %vm2818_vm13, %v3296_v60, %v3292_v54  ;;  %v3306_v17 = vrot.slane %v12938_v44, %v12748_v7  ;;  %v3144_v58 = vsel %vm2825_vm14, %v3143_v38, %v3139_v55  ;;  %v17454_v55 = vld [vmem:[#allocation111_spill] sm:$0xff]  ;;  %v17458_v54 = vld [vmem:[#allocation112_spill] sm:$0xff] }
 0x53a   : > { %v3356_v31 = vsel %vm16738_vm9, %v3355_v39, %v3351_v25  ;;  %v3070_v57 = vsel %vm2832_vm15, %v3069_v24, %v3065_v53  ;;  %v3149_v2 = vsel %vm2832_vm15, %v3148_v5, %v3144_v58  ;;  %v3223_v12 = vsel %vm2825_vm14, %v3222_v19, %v3218_v29  ;;  %v17455_v5 = vld [vmem:[#allocation125_spill] sm:$0xff]  ;;  %v17461_v58 = vld [vmem:[#allocation131_spill] sm:$0xff] }
 0x53b   : > { %v2715_v45 = vpop.permute.xlu1 %2714  ;;  %v2712_v61 = vpop.permute.xlu0 %2711  ;;  %v3361_v35 = vsel %vm16737_vm10, %v3360_v40, %v3356_v31  ;;  %v3228_v59 = vsel %vm2832_vm15, %v3227_v13, %v3223_v12  ;;  %v3302_v39 = vsel %vm2825_vm14, %v3301_v3, %v3297_v20  ;;  %vm16893_vm0 = vcmask 1045509   ;;  %v17459_v53 = vld [vmem:[#allocation129_spill] sm:$0xff]  ;;  %v17462_v12 = vld [vmem:[#allocation114_spill] sm:$0xff] }
 0x53c   : > { %v3365_v0 = vrot.slane %v2712_v61, %v12714_v16  ;;  %v3370_v52 = vrot.slane %v2715_v45, %v12717_v22  ;;  %v3392_v8 = vsel %vm3391_vm6, %v3070_v57, %v3390_v48  ;;  %v3307_v46 = vsel %vm2832_vm15, %v3306_v17, %v3302_v39  ;;  %v17453_v45 = vld [vmem:[#allocation119_spill] sm:$0xff]  ;;  %v17465_v39 = vld [vmem:[#allocation133_spill] sm:$0xff] }
 0x53d   : > { %vm16892_vm10 = vcmask 1046534   ;;  %vm16891_vm9 = vcmask 1047559   ;;  %v13125_v38 = vsub.s32 1, %v17387_v51 }
 0x53e   : > { %v3366_v15 = vsel %vm16735_vm11, %v3365_v0, %v3361_v35  ;;  %vm16894_vm11 = vcmask 1044484   ;;  %v17456_v0 = vld [vmem:[#allocation110_spill] sm:$0xff]  ;;  %v17457_v35 = vld [vmem:[#allocation127_spill] sm:$0xff] }
 0x53f   : > { %v2721_v37 = vpop.permute.xlu1 %2720  ;;  %v2718_v47 = vpop.permute.xlu0 %2717  ;;  %v3371_v33 = vsel %vm2811_vm12, %v3370_v52, %v3366_v15  ;;  %v3394_v25 = vsel %vm16894_vm11, %v3149_v2, %v3392_v8  ;;  %17451 = vst [vmem:[#allocation177_spill] sm:$0xff] %v13125_v38  ;;  %vm17777_vm11 = vcmask 458112  }
 0x540   : > { %v3375_v6 = vrot.slane %v2718_v47, %v12726_v21  ;;  %v3380_v49 = vrot.slane %v2721_v37, %v12745_v32  ;;  %v3396_v24 = vsel %vm16893_vm0, %v3228_v59, %v3394_v25  ;;  %v17460_v37 = vld [vmem:[#allocation113_spill] sm:$0xff]  ;;  %vm17776_vm0 = vcmask 720512  }
 0x541   : > { %v3398_v50 = vsel %vm16892_vm10, %v3307_v46, %v3396_v24  ;;  %v17466_v46 = vld [vmem:[#allocation115_spill] sm:$0xff] }
 0x542   : > { %v3376_v44 = vsel %vm2818_vm13, %v3375_v6, %v3371_v33 }
 0x543   : > { %v2724_v63 = vpop.permute.xlu0 %2723  ;;  %v3381_v27 = vsel %vm2825_vm14, %v3380_v49, %v3376_v44 }
 0x544   : > { %v3385_v40 = vrot.slane %v2724_v63, %v12748_v7 }
 0x546   : > { %v3386_v18 = vsel %vm2832_vm15, %v3385_v40, %v3381_v27 }
 0x547   : > { %v3400_v31 = vsel %vm16891_vm9, %v3386_v18, %v3398_v50  ;;  %v17469_v18 = vld [vmem:[#allocation135_spill] sm:$0xff]  ;;  %vm17771_vm9 = vcmask 458112  }
 0x548   : > { %3402 = vmax.xlane.f32.xlu1 %v3400_v31  ;;  %vm17772_vm10 = vmmov %vm17771_vm9 }
 0x5d5   : > { %v13122_v4 = vpop.xlane.xlu1 %3402 }
 0x5d6   : > { %v13129_v34 = vrot.slane %v13122_v4, %v17452_v26  ;;  %v13133_v60 = vrot.slane %v13122_v4, %v13125_v38 }
 0x5d8   : > { %v3454_v61 = vsub.f32 %v17453_v45, %v13129_v34  ;;  %v3445_v42 = vsub.f32 %v17454_v55, %v13129_v34  ;;  %v3460_v43 = vsub.f32 %v17455_v5, %v13129_v34  ;;  %v3446_v14 = vsub.f32 %v17456_v0, %v13129_v34  ;;  %v17470_v45 = vld [vmem:[#allocation116_spill] sm:$0xff] }
 0x5d9   : > { %v3462_v13 = vsub.f32 %v17457_v35, %v13133_v60  ;;  %v3447_v15 = vsub.f32 %v17458_v54, %v13129_v34  ;;  %v3464_v20 = vsub.f32 %v17459_v53, %v13133_v60  ;;  %v3448_v47 = vsub.f32 %v17460_v37, %v13129_v34  ;;  %v17478_v54 = vld [vmem:[#allocation139_spill] sm:$0xff]  ;;  %v17479_v53 = vld [vmem:[#allocation118_spill] sm:$0xff] }
 0x5da   : > { %v3591_v19 = vmul.f32 1.442695, %v3454_v61  ;;  %v3573_v29 = vmul.f32 1.442695, %v3445_v42  ;;  %v3603_v52 = vmul.f32 1.442695, %v3460_v43  ;;  %v3466_v6 = vsub.f32 %v17461_v58, %v13133_v60 }
 0x5db   : > { %v3575_v3 = vmul.f32 1.442695, %v3446_v14  ;;  %v3607_v48 = vmul.f32 1.442695, %v3462_v13  ;;  %v3577_v17 = vmul.f32 1.442695, %v3447_v15  ;;  %v3449_v49 = vsub.f32 %v17462_v12, %v13129_v34 }
 0x5dc   : > { %10091 = vpow2.f32 %v3591_v19  ;;  %v3611_v57 = vmul.f32 1.442695, %v3464_v20  ;;  %v3579_v2 = vmul.f32 1.442695, %v3448_v47  ;;  %v3615_v44 = vmul.f32 1.442695, %v3466_v6 }
 0x5dd   : > { %10093 = vpow2.f32 %v3573_v29  ;;  %v3468_v8 = vsub.f32 %v17465_v39, %v13133_v60  ;;  %v3581_v63 = vmul.f32 1.442695, %v3449_v49  ;;  %v3450_v40 = vsub.f32 %v17466_v46, %v13129_v34  ;;  %v17473_v43 = vld [vmem:[#allocation137_spill] sm:$0xff]  ;;  %v17483_v12 = vld [vmem:[#allocation120_spill] sm:$0xff] }
 0x5de   : > { %10095 = vpow2.f32 %v3603_v52  ;;  %v3470_v50 = vsub.f32 %v17469_v18, %v13133_v60  ;;  %v3451_v61 = vsub.f32 %v17470_v45, %v13129_v34  ;;  %v3472_v0 = vsub.f32 %v17473_v43, %v13133_v60  ;;  %v17474_v19 = vld [vmem:[#allocation117_spill] sm:$0xff] }
 0x5df   : > { %10097 = vpow2.f32 %v3575_v3  ;;  %v3619_v24 = vmul.f32 1.442695, %v3468_v8  ;;  %v3583_v31 = vmul.f32 1.442695, %v3450_v40  ;;  %v3452_v29 = vsub.f32 %v17474_v19, %v13129_v34  ;;  %v17482_v58 = vld [vmem:[#allocation141_spill] sm:$0xff] }
 0x5e0   : > { %10099 = vpow2.f32 %v3607_v48  ;;  %v3623_v5 = vmul.f32 1.442695, %v3470_v50  ;;  %v3585_v14 = vmul.f32 1.442695, %v3451_v61  ;;  %v13191_v13 = vsub.s32 2, %v17387_v51  ;;  %v17490_v61 = vld [vmem:[#allocation145_spill] sm:$0xff] }
 0x5e1   : > { %10101 = vpow2.f32 %v3577_v17  ;;  %v3627_v3 = vmul.f32 1.442695, %v3472_v0  ;;  %v3474_v15 = vsub.f32 %v17478_v54, %v13133_v60  ;;  %v3587_v48 = vmul.f32 1.442695, %v3452_v29  ;;  %v17491_v0 = vld [vmem:[#allocation122_spill] sm:$0xff]  ;;  %v17494_v54 = vld [vmem:[#allocation147_spill] sm:$0xff] }
 0x5e2   : > { %10103 = vpow2.f32 %v3611_v57  ;;  %17477 = vst [vmem:[#allocation164_spill] sm:$0xff] %v13191_v13  ;;  %v3453_v20 = vsub.f32 %v17479_v53, %v13129_v34  ;;  %v13205_v47 = vrot.slane %v13122_v4, %v13191_v13  ;;  %v3476_v6 = vsub.f32 %v17482_v58, %v13133_v60  ;;  %v17495_v53 = vld [vmem:[#allocation123_spill] sm:$0xff] }
 0x5e3   : > { %10105 = vpow2.f32 %v3579_v2  ;;  %v3631_v57 = vmul.f32 1.442695, %v3474_v15  ;;  %v3455_v49 = vsub.f32 %v17483_v12, %v13129_v34 }
 0x5e4   : > { %10107 = vpow2.f32 %v3615_v44  ;;  %v3589_v2 = vmul.f32 1.442695, %v3453_v20  ;;  %v3635_v8 = vmul.f32 1.442695, %v3476_v6  ;;  %v3482_v15 = vsub.f32 %v17494_v54, %v13205_v47 }
 0x5e5   : > { %10109 = vpow2.f32 %v3581_v63  ;;  %v17486_v63 = vld [vmem:[#allocation143_spill] sm:$0xff]  ;;  %v3593_v40 = vmul.f32 1.442695, %v3455_v49  ;;  %v3458_v20 = vsub.f32 %v17495_v53, %v13129_v34 }
 0x5e6   : > { %v13155_v33 = vpop.eup %10091  ;;  %10111 = vpow2.f32 %v3619_v24  ;;  %v3478_v46 = vsub.f32 %v17486_v63, %v13205_v47  ;;  %v17487_v24 = vld [vmem:[#allocation121_spill] sm:$0xff]  ;;  %v3647_v6 = vmul.f32 1.442695, %v3482_v15 }
 0x5e7   : > { %17463 = vst [vmem:[#allocation163_spill] sm:$0xff] %v13155_v33  ;;  %v13157_v59 = vpop.eup %10093  ;;  %3985 = vperm.xlu1 %9906, %v13155_v33   ;;  %10113 = vpow2.f32 %v3583_v31  ;;  %v3456_v18 = vsub.f32 %v17487_v24, %v13129_v34  ;;  %v3599_v49 = vmul.f32 1.442695, %v3458_v20 }
 0x5e8   : > { %17464 = vst [vmem:[#allocation180_spill] sm:$0xff] %v13157_v59  ;;  %3958 = vperm.xlu0 %9905, %v13157_v59   ;;  %v13165_v25 = vpop.eup %10095  ;;  %10115 = vpow2.f32 %v3623_v5  ;;  %v3639_v45 = vmul.f32 1.442695, %v3478_v46  ;;  %v3480_v5 = vsub.f32 %v17490_v61, %v13205_v47 }
 0x5e9   : > { %17467 = vst [vmem:[#allocation165_spill] sm:$0xff] %v13165_v25  ;;  %v13167_v27 = vpop.eup %10097  ;;  %10117 = vpow2.f32 %v3585_v14  ;;  %v3595_v43 = vmul.f32 1.442695, %v3456_v18  ;;  %v3457_v14 = vsub.f32 %v17491_v0, %v13129_v34  ;;  %v17502_v18 = vld [vmem:[#allocation37_spill] sm:$0xff] }
 0x5ea   : > { %17468 = vst [vmem:[#allocation167_spill] sm:$0xff] %v13167_v27  ;;  %v13175_v55 = vpop.eup %10099  ;;  %10119 = vpow2.f32 %v3627_v3  ;;  %v3643_v3 = vmul.f32 1.442695, %v3480_v5  ;;  %v17503_v5 = vld [vmem:[#allocation126_spill] sm:$0xff] }
 0x5eb   : > { %4003 = vperm.xlu1 %9906, %v13165_v25   ;;  %17471 = vst [vmem:[#allocation169_spill] sm:$0xff] %v13175_v55  ;;  %v13177_v42 = vpop.eup %10101  ;;  %10121 = vpow2.f32 %v3587_v48  ;;  %v3597_v48 = vmul.f32 1.442695, %v3457_v14 }
 0x5ec   : > { %3961 = vperm.xlu0 %9905, %v13167_v27   ;;  %17472 = vst [vmem:[#allocation171_spill] sm:$0xff] %v13177_v42  ;;  %v13185_v52 = vpop.eup %10103  ;;  %10123 = vpow2.f32 %v3631_v57 }
 0x5ed   : > { %17475 = vst [vmem:[#allocation173_spill] sm:$0xff] %v13185_v52  ;;  %v13187_v35 = vpop.eup %10105  ;;  %10125 = vpow2.f32 %v3589_v2  ;;  %v17498_v2 = vld [vmem:[#allocation149_spill] sm:$0xff] }
 0x5ee   : > { %17476 = vst [vmem:[#allocation179_spill] sm:$0xff] %v13187_v35  ;;  %v13198_v17 = vpop.eup %10107  ;;  %10127 = vpow2.f32 %v3635_v8  ;;  %v3484_v12 = vsub.f32 %v17498_v2, %v13205_v47  ;;  %v17499_v8 = vld [vmem:[#allocation124_spill] sm:$0xff]  ;;  %v13278_v2 = vsub.s32 3, %v17387_v51 }
 0x5ef   : > { %4009 = vperm.xlu1 %9906, %v13175_v55   ;;  %17480 = vst [vmem:[#allocation183_spill] sm:$0xff] %v13198_v17  ;;  %v13200_v37 = vpop.eup %10109  ;;  %10129 = vpow2.f32 %v3593_v40  ;;  %v3459_v63 = vsub.f32 %v17499_v8, %v13129_v34 }
 0x5f0   : > { %3964 = vperm.xlu0 %9905, %v13177_v42   ;;  %17481 = vst [vmem:[#allocation166_spill] sm:$0xff] %v13200_v37  ;;  %v13212_v44 = vpop.eup %10111  ;;  %10131 = vpow2.f32 %v3639_v45  ;;  %v3651_v24 = vmul.f32 1.442695, %v3484_v12  ;;  %v3486_v45 = vsub.f32 %v17502_v18, %v13205_v47  ;;  %17510 = vst [vmem:[#allocation195_spill] sm:$0xff] %v13278_v2 }
 0x5f1   : > { %17484 = vst [vmem:[#allocation168_spill] sm:$0xff] %v13212_v44  ;;  %v13214_v39 = vpop.eup %10113  ;;  %10133 = vpow2.f32 %v3595_v43  ;;  %v3601_v61 = vmul.f32 1.442695, %v3459_v63  ;;  %v3461_v43 = vsub.f32 %v17503_v5, %v13133_v60  ;;  %v13292_v5 = vrot.slane %v13122_v4, %v13278_v2 }
 0x5f2   : > { %17485 = vst [vmem:[#allocation170_spill] sm:$0xff] %v13214_v39  ;;  %v13222_v50 = vpop.eup %10115  ;;  %10135 = vpow2.f32 %v3643_v3  ;;  %v3655_v14 = vmul.f32 1.442695, %v3486_v45  ;;  %v17506_v3 = vld [vmem:[#allocation38_spill] sm:$0xff] }
 0x5f3   : > { %4015 = vperm.xlu1 %9906, %v13185_v52   ;;  %17488 = vst [vmem:[#allocation194_spill] sm:$0xff] %v13222_v50  ;;  %v13224_v31 = vpop.eup %10117  ;;  %10137 = vpow2.f32 %v3597_v48  ;;  %v3488_v54 = vsub.f32 %v17506_v3, %v13205_v47  ;;  %v3605_v15 = vmul.f32 1.442695, %v3461_v43  ;;  %v17507_v48 = vld [vmem:[#allocation128_spill] sm:$0xff] }
 0x5f4   : > { %3967 = vperm.xlu0 %9905, %v13187_v35   ;;  %17489 = vst [vmem:[#allocation172_spill] sm:$0xff] %v13224_v31  ;;  %v13232_v19 = vpop.eup %10119  ;;  %10139 = vpow2.f32 %v3647_v6  ;;  %v3463_v53 = vsub.f32 %v17507_v48, %v13133_v60 }
 0x5f5   : > { %17492 = vst [vmem:[#allocation182_spill] sm:$0xff] %v13232_v19  ;;  %v13234_v29 = vpop.eup %10121  ;;  %10141 = vpow2.f32 %v3599_v49  ;;  %v3659_v12 = vmul.f32 1.442695, %v3488_v54  ;;  %v17511_v49 = vld [vmem:[#allocation39_spill] sm:$0xff] }
 0x5f6   : > { %17493 = vst [vmem:[#allocation175_spill] sm:$0xff] %v13234_v29  ;;  %v13242_v57 = vpop.eup %10123  ;;  %10143 = vpow2.f32 %v3651_v24  ;;  %v3490_v8 = vsub.f32 %v17511_v49, %v13205_v47  ;;  %v3609_v63 = vmul.f32 1.442695, %v3463_v53  ;;  %v17512_v24 = vld [vmem:[#allocation130_spill] sm:$0xff] }
 0x5f7   : > { %4021 = vperm.xlu1 %9906, %v13198_v17   ;;  %17496 = vst [vmem:[#allocation186_spill] sm:$0xff] %v13242_v57  ;;  %v13244_v58 = vpop.eup %10125  ;;  %10145 = vpow2.f32 %v3601_v61  ;;  %v3465_v18 = vsub.f32 %v17512_v24, %v13133_v60 }
 0x5f8   : > { %3970 = vperm.xlu0 %9905, %v13200_v37   ;;  %17497 = vst [vmem:[#allocation191_spill] sm:$0xff] %v13244_v58  ;;  %v13252_v46 = vpop.eup %10127  ;;  %10147 = vpow2.f32 %v3655_v14  ;;  %v3663_v43 = vmul.f32 1.442695, %v3490_v8  ;;  %v17515_v14 = vld [vmem:[#allocation41_spill] sm:$0xff] }
 0x5f9   : > { %17500 = vst [vmem:[#allocation193_spill] sm:$0xff] %v13252_v46  ;;  %v13254_v40 = vpop.eup %10129  ;;  %10149 = vpow2.f32 %v3605_v15  ;;  %v3492_v3 = vsub.f32 %v17515_v14, %v13205_v47  ;;  %v3613_v54 = vmul.f32 1.442695, %v3465_v18  ;;  %v17516_v15 = vld [vmem:[#allocation132_spill] sm:$0xff] }
 0x5fa   : > { %17501 = vst [vmem:[#allocation196_spill] sm:$0xff] %v13254_v40  ;;  %v13262_v0 = vpop.eup %10131  ;;  %10151 = vpow2.f32 %v3659_v12  ;;  %v3467_v48 = vsub.f32 %v17516_v15, %v13133_v60  ;;  %v17519_v12 = vld [vmem:[#allocation153_spill] sm:$0xff] }
 0x5fb   : > { %4027 = vperm.xlu1 %9906, %v13212_v44   ;;  %17504 = vst [vmem:[#allocation174_spill] sm:$0xff] %v13262_v0  ;;  %v13264_v34 = vpop.eup %10133  ;;  %10153 = vpow2.f32 %v3609_v63  ;;  %v3667_v24 = vmul.f32 1.442695, %v3492_v3  ;;  %v3494_v8 = vsub.f32 %v17519_v12, %v13292_v5  ;;  %v17520_v63 = vld [vmem:[#allocation134_spill] sm:$0xff] }
 0x5fc   : > { %3973 = vperm.xlu0 %9905, %v13214_v39   ;;  %17505 = vst [vmem:[#allocation185_spill] sm:$0xff] %v13264_v34  ;;  %v13272_v20 = vpop.eup %10135  ;;  %10155 = vpow2.f32 %v3663_v43  ;;  %v3617_v14 = vmul.f32 1.442695, %v3467_v48  ;;  %v3469_v18 = vsub.f32 %v17520_v63, %v13133_v60  ;;  %v17523_v43 = vld [vmem:[#allocation155_spill] sm:$0xff] }
 0x5fd   : > { %17508 = vst [vmem:[#allocation210_spill] sm:$0xff] %v13272_v20  ;;  %v13274_v6 = vpop.eup %10137  ;;  %10157 = vpow2.f32 %v3613_v54  ;;  %v3496_v3 = vsub.f32 %v17523_v43, %v13292_v5  ;;  %v17524_v54 = vld [vmem:[#allocation136_spill] sm:$0xff] }
 0x5fe   : > { %17509 = vst [vmem:[#allocation188_spill] sm:$0xff] %v13274_v6  ;;  %v13285_v45 = vpop.eup %10139  ;;  %10159 = vpow2.f32 %v3667_v24  ;;  %v3621_v12 = vmul.f32 1.442695, %v3469_v18  ;;  %v3471_v48 = vsub.f32 %v17524_v54, %v13133_v60  ;;  %v17527_v24 = vld [vmem:[#allocation157_spill] sm:$0xff] }
 0x5ff   : > { %4033 = vperm.xlu1 %9906, %v13222_v50   ;;  %17513 = vst [vmem:[#allocation198_spill] sm:$0xff] %v13285_v45  ;;  %v13287_v61 = vpop.eup %10141  ;;  %10161 = vpow2.f32 %v3617_v14  ;;  %v17528_v14 = vld [vmem:[#allocation138_spill] sm:$0xff] }
 0x600   : > { %3976 = vperm.xlu0 %9905, %v13224_v31   ;;  %17514 = vst [vmem:[#allocation207_spill] sm:$0xff] %v13287_v61  ;;  %v13299_v53 = vpop.eup %10143  ;;  %v3625_v43 = vmul.f32 1.442695, %v3471_v48  ;;  %v3473_v18 = vsub.f32 %v17528_v14, %v13133_v60 }
 0x601   : > { %17517 = vst [vmem:[#allocation176_spill] sm:$0xff] %v13299_v53  ;;  %v13301_v49 = vpop.eup %10145 }
 0x602   : > { %17518 = vst [vmem:[#allocation209_spill] sm:$0xff] %v13301_v49  ;;  %v13309_v2 = vpop.eup %10147 }
 0x603   : > { %4039 = vperm.xlu1 %9906, %v13232_v19   ;;  %17521 = vst [vmem:[#allocation187_spill] sm:$0xff] %v13309_v2  ;;  %v13311_v15 = vpop.eup %10149 }
 0x604   : > { %3979 = vperm.xlu0 %9905, %v13234_v29   ;;  %17522 = vst [vmem:[#allocation212_spill] sm:$0xff] %v13311_v15 }
 0x607   : > { %4045 = vperm.xlu1 %9906, %v13242_v57  }
 0x608   : > { %3982 = vperm.xlu0 %9905, %v13244_v58  }
 0x60b   : > { %4051 = vperm.xlu1 %9906, %v13252_v46  }
 0x60c   : > { %3988 = vperm.xlu0 %9905, %v13254_v40  }
 0x60f   : > { %4057 = vperm.xlu1 %9906, %v13262_v0  }
 0x610   : > { %3991 = vperm.xlu0 %9905, %v13264_v34  }
 0x613   : > { %4063 = vperm.xlu1 %9906, %v13272_v20  }
 0x614   : > { %3994 = vperm.xlu0 %9905, %v13274_v6  }
 0x617   : > { %4069 = vperm.xlu1 %9906, %v13285_v45   ;;  %v13319_v45 = vpop.eup %10151 }
 0x618   : > { %3997 = vperm.xlu0 %9905, %v13287_v61   ;;  %17525 = vst [vmem:[#allocation197_spill] sm:$0xff] %v13319_v45  ;;  %v13321_v63 = vpop.eup %10153 }
 0x619   : > { %17526 = vst [vmem:[#allocation200_spill] sm:$0xff] %v13321_v63  ;;  %v13329_v61 = vpop.eup %10155 }
 0x61a   : > { %17529 = vst [vmem:[#allocation211_spill] sm:$0xff] %v13329_v61  ;;  %v13331_v54 = vpop.eup %10157 }
 0x61b   : > { %4075 = vperm.xlu1 %9906, %v13299_v53   ;;  %v3671_v53 = vmul.f32 1.442695, %v3494_v8  ;;  %v3498_v8 = vsub.f32 %v17527_v24, %v13292_v5  ;;  %17530 = vst [vmem:[#allocation214_spill] sm:$0xff] %v13331_v54  ;;  %v3629_v24 = vmul.f32 1.442695, %v3473_v18  ;;  %v13339_v6 = vpop.eup %10159 }
 0x61c   : > { %4000 = vperm.xlu0 %9905, %v13301_v49   ;;  %17533 = vst [vmem:[#allocation199_spill] sm:$0xff] %v13339_v6  ;;  %v13341_v14 = vpop.eup %10161 }
 0x61d   : > { %10163 = vpow2.f32 %v3671_v53  ;;  %v17531_v53 = vld [vmem:[#allocation159_spill] sm:$0xff]  ;;  %17534 = vst [vmem:[#allocation213_spill] sm:$0xff] %v13341_v14 }
 0x61e   : > { %10165 = vpow2.f32 %v3621_v12  ;;  %v17532_v12 = vld [vmem:[#allocation140_spill] sm:$0xff] }
 0x61f   : > { %4081 = vperm.xlu1 %9906, %v13309_v2   ;;  %v3675_v2 = vmul.f32 1.442695, %v3496_v3  ;;  %v3500_v3 = vsub.f32 %v17531_v53, %v13292_v5  ;;  %v3475_v48 = vsub.f32 %v17532_v12, %v13133_v60 }
 0x620   : > { %4006 = vperm.xlu0 %9905, %v13311_v15  }
 0x621   : > { %10167 = vpow2.f32 %v3675_v2  ;;  %v17535_v2 = vld [vmem:[#allocation161_spill] sm:$0xff]  ;;  %v3633_v53 = vmul.f32 1.442695, %v3475_v48 }
 0x622   : > { %10169 = vpow2.f32 %v3625_v43  ;;  %v17536_v43 = vld [vmem:[#allocation142_spill] sm:$0xff] }
 0x623   : > { %4087 = vperm.xlu1 %9906, %v13319_v45   ;;  %v3679_v45 = vmul.f32 1.442695, %v3498_v8  ;;  %v3502_v8 = vsub.f32 %v17535_v2, %v13292_v5  ;;  %v3477_v18 = vsub.f32 %v17536_v43, %v13205_v47 }
 0x624   : > { %4012 = vperm.xlu0 %9905, %v13321_v63  }
 0x625   : > { %10171 = vpow2.f32 %v3679_v45  ;;  %v3687_v12 = vmul.f32 1.442695, %v3502_v8  ;;  %v17539_v45 = vld [vmem:[#allocation60_spill] sm:$0xff]  ;;  %v3637_v2 = vmul.f32 1.442695, %v3477_v18  ;;  %v17544_v8 = vld [vmem:[#allocation61_spill] sm:$0xff] }
 0x626   : > { %10173 = vpow2.f32 %v3629_v24  ;;  %v17540_v24 = vld [vmem:[#allocation144_spill] sm:$0xff] }
 0x627   : > { %4093 = vperm.xlu1 %9906, %v13329_v61   ;;  %v3683_v61 = vmul.f32 1.442695, %v3500_v3  ;;  %v13349_v20 = vpop.eup %10163  ;;  %v3504_v3 = vsub.f32 %v17539_v45, %v13292_v5  ;;  %v3479_v48 = vsub.f32 %v17540_v24, %v13205_v47  ;;  %v17545_v45 = vld [vmem:[#allocation146_spill] sm:$0xff] }
 0x628   : > { %4018 = vperm.xlu0 %9905, %v13331_v54   ;;  %17537 = vst [vmem:[#allocation216_spill] sm:$0xff] %v13349_v20  ;;  %v13351_v60 = vpop.eup %10165  ;;  %v3481_v24 = vsub.f32 %v17545_v45, %v13205_v47 }
 0x629   : > { %17538 = vst [vmem:[#allocation189_spill] sm:$0xff] %v13351_v60  ;;  %10175 = vpow2.f32 %v3683_v61  ;;  %v3691_v61 = vmul.f32 1.442695, %v3504_v3  ;;  %v3641_v18 = vmul.f32 1.442695, %v3479_v48  ;;  %v17548_v3 = vld [vmem:[#allocation63_spill] sm:$0xff] }
 0x62a   : > { %10177 = vpow2.f32 %v3633_v53  ;;  %v3506_v53 = vsub.f32 %v17544_v8, %v13292_v5  ;;  %v3645_v48 = vmul.f32 1.442695, %v3481_v24  ;;  %v17549_v8 = vld [vmem:[#allocation148_spill] sm:$0xff] }
 0x62b   : > { %4099 = vperm.xlu1 %9906, %v13339_v6   ;;  %v13359_v6 = vpop.eup %10167  ;;  %10179 = vpow2.f32 %v3687_v12  ;;  %v3483_v45 = vsub.f32 %v17549_v8, %v13205_v47 }
 0x62c   : > { %4024 = vperm.xlu0 %9905, %v13341_v14   ;;  %17541 = vst [vmem:[#allocation190_spill] sm:$0xff] %v13359_v6  ;;  %v13361_v43 = vpop.eup %10169  ;;  %10181 = vpow2.f32 %v3637_v2  ;;  %v3695_v12 = vmul.f32 1.442695, %v3506_v53  ;;  %v3508_v2 = vsub.f32 %v17548_v3, %v13292_v5 }
 0x62d   : > { %17542 = vst [vmem:[#allocation202_spill] sm:$0xff] %v13361_v43  ;;  %10183 = vpow2.f32 %v3691_v61  ;;  %v17552_v61 = vld [vmem:[#allocation43_spill] sm:$0xff]  ;;  %v3649_v3 = vmul.f32 1.442695, %v3483_v45 }
 0x62e   : > { %10185 = vpow2.f32 %v3641_v18  ;;  %v17553_v18 = vld [vmem:[#allocation150_spill] sm:$0xff] }
 0x62f   : > { %4105 = vperm.xlu1 %9906, %v13349_v20   ;;  %v13365_v20 = vsub.s32 4, %v17387_v51  ;;  %v13372_v0 = vpop.eup %10171  ;;  %10187 = vpow2.f32 %v3695_v12  ;;  %v3485_v24 = vsub.f32 %v17553_v18, %v13205_v47  ;;  %v17556_v12 = vld [vmem:[#allocation45_spill] sm:$0xff] }
 0x630   : > { %4030 = vperm.xlu0 %9905, %v13351_v60   ;;  %17546 = vst [vmem:[#allocation217_spill] sm:$0xff] %v13372_v0  ;;  %v13374_v34 = vpop.eup %10173  ;;  %10189 = vpow2.f32 %v3645_v48  ;;  %v17557_v48 = vld [vmem:[#allocation151_spill] sm:$0xff] }
 0x631   : > { %17543 = vst [vmem:[#allocation215_spill] sm:$0xff] %v13365_v20  ;;  %17547 = vst [vmem:[#allocation201_spill] sm:$0xff] %v13374_v34  ;;  %v3487_v45 = vsub.f32 %v17557_v48, %v13205_v47 }
 0x633   : > { %4111 = vperm.xlu1 %9906, %v13359_v6   ;;  %v13379_v6 = vrot.slane %v13122_v4, %v13365_v20  ;;  %v13386_v40 = vpop.eup %10175  ;;  %v3699_v20 = vmul.f32 1.442695, %v3508_v2 }
 0x634   : > { %4036 = vperm.xlu0 %9905, %v13361_v43   ;;  %17550 = vst [vmem:[#allocation204_spill] sm:$0xff] %v13386_v40  ;;  %v13388_v13 = vpop.eup %10177 }
 0x635   : > { %17551 = vst [vmem:[#allocation55_spill] sm:$0xff] %v13388_v13  ;;  %v3510_v53 = vsub.f32 %v17552_v61, %v13379_v6  ;;  %10191 = vpow2.f32 %v3699_v20  ;;  %v3512_v2 = vsub.f32 %v17556_v12, %v13379_v6  ;;  %v3653_v61 = vmul.f32 1.442695, %v3485_v24  ;;  %v17560_v20 = vld [vmem:[#allocation47_spill] sm:$0xff] }
 0x636   : > { %10193 = vpow2.f32 %v3649_v3  ;;  %v3657_v12 = vmul.f32 1.442695, %v3487_v45  ;;  %v17561_v3 = vld [vmem:[#allocation40_spill] sm:$0xff] }
 0x637   : > { %4117 = vperm.xlu1 %9906, %v13372_v0   ;;  %v13396_v0 = vpop.eup %10179  ;;  %v3489_v24 = vsub.f32 %v17561_v3, %v13205_v47 }
 0x638   : > { %4042 = vperm.xlu0 %9905, %v13374_v34   ;;  %17554 = vst [vmem:[#allocation219_spill] sm:$0xff] %v13396_v0  ;;  %v13398_v8 = vpop.eup %10181 }
 0x639   : > { %17555 = vst [vmem:[#allocation203_spill] sm:$0xff] %v13398_v8  ;;  %v13406_v46 = vpop.eup %10183 }
 0x63a   : > { %17558 = vst [vmem:[#allocation206_spill] sm:$0xff] %v13406_v46  ;;  %v13408_v18 = vpop.eup %10185 }
 0x63b   : > { %4123 = vperm.xlu1 %9906, %v13386_v40   ;;  %v3703_v40 = vmul.f32 1.442695, %v3510_v53  ;;  %17559 = vst [vmem:[#allocation218_spill] sm:$0xff] %v13408_v18  ;;  %v3514_v53 = vsub.f32 %v17560_v20, %v13379_v6  ;;  %v3661_v20 = vmul.f32 1.442695, %v3489_v24 }
 0x63c   : > { %4048 = vperm.xlu0 %9905, %v13388_v13  }
 0x63d   : > { %10195 = vpow2.f32 %v3703_v40  ;;  %v17564_v40 = vld [vmem:[#allocation49_spill] sm:$0xff] }
 0x63e   : > { %10197 = vpow2.f32 %v3653_v61  ;;  %v17565_v61 = vld [vmem:[#allocation42_spill] sm:$0xff] }
 0x63f   : > { %4129 = vperm.xlu1 %9906, %v13396_v0   ;;  %v3707_v0 = vmul.f32 1.442695, %v3512_v2  ;;  %v3516_v2 = vsub.f32 %v17564_v40, %v13379_v6  ;;  %v3491_v45 = vsub.f32 %v17565_v61, %v13205_v47 }
 0x640   : > { %4054 = vperm.xlu0 %9905, %v13398_v8   ;;  %v13416_v8 = vpop.eup %10187 }
 0x641   : > { %17562 = vst [vmem:[#allocation221_spill] sm:$0xff] %v13416_v8  ;;  %v13418_v48 = vpop.eup %10189  ;;  %10199 = vpow2.f32 %v3707_v0  ;;  %v17568_v0 = vld [vmem:[#allocation51_spill] sm:$0xff]  ;;  %v3665_v40 = vmul.f32 1.442695, %v3491_v45 }
 0x642   : > { %17563 = vst [vmem:[#allocation192_spill] sm:$0xff] %v13418_v48  ;;  %10201 = vpow2.f32 %v3657_v12  ;;  %v17569_v12 = vld [vmem:[#allocation152_spill] sm:$0xff] }
 0x643   : > { %4135 = vperm.xlu1 %9906, %v13406_v46   ;;  %v3711_v46 = vmul.f32 1.442695, %v3514_v53  ;;  %v3518_v53 = vsub.f32 %v17568_v0, %v13379_v6  ;;  %v3493_v24 = vsub.f32 %v17569_v12, %v13292_v5 }
 0x644   : > { %4060 = vperm.xlu0 %9905, %v13408_v18   ;;  %v13426_v18 = vpop.eup %10191 }
 0x645   : > { %17566 = vst [vmem:[#allocation205_spill] sm:$0xff] %v13426_v18  ;;  %v13428_v3 = vpop.eup %10193  ;;  %10203 = vpow2.f32 %v3711_v46  ;;  %v3719_v61 = vmul.f32 1.442695, %v3518_v53  ;;  %v17572_v46 = vld [vmem:[#allocation53_spill] sm:$0xff]  ;;  %v3669_v0 = vmul.f32 1.442695, %v3493_v24 }
 0x646   : > { %17567 = vst [vmem:[#allocation208_spill] sm:$0xff] %v13428_v3  ;;  %10205 = vpow2.f32 %v3661_v20  ;;  %v17573_v20 = vld [vmem:[#allocation154_spill] sm:$0xff]  ;;  %v17577_v53 = vld [vmem:[#allocation56_spill] sm:$0xff] }
 0x647   : > { %4141 = vperm.xlu1 %9906, %v13416_v8   ;;  %v3715_v8 = vmul.f32 1.442695, %v3516_v2  ;;  %v3520_v2 = vsub.f32 %v17572_v46, %v13379_v6  ;;  %v3495_v45 = vsub.f32 %v17573_v20, %v13292_v5  ;;  %v17578_v46 = vld [vmem:[#allocation156_spill] sm:$0xff] }
 0x648   : > { %4066 = vperm.xlu0 %9905, %v13418_v48   ;;  %v13436_v48 = vpop.eup %10195  ;;  %v3497_v20 = vsub.f32 %v17578_v46, %v13292_v5 }
 0x649   : > { %17570 = vst [vmem:[#allocation220_spill] sm:$0xff] %v13436_v48  ;;  %v13438_v47 = vpop.eup %10197  ;;  %10207 = vpow2.f32 %v3715_v8  ;;  %v3723_v8 = vmul.f32 1.442695, %v3520_v2  ;;  %v3673_v24 = vmul.f32 1.442695, %v3495_v45  ;;  %v17581_v2 = vld [vmem:[#allocation58_spill] sm:$0xff] }
 0x64a   : > { %17571 = vst [vmem:[#allocation119_spill] sm:$0xff] %v13438_v47  ;;  %10209 = vpow2.f32 %v3665_v40  ;;  %v3522_v40 = vsub.f32 %v17577_v53, %v13379_v6  ;;  %v3677_v45 = vmul.f32 1.442695, %v3497_v20  ;;  %v17582_v53 = vld [vmem:[#allocation158_spill] sm:$0xff] }
 0x64b   : > { %4147 = vperm.xlu1 %9906, %v13426_v18   ;;  %v13446_v18 = vpop.eup %10199  ;;  %10211 = vpow2.f32 %v3719_v61  ;;  %v3499_v46 = vsub.f32 %v17582_v53, %v13292_v5 }
 0x64c   : > { %4072 = vperm.xlu0 %9905, %v13428_v3   ;;  %17574 = vst [vmem:[#allocation111_spill] sm:$0xff] %v13446_v18  ;;  %v13448_v12 = vpop.eup %10201  ;;  %10213 = vpow2.f32 %v3669_v0  ;;  %v3727_v61 = vmul.f32 1.442695, %v3522_v40  ;;  %v3524_v0 = vsub.f32 %v17581_v2, %v13379_v6 }
 0x64d   : > { %17575 = vst [vmem:[#allocation125_spill] sm:$0xff] %v13448_v12  ;;  %10215 = vpow2.f32 %v3723_v8  ;;  %v17585_v8 = vld [vmem:[#allocation65_spill] sm:$0xff]  ;;  %v3681_v2 = vmul.f32 1.442695, %v3499_v46 }
 0x64e   : > { %10217 = vpow2.f32 %v3673_v24  ;;  %v17586_v24 = vld [vmem:[#allocation160_spill] sm:$0xff] }
 0x64f   : > { %4153 = vperm.xlu1 %9906, %v13436_v48   ;;  %v13452_v48 = vsub.s32 5, %v17387_v51  ;;  %10219 = vpow2.f32 %v3727_v61  ;;  %v3501_v20 = vsub.f32 %v17586_v24, %v13292_v5  ;;  %v17589_v61 = vld [vmem:[#allocation67_spill] sm:$0xff] }
 0x650   : > { %4078 = vperm.xlu0 %9905, %v13438_v47   ;;  %v13459_v47 = vpop.eup %10203  ;;  %10221 = vpow2.f32 %v3677_v45  ;;  %v17590_v45 = vld [vmem:[#allocation162_spill] sm:$0xff] }
 0x651   : > { %17576 = vst [vmem:[#allocation110_spill] sm:$0xff] %v13452_v48  ;;  %17579 = vst [vmem:[#allocation127_spill] sm:$0xff] %v13459_v47  ;;  %v13461_v3 = vpop.eup %10205  ;;  %v3503_v46 = vsub.f32 %v17590_v45, %v13292_v5 }
 0x652   : > { %17580 = vst [vmem:[#allocation112_spill] sm:$0xff] %v13461_v3 }
 0x653   : > { %4159 = vperm.xlu1 %9906, %v13446_v18   ;;  %v13466_v18 = vrot.slane %v13122_v4, %v13452_v48  ;;  %v3731_v48 = vmul.f32 1.442695, %v3524_v0 }
 0x654   : > { %4084 = vperm.xlu0 %9905, %v13448_v12   ;;  %v13473_v12 = vpop.eup %10207 }
 0x655   : > { %17583 = vst [vmem:[#allocation129_spill] sm:$0xff] %v13473_v12  ;;  %v13475_v13 = vpop.eup %10209  ;;  %v3526_v40 = vsub.f32 %v17585_v8, %v13466_v18  ;;  %10223 = vpow2.f32 %v3731_v48  ;;  %v3528_v0 = vsub.f32 %v17589_v61, %v13466_v18  ;;  %v3685_v8 = vmul.f32 1.442695, %v3501_v20  ;;  %v17593_v48 = vld [vmem:[#allocation69_spill] sm:$0xff] }
 0x656   : > { %17584 = vst [vmem:[#allocation113_spill] sm:$0xff] %v13475_v13  ;;  %10225 = vpow2.f32 %v3681_v2  ;;  %v3689_v61 = vmul.f32 1.442695, %v3503_v46  ;;  %v17594_v2 = vld [vmem:[#allocation62_spill] sm:$0xff] }
 0x657   : > { %4165 = vperm.xlu1 %9906, %v13459_v47   ;;  %v13483_v47 = vpop.eup %10211  ;;  %v3505_v20 = vsub.f32 %v17594_v2, %v13292_v5 }
 0x658   : > { %4090 = vperm.xlu0 %9905, %v13461_v3   ;;  %17587 = vst [vmem:[#allocation131_spill] sm:$0xff] %v13483_v47  ;;  %v13485_v53 = vpop.eup %10213 }
 0x659   : > { %17588 = vst [vmem:[#allocation114_spill] sm:$0xff] %v13485_v53  ;;  %v3693_v46 = vmul.f32 1.442695, %v3505_v20 }
 0x65b   : > { %4171 = vperm.xlu1 %9906, %v13473_v12   ;;  %v3735_v12 = vmul.f32 1.442695, %v3526_v40  ;;  %v3530_v40 = vsub.f32 %v17593_v48, %v13466_v18  ;;  %v17598_v48 = vld [vmem:[#allocation64_spill] sm:$0xff] }
 0x65c   : > { %4096 = vperm.xlu0 %9905, %v13475_v13   ;;  %v13493_v13 = vpop.eup %10215  ;;  %v3507_v2 = vsub.f32 %v17598_v48, %v13292_v5  ;;  %v17603_v5 = vld [vmem:[#allocation44_spill] sm:$0xff] }
 0x65d   : > { %17591 = vst [vmem:[#allocation133_spill] sm:$0xff] %v13493_v13  ;;  %v13495_v24 = vpop.eup %10217  ;;  %10227 = vpow2.f32 %v3735_v12  ;;  %v3743_v12 = vmul.f32 1.442695, %v3530_v40  ;;  %v17602_v40 = vld [vmem:[#allocation73_spill] sm:$0xff] }
 0x65e   : > { %17592 = vst [vmem:[#allocation115_spill] sm:$0xff] %v13495_v24  ;;  %10229 = vpow2.f32 %v3685_v8  ;;  %v3697_v20 = vmul.f32 1.442695, %v3507_v2 }
 0x65f   : > { %4177 = vperm.xlu1 %9906, %v13483_v47   ;;  %v3739_v47 = vmul.f32 1.442695, %v3528_v0  ;;  %v17597_v0 = vld [vmem:[#allocation71_spill] sm:$0xff] }
 0x660   : > { %4102 = vperm.xlu0 %9905, %v13485_v53   ;;  %v13503_v53 = vpop.eup %10219  ;;  %v3532_v8 = vsub.f32 %v17597_v0, %v13466_v18  ;;  %v3509_v0 = vsub.f32 %v17603_v5, %v13379_v6 }
 0x661   : > { %17595 = vst [vmem:[#allocation135_spill] sm:$0xff] %v13503_v53  ;;  %v13507_v3 = vpop.eup %10221  ;;  %10231 = vpow2.f32 %v3739_v47 }
 0x662   : > { %17596 = vst [vmem:[#allocation116_spill] sm:$0xff] %v13507_v3  ;;  %10233 = vpow2.f32 %v3689_v61  ;;  %v3747_v47 = vmul.f32 1.442695, %v3532_v8  ;;  %v3534_v61 = vsub.f32 %v17602_v40, %v13466_v18  ;;  %v17606_v8 = vld [vmem:[#allocation75_spill] sm:$0xff]  ;;  %v3701_v2 = vmul.f32 1.442695, %v3509_v0 }
 0x663   : > { %4183 = vperm.xlu1 %9906, %v13493_v13   ;;  %v13517_v13 = vpop.eup %10223  ;;  %10235 = vpow2.f32 %v3743_v12  ;;  %v17607_v40 = vld [vmem:[#allocation46_spill] sm:$0xff] }
 0x664   : > { %4108 = vperm.xlu0 %9905, %v13495_v24   ;;  %17599 = vst [vmem:[#allocation137_spill] sm:$0xff] %v13517_v13  ;;  %v13521_v34 = vpop.eup %10225  ;;  %10237 = vpow2.f32 %v3693_v46  ;;  %v3751_v12 = vmul.f32 1.442695, %v3534_v61  ;;  %v3536_v46 = vsub.f32 %v17606_v8, %v13466_v18  ;;  %v3511_v5 = vsub.f32 %v17607_v40, %v13379_v6  ;;  %v17611_v40 = vld [vmem:[#allocation48_spill] sm:$0xff] }
 0x665   : > { %17601 = vst [vmem:[#allocation139_spill] sm:$0xff] %v13521_v34  ;;  %10239 = vpow2.f32 %v3747_v47  ;;  %v16804_v47 = vsub.s32 6, %v17387_v51 }
 0x666   : > { %v13505_v45 = vpop.permute.xlu1 %3985  ;;  %10241 = vpow2.f32 %v3697_v20  ;;  %v3755_v61 = vmul.f32 1.442695, %v3536_v46  ;;  %v17610_v20 = vld [vmem:[#allocation77_spill] sm:$0xff]  ;;  %v3705_v8 = vmul.f32 1.442695, %v3511_v5 }
 0x667   : > { %v13509_v57 = vpop.permute.xlu0 %3958  ;;  %4189 = vperm.xlu1 %9906, %v13503_v53   ;;  %v13531_v48 = vpop.eup %10227  ;;  %10243 = vpow2.f32 %v3751_v12  ;;  %v3538_v0 = vsub.f32 %v17610_v20, %v13466_v18  ;;  %v13572_v12 = vrot.slane %v13122_v4, %v16804_v47 }
 0x668   : > { %4114 = vperm.xlu0 %9905, %v13507_v3   ;;  %17604 = vst [vmem:[#allocation118_spill] sm:$0xff] %v13531_v48  ;;  %v13535_v3 = vpop.eup %10229  ;;  %10245 = vpow2.f32 %v3701_v2  ;;  %v17614_v2 = vld [vmem:[#allocation79_spill] sm:$0xff] }
 0x669   : > { %17605 = vst [vmem:[#allocation141_spill] sm:$0xff] %v13535_v3  ;;  %10247 = vpow2.f32 %v3755_v61  ;;  %v3759_v46 = vmul.f32 1.442695, %v3538_v0  ;;  %v3540_v5 = vsub.f32 %v17614_v2, %v13466_v18  ;;  %v17618_v0 = vld [vmem:[#allocation81_spill] sm:$0xff]  ;;  %v17619_v2 = vld [vmem:[#allocation52_spill] sm:$0xff] }
 0x66a   : > { %v13519_v24 = vpop.permute.xlu1 %4003  ;;  %10249 = vpow2.f32 %v3705_v8 }
 0x66b   : > { %17600 = vst [vmem:[#allocation117_spill] sm:$0xff] %v13519_v24  ;;  %v13523_v19 = vpop.permute.xlu0 %3961  ;;  %4195 = vperm.xlu1 %9906, %v13517_v13   ;;  %v13545_v13 = vpop.eup %10231  ;;  %10251 = vpow2.f32 %v3759_v46  ;;  %v3763_v61 = vmul.f32 1.442695, %v3540_v5  ;;  %v17622_v5 = vld [vmem:[#allocation83_spill] sm:$0xff] }
 0x66c   : > { %4120 = vperm.xlu0 %9905, %v13521_v34   ;;  %17608 = vst [vmem:[#allocation120_spill] sm:$0xff] %v13545_v13  ;;  %v13549_v29 = vpop.eup %10233 }
 0x66d   : > { %17609 = vst [vmem:[#allocation143_spill] sm:$0xff] %v13549_v29 }
 0x66e   : > { %v13533_v53 = vpop.permute.xlu1 %4009 }
 0x66f   : > { %v13537_v43 = vpop.permute.xlu0 %3964  ;;  %4201 = vperm.xlu1 %9906, %v13531_v48   ;;  %v3513_v48 = vsub.f32 %v17611_v40, %v13379_v6  ;;  %v17615_v40 = vld [vmem:[#allocation50_spill] sm:$0xff] }
 0x670   : > { %4126 = vperm.xlu0 %9905, %v13535_v3   ;;  %v13560_v3 = vpop.eup %10235 }
 0x671   : > { %17612 = vst [vmem:[#allocation121_spill] sm:$0xff] %v13560_v3  ;;  %v13564_v60 = vpop.eup %10237  ;;  %v3709_v20 = vmul.f32 1.442695, %v3513_v48  ;;  %v3542_v48 = vsub.f32 %v17618_v0, %v13572_v12  ;;  %v17623_v0 = vld [vmem:[#allocation54_spill] sm:$0xff] }
 0x672   : > { %v13547_v34 = vpop.permute.xlu1 %4015  ;;  %17613 = vst [vmem:[#allocation145_spill] sm:$0xff] %v13564_v60  ;;  %v13579_v44 = vpop.eup %10239 }
 0x673   : > { %v13551_v31 = vpop.permute.xlu0 %3967  ;;  %4207 = vperm.xlu1 %9906, %v13545_v13   ;;  %17616 = vst [vmem:[#allocation122_spill] sm:$0xff] %v13579_v44  ;;  %v13583_v14 = vpop.eup %10241  ;;  %10253 = vpow2.f32 %v3709_v20  ;;  %v3767_v46 = vmul.f32 1.442695, %v3542_v48  ;;  %v17626_v48 = vld [vmem:[#allocation85_spill] sm:$0xff] }
 0x674   : > { %4132 = vperm.xlu0 %9905, %v13549_v29   ;;  %v3515_v29 = vsub.f32 %v17615_v40, %v13379_v6  ;;  %17617 = vst [vmem:[#allocation147_spill] sm:$0xff] %v13583_v14  ;;  %v3517_v40 = vsub.f32 %v17619_v2, %v13379_v6  ;;  %10255 = vpow2.f32 %v3763_v61  ;;  %v3519_v2 = vsub.f32 %v17623_v0, %v13379_v6 }
 0x676   : > { %v13562_v50 = vpop.permute.xlu1 %4021  ;;  %v3713_v8 = vmul.f32 1.442695, %v3515_v29  ;;  %v3544_v29 = vsub.f32 %v17622_v5, %v13572_v12  ;;  %v3717_v20 = vmul.f32 1.442695, %v3517_v40  ;;  %v3721_v40 = vmul.f32 1.442695, %v3519_v2 }
 0x677   : > { %v13566_v13 = vpop.permute.xlu0 %3970  ;;  %4213 = vperm.xlu1 %9906, %v13560_v3   ;;  %v17627_v5 = vld [vmem:[#allocation57_spill] sm:$0xff] }
 0x678   : > { %4138 = vperm.xlu0 %9905, %v13564_v60   ;;  %v13593_v60 = vpop.eup %10243  ;;  %10257 = vpow2.f32 %v3713_v8  ;;  %v3771_v61 = vmul.f32 1.442695, %v3544_v29  ;;  %v3546_v8 = vsub.f32 %v17626_v48, %v13572_v12  ;;  %v3521_v0 = vsub.f32 %v17627_v5, %v13379_v6  ;;  %v17631_v29 = vld [vmem:[#allocation87_spill] sm:$0xff] }
 0x679   : > { %17620 = vst [vmem:[#allocation123_spill] sm:$0xff] %v13593_v60  ;;  %v13597_v37 = vpop.eup %10245  ;;  %10259 = vpow2.f32 %v3767_v46  ;;  %v17632_v48 = vld [vmem:[#allocation59_spill] sm:$0xff] }
 0x67a   : > { %v13581_v3 = vpop.permute.xlu1 %4027  ;;  %17621 = vst [vmem:[#allocation149_spill] sm:$0xff] %v13597_v37  ;;  %10261 = vpow2.f32 %v3717_v20  ;;  %v3775_v46 = vmul.f32 1.442695, %v3546_v8  ;;  %v3548_v20 = vsub.f32 %v17631_v29, %v13572_v12  ;;  %v3725_v2 = vmul.f32 1.442695, %v3521_v0  ;;  %v17636_v8 = vld [vmem:[#allocation89_spill] sm:$0xff] }
 0x67b   : > { %v13585_v47 = vpop.permute.xlu0 %3973  ;;  %4219 = vperm.xlu1 %9906, %v13579_v44   ;;  %v13607_v44 = vpop.eup %10247  ;;  %10263 = vpow2.f32 %v3771_v61  ;;  %v3523_v5 = vsub.f32 %v17632_v48, %v13379_v6  ;;  %v17637_v6 = vld [vmem:[#allocation66_spill] sm:$0xff] }
 0x67c   : > { %4144 = vperm.xlu0 %9905, %v13583_v14   ;;  %17624 = vst [vmem:[#allocation124_spill] sm:$0xff] %v13607_v44  ;;  %v13611_v54 = vpop.eup %10249  ;;  %10265 = vpow2.f32 %v3721_v40  ;;  %v3779_v61 = vmul.f32 1.442695, %v3548_v20  ;;  %v3550_v40 = vsub.f32 %v17636_v8, %v13572_v12  ;;  %v3525_v29 = vsub.f32 %v17637_v6, %v13466_v18  ;;  %v17640_v20 = vld [vmem:[#allocation91_spill] sm:$0xff]  ;;  %v17641_v8 = vld [vmem:[#allocation68_spill] sm:$0xff] }
 0x67d   : > { %17625 = vst [vmem:[#allocation37_spill] sm:$0xff] %v13611_v54  ;;  %10267 = vpow2.f32 %v3775_v46  ;;  %v3729_v0 = vmul.f32 1.442695, %v3523_v5  ;;  %v3527_v6 = vsub.f32 %v17641_v8, %v13466_v18  ;;  %v17645_v8 = vld [vmem:[#allocation70_spill] sm:$0xff] }
 0x67e   : > { %v13595_v39 = vpop.permute.xlu1 %4033  ;;  %10269 = vpow2.f32 %v3725_v2  ;;  %v3783_v46 = vmul.f32 1.442695, %v3550_v40  ;;  %v3552_v2 = vsub.f32 %v17640_v20, %v13572_v12  ;;  %v3733_v5 = vmul.f32 1.442695, %v3525_v29 }
 0x67f   : > { %v13599_v17 = vpop.permute.xlu0 %3976  ;;  %4225 = vperm.xlu1 %9906, %v13593_v60   ;;  %v13621_v60 = vpop.eup %10251  ;;  %10271 = vpow2.f32 %v3779_v61  ;;  %v16837_v61 = vsub.s32 7, %v17387_v51  ;;  %v3737_v20 = vmul.f32 1.442695, %v3527_v6 }
 0x680   : > { %4150 = vperm.xlu0 %9905, %v13597_v37   ;;  %17628 = vst [vmem:[#allocation126_spill] sm:$0xff] %v13621_v60  ;;  %v13625_v63 = vpop.eup %10253  ;;  %10273 = vpow2.f32 %v3729_v0  ;;  %v3787_v40 = vmul.f32 1.442695, %v3552_v2  ;;  %v17644_v0 = vld [vmem:[#allocation93_spill] sm:$0xff] }
 0x681   : > { %17630 = vst [vmem:[#allocation128_spill] sm:$0xff] %v13625_v63  ;;  %10275 = vpow2.f32 %v3783_v46  ;;  %v3554_v29 = vsub.f32 %v17644_v0, %v13572_v12  ;;  %v13690_v46 = vrot.slane %v13122_v4, %v16837_v61 }
 0x682   : > { %v13609_v14 = vpop.permute.xlu1 %4039  ;;  %10277 = vpow2.f32 %v3733_v5  ;;  %v17648_v5 = vld [vmem:[#allocation95_spill] sm:$0xff] }
 0x683   : > { %v13613_v52 = vpop.permute.xlu0 %3979  ;;  %4231 = vperm.xlu1 %9906, %v13607_v44   ;;  %v13635_v44 = vpop.eup %10255  ;;  %10279 = vpow2.f32 %v3787_v40  ;;  %v3791_v2 = vmul.f32 1.442695, %v3554_v29  ;;  %v3556_v6 = vsub.f32 %v17648_v5, %v13572_v12  ;;  %v17653_v29 = vld [vmem:[#allocation97_spill] sm:$0xff]  ;;  %v17654_v5 = vld [vmem:[#allocation74_spill] sm:$0xff] }
 0x684   : > { %4156 = vperm.xlu0 %9905, %v13611_v54   ;;  %17633 = vst [vmem:[#allocation39_spill] sm:$0xff] %v13635_v44  ;;  %v13639_v42 = vpop.eup %10257  ;;  %10281 = vpow2.f32 %v3737_v20 }
 0x685   : > { %17635 = vst [vmem:[#allocation41_spill] sm:$0xff] %v13639_v42  ;;  %v13649_v48 = vpop.eup %10259  ;;  %10283 = vpow2.f32 %v3791_v2  ;;  %v3795_v40 = vmul.f32 1.442695, %v3556_v6  ;;  %v17658_v6 = vld [vmem:[#allocation99_spill] sm:$0xff] }
 0x686   : > { %v13623_v37 = vpop.permute.xlu1 %4045  ;;  %17638 = vst [vmem:[#allocation132_spill] sm:$0xff] %v13649_v48 }
 0x687   : > { %17629 = vst [vmem:[#allocation38_spill] sm:$0xff] %v13623_v37  ;;  %v13627_v35 = vpop.permute.xlu0 %3982  ;;  %4237 = vperm.xlu1 %9906, %v13621_v60  }
 0x688   : > { %4162 = vperm.xlu0 %9905, %v13625_v63   ;;  %v13653_v63 = vpop.eup %10261 }
 0x689   : > { %17639 = vst [vmem:[#allocation153_spill] sm:$0xff] %v13653_v63 }
 0x68a   : > { %v13637_v54 = vpop.permute.xlu1 %4051 }
 0x68b   : > { %17634 = vst [vmem:[#allocation130_spill] sm:$0xff] %v13637_v54  ;;  %v13641_v55 = vpop.permute.xlu0 %3988  ;;  %4243 = vperm.xlu1 %9906, %v13635_v44   ;;  %v13663_v44 = vpop.eup %10263 }
 0x68c   : > { %4168 = vperm.xlu0 %9905, %v13639_v42   ;;  %17642 = vst [vmem:[#allocation134_spill] sm:$0xff] %v13663_v44  ;;  %v13667_v25 = vpop.eup %10265 }
 0x68d   : > { %17643 = vst [vmem:[#allocation155_spill] sm:$0xff] %v13667_v25 }
 0x68e   : > { %v13651_v60 = vpop.permute.xlu1 %4057 }
 0x68f   : > { %v13655_v15 = vpop.permute.xlu0 %3991  ;;  %4249 = vperm.xlu1 %9906, %v13649_v48   ;;  %v3529_v48 = vsub.f32 %v17645_v8, %v13466_v18  ;;  %v17649_v8 = vld [vmem:[#allocation72_spill] sm:$0xff] }
 0x690   : > { %4174 = vperm.xlu0 %9905, %v13653_v63   ;;  %v13678_v63 = vpop.eup %10267 }
 0x691   : > { %17646 = vst [vmem:[#allocation136_spill] sm:$0xff] %v13678_v63  ;;  %v13682_v59 = vpop.eup %10269  ;;  %v3741_v0 = vmul.f32 1.442695, %v3529_v48  ;;  %v3558_v48 = vsub.f32 %v17653_v29, %v13690_v46  ;;  %v17659_v29 = vld [vmem:[#allocation76_spill] sm:$0xff] }
 0x692   : > { %v13665_v42 = vpop.permute.xlu1 %4063  ;;  %17647 = vst [vmem:[#allocation157_spill] sm:$0xff] %v13682_v59  ;;  %v13697_v33 = vpop.eup %10271 }
 0x693   : > { %v13669_v49 = vpop.permute.xlu0 %3994  ;;  %4255 = vperm.xlu1 %9906, %v13663_v44   ;;  %17650 = vst [vmem:[#allocation138_spill] sm:$0xff] %v13697_v33  ;;  %v13701_v51 = vpop.eup %10273  ;;  %10285 = vpow2.f32 %v3741_v0  ;;  %v3799_v2 = vmul.f32 1.442695, %v3558_v48  ;;  %v17663_v48 = vld [vmem:[#allocation101_spill] sm:$0xff] }
 0x694   : > { %4180 = vperm.xlu0 %9905, %v13667_v25   ;;  %v3531_v25 = vsub.f32 %v17649_v8, %v13466_v18  ;;  %17651 = vst [vmem:[#allocation159_spill] sm:$0xff] %v13701_v51  ;;  %v3533_v8 = vsub.f32 %v17654_v5, %v13466_v18  ;;  %v13711_v61 = vpop.eup %10275  ;;  %10287 = vpow2.f32 %v3795_v40  ;;  %v3535_v5 = vsub.f32 %v17659_v29, %v13466_v18 }
 0x695   : > { %17655 = vst [vmem:[#allocation161_spill] sm:$0xff] %v13711_v61  ;;  %v13715_v58 = vpop.eup %10277 }
 0x696   : > { %v13680_v27 = vpop.permute.xlu1 %4069  ;;  %v3745_v20 = vmul.f32 1.442695, %v3531_v25  ;;  %17657 = vst [vmem:[#allocation60_spill] sm:$0xff] %v13715_v58  ;;  %v3560_v25 = vsub.f32 %v17658_v6, %v13690_v46  ;;  %v3749_v0 = vmul.f32 1.442695, %v3533_v8  ;;  %v17664_v6 = vld [vmem:[#allocation78_spill] sm:$0xff] }
 0x697   : > { %v13684_v44 = vpop.permute.xlu0 %3997  ;;  %4261 = vperm.xlu1 %9906, %v13678_v63   ;;  %v3753_v8 = vmul.f32 1.442695, %v3535_v5  ;;  %v3537_v29 = vsub.f32 %v17664_v6, %v13466_v18 }
 0x698   : > { %4186 = vperm.xlu0 %9905, %v13682_v59   ;;  %10289 = vpow2.f32 %v3745_v20  ;;  %v3803_v40 = vmul.f32 1.442695, %v3560_v25  ;;  %v3562_v20 = vsub.f32 %v17663_v48, %v13690_v46  ;;  %v17668_v25 = vld [vmem:[#allocation103_spill] sm:$0xff]  ;;  %v17669_v48 = vld [vmem:[#allocation80_spill] sm:$0xff] }
 0x699   : > { %10291 = vpow2.f32 %v3799_v2  ;;  %v3757_v5 = vmul.f32 1.442695, %v3537_v29  ;;  %v3539_v6 = vsub.f32 %v17669_v48, %v13466_v18  ;;  %v17674_v18 = vld [vmem:[#allocation82_spill] sm:$0xff] }
 0x69a   : > { %v13699_v63 = vpop.permute.xlu1 %4075  ;;  %10293 = vpow2.f32 %v3749_v0  ;;  %v3807_v2 = vmul.f32 1.442695, %v3562_v20  ;;  %v3564_v0 = vsub.f32 %v17668_v25, %v13690_v46  ;;  %v17673_v20 = vld [vmem:[#allocation104_spill] sm:$0xff]  ;;  %v3541_v25 = vsub.f32 %v17674_v18, %v13572_v12 }
 0x69b   : > { %v13703_v4 = vpop.permute.xlu0 %4000  ;;  %4267 = vperm.xlu1 %9906, %v13697_v33   ;;  %v13725_v33 = vpop.eup %10279  ;;  %10295 = vpow2.f32 %v3803_v40  ;;  %v3761_v29 = vmul.f32 1.442695, %v3539_v6 }
 0x69c   : > { %17652 = vst [vmem:[#allocation140_spill] sm:$0xff] %v13703_v4  ;;  %4192 = vperm.xlu0 %9905, %v13701_v51   ;;  %17660 = vst [vmem:[#allocation144_spill] sm:$0xff] %v13725_v33  ;;  %v13729_v26 = vpop.eup %10281  ;;  %10297 = vpow2.f32 %v3753_v8  ;;  %v3811_v40 = vmul.f32 1.442695, %v3564_v0  ;;  %v3566_v8 = vsub.f32 %v17673_v20, %v13690_v46  ;;  %v17678_v0 = vld [vmem:[#allocation105_spill] sm:$0xff]  ;;  %v17679_v20 = vld [vmem:[#allocation84_spill] sm:$0xff] }
 0x69d   : > { %17662 = vst [vmem:[#allocation146_spill] sm:$0xff] %v13729_v26  ;;  %10299 = vpow2.f32 %v3807_v2  ;;  %v3765_v6 = vmul.f32 1.442695, %v3541_v25  ;;  %v3543_v18 = vsub.f32 %v17679_v20, %v13572_v12 }
 0x69e   : > { %v13713_v59 = vpop.permute.xlu1 %4081  ;;  %10301 = vpow2.f32 %v3757_v5  ;;  %v3815_v2 = vmul.f32 1.442695, %v3566_v8  ;;  %v3568_v5 = vsub.f32 %v17678_v0, %v13690_v46  ;;  %v17683_v8 = vld [vmem:[#allocation106_spill] sm:$0xff] }
 0x69f   : > { %17656 = vst [vmem:[#allocation142_spill] sm:$0xff] %v13713_v59  ;;  %v13717_v38 = vpop.permute.xlu0 %4006  ;;  %4273 = vperm.xlu1 %9906, %v13711_v61   ;;  %v13739_v61 = vpop.eup %10283  ;;  %10303 = vpow2.f32 %v3811_v40  ;;  %v3769_v25 = vmul.f32 1.442695, %v3543_v18  ;;  %v17684_v0 = vld [vmem:[#allocation86_spill] sm:$0xff] }
 0x6a0   : > { %4198 = vperm.xlu0 %9905, %v13715_v58   ;;  %17665 = vst [vmem:[#allocation63_spill] sm:$0xff] %v13739_v61  ;;  %10305 = vpow2.f32 %v3761_v29  ;;  %v3819_v40 = vmul.f32 1.442695, %v3568_v5  ;;  %v3570_v29 = vsub.f32 %v17683_v8, %v13690_v46  ;;  %v3545_v20 = vsub.f32 %v17684_v0, %v13572_v12  ;;  %v17688_v5 = vld [vmem:[#allocation108_spill] sm:$0xff] }
 0x6a1   : > { %10307 = vpow2.f32 %v3815_v2  ;;  %v17689_v8 = vld [vmem:[#allocation88_spill] sm:$0xff] }
 0x6a2   : > { %v13727_v51 = vpop.permute.xlu1 %4087  ;;  %10309 = vpow2.f32 %v3765_v6  ;;  %v3823_v2 = vmul.f32 1.442695, %v3570_v29  ;;  %v3572_v6 = vsub.f32 %v17688_v5, %v13690_v46  ;;  %v3773_v18 = vmul.f32 1.442695, %v3545_v20 }
 0x6a3   : > { %17661 = vst [vmem:[#allocation61_spill] sm:$0xff] %v13727_v51  ;;  %v13731_v54 = vpop.permute.xlu0 %4012  ;;  %4279 = vperm.xlu1 %9906, %v13725_v33   ;;  %v13743_v51 = vpop.eup %10285  ;;  %10311 = vpow2.f32 %v3819_v40  ;;  %v3547_v0 = vsub.f32 %v17689_v8, %v13572_v12 }
 0x6a4   : > { %4204 = vperm.xlu0 %9905, %v13729_v26   ;;  %17667 = vst [vmem:[#allocation43_spill] sm:$0xff] %v13743_v51  ;;  %v13753_v33 = vpop.eup %10287  ;;  %10313 = vpow2.f32 %v3769_v25  ;;  %v3827_v40 = vmul.f32 1.442695, %v3572_v6  ;;  %v17694_v25 = vld [vmem:[#allocation90_spill] sm:$0xff]  ;;  %v17698_v6 = vld [vmem:[#allocation92_spill] sm:$0xff] }
 0x6a5   : > { %17670 = vst [vmem:[#allocation150_spill] sm:$0xff] %v13753_v33  ;;  %10315 = vpow2.f32 %v3823_v2  ;;  %v3777_v29 = vmul.f32 1.442695, %v3547_v0  ;;  %v3549_v20 = vsub.f32 %v17694_v25, %v13572_v12 }
 0x6a6   : > { %v13741_v58 = vpop.permute.xlu1 %4093  ;;  %10317 = vpow2.f32 %v3773_v18  ;;  %v3551_v18 = vsub.f32 %v17698_v6, %v13572_v12 }
 0x6a7   : > { %17666 = vst [vmem:[#allocation148_spill] sm:$0xff] %v13741_v58  ;;  %v13745_v24 = vpop.permute.xlu0 %4018  ;;  %4285 = vperm.xlu1 %9906, %v13739_v61   ;;  %v13757_v58 = vpop.eup %10289  ;;  %10319 = vpow2.f32 %v3827_v40  ;;  %v3781_v2 = vmul.f32 1.442695, %v3549_v20  ;;  %v17702_v40 = vld [vmem:[#allocation94_spill] sm:$0xff] }
 0x6a8   : > { %4210 = vperm.xlu0 %9905, %v13743_v51   ;;  %17672 = vst [vmem:[#allocation151_spill] sm:$0xff] %v13757_v58  ;;  %v13767_v48 = vpop.eup %10291  ;;  %10321 = vpow2.f32 %v3777_v29  ;;  %v3553_v29 = vsub.f32 %v17702_v40, %v13572_v12 }
 0x6a9   : > { %17675 = vst [vmem:[#allocation47_spill] sm:$0xff] %v13767_v48  ;;  %v13771_v51 = vpop.eup %10293  ;;  %10323 = vpow2.f32 %v3781_v2  ;;  %v17706_v2 = vld [vmem:[#allocation96_spill] sm:$0xff] }
 0x6aa   : > { %v13755_v26 = vpop.permute.xlu1 %4099  ;;  %17677 = vst [vmem:[#allocation49_spill] sm:$0xff] %v13771_v51 }
 0x6ab   : > { %17671 = vst [vmem:[#allocation45_spill] sm:$0xff] %v13755_v26  ;;  %v13759_v7 = vpop.permute.xlu0 %4024  ;;  %4291 = vperm.xlu1 %9906, %v13753_v33   ;;  %v13781_v33 = vpop.eup %10295 }
 0x6ac   : > { %4216 = vperm.xlu0 %9905, %v13757_v58   ;;  %17680 = vst [vmem:[#allocation42_spill] sm:$0xff] %v13781_v33  ;;  %v13785_v59 = vpop.eup %10297 }
 0x6ad   : > { %17682 = vst [vmem:[#allocation152_spill] sm:$0xff] %v13785_v59 }
 0x6ae   : > { %v13769_v61 = vpop.permute.xlu1 %4105 }
 0x6af   : > { %17676 = vst [vmem:[#allocation40_spill] sm:$0xff] %v13769_v61  ;;  %v13773_v26 = vpop.permute.xlu0 %4030  ;;  %4297 = vperm.xlu1 %9906, %v13767_v48   ;;  %v13795_v48 = vpop.eup %10299 }
 0x6b0   : > { %4222 = vperm.xlu0 %9905, %v13771_v51   ;;  %17685 = vst [vmem:[#allocation53_spill] sm:$0xff] %v13795_v48 }
 0x6b2   : > { %v13783_v58 = vpop.permute.xlu1 %4111 }
 0x6b3   : > { %17681 = vst [vmem:[#allocation51_spill] sm:$0xff] %v13783_v58  ;;  %v13787_v37 = vpop.permute.xlu0 %4036  ;;  %4303 = vperm.xlu1 %9906, %v13781_v33   ;;  %v13799_v58 = vpop.eup %10301 }
 0x6b4   : > { %4228 = vperm.xlu0 %9905, %v13785_v59   ;;  %17687 = vst [vmem:[#allocation56_spill] sm:$0xff] %v13799_v58  ;;  %v13809_v33 = vpop.eup %10303 }
 0x6b5   : > { %17690 = vst [vmem:[#allocation156_spill] sm:$0xff] %v13809_v33 }
 0x6b6   : > { %v13797_v51 = vpop.permute.xlu1 %4117 }
 0x6b7   : > { %17686 = vst [vmem:[#allocation154_spill] sm:$0xff] %v13797_v51  ;;  %v13801_v61 = vpop.permute.xlu0 %4042  ;;  %4309 = vperm.xlu1 %9906, %v13795_v48   ;;  %v13813_v51 = vpop.eup %10305 }
 0x6b8   : > { %4234 = vperm.xlu0 %9905, %v13799_v58   ;;  %17692 = vst [vmem:[#allocation158_spill] sm:$0xff] %v13813_v51  ;;  %v13821_v5 = vpop.eup %10307 }
 0x6b9   : > { %17695 = vst [vmem:[#allocation160_spill] sm:$0xff] %v13821_v5  ;;  %v13825_v48 = vpop.eup %10309 }
 0x6ba   : > { %v13811_v59 = vpop.permute.xlu1 %4123  ;;  %17697 = vst [vmem:[#allocation162_spill] sm:$0xff] %v13825_v48  ;;  %v13833_v0 = vpop.eup %10311 }
 0x6bb   : > { %17691 = vst [vmem:[#allocation58_spill] sm:$0xff] %v13811_v59  ;;  %v13815_v4 = vpop.permute.xlu0 %4048  ;;  %4315 = vperm.xlu1 %9906, %v13809_v33   ;;  %17699 = vst [vmem:[#allocation69_spill] sm:$0xff] %v13833_v0  ;;  %v13837_v33 = vpop.eup %10313  ;;  %v17713_v59 = vld [vmem:[#allocation100_spill] sm:$0xff] }
 0x6bc   : > { %17693 = vst [vmem:[#allocation65_spill] sm:$0xff] %v13815_v4  ;;  %4240 = vperm.xlu0 %9905, %v13813_v51   ;;  %17701 = vst [vmem:[#allocation71_spill] sm:$0xff] %v13837_v33  ;;  %v13845_v20 = vpop.eup %10315 }
 0x6bd   : > { %17703 = vst [vmem:[#allocation64_spill] sm:$0xff] %v13845_v20 }
 0x6be   : > { %v13823_v8 = vpop.permute.xlu1 %4129 }
 0x6bf   : > { %17696 = vst [vmem:[#allocation67_spill] sm:$0xff] %v13823_v8  ;;  %v13827_v58 = vpop.permute.xlu0 %4054  ;;  %4321 = vperm.xlu1 %9906, %v13821_v5   ;;  %v3785_v5 = vmul.f32 1.442695, %v3551_v18  ;;  %v3555_v18 = vsub.f32 %v17706_v2, %v13572_v12 }
 0x6c0   : > { %4246 = vperm.xlu0 %9905, %v13825_v48   ;;  %v13849_v48 = vpop.eup %10317 }
 0x6c1   : > { %17705 = vst [vmem:[#allocation44_spill] sm:$0xff] %v13849_v48  ;;  %10325 = vpow2.f32 %v3785_v5  ;;  %v17710_v5 = vld [vmem:[#allocation98_spill] sm:$0xff] }
 0x6c2   : > { %v13835_v25 = vpop.permute.xlu1 %4135 }
 0x6c3   : > { %17700 = vst [vmem:[#allocation62_spill] sm:$0xff] %v13835_v25  ;;  %v13839_v51 = vpop.permute.xlu0 %4060  ;;  %4327 = vperm.xlu1 %9906, %v13833_v0   ;;  %v3789_v0 = vmul.f32 1.442695, %v3553_v29  ;;  %v3557_v29 = vsub.f32 %v17710_v5, %v13690_v46 }
 0x6c4   : > { %4252 = vperm.xlu0 %9905, %v13837_v33   ;;  %v13857_v33 = vpop.eup %10319 }
 0x6c5   : > { %17707 = vst [vmem:[#allocation75_spill] sm:$0xff] %v13857_v33  ;;  %v13861_v8 = vpop.eup %10321  ;;  %10327 = vpow2.f32 %v3789_v0 }
 0x6c6   : > { %v13847_v6 = vpop.permute.xlu1 %4141  ;;  %17709 = vst [vmem:[#allocation77_spill] sm:$0xff] %v13861_v8  ;;  %v13871_v12 = vpop.eup %10323 }
 0x6c7   : > { %17704 = vst [vmem:[#allocation73_spill] sm:$0xff] %v13847_v6  ;;  %v13851_v25 = vpop.permute.xlu0 %4066  ;;  %4333 = vperm.xlu1 %9906, %v13845_v20   ;;  %v3793_v20 = vmul.f32 1.442695, %v3555_v18  ;;  %17712 = vst [vmem:[#allocation79_spill] sm:$0xff] %v13871_v12 }
 0x6c8   : > { %4258 = vperm.xlu0 %9905, %v13849_v48  }
 0x6c9   : > { %10329 = vpow2.f32 %v3793_v20 }
 0x6ca   : > { %v13859_v40 = vpop.permute.xlu1 %4147 }
 0x6cb   : > { %17708 = vst [vmem:[#allocation46_spill] sm:$0xff] %v13859_v40  ;;  %v13863_v6 = vpop.permute.xlu0 %4072  ;;  %4339 = vperm.xlu1 %9906, %v13857_v33   ;;  %v3797_v40 = vmul.f32 1.442695, %v3557_v29  ;;  %v3559_v33 = vsub.f32 %v17713_v59, %v13690_v46  ;;  %v13880_v0 = vpop.eup %10325 }
 0x6cc   : > { %4264 = vperm.xlu0 %9905, %v13861_v8   ;;  %17715 = vst [vmem:[#allocation81_spill] sm:$0xff] %v13880_v0  ;;  %v17717_v8 = vld [vmem:[#allocation102_spill] sm:$0xff] }
 0x6cd   : > { %10331 = vpow2.f32 %v3797_v40  ;;  %v3801_v5 = vmul.f32 1.442695, %v3559_v33 }
 0x6ce   : > { %v13869_v48 = vpop.permute.xlu1 %4153 }
 0x6cf   : > { %17711 = vst [vmem:[#allocation48_spill] sm:$0xff] %v13869_v48  ;;  %v13873_v2 = vpop.permute.xlu0 %4078  ;;  %v3561_v48 = vsub.f32 %v17717_v8, %v13690_v46  ;;  %v13889_v20 = vpop.eup %10327  ;;  %10333 = vpow2.f32 %v3801_v5 }
 0x6d0   : > { %4270 = vperm.xlu0 %9905, %v13871_v12   ;;  %17719 = vst [vmem:[#allocation54_spill] sm:$0xff] %v13889_v20  ;;  %v17721_v12 = vld [vmem:[#allocation178_spill] sm:$0xff] }
 0x6d1   : > { %v3805_v59 = vmul.f32 1.442695, %v3561_v48 }
 0x6d2   : > { %v13878_v4 = vpop.permute.xlu1 %4159 }
 0x6d3   : > { %17714 = vst [vmem:[#allocation50_spill] sm:$0xff] %v13878_v4  ;;  %v13882_v18 = vpop.permute.xlu0 %4084  ;;  %v3563_v4 = vsub.f32 %v17721_v12, %v13690_v46  ;;  %v13898_v40 = vpop.eup %10329  ;;  %10335 = vpow2.f32 %v3805_v59 }
 0x6d4   : > { %17716 = vst [vmem:[#allocation52_spill] sm:$0xff] %v13882_v18  ;;  %4276 = vperm.xlu0 %9905, %v13880_v0   ;;  %17723 = vst [vmem:[#allocation87_spill] sm:$0xff] %v13898_v40  ;;  %v17725_v0 = vld [vmem:[#allocation181_spill] sm:$0xff] }
 0x6d5   : > { %v3809_v8 = vmul.f32 1.442695, %v3563_v4 }
 0x6d6   : > { %v13887_v32 = vpop.permute.xlu1 %4165 }
 0x6d7   : > { %17718 = vst [vmem:[#allocation83_spill] sm:$0xff] %v13887_v32  ;;  %v13891_v29 = vpop.permute.xlu0 %4090  ;;  %v3565_v32 = vsub.f32 %v17725_v0, %v13690_v46  ;;  %v13907_v5 = vpop.eup %10331  ;;  %10337 = vpow2.f32 %v3809_v8 }
 0x6d8   : > { %17720 = vst [vmem:[#allocation85_spill] sm:$0xff] %v13891_v29  ;;  %4282 = vperm.xlu0 %9905, %v13889_v20   ;;  %17727 = vst [vmem:[#allocation66_spill] sm:$0xff] %v13907_v5  ;;  %v17729_v20 = vld [vmem:[#allocation184_spill] sm:$0xff] }
 0x6d9   : > { %v3813_v12 = vmul.f32 1.442695, %v3565_v32  ;;  %v13916_v59 = vpop.eup %10333 }
 0x6da   : > { %v13896_v18 = vpop.permute.xlu1 %4171  ;;  %17731 = vst [vmem:[#allocation93_spill] sm:$0xff] %v13916_v59 }
 0x6db   : > { %17722 = vst [vmem:[#allocation57_spill] sm:$0xff] %v13896_v18  ;;  %v13900_v33 = vpop.permute.xlu0 %4096  ;;  %v3567_v18 = vsub.f32 %v17729_v20, %v13690_v46  ;;  %10339 = vpow2.f32 %v3813_v12 }
 0x6dc   : > { %17724 = vst [vmem:[#allocation59_spill] sm:$0xff] %v13900_v33  ;;  %4288 = vperm.xlu0 %9905, %v13898_v40   ;;  %v17733_v40 = vld [vmem:[#allocation107_spill] sm:$0xff] }
 0x6dd   : > { %v3817_v0 = vmul.f32 1.442695, %v3567_v18  ;;  %v13925_v8 = vpop.eup %10335 }
 0x6de   : > { %v13905_v29 = vpop.permute.xlu1 %4177  ;;  %17735 = vst [vmem:[#allocation72_spill] sm:$0xff] %v13925_v8 }
 0x6df   : > { %17726 = vst [vmem:[#allocation89_spill] sm:$0xff] %v13905_v29  ;;  %v13909_v48 = vpop.permute.xlu0 %4102  ;;  %v3569_v29 = vsub.f32 %v17733_v40, %v13690_v46  ;;  %10341 = vpow2.f32 %v3817_v0 }
 0x6e0   : > { %17728 = vst [vmem:[#allocation91_spill] sm:$0xff] %v13909_v48  ;;  %4294 = vperm.xlu0 %9905, %v13907_v5   ;;  %v17736_v5 = vld [vmem:[#allocation109_spill] sm:$0xff] }
 0x6e1   : > { %v3821_v20 = vmul.f32 1.442695, %v3569_v29  ;;  %v13934_v12 = vpop.eup %10337 }
 0x6e2   : > { %v13914_v33 = vpop.permute.xlu1 %4183  ;;  %17738 = vst [vmem:[#allocation74_spill] sm:$0xff] %v13934_v12 }
 0x6e3   : > { %17730 = vst [vmem:[#allocation68_spill] sm:$0xff] %v13914_v33  ;;  %v13918_v4 = vpop.permute.xlu0 %4108  ;;  %v3571_v33 = vsub.f32 %v17736_v5, %v13690_v46  ;;  %10343 = vpow2.f32 %v3821_v20 }
 0x6e4   : > { %17732 = vst [vmem:[#allocation70_spill] sm:$0xff] %v13918_v4  ;;  %4300 = vperm.xlu0 %9905, %v13916_v59  }
 0x6e5   : > { %v3825_v40 = vmul.f32 1.442695, %v3571_v33  ;;  %v13939_v59 = vpop.eup %10339 }
 0x6e6   : > { %v13923_v48 = vpop.permute.xlu1 %4189  ;;  %17739 = vst [vmem:[#allocation99_spill] sm:$0xff] %v13939_v59 }
 0x6e7   : > { %17734 = vst [vmem:[#allocation95_spill] sm:$0xff] %v13923_v48  ;;  %v13927_v32 = vpop.permute.xlu0 %4114  ;;  %10345 = vpow2.f32 %v3825_v40 }
 0x6e8   : > { %4306 = vperm.xlu0 %9905, %v13925_v8  }
 0x6e9   : > { %v13946_v46 = vpop.eup %10341 }
 0x6ea   : > { %v13932_v4 = vpop.permute.xlu1 %4195  ;;  %17741 = vst [vmem:[#allocation101_spill] sm:$0xff] %v13946_v46 }
 0x6eb   : > { %17737 = vst [vmem:[#allocation97_spill] sm:$0xff] %v13932_v4  ;;  %v13936_v18 = vpop.permute.xlu0 %4120 }
 0x6ec   : > { %4312 = vperm.xlu0 %9905, %v13934_v12  }
 0x6ed   : > { %v13953_v0 = vpop.eup %10343 }
 0x6ee   : > { %v13943_v8 = vpop.permute.xlu1 %4201  ;;  %17744 = vst [vmem:[#allocation80_spill] sm:$0xff] %v13953_v0 }
 0x6ef   : > { %v13941_v48 = vpop.permute.xlu0 %4126  ;;  %17740 = vst [vmem:[#allocation76_spill] sm:$0xff] %v13943_v8 }
 0x6f0   : > { %4318 = vperm.xlu0 %9905, %v13939_v59  }
 0x6f1   : > { %v13958_v20 = vpop.eup %10345 }
 0x6f2   : > { %v13951_v5 = vpop.permute.xlu1 %4207  ;;  %17746 = vst [vmem:[#allocation82_spill] sm:$0xff] %v13958_v20 }
 0x6f3   : > { %v13948_v29 = vpop.permute.xlu0 %4132  ;;  %17743 = vst [vmem:[#allocation103_spill] sm:$0xff] %v13951_v5 }
 0x6f4   : > { %17742 = vst [vmem:[#allocation78_spill] sm:$0xff] %v13948_v29  ;;  %4324 = vperm.xlu0 %9905, %v13946_v46  }
 0x6f6   : > { %v13962_v59 = vpop.permute.xlu1 %4213 }
 0x6f7   : > { %v13955_v33 = vpop.permute.xlu0 %4138  ;;  %17748 = vst [vmem:[#allocation84_spill] sm:$0xff] %v13962_v59 }
 0x6f8   : > { %17745 = vst [vmem:[#allocation104_spill] sm:$0xff] %v13955_v33  ;;  %4330 = vperm.xlu0 %9905, %v13953_v0  }
 0x6fa   : > { %v13967_v4 = vpop.permute.xlu1 %4219 }
 0x6fb   : > { %v13960_v12 = vpop.permute.xlu0 %4144  ;;  %17750 = vst [vmem:[#allocation86_spill] sm:$0xff] %v13967_v4 }
 0x6fc   : > { %17747 = vst [vmem:[#allocation105_spill] sm:$0xff] %v13960_v12  ;;  %4336 = vperm.xlu0 %9905, %v13958_v20  }
 0x6fe   : > { %v13973_v29 = vpop.permute.xlu1 %4225 }
 0x6ff   : > { %v13965_v40 = vpop.permute.xlu0 %4150  ;;  %17753 = vst [vmem:[#allocation90_spill] sm:$0xff] %v13973_v29 }
 0x700   : > { %17749 = vst [vmem:[#allocation106_spill] sm:$0xff] %v13965_v40 }
 0x702   : > { %v13977_v0 = vpop.permute.xlu1 %4231 }
 0x703   : > { %v13969_v46 = vpop.permute.xlu0 %4156  ;;  %17755 = vst [vmem:[#allocation94_spill] sm:$0xff] %v13977_v0 }
 0x704   : > { %17751 = vst [vmem:[#allocation108_spill] sm:$0xff] %v13969_v46 }
 0x706   : > { %v13983_v59 = vpop.permute.xlu1 %4237 }
 0x707   : > { %v13971_v5 = vpop.permute.xlu0 %4162  ;;  %17758 = vst [vmem:[#allocation100_spill] sm:$0xff] %v13983_v59 }
 0x708   : > { %17752 = vst [vmem:[#allocation88_spill] sm:$0xff] %v13971_v5 }
 0x70a   : > { %v13987_v40 = vpop.permute.xlu1 %4243 }
 0x70b   : > { %v13975_v33 = vpop.permute.xlu0 %4168  ;;  %17760 = vst [vmem:[#allocation178_spill] sm:$0xff] %v13987_v40 }
 0x70c   : > { %17754 = vst [vmem:[#allocation92_spill] sm:$0xff] %v13975_v33 }
 0x70e   : > { %v13993_v5 = vpop.permute.xlu1 %4249 }
 0x70f   : > { %v13979_v8 = vpop.permute.xlu0 %4174  ;;  %17762 = vst [vmem:[#allocation184_spill] sm:$0xff] %v13993_v5 }
 0x710   : > { %17756 = vst [vmem:[#allocation96_spill] sm:$0xff] %v13979_v8 }
 0x712   : > { %v13997_v33 = vpop.permute.xlu1 %4255 }
 0x713   : > { %v13981_v12 = vpop.permute.xlu0 %4180  ;;  %17764 = vst [vmem:[#allocation109_spill] sm:$0xff] %v13997_v33  ;;  %v4432_v33 = vrot.slane %v13731_v54, %v12660_v41  ;;  %v4442_v54 = vrot.slane %v13745_v24, %v12667_v56 }
 0x714   : > { %17757 = vst [vmem:[#allocation98_spill] sm:$0xff] %v13981_v12 }
 0x716   : > { %v14003_v12 = vpop.permute.xlu1 %4261 }
 0x717   : > { %v13985_v20 = vpop.permute.xlu0 %4186  ;;  %17766 = vst [vmem:[#allocation225_spill] sm:$0xff] %v14003_v12 }
 0x718   : > { %17759 = vst [vmem:[#allocation102_spill] sm:$0xff] %v13985_v20 }
 0x71a   : > { %v14007_v20 = vpop.permute.xlu1 %4267 }
 0x71b   : > { %v13989_v4 = vpop.permute.xlu0 %4192  ;;  %17768 = vst [vmem:[#allocation227_spill] sm:$0xff] %v14007_v20 }
 0x71c   : > { %17761 = vst [vmem:[#allocation181_spill] sm:$0xff] %v13989_v4  ;;  %v4423_v4 = vrot.slane %v13717_v38, %v12650_v28  ;;  %v4353_v38 = vrot.slane %v13537_v43, %v12660_v41 }
 0x71f   : > { %v13991_v46 = vpop.permute.xlu0 %4198 }
 0x723   : > { %v13995_v29 = vpop.permute.xlu0 %4204 }
 0x724   : > { %17763 = vst [vmem:[#allocation107_spill] sm:$0xff] %v13995_v29  ;;  %v14017_v29 = vpop.permute.xlu1 %4273 }
 0x725   : > { %17770 = vst [vmem:[#allocation229_spill] sm:$0xff] %v14017_v29  ;;  %v4344_v29 = vrot.slane %v13509_v57, %v12650_v28  ;;  %v4502_v57 = vrot.slane %v13827_v58, %v12650_v28  ;;  %v4373_v58 = vrot.slane %v13599_v17, %v12673_v9 }
 0x727   : > { %v13999_v0 = vpop.permute.xlu0 %4210 }
 0x72b   : > { %v14001_v8 = vpop.permute.xlu0 %4216 }
 0x72c   : > { %17765 = vst [vmem:[#allocation224_spill] sm:$0xff] %v14001_v8  ;;  %v4427_v8 = vrot.slane %v13533_v53, %v12653_v30  ;;  %v4437_v53 = vrot.slane %v13547_v34, %v12663_v11 }
 0x72e   : > { %v4428_v20 = vsel %vm2734_vm1, %v4427_v8, %v4423_v4  ;;  %v4363_v4 = vrot.slane %v13566_v13, %v12667_v56  ;;  %v14039_v8 = vpop.permute.xlu1 %4279  ;;  %v4452_v13 = vrot.slane %v13759_v7, %v12673_v9 }
 0x72f   : > { %v14005_v59 = vpop.permute.xlu0 %4222 }
 0x730   : > { %17767 = vst [vmem:[#allocation226_spill] sm:$0xff] %v14005_v59  ;;  %v4348_v59 = vrot.slane %v13523_v19, %v12653_v30  ;;  %v4358_v19 = vrot.slane %v13551_v31, %v12663_v11 }
 0x732   : > { %v4349_v43 = vsel %vm2734_vm1, %v4348_v59, %v4344_v29  ;;  %v4511_v59 = vrot.slane %v13839_v51, %v12660_v41  ;;  %v4383_v51 = vrot.slane %v13627_v35, %v12680_v10  ;;  %v4457_v35 = vrot.slane %v13581_v3, %v12677_v1 }
 0x733   : > { %v14009_v40 = vpop.permute.xlu0 %4228  ;;  %v4354_v34 = vsel %vm2741_vm2, %v4353_v38, %v4349_v43  ;;  %v14078_v43 = vpop.permute.xlu1 %4285  ;;  %v4472_v3 = vrot.slane %v13787_v37, %v12703_v23  ;;  %v4477_v37 = vrot.slane %v13609_v14, %v12714_v16  ;;  %v4482_v14 = vrot.slane %v13801_v61, %v12717_v22  ;;  %v17782_v61 = vld [vmem:[#allocation140_spill] sm:$0xff] }
 0x734   : > { %v4359_v29 = vsel %vm2748_vm3, %v4358_v19, %v4354_v34 }
 0x735   : > { %v4364_v38 = vsel %vm2755_vm4, %v4363_v4, %v4359_v29  ;;  %v4388_v29 = vrot.slane %v13505_v45, %v12696_v62  ;;  %v4403_v45 = vrot.slane %v13669_v49, %v12717_v22  ;;  %v4408_v49 = vrot.slane %v13684_v44, %v12726_v21 }
 0x737   : > { %v14013_v5 = vpop.permute.xlu0 %4234 }
 0x738   : > { %17769 = vst [vmem:[#allocation228_spill] sm:$0xff] %v14013_v5  ;;  %v4433_v5 = vsel %vm2741_vm2, %v4432_v33, %v4428_v20  ;;  %v4368_v33 = vrot.slane %v13585_v47, %v12670_v36  ;;  %v4447_v47 = vrot.slane %v13562_v50, %v12670_v36 }
 0x739   : > { %v4438_v24 = vsel %vm2748_vm3, %v4437_v53, %v4433_v5  ;;  %v4506_v5 = vrot.slane %v13651_v60, %v12653_v30  ;;  %v4462_v60 = vrot.slane %v13773_v26, %v12680_v10 }
 0x73a   : > { %v4443_v31 = vsel %vm2755_vm4, %v4442_v54, %v4438_v24  ;;  %v4378_v54 = vrot.slane %v13613_v52, %v12677_v1  ;;  %v4369_v7 = vsel %vm16895_vm5, %v4368_v33, %v4364_v38  ;;  %v4521_v52 = vrot.slane %v13851_v25, %v12667_v56 }
 0x73b   : > { %v14024_v12 = vpop.permute.xlu0 %4240  ;;  %v4448_v53 = vsel %vm16895_vm5, %v4447_v47, %v4443_v31  ;;  %v4507_v50 = vsel %vm2734_vm1, %v4506_v5, %v4502_v57  ;;  %v4374_v33 = vsel %vm17772_vm10, %v4373_v58, %v4369_v7  ;;  %v4516_v24 = vrot.slane %v13665_v42, %v12663_v11 }
 0x73c   : > { %v4453_v17 = vsel %vm17771_vm9, %v4452_v13, %v4448_v53  ;;  %v4512_v4 = vsel %vm2741_vm2, %v4511_v59, %v4507_v50  ;;  %v4379_v57 = vsel %vm2776_vm7, %v4378_v54, %v4374_v33  ;;  %v4531_v42 = vrot.slane %v13863_v6, %v12673_v9  ;;  %v14109_v54 = vpop.permute.xlu1 %4291  ;;  %v17783_v33 = vld [vmem:[#allocation70_spill] sm:$0xff] }
 0x73d   : > { %v4384_v34 = vsel %vm2783_vm8, %v4383_v51, %v4379_v57  ;;  %v4458_v26 = vsel %vm2776_vm7, %v4457_v35, %v4453_v17  ;;  %v4517_v31 = vsel %vm2748_vm3, %v4516_v24, %v4512_v4  ;;  %v4467_v47 = vrot.slane %v13595_v39, %v12696_v62  ;;  %17773 = vst [vmem:[#allocation230_spill] sm:$0xff] %v14109_v54  ;;  %v17779_v17 = vld [vmem:[#allocation91_spill] sm:$0xff]  ;;  %v17784_v57 = vld [vmem:[#allocation40_spill] sm:$0xff] }
 0x73e   : > { %v4463_v25 = vsel %vm2783_vm8, %v4462_v60, %v4458_v26  ;;  %v4522_v59 = vsel %vm2755_vm4, %v4521_v52, %v4517_v31  ;;  %v4393_v58 = vrot.slane %v13641_v55, %v12703_v23  ;;  %v4526_v5 = vrot.slane %v13680_v27, %v12670_v36  ;;  %v17781_v52 = vld [vmem:[#allocation222_spill] sm:$0xff] }
 0x73f   : > { %v14047_v20 = vpop.permute.xlu0 %4246  ;;  %v4398_v38 = vrot.slane %v13655_v15, %v12714_v16  ;;  %vm17774_vm9 = vcmask 654912   ;;  %v4541_v51 = vrot.slane %v13873_v2, %v12680_v10  ;;  %v4536_v50 = vrot.slane %v13699_v63, %v12677_v1 }
 0x740   : > { %v4389_v6 = vsel %vm17774_vm9, %v4388_v29, %v4384_v34  ;;  %vm17775_vm10 = vmmov %vm17774_vm9  ;;  %v4527_v55 = vsel %vm16895_vm5, %v4526_v5, %v4522_v59  ;;  %v4581_v60 = vrot.slane %v17779_v17, %v12650_v28  ;;  %v4413_v35 = vrot.slane %v17782_v61, %v17781_v52 }
 0x741   : > { %v4468_v39 = vsel %vm17775_vm10, %v4467_v47, %v4463_v25  ;;  %v4532_v15 = vsel %vm17777_vm11, %v4531_v42, %v4527_v55  ;;  %vm17778_vm9 = vmmov %vm17776_vm0  ;;  %v4590_v24 = vrot.slane %v17783_v33, %v12660_v41  ;;  %v4585_v34 = vrot.slane %v17784_v57, %v12653_v30  ;;  %v17786_v25 = vld [vmem:[#allocation65_spill] sm:$0xff]  ;;  %v17787_v42 = vld [vmem:[#allocation52_spill] sm:$0xff]  ;;  %v14149_v47 = vpop.permute.xlu1 %4297 }
 0x742   : > { %v4473_v27 = vsel %vm17776_vm0, %v4472_v3, %v4468_v39  ;;  %v4394_v53 = vsel %vm17778_vm9, %v4393_v58, %v4389_v6  ;;  %vm17780_vm0 = vcmask 786112   ;;  %v4537_v63 = vsel %vm2776_vm7, %v4536_v50, %v4532_v15  ;;  %v17788_v58 = vld [vmem:[#allocation38_spill] sm:$0xff]  ;;  %v17791_v15 = vld [vmem:[#allocation117_spill] sm:$0xff] }
 0x743   : > { %v14070_v19 = vpop.permute.xlu0 %4252  ;;  %v4399_v4 = vsel %vm17780_vm0, %v4398_v38, %v4394_v53  ;;  %vm17785_vm11 = vmmov %vm17780_vm0  ;;  %v4492_v3 = vrot.slane %v17786_v25, %v17781_v52  ;;  %v4542_v59 = vsel %vm2783_vm8, %v4541_v51, %v4537_v63  ;;  %v4551_v29 = vrot.slane %v17787_v42, %v12703_v23  ;;  %v17789_v38 = vld [vmem:[#allocation142_spill] sm:$0xff]  ;;  %v17792_v53 = vld [vmem:[#allocation51_spill] sm:$0xff] }
 0x744   : > { %v4404_v2 = vsel %vm2811_vm12, %v4403_v45, %v4399_v4  ;;  %v4478_v44 = vsel %vm17785_vm11, %v4477_v37, %v4473_v27  ;;  %v4487_v5 = vrot.slane %v17788_v58, %v12726_v21  ;;  %v4546_v6 = vrot.slane %v17789_v38, %v12696_v62  ;;  %v17796_v57 = vld [vmem:[#allocation61_spill] sm:$0xff] }
 0x745   : > { %v4483_v31 = vsel %vm2811_vm12, %v4482_v14, %v4478_v44  ;;  %v4409_v37 = vsel %vm2818_vm13, %v4408_v49, %v4404_v2  ;;  %v4586_v45 = vsel %vm2734_vm1, %v4585_v34, %v4581_v60  ;;  %v4600_v27 = vrot.slane %v13927_v32, %v12667_v56  ;;  %v17790_v14 = vld [vmem:[#allocation223_spill] sm:$0xff]  ;;  %v17793_v60 = vld [vmem:[#allocation130_spill] sm:$0xff]  ;;  %v17794_v32 = vld [vmem:[#allocation85_spill] sm:$0xff] }
 0x746   : > { %v4414_v39 = vsel %vm2825_vm14, %v4413_v35, %v4409_v37  ;;  %v4591_v55 = vsel %vm2741_vm2, %v4590_v24, %v4586_v45  ;;  %v4418_v51 = vrot.slane %v17791_v15, %v17790_v14  ;;  %v4595_v50 = vrot.slane %v17792_v53, %v12663_v11  ;;  %v17797_v44 = vld [vmem:[#allocation148_spill] sm:$0xff]  ;;  %v17798_v25 = vld [vmem:[#allocation45_spill] sm:$0xff]  ;;  %v17800_v37 = vld [vmem:[#allocation58_spill] sm:$0xff] }
 0x747   : > { %v14089_v13 = vpop.permute.xlu0 %4258  ;;  %v4488_v49 = vsel %vm2818_vm13, %v4487_v5, %v4483_v31  ;;  %v4547_v17 = vsel %vm17775_vm10, %v4546_v6, %v4542_v59  ;;  %v4497_v61 = vrot.slane %v17793_v60, %v17790_v14  ;;  %v4561_v24 = vrot.slane %v17794_v32, %v12717_v22  ;;  %v14190_v5 = vpop.permute.xlu1 %4303  ;;  %v17802_v45 = vld [vmem:[#allocation67_spill] sm:$0xff]  ;;  %v17806_v60 = vld [vmem:[#allocation46_spill] sm:$0xff] }
 0x748   : > { %v4493_v35 = vsel %vm2825_vm14, %v4492_v3, %v4488_v49  ;;  %v4552_v33 = vsel %vm17778_vm9, %v4551_v29, %v4547_v17  ;;  %v14176_v2 = vsel %vm2832_vm15, %v4418_v51, %v4414_v39  ;;  %v4556_v34 = vrot.slane %v17796_v57, %v12714_v16  ;;  %v17799_v3 = vld [vmem:[#allocation154_spill] sm:$0xff]  ;;  %v17805_v49 = vld [vmem:[#allocation59_spill] sm:$0xff] }
 0x749   : > { %17795 = vst [vmem:[#allocation91_spill] sm:$0xff] %v14176_v2  ;;  %v4566_v63 = vrot.slane %v17797_v44, %v12726_v21  ;;  %v4596_v31 = vsel %vm2748_vm3, %v4595_v50, %v4591_v55  ;;  %v4605_v42 = vrot.slane %v17799_v3, %v12670_v36  ;;  %v4610_v58 = vrot.slane %v13936_v18, %v12673_v9  ;;  %v17804_v18 = vld [vmem:[#allocation73_spill] sm:$0xff]  ;;  %v17809_v44 = vld [vmem:[#allocation83_spill] sm:$0xff] }
 0x74a   : > { %v4601_v29 = vsel %vm2755_vm4, %v4600_v27, %v4596_v31  ;;  %v4615_v38 = vrot.slane %v17800_v37, %v12677_v1  ;;  %v14195_v6 = vsel %vm2832_vm15, %v4497_v61, %v4493_v35  ;;  %v4625_v39 = vrot.slane %v17802_v45, %v12696_v62  ;;  %v17803_v27 = vld [vmem:[#allocation62_spill] sm:$0xff]  ;;  %v17807_v35 = vld [vmem:[#allocation48_spill] sm:$0xff] }
 0x74b   : > { %v14116_v7 = vpop.permute.xlu0 %4264  ;;  %17801 = vst [vmem:[#allocation222_spill] sm:$0xff] %v14195_v6  ;;  %v4557_v55 = vsel %vm17780_vm0, %v4556_v34, %v4552_v33  ;;  %v4635_v51 = vrot.slane %v17803_v27, %v12714_v16  ;;  %v4571_v17 = vrot.slane %v17805_v49, %v17781_v52  ;;  %v4664_v32 = vrot.slane %v17807_v35, %v12653_v30  ;;  %v17808_v33 = vld [vmem:[#allocation50_spill] sm:$0xff]  ;;  %v17813_v35 = vld [vmem:[#allocation108_spill] sm:$0xff]  ;;  %v14239_v61 = vpop.permute.xlu1 %4309 }
 0x74c   : > { %v4562_v50 = vsel %vm2811_vm12, %v4561_v24, %v4557_v55  ;;  %v4674_v57 = vrot.slane %v17808_v33, %v12663_v11  ;;  %v4606_v34 = vsel %vm16895_vm5, %v4605_v42, %v4601_v29  ;;  %v4684_v31 = vrot.slane %v17809_v44, %v12670_v36  ;;  %v17811_v37 = vld [vmem:[#allocation106_spill] sm:$0xff]  ;;  %v17812_v55 = vld [vmem:[#allocation57_spill] sm:$0xff]  ;;  %v17815_v44 = vld [vmem:[#allocation107_spill] sm:$0xff] }
 0x74d   : > { %vm17810_vm11 = vcmask 458112   ;;  %v4620_v24 = vrot.slane %v13941_v48, %v12680_v10  ;;  %v4660_v45 = vrot.slane %v17811_v37, %v12650_v28  ;;  %v4567_v49 = vsel %vm2818_vm13, %v4566_v63, %v4562_v50  ;;  %v17814_v48 = vld [vmem:[#allocation89_spill] sm:$0xff]  ;;  %v17816_v50 = vld [vmem:[#allocation68_spill] sm:$0xff] }
 0x74e   : > { %v4611_v3 = vsel %vm17810_vm11, %v4610_v58, %v4606_v34  ;;  %v4669_v33 = vrot.slane %v17813_v35, %v12660_v41  ;;  %v4739_v42 = vrot.slane %v13991_v46, %v12650_v28  ;;  %v14233_v58 = vsel %vm2825_vm14, %v4571_v17, %v4567_v49  ;;  %v17817_v46 = vld [vmem:[#allocation76_spill] sm:$0xff]  ;;  %v17820_v35 = vld [vmem:[#allocation95_spill] sm:$0xff] }
 0x74f   : > { %v14141_v26 = vpop.permute.xlu0 %4270  ;;  %v4748_v37 = vrot.slane %v17815_v44, %v12660_v41  ;;  %v4818_v63 = vrot.slane %v14047_v20, %v12650_v28  ;;  %v4743_v59 = vrot.slane %v17817_v46, %v12653_v30  ;;  %v4616_v17 = vsel %vm2776_vm7, %v4615_v38, %v4611_v3  ;;  %v17818_v44 = vld [vmem:[#allocation78_spill] sm:$0xff]  ;;  %v17819_v20 = vld [vmem:[#allocation184_spill] sm:$0xff] }
 0x750   : > { %v4827_v49 = vrot.slane %v14070_v19, %v12660_v41  ;;  %v4621_v34 = vsel %vm2783_vm8, %v4620_v24, %v4616_v17  ;;  %v4630_v53 = vrot.slane %v17818_v44, %v12703_v23  ;;  %v4665_v27 = vsel %vm2734_vm1, %v4664_v32, %v4660_v45  ;;  %v17821_v38 = vld [vmem:[#allocation88_spill] sm:$0xff]  ;;  %v17822_v24 = vld [vmem:[#allocation103_spill] sm:$0xff] }
 0x751   : > { %v4822_v54 = vrot.slane %v17819_v20, %v12653_v30  ;;  %v4724_v6 = vrot.slane %v17820_v35, %v12726_v21  ;;  %v4670_v46 = vsel %vm2741_vm2, %v4669_v33, %v4665_v27  ;;  %v4679_v3 = vrot.slane %v17821_v38, %v12667_v56  ;;  %v17823_v38 = vld [vmem:[#allocation84_spill] sm:$0xff] }
 0x752   : > { %v4744_v19 = vsel %vm2734_vm1, %v4743_v59, %v4739_v42  ;;  %v4753_v17 = vrot.slane %v17822_v24, %v12663_v11  ;;  %v4758_v32 = vrot.slane %v13999_v0, %v12667_v56  ;;  %v4626_v20 = vsel %vm17775_vm10, %v4625_v39, %v4621_v34  ;;  %v17824_v0 = vld [vmem:[#allocation109_spill] sm:$0xff]  ;;  %v17825_v34 = vld [vmem:[#allocation92_spill] sm:$0xff]  ;;  %vm17830_vm10 = vmmov %vm17810_vm11 }
 0x753   : > { %v14167_v4 = vpop.permute.xlu0 %4276  ;;  %v4749_v44 = vsel %vm2741_vm2, %v4748_v37, %v4744_v19  ;;  %v4823_v45 = vsel %vm2734_vm1, %v4822_v54, %v4818_v63  ;;  %v4837_v33 = vrot.slane %v14089_v13, %v12667_v56  ;;  %v4631_v42 = vsel %vm17778_vm9, %v4630_v53, %v4626_v20  ;;  %v14279_v54 = vpop.permute.xlu1 %4315  ;;  %vm17833_vm9 = vmmov %vm17830_vm10 }
 0x754   : > { %v4828_v27 = vsel %vm2741_vm2, %v4827_v49, %v4823_v45  ;;  %v4763_v24 = vrot.slane %v17823_v38, %v12670_v36  ;;  %v4675_v37 = vsel %vm2748_vm3, %v4674_v57, %v4670_v46  ;;  %v4832_v19 = vrot.slane %v17824_v0, %v12663_v11  ;;  %v17826_v57 = vld [vmem:[#allocation224_spill] sm:$0xff]  ;;  %v17828_v0 = vld [vmem:[#allocation225_spill] sm:$0xff] }
 0x755   : > { %v4680_v39 = vsel %vm2755_vm4, %v4679_v3, %v4675_v37  ;;  %v4689_v63 = vrot.slane %v17825_v34, %v12673_v9  ;;  %v4754_v13 = vsel %vm2748_vm3, %v4753_v17, %v4749_v44  ;;  %v4768_v46 = vrot.slane %v17826_v57, %v12673_v9 }
 0x756   : > { %v4759_v49 = vsel %vm2755_vm4, %v4758_v32, %v4754_v13  ;;  %v4833_v45 = vsel %vm2748_vm3, %v4832_v19, %v4828_v27  ;;  %v4636_v3 = vsel %vm17780_vm0, %v4635_v51, %v4631_v42  ;;  %v4847_v17 = vrot.slane %v14116_v7, %v12673_v9  ;;  %v17829_v51 = vld [vmem:[#allocation96_spill] sm:$0xff] }
 0x757   : > { %v14200_v15 = vpop.permute.xlu0 %4282  ;;  %v4838_v38 = vsel %vm2755_vm4, %v4837_v33, %v4833_v45  ;;  %v4685_v32 = vsel %vm16895_vm5, %v4684_v31, %v4680_v39  ;;  %v4842_v34 = vrot.slane %v17828_v0, %v12670_v36  ;;  %v4699_v33 = vrot.slane %v17829_v51, %v12680_v10  ;;  %v17831_v31 = vld [vmem:[#allocation226_spill] sm:$0xff] }
 0x758   : > { %v4690_v19 = vsel %vm17810_vm11, %v4689_v63, %v4685_v32  ;;  %v4764_v42 = vsel %vm16895_vm5, %v4763_v24, %v4759_v49  ;;  %v4911_v7 = vrot.slane %v14190_v5, %v12663_v11  ;;  %v4778_v39 = vrot.slane %v17831_v31, %v12680_v10  ;;  %v17832_v63 = vld [vmem:[#allocation86_spill] sm:$0xff]  ;;  %vm17842_vm11 = vmmov %vm17833_vm9 }
 0x759   : > { %v4769_v13 = vsel %vm17830_vm10, %v4768_v46, %v4764_v42  ;;  %v4773_v45 = vrot.slane %v17832_v63, %v12677_v1  ;;  %v4857_v24 = vrot.slane %v14141_v26, %v12680_v10  ;;  %v17834_v46 = vrot.slane %v17812_v55, %v12677_v1 }
 0x75a   : > { %vm17840_vm0 = vcmask 654912   ;;  %vm17843_vm10 = vcmask 720512  }
 0x75b   : > { %v14230_v29 = vpop.permute.xlu0 %4288  ;;  %v4774_v26 = vsel %vm2776_vm7, %v4773_v45, %v4769_v13  ;;  %v17838_v13 = vrot.slane %v17804_v18, %v12726_v21 }
 0x75c   : > { %v4779_v55 = vsel %vm2783_vm8, %v4778_v39, %v4774_v26  ;;  %v17850_v26 = vld [vmem:[#allocation105_spill] sm:$0xff] }
 0x75f   : > { %v4295_v2 = vpop.permute.xlu0 %4294 }
 0x760   : > { %v4897_v59 = vrot.slane %v4295_v2, %v12650_v28  ;;  %v4901_v2 = vrot.slane %v14149_v47, %v12653_v30  ;;  %v17827_v47 = vld [vmem:[#allocation104_spill] sm:$0xff] }
 0x761   : > { %v4640_v37 = vrot.slane %v17827_v47, %v12717_v22 }
 0x762   : > { %v4902_v44 = vsel %vm2734_vm1, %v4901_v2, %v4897_v59  ;;  %v4322_v2 = vpop.permute.xlu1 %4321 }
 0x763   : > { %v4301_v53 = vpop.permute.xlu0 %4300  ;;  %v4641_v49 = vsel %vm2811_vm12, %v4640_v37, %v4636_v3  ;;  %v4921_v3 = vrot.slane %v14239_v61, %v12670_v36 }
 0x764   : > { %v4906_v20 = vrot.slane %v4301_v53, %v12660_v41  ;;  %v4843_v53 = vsel %vm16895_vm5, %v4842_v34, %v4838_v38  ;;  %v17835_v38 = vld [vmem:[#allocation227_spill] sm:$0xff]  ;;  %v4646_v31 = vsel %vm2818_vm13, %v17838_v13, %v4641_v49 }
 0x765   : > { %v4852_v47 = vrot.slane %v17835_v38, %v12677_v1 }
 0x766   : > { %v4907_v27 = vsel %vm2741_vm2, %v4906_v20, %v4902_v44  ;;  %v4848_v20 = vsel %vm17833_vm9, %v4847_v17, %v4843_v53  ;;  %v4695_v44 = vsel %vm2776_vm7, %v17834_v46, %v4690_v19  ;;  %v17836_v17 = vld [vmem:[#allocation98_spill] sm:$0xff]  ;;  %v17841_v53 = vld [vmem:[#allocation229_spill] sm:$0xff]  ;;  %v4328_v63 = vpop.permute.xlu1 %4327  ;;  %vm17845_vm9 = vmmov %vm17840_vm0 }
 0x767   : > { %v4307_v59 = vpop.permute.xlu0 %4306  ;;  %v4912_v5 = vsel %vm2748_vm3, %v4911_v7, %v4907_v27  ;;  %v4700_v0 = vsel %vm2783_vm8, %v4699_v33, %v4695_v44  ;;  %v4709_v34 = vrot.slane %v17836_v17, %v12703_v23  ;;  %v4788_v27 = vrot.slane %v14009_v40, %v12703_v23  ;;  %v17837_v33 = vld [vmem:[#allocation90_spill] sm:$0xff]  ;;  %v17847_v46 = vld [vmem:[#allocation228_spill] sm:$0xff] }
 0x768   : > { %v4916_v57 = vrot.slane %v4307_v59, %v12667_v56  ;;  %v4853_v19 = vsel %vm2776_vm7, %v4852_v47, %v4848_v20  ;;  %v4783_v42 = vrot.slane %v17837_v33, %v12696_v62  ;;  %v4867_v59 = vrot.slane %v14167_v4, %v12703_v23  ;;  %v17844_v20 = vld [vmem:[#allocation102_spill] sm:$0xff]  ;;  %v17853_v33 = vld [vmem:[#allocation181_spill] sm:$0xff] }
 0x769   : > { %v4858_v7 = vsel %vm2783_vm8, %v4857_v24, %v4853_v19  ;;  %v17839_v40 = vrot.slane %v17814_v48, %v12696_v62  ;;  %v4719_v24 = vrot.slane %v17844_v20, %v12717_v22  ;;  %v4798_v44 = vrot.slane %v17847_v46, %v12717_v22 }
 0x76a   : > { %v4917_v32 = vsel %vm2755_vm4, %v4916_v57, %v4912_v5  ;;  %v4862_v57 = vrot.slane %v17841_v53, %v12696_v62  ;;  %v4784_v18 = vsel %vm17845_vm9, %v4783_v42, %v4779_v55  ;;  %v4931_v5 = vrot.slane %v14279_v54, %v12677_v1  ;;  %v4334_v13 = vpop.permute.xlu1 %4333 }
 0x76b   : > { %v4313_v37 = vpop.permute.xlu0 %4312  ;;  %v4922_v61 = vsel %vm16895_vm5, %v4921_v3, %v4917_v32  ;;  %v4705_v39 = vsel %vm17840_vm0, %v17839_v40, %v4700_v0  ;;  %vm17846_vm5 = vmmov %vm17843_vm10  ;;  %v17848_v32 = vld [vmem:[#allocation94_spill] sm:$0xff]  ;;  %v4650_v3 = vrot.slane %v17850_v26, %v17781_v52  ;;  %v4882_v20 = vrot.slane %v14078_v43, %v12726_v21 }
 0x76c   : > { %v4926_v51 = vrot.slane %v4313_v37, %v12673_v9  ;;  %v4710_v4 = vsel %vm17843_vm10, %v4709_v34, %v4705_v39  ;;  %v4789_v48 = vsel %vm17846_vm5, %v4788_v27, %v4784_v18  ;;  %v4863_v38 = vsel %vm17840_vm0, %v4862_v57, %v4858_v7  ;;  %v17856_v39 = vld [vmem:[#allocation100_spill] sm:$0xff]  ;;  %v17864_v26 = vld [vmem:[#allocation230_spill] sm:$0xff] }
 0x76d   : > { %v4793_v0 = vrot.slane %v17848_v32, %v12714_v16  ;;  %v4877_v34 = vrot.slane %v14200_v15, %v12717_v22  ;;  %v17851_v37 = vrot.slane %v17816_v50, %v12714_v16  ;;  %v4872_v27 = vrot.slane %v14039_v8, %v12714_v16 }
 0x76e   : > { %v4927_v45 = vsel %vm17842_vm11, %v4926_v51, %v4922_v61  ;;  %vm17849_vm11 = vmmov %vm17846_vm5  ;;  %vm17852_vm5 = vcmask 786112   ;;  %v4729_v15 = vrot.slane %v17853_v33, %v17781_v52  ;;  %v4941_v7 = vrot.slane %v4322_v2, %v12696_v62 }
 0x76f   : > { %v4319_v49 = vpop.permute.xlu0 %4318  ;;  %v4868_v17 = vsel %vm17849_vm11, %v4867_v59, %v4863_v38  ;;  %v4932_v54 = vsel %vm2776_vm7, %v4931_v5, %v4927_v45  ;;  %v4715_v55 = vsel %vm17852_vm5, %v17851_v37, %v4710_v4  ;;  %vm17854_vm10 = vmmov %vm17852_vm5  ;;  %v4808_v50 = vrot.slane %v14024_v12, %v17781_v52  ;;  %v17860_v38 = vld [vmem:[#allocation178_spill] sm:$0xff]  ;;  %v4340_v37 = vpop.permute.xlu1 %4339 }
 0x770   : > { %v4936_v47 = vrot.slane %v4319_v49, %v12680_v10  ;;  %v4720_v51 = vsel %vm2811_vm12, %v4719_v24, %v4715_v55  ;;  %v4794_v42 = vsel %vm17854_vm10, %v4793_v0, %v4789_v48  ;;  %vm17855_vm9 = vmmov %vm17852_vm5  ;;  %v4803_v53 = vrot.slane %v17856_v39, %v12726_v21  ;;  %v17861_v0 = vld [vmem:[#allocation91_spill] sm:$0xff] }
 0x771   : > { %v4799_v61 = vsel %vm2811_vm12, %v4798_v44, %v4794_v42  ;;  %v4873_v8 = vsel %vm17855_vm9, %v4872_v27, %v4868_v17  ;;  %v4887_v45 = vrot.slane %v14230_v29, %v17781_v52  ;;  %v4651_v4 = vsel %vm2825_vm14, %v4650_v3, %v4646_v31  ;;  %v17862_v17 = vld [vmem:[#allocation222_spill] sm:$0xff] }
 0x772   : > { %v4937_v19 = vsel %vm2783_vm8, %v4936_v47, %v4932_v54  ;;  %v4878_v57 = vsel %vm2811_vm12, %v4877_v34, %v4873_v8  ;;  %v4725_v12 = vsel %vm2818_vm13, %v4724_v6, %v4720_v51  ;;  %v17857_v18 = vrot.slane %v17798_v25, %v17790_v14  ;;  %v17858_v6 = vld [vmem:[#allocation97_spill] sm:$0xff] }
 0x773   : > { %v4325_v59 = vpop.permute.xlu0 %4324  ;;  %v4942_v2 = vsel %vm17840_vm0, %v4941_v7, %v4937_v19  ;;  %v4730_v5 = vsel %vm2825_vm14, %v4729_v15, %v4725_v12  ;;  %v4804_v31 = vsel %vm2818_vm13, %v4803_v53, %v4799_v61  ;;  %v4951_v49 = vrot.slane %v4328_v63, %v12714_v16  ;;  %v9933_v12 = vld [vmem:[#allocation14 + $0x8] ss:$24 sps:$4 sm:$0xff]  }
 0x774   : > { %v4946_v40 = vrot.slane %v4325_v59, %v12703_v23  ;;  %v4577_v29 = vsel %vm2832_vm15, %v17857_v18, %v14233_v58  ;;  %v4734_v48 = vrot.slane %v17858_v6, %v17790_v14  ;;  %v4809_v43 = vsel %vm2825_vm14, %v4808_v50, %v4804_v31  ;;  %v17872_v18 = vld [vmem:[#allocation191_spill] sm:$0xff] }
 0x775   : > { %v4883_v46 = vsel %vm2818_vm13, %v4882_v20, %v4878_v57  ;;  %v17859_v25 = vrot.slane %v17806_v60, %v17790_v14  ;;  %v4813_v47 = vrot.slane %v17860_v38, %v17790_v14  ;;  %vm17863_vm10 = vcmask 1041409   ;;  %v17871_v20 = vld [vmem:[#allocation177_spill] sm:$0xff]  ;;  %v17878_v6 = vld [vmem:[#allocation167_spill] sm:$0xff] }
 0x776   : > { %v4947_v24 = vsel %vm17849_vm11, %v4946_v40, %v4942_v2  ;;  %v4888_v63 = vsel %vm2825_vm14, %v4887_v45, %v4883_v46  ;;  %v4973_v34 = vsel %vm17863_vm10, %v17862_v17, %v17861_v0  ;;  %v4735_v54 = vsel %vm2832_vm15, %v4734_v48, %v4730_v5  ;;  %v17870_v45 = vld [vmem:[#allocation35_spill] sm:$0xff]  ;;  %v17886_v17 = vld [vmem:[#allocation169_spill] sm:$0xff] }
 0x777   : > { %v4331_v35 = vpop.permute.xlu0 %4330  ;;  %v4656_v58 = vsel %vm2832_vm15, %v17859_v25, %v4651_v4  ;;  %v4952_v32 = vsel %vm17852_vm5, %v4951_v49, %v4947_v24  ;;  %v4892_v3 = vrot.slane %v17864_v26, %v17790_v14  ;;  %vm17865_vm9 = vcmask 1042434   ;;  %v9931_v4 = vld [vmem:[#allocation14 + $0xc] ss:$24 sps:$4 sm:$0xff]   ;;  %v17874_v5 = vld [vmem:[#allocation163_spill] sm:$0xff] }
 0x778   : > { %v4956_v44 = vrot.slane %v4331_v35, %v12717_v22  ;;  %v4974_v55 = vsel %vm17865_vm9, %v4577_v29, %v4973_v34  ;;  %v4961_v27 = vrot.slane %v4334_v13, %v12726_v21  ;;  %v4814_v51 = vsel %vm2832_vm15, %v4813_v47, %v4809_v43  ;;  %v17876_v49 = vld [vmem:[#allocation180_spill] sm:$0xff]  ;;  %920 = vmatprep.subr.bf16.mxu1 %v9931_v4  ;;  %v17880_v43 = vld [vmem:[#allocation209_spill] sm:$0xff]  ;;  %v17898_v4 = vld [vmem:[#allocation183_spill] sm:$0xff] }
 0x779   : > { %v4893_v15 = vsel %vm2832_vm15, %v4892_v3, %v4888_v63  ;;  %v4975_v42 = vsel %vm3391_vm6, %v4656_v58, %v4974_v55  ;;  %v4971_v7 = vrot.slane %v4340_v37, %v17790_v14  ;;  %vm17866_vm0 = vcmask 1044484   ;;  %921 = vmatpush1.bf16.msra.mxu1 %v9933_v12  ;;  %v9934_v47 = vld [vmem:[#allocation14 + $0x3c] ss:$24 sps:$4 sm:$0xff]   ;;  %v9936_v63 = vld [vmem:[#allocation14 + $0x38] ss:$24 sps:$4 sm:$0xff]  }
 0x77a   : > { %v4957_v60 = vsel %vm2811_vm12, %v4956_v44, %v4952_v32  ;;  %v4976_v61 = vsel %vm17866_vm0, %v4735_v54, %v4975_v42  ;;  %vm17867_vm11 = vcmask 1045509   ;;  %vm17868_vm5 = vcmask 1046534   ;;  %v17882_v44 = vld [vmem:[#allocation165_spill] sm:$0xff]  ;;  %v17884_v32 = vld [vmem:[#allocation212_spill] sm:$0xff]  ;;  %v17888_v54 = vld [vmem:[#allocation171_spill] sm:$0xff]  ;;  %922 = vmatprep.subr.bf16.mxu1 %v9934_v47 }
 0x77b   : > { %v4337_v19 = vpop.permute.xlu0 %4336  ;;  %v4962_v59 = vsel %vm2818_vm13, %v4961_v27, %v4957_v60  ;;  %v4977_v8 = vsel %vm17867_vm11, %v4814_v51, %v4976_v61  ;;  %vm17869_vm10 = vcmask 1047559   ;;  %v17890_v55 = vld [vmem:[#allocation179_spill] sm:$0xff]  ;;  %v9939_v51 = vld [vmem:[#allocation14 + $0x68] ss:$24 sps:$4 sm:$0xff]   ;;  %vm10784_vm9 = vmmov 0  }
 0x77c   : > { %v4966_v33 = vrot.slane %v4337_v19, %v17781_v52  ;;  %v4978_v40 = vsel %vm17868_vm5, %v4893_v15, %v4977_v8  ;;  %v9937_v19 = vld [vmem:[#allocation14 + $0x6c] ss:$24 sps:$4 sm:$0xff]   ;;  %vm18089_vm0 = vcmask 392512   ;;  %vm18090_vm11 = vcmask 458112  }
 0x77d   : > { %923 = vmatpush1.bf16.msra.mxu1 %v9936_v63  ;;  %v17892_v15 = vld [vmem:[#allocation200_spill] sm:$0xff]  ;;  %vm18094_vm5 = vcmask 654912  }
 0x77e   : > { %v4967_v50 = vsel %vm2825_vm14, %v4966_v33, %v4962_v59  ;;  %924 = vmatprep.subr.bf16.mxu1 %v9937_v19  ;;  %v9945_v19 = vld [vmem:[#allocation14 + $0xc8] ss:$24 sps:$4 sm:$0xff]  }
 0x77f   : > { %v4972_v13 = vsel %vm2832_vm15, %v4971_v7, %v4967_v50  ;;  %v17894_v7 = vld [vmem:[#allocation173_spill] sm:$0xff] }
 0x780   : > { %v4979_v39 = vsel %vm17869_vm10, %v4972_v13, %v4978_v40  ;;  %vm18097_vm10 = vcmask 720512  }
 0x781   : > { %4981 = vadd.xlane.f32.xlu0 %v4979_v39  ;;  %925 = vmatpush1.bf16.msra.mxu1 %v9939_v51  ;;  %v17896_v39 = vld [vmem:[#allocation214_spill] sm:$0xff]  ;;  %v17908_v51 = vld [vmem:[#allocation189_spill] sm:$0xff] }
 0x80e   : > { %v4982_v53 = vpop.xlane.xlu0 %4981 }
 0x80f   : > { %10347 = vrcp.f32 %v4982_v53 }
 0x819   : > { %v14448_v57 = vpop.eup %10347 }
 0x81a   : > { %v14452_v2 = vrot.slane %v14448_v57, %v17870_v45  ;;  %v14456_v24 = vrot.slane %v14448_v57, %v17871_v20  ;;  %v17926_v20 = vld [vmem:[#allocation193_spill] sm:$0xff] }
 0x81c   : > { %v14460_v29 = vmul.f32 %v17872_v18, %v14452_v2  ;;  %v14464_v31 = vmul.f32 %v17874_v5, %v14452_v2  ;;  %v14468_v35 = vmul.f32 %v17876_v49, %v14452_v2  ;;  %v14472_v48 = vmul.f32 %v17878_v6, %v14452_v2  ;;  %v17900_v18 = vld [vmem:[#allocation166_spill] sm:$0xff] }
 0x81d   : > { %v14476_v46 = vmul.f32 %v17880_v43, %v14452_v2  ;;  %v14480_v25 = vmul.f32 %v17882_v44, %v14452_v2  ;;  %v14490_v0 = vmul.f32 %v17884_v32, %v14456_v24  ;;  %v14494_v34 = vmul.f32 %v17886_v17, %v14456_v24  ;;  %v17902_v49 = vld [vmem:[#allocation170_spill] sm:$0xff]  ;;  %v17904_v17 = vld [vmem:[#allocation213_spill] sm:$0xff] }
 0x81e   : > { %17873 = vst [vmem:[#allocation140_spill] sm:$0xff] %v14460_v29  ;;  %17875 = vst [vmem:[#allocation70_spill] sm:$0xff] %v14464_v31  ;;  %v14484_v58 = vpack.c.bf16 %v14464_v31, %v14460_v29  ;;  %v5153_v38 = vpack.c.bf16 %v14472_v48, %v14468_v35  ;;  %v14498_v26 = vmul.f32 %v17888_v54, %v14452_v2  ;;  %v9940_v43 = vld [vmem:[#allocation14 + $0x9c] ss:$24 sps:$4 sm:$0xff]   ;;  %v9942_v44 = vld [vmem:[#allocation14 + $0x98] ss:$24 sps:$4 sm:$0xff]  }
 0x81f   : > { %17877 = vst [vmem:[#allocation40_spill] sm:$0xff] %v14468_v35  ;;  %17879 = vst [vmem:[#allocation65_spill] sm:$0xff] %v14472_v48  ;;  %v14503_v60 = vpack.c.bf16 %v14480_v25, %v14476_v46  ;;  %v14507_v27 = vmul.f32 %v17890_v55, %v14452_v2  ;;  %v14511_v33 = vpack.c.bf16 %v14494_v34, %v14490_v0  ;;  %926 = vmatprep.subr.bf16.mxu1 %v9940_v43  ;;  %v9943_v55 = vld [vmem:[#allocation14 + $0xcc] ss:$24 sps:$4 sm:$0xff]   ;;  %v9948_v43 = vld [vmem:[#allocation14 + $0xf8] ss:$24 sps:$4 sm:$0xff]  }
 0x820   : > { %17881 = vst [vmem:[#allocation52_spill] sm:$0xff] %v14476_v46  ;;  %17883 = vst [vmem:[#allocation38_spill] sm:$0xff] %v14480_v25  ;;  %v5361_v3 = vunpack.c.l.b16 %v14484_v58  ;;  %v5353_v37 = vunpack.c.l.b16 %v5153_v38  ;;  %v14515_v42 = vmul.f32 %v17892_v15, %v14456_v24  ;;  %v14519_v59 = vmul.f32 %v17894_v7, %v14456_v24  ;;  %927 = vmatpush1.bf16.msra.mxu1 %v9942_v44  ;;  %v17910_v7 = vld [vmem:[#allocation194_spill] sm:$0xff] }
 0x821   : > { %17885 = vst [vmem:[#allocation142_spill] sm:$0xff] %v14490_v0  ;;  %17887 = vst [vmem:[#allocation223_spill] sm:$0xff] %v14494_v34  ;;  %v5368_v61 = vunpack.c.h.b16 %v14503_v60  ;;  %v5354_v50 = vunpack.c.h.b16 %v5153_v38  ;;  %v5154_v8 = vpack.c.bf16 %v14507_v27, %v14498_v26  ;;  %v5595_v13 = vunpack.c.h.b16 %v14511_v33  ;;  %928 = vmatprep.subr.bf16.mxu1 %v9943_v55  ;;  %v17940_v0 = vld [vmem:[#allocation210_spill] sm:$0xff] }
 0x822   : > { %17889 = vst [vmem:[#allocation117_spill] sm:$0xff] %v14498_v26  ;;  %17891 = vst [vmem:[#allocation51_spill] sm:$0xff] %v14507_v27  ;;  %5394 = vperm.xlu0 %9905, %v5361_v3   ;;  %5370 = vperm.xlu1 %9906, %v5353_v37   ;;  %v14527_v40 = vpack.c.bf16 %v14519_v59, %v14515_v42  ;;  %v14531_v53 = vmul.f32 %v17896_v39, %v14456_v24  ;;  %v17906_v3 = vld [vmem:[#allocation168_spill] sm:$0xff]  ;;  %v9963_v29 = vld [vmem:[#allocation14 + $0x70] ss:$24 sps:$4 sm:$0xff]  }
 0x823   : > { %17893 = vst [vmem:[#allocation130_spill] sm:$0xff] %v14515_v42  ;;  %17895 = vst [vmem:[#allocation85_spill] sm:$0xff] %v14519_v59  ;;  %v5355_v45 = vunpack.c.l.b16 %v5154_v8  ;;  %v14535_v12 = vmul.f32 %v17898_v4, %v14456_v24  ;;  %v14539_v5 = vmul.f32 %v17900_v18, %v14452_v2  ;;  %v14543_v6 = vmul.f32 %v17902_v49, %v14452_v2  ;;  %v17914_v4 = vld [vmem:[#allocation175_spill] sm:$0xff] }
 0x824   : > { %17897 = vst [vmem:[#allocation61_spill] sm:$0xff] %v14531_v53  ;;  %v5597_v38 = vunpack.c.h.b16 %v14527_v40  ;;  %v5356_v47 = vunpack.c.h.b16 %v5154_v8  ;;  %v14554_v54 = vmul.f32 %v17904_v17, %v14456_v24  ;;  %v14558_v37 = vmul.f32 %v17906_v3, %v14456_v24  ;;  %929 = vmatpush1.bf16.msra.mxu1 %v9945_v19  ;;  %v9946_v49 = vld [vmem:[#allocation14 + $0xfc] ss:$24 sps:$4 sm:$0xff]  }
 0x825   : > { %17899 = vst [vmem:[#allocation148_spill] sm:$0xff] %v14535_v12  ;;  %17901 = vst [vmem:[#allocation45_spill] sm:$0xff] %v14539_v5  ;;  %v14548_v63 = vpack.c.bf16 %v14535_v12, %v14531_v53  ;;  %v5155_v32 = vpack.c.bf16 %v14543_v6, %v14539_v5  ;;  %v14562_v15 = vmul.f32 %v17908_v51, %v14456_v24  ;;  %930 = vmatprep.subr.bf16.mxu1 %v9946_v49  ;;  %v17918_v19 = vld [vmem:[#allocation182_spill] sm:$0xff] }
 0x826   : > { %5415 = vperm.xlu0 %9905, %v5368_v61   ;;  %5373 = vperm.xlu1 %9906, %v5354_v50   ;;  %17903 = vst [vmem:[#allocation154_spill] sm:$0xff] %v14543_v6  ;;  %17905 = vst [vmem:[#allocation58_spill] sm:$0xff] %v14554_v54  ;;  %v14566_v61 = vmul.f32 %v17910_v7, %v14456_v24  ;;  %v17912_v50 = vld [vmem:[#allocation172_spill] sm:$0xff]  ;;  %v14579_v18 = vmul.f32 %v17914_v4, %v14452_v2 }
 0x827   : > { %17907 = vst [vmem:[#allocation67_spill] sm:$0xff] %v14558_v37  ;;  %17909 = vst [vmem:[#allocation62_spill] sm:$0xff] %v14562_v15  ;;  %v14570_v8 = vmul.f32 %v17912_v50, %v14452_v2  ;;  %v5357_v39 = vunpack.c.l.b16 %v5155_v32  ;;  %v5358_v3 = vunpack.c.h.b16 %v5155_v32  ;;  %v14594_v51 = vmul.f32 %v17918_v19, %v14456_v24  ;;  %v9949_v7 = vld [vmem:[#allocation14 + $0x12c] ss:$24 sps:$4 sm:$0xff]   ;;  %v9951_v50 = vld [vmem:[#allocation14 + $0x128] ss:$24 sps:$4 sm:$0xff]  }
 0x828   : > { %17911 = vst [vmem:[#allocation73_spill] sm:$0xff] %v14566_v61  ;;  %17915 = vst [vmem:[#allocation46_spill] sm:$0xff] %v14579_v18  ;;  %v14583_v44 = vpack.c.bf16 %v14566_v61, %v14562_v15  ;;  %931 = vmatpush1.bf16.msra.mxu1 %v9948_v43  ;;  %v9952_v43 = vld [vmem:[#allocation14 + $0x15c] ss:$24 sps:$4 sm:$0xff]   ;;  %v14615_v15 = vmul.f32 %v17926_v20, %v14456_v24  ;;  %v9955_v20 = vld [vmem:[#allocation14 + $0x10] ss:$24 sps:$4 sm:$0xff]  }
 0x829   : > { %17913 = vst [vmem:[#allocation59_spill] sm:$0xff] %v14570_v8  ;;  %v5156_v55 = vpack.c.bf16 %v14579_v18, %v14570_v8  ;;  %17919 = vst [vmem:[#allocation50_spill] sm:$0xff] %v14594_v51  ;;  %932 = vmatprep.subr.bf16.mxu1 %v9949_v7 }
 0x82a   : > { %5614 = vperm.xlu0 %9905, %v5595_v13   ;;  %5376 = vperm.xlu1 %9906, %v5355_v45   ;;  %v5599_v13 = vunpack.c.h.b16 %v14548_v63  ;;  %v14575_v45 = vpack.c.bf16 %v14558_v37, %v14554_v54  ;;  %v5603_v4 = vunpack.c.h.b16 %v14583_v44  ;;  %17927 = vst [vmem:[#allocation108_spill] sm:$0xff] %v14615_v15 }
 0x82b   : > { %v5359_v32 = vunpack.c.l.b16 %v5156_v55 }
 0x82c   : > { %v5601_v17 = vunpack.c.h.b16 %v14575_v45  ;;  %933 = vmatpush1.bf16.msra.mxu1 %v9951_v50 }
 0x82d   : > { %934 = vmatprep.subr.bf16.mxu1 %v9952_v43  ;;  %v5362_v43 = vunpack.c.h.b16 %v14484_v58  ;;  %v9959_v58 = vld [vmem:[#allocation14 + $0x40] ss:$24 sps:$4 sm:$0xff]  }
 0x82e   : > { %5620 = vperm.xlu0 %9905, %v5597_v38   ;;  %5379 = vperm.xlu1 %9906, %v5356_v47   ;;  %v17916_v38 = vld [vmem:[#allocation202_spill] sm:$0xff] }
 0x82f   : > { %v14587_v47 = vmul.f32 %v17916_v38, %v14456_v24  ;;  %v17922_v38 = vld [vmem:[#allocation186_spill] sm:$0xff] }
 0x830   : > { %v14607_v19 = vmul.f32 %v17922_v38, %v14456_v24  ;;  %v17931_v38 = vld [vmem:[#allocation185_spill] sm:$0xff] }
 0x831   : > { %17917 = vst [vmem:[#allocation48_spill] sm:$0xff] %v14587_v47  ;;  %v14603_v49 = vpack.c.bf16 %v14594_v51, %v14587_v47  ;;  %v17928_v47 = vld [vmem:[#allocation164_spill] sm:$0xff] }
 0x832   : > { %5626 = vperm.xlu0 %9905, %v5599_v13   ;;  %5382 = vperm.xlu1 %9906, %v5357_v39   ;;  %v17920_v13 = vld [vmem:[#allocation201_spill] sm:$0xff]  ;;  %17923 = vst [vmem:[#allocation106_spill] sm:$0xff] %v14607_v19  ;;  %v14619_v54 = vrot.slane %v14448_v57, %v17928_v47 }
 0x833   : > { %v14598_v39 = vmul.f32 %v17920_v13, %v14456_v24  ;;  %v17924_v13 = vld [vmem:[#allocation55_spill] sm:$0xff]  ;;  %v5605_v50 = vunpack.c.h.b16 %v14603_v49 }
 0x834   : > { %v14611_v7 = vmul.f32 %v17924_v13, %v14456_v24  ;;  %v14632_v13 = vmul.f32 %v17931_v38, %v14452_v2  ;;  %v9957_v24 = vld [vmem:[#allocation14 + $0x14] ss:$24 sps:$4 sm:$0xff]   ;;  %v14657_v46 = vmul.f32 %v17940_v0, %v14619_v54 }
 0x835   : > { %17921 = vst [vmem:[#allocation83_spill] sm:$0xff] %v14598_v39  ;;  %961 = vmatprep.subr.bf16.mxu0 %v9957_v24  ;;  %v17938_v24 = vld [vmem:[#allocation218_spill] sm:$0xff] }
 0x836   : > { %5632 = vperm.xlu0 %9905, %v5601_v17   ;;  %5385 = vperm.xlu1 %9906, %v5358_v3   ;;  %v9954_v17 = vld [vmem:[#allocation14 + $0x158] ss:$24 sps:$4 sm:$0xff]   ;;  %v5360_v3 = vunpack.c.h.b16 %v5156_v55  ;;  %17925 = vst [vmem:[#allocation57_spill] sm:$0xff] %v14611_v7  ;;  %v17929_v55 = vld [vmem:[#allocation196_spill] sm:$0xff]  ;;  %17932 = vst [vmem:[#allocation107_spill] sm:$0xff] %v14632_v13  ;;  %v14637_v47 = vpack.c.bf16 %v14615_v15, %v14611_v7  ;;  %v14653_v42 = vmul.f32 %v17938_v24, %v14619_v54 }
 0x837   : > { %935 = vmatpush1.bf16.msra.mxu1 %v9954_v17  ;;  %v17934_v17 = vld [vmem:[#allocation203_spill] sm:$0xff]  ;;  %962 = vmatpush1.bf16.msra.mxu0 %v9955_v20  ;;  %17941 = vst [vmem:[#allocation184_spill] sm:$0xff] %v14657_v46 }
 0x838   : > { %v14645_v53 = vmul.f32 %v17934_v17, %v14619_v54  ;;  %v9961_v7 = vld [vmem:[#allocation14 + $0x44] ss:$24 sps:$4 sm:$0xff]   ;;  %17939 = vst [vmem:[#allocation78_spill] sm:$0xff] %v14653_v42  ;;  %v9965_v0 = vld [vmem:[#allocation14 + $0x74] ss:$24 sps:$4 sm:$0xff]  }
 0x839   : > { %v17942_v17 = vld [vmem:[#allocation188_spill] sm:$0xff]  ;;  %963 = vmatprep.subr.bf16.mxu0 %v9961_v7 }
 0x83a   : > { %5638 = vperm.xlu0 %9905, %v5603_v4   ;;  %5388 = vperm.xlu1 %9906, %v5359_v32   ;;  %v14624_v4 = vpack.c.bf16 %v14607_v19, %v14598_v39  ;;  %v14628_v32 = vmul.f32 %v17929_v55, %v14452_v2  ;;  %v17933_v39 = vld [vmem:[#allocation33_spill] sm:$0xff]  ;;  %17935 = vst [vmem:[#allocation68_spill] sm:$0xff] %v14645_v53 }
 0x83b   : > { %953 = vmatmul.mubr.bf16.vlgmr.msra.gmra.mrb[0].mxu1 %v17933_v39  ;;  %964 = vmatpush1.bf16.msra.mxu0 %v9959_v58  ;;  %v17948_v58 = vld [vmem:[#allocation198_spill] sm:$0xff] }
 0x83c   : > { %17930 = vst [vmem:[#allocation89_spill] sm:$0xff] %v14628_v32  ;;  %v5607_v55 = vunpack.c.h.b16 %v14624_v4  ;;  %v5158_v38 = vpack.c.bf16 %v14632_v13, %v14628_v32  ;;  %v14661_v32 = vmul.f32 %v17942_v17, %v14452_v2  ;;  %v17946_v17 = vld [vmem:[#allocation192_spill] sm:$0xff]  ;;  %965 = vmatprep.subr.bf16.mxu0 %v9965_v0 }
 0x83d   : > { %v14674_v7 = vmul.f32 %v17946_v17, %v14619_v54 }
 0x83e   : > { %5644 = vperm.xlu0 %9905, %v5605_v50   ;;  %5391 = vperm.xlu1 %9906, %v5360_v3   ;;  %v17936_v3 = vld [vmem:[#allocation174_spill] sm:$0xff]  ;;  %17943 = vst [vmem:[#allocation95_spill] sm:$0xff] %v14661_v32  ;;  %v5363_v20 = vunpack.c.l.b16 %v5158_v38  ;;  %v5364_v8 = vunpack.c.h.b16 %v5158_v38  ;;  %v9967_v38 = vld [vmem:[#allocation14 + $0xa0] ss:$24 sps:$4 sm:$0xff]  }
 0x83f   : > { %v14649_v50 = vmul.f32 %v17936_v3, %v14619_v54  ;;  %v5609_v3 = vunpack.c.h.b16 %v14637_v47  ;;  %17947 = vst [vmem:[#allocation103_spill] sm:$0xff] %v14674_v7  ;;  %966 = vmatpush1.bf16.msra.mxu0 %v9963_v29  ;;  %v9971_v29 = vld [vmem:[#allocation14 + $0xd0] ss:$24 sps:$4 sm:$0xff]  }
 0x841   : > { %17937 = vst [vmem:[#allocation76_spill] sm:$0xff] %v14649_v50 }
 0x842   : > { %5650 = vperm.xlu0 %9905, %v5607_v55   ;;  %5397 = vperm.xlu1 %9906, %v5362_v43   ;;  %v14666_v55 = vpack.c.bf16 %v14649_v50, %v14645_v53  ;;  %v17944_v43 = vld [vmem:[#allocation207_spill] sm:$0xff]  ;;  %v14679_v53 = vpack.c.bf16 %v14657_v46, %v14653_v42  ;;  %v9958_v50 = vld [vmem:[#allocation4] sm:$0xff]  }
 0x843   : > { %v14670_v24 = vmul.f32 %v17944_v43, %v14452_v2  ;;  %v14685_v43 = vmul.f32 %v17948_v58, %v14619_v54  ;;  %v17952_v58 = vld [vmem:[#allocation176_spill] sm:$0xff] }
 0x844   : > { %v5836_v15 = vunpack.c.h.b16 %v14666_v55  ;;  %v5838_v17 = vunpack.c.h.b16 %v14679_v53  ;;  %v14698_v46 = vmul.f32 %v17952_v58, %v14619_v54  ;;  %v17956_v58 = vld [vmem:[#allocation187_spill] sm:$0xff] }
 0x845   : > { %17945 = vst [vmem:[#allocation88_spill] sm:$0xff] %v14670_v24  ;;  %v5159_v2 = vpack.c.bf16 %v14670_v24, %v14661_v32  ;;  %17949 = vst [vmem:[#allocation84_spill] sm:$0xff] %v14685_v43  ;;  %v14694_v32 = vpack.c.bf16 %v14685_v43, %v14674_v7  ;;  %v17960_v43 = vld [vmem:[#allocation197_spill] sm:$0xff] }
 0x846   : > { %5656 = vperm.xlu0 %9905, %v5609_v3   ;;  %5400 = vperm.xlu1 %9906, %v5363_v20   ;;  %v9969_v3 = vld [vmem:[#allocation14 + $0xa4] ss:$24 sps:$4 sm:$0xff]   ;;  %17953 = vst [vmem:[#allocation92_spill] sm:$0xff] %v14698_v46 }
 0x847   : > { %v17950_v20 = vld [vmem:[#allocation208_spill] sm:$0xff]  ;;  %967 = vmatprep.subr.bf16.mxu0 %v9969_v3  ;;  %v5365_v42 = vunpack.c.l.b16 %v5159_v2  ;;  %v5840_v5 = vunpack.c.h.b16 %v14694_v32 }
 0x848   : > { %v14689_v0 = vmul.f32 %v17950_v20, %v14619_v54  ;;  %968 = vmatpush1.bf16.msra.mxu0 %v9967_v38  ;;  %v17954_v20 = vld [vmem:[#allocation119_spill] sm:$0xff]  ;;  %v14711_v38 = vmul.f32 %v17956_v58, %v14619_v54 }
 0x849   : > { %v14702_v3 = vmul.f32 %v17954_v20, %v14619_v54  ;;  %v9962_v20 = vld [vmem:[#allocation4 + $0x8] sm:$0xff]  }
 0x84a   : > { %5855 = vperm.xlu0 %9905, %v5836_v15   ;;  %5403 = vperm.xlu1 %9906, %v5364_v8   ;;  %17951 = vst [vmem:[#allocation109_spill] sm:$0xff] %v14689_v0  ;;  %v9973_v15 = vld [vmem:[#allocation14 + $0xd4] ss:$24 sps:$4 sm:$0xff]   ;;  %v5366_v8 = vunpack.c.h.b16 %v5159_v2  ;;  %v14707_v7 = vpack.c.bf16 %v14698_v46, %v14689_v0  ;;  %17957 = vst [vmem:[#allocation104_spill] sm:$0xff] %v14711_v38  ;;  %v16919_v2 = vmov 0.0  }
 0x84b   : > { %17955 = vst [vmem:[#allocation224_spill] sm:$0xff] %v14702_v3  ;;  %969 = vmatprep.subr.bf16.mxu0 %v9973_v15  ;;  %9570 = vmatprep.subr.bf16.mxu1 %v16919_v2  ;;  %v5367_v15 = vunpack.c.l.b16 %v14503_v60  ;;  %v14718_v46 = vpack.c.bf16 %v14711_v38, %v14702_v3  ;;  %v14726_v2 = vmul.f32 %v17960_v43, %v14619_v54  ;;  %v9979_v60 = vld [vmem:[#allocation14 + $0x130] ss:$24 sps:$4 sm:$0xff]   ;;  %v17963_v43 = vld [vmem:[#allocation112_spill] sm:$0xff] }
 0x84c   : > { %970 = vmatpush1.bf16.msra.mxu0 %v9971_v29  ;;  %9571 = vmatpush3.bf16.msra.mxu1 %v9958_v50  ;;  %v5842_v0 = vunpack.c.h.b16 %v14707_v7  ;;  %v17958_v29 = vld [vmem:[#allocation125_spill] sm:$0xff]  ;;  %v14737_v38 = vmul.f32 %v17963_v43, %v14619_v54 }
 0x84d   : > { %v14722_v58 = vmul.f32 %v17958_v29, %v14619_v54  ;;  %17961 = vst [vmem:[#allocation96_spill] sm:$0xff] %v14726_v2  ;;  %v9981_v50 = vld [vmem:[#allocation14 + $0x134] ss:$24 sps:$4 sm:$0xff]   ;;  %v5844_v3 = vunpack.c.h.b16 %v14718_v46 }
 0x84e   : > { %5861 = vperm.xlu0 %9905, %v5838_v17   ;;  %5406 = vperm.xlu1 %9906, %v5365_v42   ;;  %v9975_v17 = vld [vmem:[#allocation14 + $0x100] ss:$24 sps:$4 sm:$0xff]   ;;  %v9977_v42 = vld [vmem:[#allocation14 + $0x104] ss:$24 sps:$4 sm:$0xff]   ;;  %17964 = vst [vmem:[#allocation226_spill] sm:$0xff] %v14737_v38 }
 0x84f   : > { %971 = vmatprep.subr.bf16.mxu0 %v9977_v42  ;;  %17959 = vst [vmem:[#allocation225_spill] sm:$0xff] %v14722_v58  ;;  %v9966_v42 = vld [vmem:[#allocation4 + $0x10] sm:$0xff]   ;;  %v14733_v29 = vpack.c.bf16 %v14726_v2, %v14722_v58  ;;  %v17969_v58 = vld [vmem:[#allocation195_spill] sm:$0xff] }
 0x850   : > { %972 = vmatpush1.bf16.msra.mxu0 %v9975_v17  ;;  %v17965_v17 = vld [vmem:[#allocation211_spill] sm:$0xff]  ;;  %v14751_v43 = vrot.slane %v14448_v57, %v17969_v58  ;;  %v17974_v58 = vld [vmem:[#allocation216_spill] sm:$0xff] }
 0x851   : > { %973 = vmatprep.subr.bf16.mxu0 %v9981_v50  ;;  %v14741_v19 = vmul.f32 %v17965_v17, %v14619_v54  ;;  %v9970_v17 = vld [vmem:[#allocation4 + $0x18] sm:$0xff]   ;;  %v5846_v2 = vunpack.c.h.b16 %v14733_v29 }
 0x852   : > { %5867 = vperm.xlu0 %9905, %v5840_v5   ;;  %5409 = vperm.xlu1 %9906, %v5366_v8   ;;  %v17962_v5 = vmov 0.0   ;;  %v5594_v8 = vunpack.c.l.b16 %v14511_v33  ;;  %v9983_v33 = vld [vmem:[#allocation14 + $0x160] ss:$24 sps:$4 sm:$0xff]  }
 0x853   : > { %9572 = vmatprep.subr.bf16.mxu1 %v17962_v5  ;;  %17966 = vst [vmem:[#allocation86_spill] sm:$0xff] %v14741_v19  ;;  %9586 = vmatprep.mubr.msk.bf16.mxu1 %vm10784_vm9, %v17962_v5 }
 0x854   : > { %9573 = vmatpush3.bf16.msra.mxu1 %v9962_v20  ;;  %974 = vmatpush1.bf16.msra.mxu0 %v9979_v60  ;;  %v17967_v20 = vld [vmem:[#allocation113_spill] sm:$0xff]  ;;  %v14756_v60 = vpack.c.bf16 %v14741_v19, %v14737_v38 }
 0x855   : > { %9574 = vmatprep.subr.bf16.mxu1 %v17962_v5  ;;  %v14747_v50 = vmul.f32 %v17967_v20, %v14619_v54  ;;  %v17972_v20 = vld [vmem:[#allocation114_spill] sm:$0xff] }
 0x856   : > { %5873 = vperm.xlu0 %9905, %v5842_v0   ;;  %5412 = vperm.xlu1 %9906, %v5367_v15   ;;  %v9985_v0 = vld [vmem:[#allocation14 + $0x164] ss:$24 sps:$4 sm:$0xff]   ;;  %v5596_v15 = vunpack.c.l.b16 %v14527_v40 }
 0x857   : > { %17968 = vst [vmem:[#allocation227_spill] sm:$0xff] %v14747_v50  ;;  %975 = vmatprep.subr.bf16.mxu0 %v9985_v0  ;;  %v9974_v0 = vld [vmem:[#allocation4 + $0x20] sm:$0xff]  }
 0x858   : > { %9575 = vmatpush3.bf16.msra.mxu1 %v9966_v42  ;;  %976 = vmatpush1.bf16.msra.mxu0 %v9983_v33  ;;  %v5598_v42 = vunpack.c.l.b16 %v14548_v63  ;;  %v9988_v63 = vld [vmem:[#allocation4 + $0x48] sm:$0xff]  }
 0x859   : > { %9576 = vmatprep.subr.bf16.mxu1 %v17962_v5  ;;  %9590 = vmatprep.subr.bf16.mxu0 %v17962_v5 }
 0x85a   : > { %5879 = vperm.xlu0 %9905, %v5844_v3   ;;  %5611 = vperm.xlu1 %9906, %v5594_v8   ;;  %v17970_v3 = vld [vmem:[#allocation199_spill] sm:$0xff]  ;;  %v9987_v8 = vld [vmem:[#allocation4 + $0x40] sm:$0xff]  }
 0x85b   : > { %v14760_v40 = vmul.f32 %v17970_v3, %v14619_v54  ;;  %994 = vmatmul.mubr.bf16.vlgmr.msra.gmra.mrb[4].mxu0 %v17933_v39  ;;  %v5848_v54 = vunpack.c.h.b16 %v14756_v60  ;;  %v14775_v3 = vmul.f32 %v17972_v20, %v14751_v43  ;;  %v5600_v39 = vunpack.c.l.b16 %v14575_v45  ;;  %v9989_v45 = vld [vmem:[#allocation4 + $0x50] sm:$0xff]  }
 0x85c   : > { %9577 = vmatpush3.bf16.msra.mxu1 %v9970_v17  ;;  %9591 = vmatpush3.bf16.msra.mxu0 %v9987_v8  ;;  %v17976_v8 = vld [vmem:[#allocation115_spill] sm:$0xff] }
 0x85d   : > { %17971 = vst [vmem:[#allocation98_spill] sm:$0xff] %v14760_v40  ;;  %v14771_v33 = vpack.c.bf16 %v14760_v40, %v14747_v50  ;;  %17973 = vst [vmem:[#allocation90_spill] sm:$0xff] %v14775_v3  ;;  %9578 = vmatprep.subr.bf16.mxu1 %v17962_v5  ;;  %9592 = vmatprep.subr.bf16.mxu0 %v17962_v5  ;;  %v14793_v20 = vmul.f32 %v17976_v8, %v14751_v43  ;;  %v17978_v50 = vld [vmem:[#allocation190_spill] sm:$0xff] }
 0x85e   : > { %5885 = vperm.xlu0 %9905, %v5846_v2   ;;  %5617 = vperm.xlu1 %9906, %v5596_v15   ;;  %v14779_v2 = vmul.f32 %v17974_v58, %v14751_v43  ;;  %v9978_v15 = vld [vmem:[#allocation4 + $0x28] sm:$0xff]   ;;  %v14797_v38 = vmul.f32 %v17978_v50, %v14751_v43  ;;  %v17980_v50 = vld [vmem:[#allocation116_spill] sm:$0xff] }
 0x85f   : > { %9606 = vmatprep.mubr.msk.bf16.mxu0 %vm10784_vm9, %v17962_v5  ;;  %v5850_v17 = vunpack.c.h.b16 %v14771_v33  ;;  %17977 = vst [vmem:[#allocation102_spill] sm:$0xff] %v14793_v20 }
 0x860   : > { %17975 = vst [vmem:[#allocation229_spill] sm:$0xff] %v14779_v2  ;;  %9579 = vmatpush3.bf16.msra.mxu1 %v9974_v0  ;;  %v14789_v58 = vpack.c.bf16 %v14779_v2, %v14775_v3  ;;  %17979 = vst [vmem:[#allocation228_spill] sm:$0xff] %v14797_v38  ;;  %9593 = vmatpush3.bf16.msra.mxu0 %v9988_v63  ;;  %v9982_v0 = vld [vmem:[#allocation4 + $0x30] sm:$0xff]   ;;  %v14805_v8 = vpack.c.bf16 %v14797_v38, %v14793_v20  ;;  %v17982_v63 = vld [vmem:[#allocation217_spill] sm:$0xff] }
 0x861   : > { %9580 = vmatprep.subr.bf16.mxu1 %v17962_v5  ;;  %9594 = vmatprep.subr.bf16.mxu0 %v17962_v5  ;;  %v14809_v3 = vmul.f32 %v17980_v50, %v14751_v43  ;;  %v14813_v2 = vmul.f32 %v17982_v63, %v14751_v43  ;;  %v17984_v63 = vld [vmem:[#allocation139_spill] sm:$0xff] }
 0x862   : > { %5891 = vperm.xlu0 %9905, %v5848_v54   ;;  %5623 = vperm.xlu1 %9906, %v5598_v42   ;;  %v5602_v42 = vunpack.c.l.b16 %v14583_v44  ;;  %v6077_v54 = vunpack.c.h.b16 %v14789_v58  ;;  %v9990_v44 = vld [vmem:[#allocation4 + $0x58] sm:$0xff]   ;;  %v14825_v20 = vmul.f32 %v17984_v63, %v14751_v43 }
 0x863   : > { %17981 = vst [vmem:[#allocation94_spill] sm:$0xff] %v14809_v3  ;;  %17983 = vst [vmem:[#allocation105_spill] sm:$0xff] %v14813_v2  ;;  %v14821_v50 = vpack.c.bf16 %v14813_v2, %v14809_v3  ;;  %v17988_v63 = vld [vmem:[#allocation141_spill] sm:$0xff] }
 0x864   : > { %9581 = vmatpush3.bf16.msra.mxu1 %v9978_v15  ;;  %9595 = vmatpush3.bf16.msra.mxu0 %v9989_v45  ;;  %v9986_v15 = vld [vmem:[#allocation4 + $0x38] sm:$0xff]   ;;  %17985 = vst [vmem:[#allocation181_spill] sm:$0xff] %v14825_v20  ;;  %v17986_v45 = vld [vmem:[#allocation204_spill] sm:$0xff] }
 0x865   : > { %9582 = vmatprep.subr.bf16.mxu1 %v17962_v5  ;;  %9596 = vmatprep.subr.bf16.mxu0 %v17962_v5  ;;  %v14829_v38 = vmul.f32 %v17986_v45, %v14751_v43  ;;  %v14841_v45 = vmul.f32 %v17988_v63, %v14751_v43  ;;  %v17992_v63 = vld [vmem:[#allocation143_spill] sm:$0xff] }
 0x866   : > { %5897 = vperm.xlu0 %9905, %v5850_v17   ;;  %5629 = vperm.xlu1 %9906, %v5600_v39   ;;  %v5604_v39 = vunpack.c.l.b16 %v14603_v49  ;;  %v6079_v17 = vunpack.c.h.b16 %v14805_v8  ;;  %v9991_v49 = vld [vmem:[#allocation4 + $0x60] sm:$0xff]  }
 0x867   : > { %17987 = vst [vmem:[#allocation100_spill] sm:$0xff] %v14829_v38  ;;  %17989 = vst [vmem:[#allocation97_spill] sm:$0xff] %v14841_v45 }
 0x868   : > { %9583 = vmatpush3.bf16.msra.mxu1 %v9982_v0  ;;  %9597 = vmatpush3.bf16.msra.mxu0 %v9990_v44  ;;  %v6081_v0 = vunpack.c.h.b16 %v14821_v50  ;;  %v17990_v44 = vld [vmem:[#allocation219_spill] sm:$0xff] }
 0x869   : > { %9584 = vmatprep.subr.bf16.mxu1 %v17962_v5  ;;  %9598 = vmatprep.subr.bf16.mxu0 %v17962_v5  ;;  %v14845_v3 = vmul.f32 %v17990_v44, %v14751_v43  ;;  %v14857_v44 = vmul.f32 %v17992_v63, %v14751_v43  ;;  %v17996_v63 = vld [vmem:[#allocation145_spill] sm:$0xff] }
 0x86a   : > { %6096 = vperm.xlu0 %9905, %v6077_v54   ;;  %5635 = vperm.xlu1 %9906, %v5602_v42   ;;  %v5606_v42 = vunpack.c.l.b16 %v14624_v4  ;;  %v14837_v54 = vpack.c.bf16 %v14829_v38, %v14825_v20  ;;  %v5608_v4 = vunpack.c.l.b16 %v14637_v47  ;;  %v9993_v38 = vld [vmem:[#allocation4 + $0x70] sm:$0xff]   ;;  %v5835_v47 = vunpack.c.l.b16 %v14666_v55 }
 0x86b   : > { %17991 = vst [vmem:[#allocation178_spill] sm:$0xff] %v14845_v3  ;;  %17993 = vst [vmem:[#allocation91_spill] sm:$0xff] %v14857_v44  ;;  %v5837_v55 = vunpack.c.l.b16 %v14679_v53  ;;  %v5839_v53 = vunpack.c.l.b16 %v14694_v32 }
 0x86c   : > { %9585 = vmatpush3.bf16.msra.mxu1 %v9986_v15  ;;  %9599 = vmatpush3.bf16.msra.mxu0 %v9991_v49  ;;  %v14853_v15 = vpack.c.bf16 %v14845_v3, %v14841_v45  ;;  %v17994_v49 = vld [vmem:[#allocation206_spill] sm:$0xff]  ;;  %v14872_v45 = vmul.f32 %v17996_v63, %v14751_v43  ;;  %v9994_v3 = vld [vmem:[#allocation4 + $0x78] sm:$0xff]  }
 0x86d   : > { %9610 = vmatprep.subr.bf16.mxu1 %v17962_v5  ;;  %9600 = vmatprep.subr.bf16.mxu0 %v17962_v5  ;;  %v14861_v20 = vmul.f32 %v17994_v49, %v14751_v43  ;;  %v17998_v49 = vld [vmem:[#allocation221_spill] sm:$0xff] }
 0x86e   : > { %6102 = vperm.xlu0 %9905, %v6079_v17   ;;  %5641 = vperm.xlu1 %9906, %v5604_v39   ;;  %v9992_v17 = vld [vmem:[#allocation4 + $0x68] sm:$0xff]   ;;  %v6083_v39 = vunpack.c.h.b16 %v14837_v54  ;;  %17997 = vst [vmem:[#allocation230_spill] sm:$0xff] %v14872_v45 }
 0x86f   : > { %17995 = vst [vmem:[#allocation222_spill] sm:$0xff] %v14861_v20 }
 0x870   : > { %9601 = vmatpush3.bf16.msra.mxu0 %v9992_v17  ;;  %v14876_v17 = vmul.f32 %v17998_v49, %v14751_v43  ;;  %v18001_v49 = vld [vmem:[#allocation147_spill] sm:$0xff] }
 0x871   : > { %9602 = vmatprep.subr.bf16.mxu0 %v17962_v5 }
 0x872   : > { %6108 = vperm.xlu0 %9905, %v6081_v0   ;;  %5647 = vperm.xlu1 %9906, %v5606_v42   ;;  %v6085_v42 = vunpack.c.h.b16 %v14853_v15  ;;  %v14868_v0 = vpack.c.bf16 %v14861_v20, %v14857_v44  ;;  %17999 = vst [vmem:[#allocation35_spill] sm:$0xff] %v14876_v17  ;;  %v14887_v63 = vpack.c.bf16 %v14876_v17, %v14872_v45  ;;  %v18003_v20 = vld [vmem:[#allocation205_spill] sm:$0xff] }
 0x874   : > { %9603 = vmatpush3.bf16.msra.mxu0 %v9993_v38  ;;  %v6087_v44 = vunpack.c.h.b16 %v14868_v0  ;;  %v14891_v38 = vmul.f32 %v18001_v49, %v14751_v43  ;;  %v18005_v49 = vld [vmem:[#allocation149_spill] sm:$0xff] }
 0x875   : > { %9604 = vmatprep.subr.bf16.mxu0 %v17962_v5 }
 0x876   : > { %6114 = vperm.xlu0 %9905, %v6083_v39   ;;  %5653 = vperm.xlu1 %9906, %v5608_v4   ;;  %v18000_v4 = vld [vmem:[#allocation215_spill] sm:$0xff]  ;;  %18002 = vst [vmem:[#allocation191_spill] sm:$0xff] %v14891_v38 }
 0x877   : > { %v14882_v39 = vrot.slane %v14448_v57, %v18000_v4 }
 0x878   : > { %9605 = vmatpush3.bf16.msra.mxu0 %v9994_v3  ;;  %v5841_v3 = vunpack.c.l.b16 %v14707_v7 }
 0x879   : > { %9630 = vmatprep.subr.bf16.mxu0 %v17962_v5  ;;  %v14906_v45 = vmul.f32 %v18005_v49, %v14882_v39  ;;  %v18011_v49 = vld [vmem:[#allocation111_spill] sm:$0xff] }
 0x87a   : > { %6120 = vperm.xlu0 %9905, %v6085_v42   ;;  %5852 = vperm.xlu1 %9906, %v5835_v47   ;;  %v14895_v42 = vmul.f32 %v18003_v20, %v14751_v43  ;;  %v6089_v47 = vunpack.c.h.b16 %v14887_v63  ;;  %v18007_v43 = vld [vmem:[#allocation220_spill] sm:$0xff] }
 0x87b   : > { %18006 = vst [vmem:[#allocation180_spill] sm:$0xff] %v14906_v45  ;;  %v14910_v20 = vmul.f32 %v18007_v43, %v14882_v39  ;;  %v18013_v43 = vld [vmem:[#allocation128_spill] sm:$0xff] }
 0x87c   : > { %18004 = vst [vmem:[#allocation163_spill] sm:$0xff] %v14895_v42  ;;  %v14902_v4 = vpack.c.bf16 %v14895_v42, %v14891_v38  ;;  %v14924_v42 = vmul.f32 %v18011_v49, %v14882_v39  ;;  %v18017_v49 = vld [vmem:[#allocation41_spill] sm:$0xff] }
 0x87d   : > { %18008 = vst [vmem:[#allocation167_spill] sm:$0xff] %v14910_v20 }
 0x87e   : > { %6126 = vperm.xlu0 %9905, %v6087_v44   ;;  %5858 = vperm.xlu1 %9906, %v5837_v55   ;;  %v6091_v32 = vunpack.c.h.b16 %v14902_v4  ;;  %v14916_v44 = vpack.c.bf16 %v14910_v20, %v14906_v45  ;;  %v18009_v55 = vld [vmem:[#allocation37_spill] sm:$0xff]  ;;  %18012 = vst [vmem:[#allocation165_spill] sm:$0xff] %v14924_v42  ;;  %v14934_v45 = vmul.f32 %v18013_v43, %v14882_v39 }
 0x87f   : > { %v14920_v38 = vmul.f32 %v18009_v55, %v14882_v39  ;;  %v18015_v55 = vld [vmem:[#allocation127_spill] sm:$0xff]  ;;  %v18019_v43 = vld [vmem:[#allocation129_spill] sm:$0xff] }
 0x880   : > { %v6318_v7 = vunpack.c.h.b16 %v14916_v44  ;;  %18014 = vst [vmem:[#allocation212_spill] sm:$0xff] %v14934_v45  ;;  %v14938_v20 = vmul.f32 %v18015_v55, %v14882_v39  ;;  %v18021_v55 = vld [vmem:[#allocation153_spill] sm:$0xff] }
 0x881   : > { %18010 = vst [vmem:[#allocation209_spill] sm:$0xff] %v14920_v38 }
 0x882   : > { %6132 = vperm.xlu0 %9905, %v6089_v47   ;;  %5864 = vperm.xlu1 %9906, %v5839_v53   ;;  %v5843_v53 = vunpack.c.l.b16 %v14718_v46  ;;  %v14930_v47 = vpack.c.bf16 %v14924_v42, %v14920_v38  ;;  %18016 = vst [vmem:[#allocation169_spill] sm:$0xff] %v14938_v20  ;;  %v14948_v38 = vmul.f32 %v18017_v49, %v14882_v39  ;;  %v18023_v49 = vld [vmem:[#allocation131_spill] sm:$0xff] }
 0x883   : > { %v14952_v42 = vmul.f32 %v18019_v43, %v14882_v39  ;;  %v18025_v43 = vld [vmem:[#allocation155_spill] sm:$0xff] }
 0x884   : > { %v6320_v46 = vunpack.c.h.b16 %v14930_v47  ;;  %18018 = vst [vmem:[#allocation171_spill] sm:$0xff] %v14948_v38 }
 0x885   : > { %18020 = vst [vmem:[#allocation179_spill] sm:$0xff] %v14952_v42 }
 0x886   : > { %6138 = vperm.xlu0 %9905, %v6091_v32   ;;  %5870 = vperm.xlu1 %9906, %v5841_v3   ;;  %v5845_v3 = vunpack.c.l.b16 %v14733_v29  ;;  %v14944_v32 = vpack.c.bf16 %v14938_v20, %v14934_v45  ;;  %v14962_v45 = vmul.f32 %v18021_v55, %v14882_v39  ;;  %v14966_v20 = vmul.f32 %v18023_v49, %v14882_v39  ;;  %v18027_v55 = vld [vmem:[#allocation133_spill] sm:$0xff] }
 0x887   : > { %v18029_v49 = vld [vmem:[#allocation157_spill] sm:$0xff] }
 0x888   : > { %v6322_v29 = vunpack.c.h.b16 %v14944_v32  ;;  %18022 = vst [vmem:[#allocation200_spill] sm:$0xff] %v14962_v45  ;;  %18024 = vst [vmem:[#allocation173_spill] sm:$0xff] %v14966_v20 }
 0x88a   : > { %6337 = vperm.xlu0 %9905, %v6318_v7   ;;  %5876 = vperm.xlu1 %9906, %v5843_v53   ;;  %v5847_v53 = vunpack.c.l.b16 %v14756_v60  ;;  %v14958_v7 = vpack.c.bf16 %v14952_v42, %v14948_v38  ;;  %v14976_v38 = vmul.f32 %v18025_v43, %v14882_v39  ;;  %v14980_v42 = vmul.f32 %v18027_v55, %v14882_v39  ;;  %v18031_v43 = vld [vmem:[#allocation135_spill] sm:$0xff] }
 0x88c   : > { %v6324_v60 = vunpack.c.h.b16 %v14958_v7  ;;  %18026 = vst [vmem:[#allocation214_spill] sm:$0xff] %v14976_v38  ;;  %18028 = vst [vmem:[#allocation183_spill] sm:$0xff] %v14980_v42 }
 0x88e   : > { %6343 = vperm.xlu0 %9905, %v6320_v46   ;;  %5882 = vperm.xlu1 %9906, %v5845_v3   ;;  %v5849_v3 = vunpack.c.l.b16 %v14771_v33  ;;  %v14972_v46 = vpack.c.bf16 %v14966_v20, %v14962_v45  ;;  %v14990_v45 = vmul.f32 %v18029_v49, %v14882_v39  ;;  %v14994_v20 = vmul.f32 %v18031_v43, %v14882_v39  ;;  %v18034_v49 = vld [vmem:[#allocation159_spill] sm:$0xff]  ;;  %v18036_v43 = vld [vmem:[#allocation137_spill] sm:$0xff] }
 0x890   : > { %v6326_v33 = vunpack.c.h.b16 %v14972_v46  ;;  %18030 = vst [vmem:[#allocation166_spill] sm:$0xff] %v14990_v45  ;;  %18032 = vst [vmem:[#allocation170_spill] sm:$0xff] %v14994_v20 }
 0x892   : > { %6349 = vperm.xlu0 %9905, %v6322_v29   ;;  %5888 = vperm.xlu1 %9906, %v5847_v53   ;;  %v6076_v53 = vunpack.c.l.b16 %v14789_v58  ;;  %v14986_v29 = vpack.c.bf16 %v14980_v42, %v14976_v38  ;;  %v15004_v38 = vpack.c.bf16 %v14994_v20, %v14990_v45  ;;  %v15008_v42 = vmul.f32 %v18034_v49, %v14882_v39  ;;  %v18038_v45 = vld [vmem:[#allocation60_spill] sm:$0xff]  ;;  %v18040_v49 = vld [vmem:[#allocation118_spill] sm:$0xff] }
 0x894   : > { %v6328_v55 = vunpack.c.h.b16 %v14986_v29  ;;  %18035 = vst [vmem:[#allocation213_spill] sm:$0xff] %v15008_v42 }
 0x896   : > { %6355 = vperm.xlu0 %9905, %v6324_v60   ;;  %5894 = vperm.xlu1 %9906, %v5849_v3   ;;  %v6078_v3 = vunpack.c.l.b16 %v14805_v8  ;;  %v18033_v60 = vld [vmem:[#allocation110_spill] sm:$0xff]  ;;  %v6080_v8 = vunpack.c.l.b16 %v14821_v50  ;;  %v6082_v50 = vunpack.c.l.b16 %v14837_v54  ;;  %v6084_v54 = vunpack.c.l.b16 %v14853_v15 }
 0x897   : > { %v14999_v58 = vrot.slane %v14448_v57, %v18033_v60  ;;  %v6086_v15 = vunpack.c.l.b16 %v14868_v0  ;;  %v6088_v0 = vunpack.c.l.b16 %v14887_v63  ;;  %v6090_v63 = vunpack.c.l.b16 %v14902_v4 }
 0x898   : > { %v6317_v4 = vunpack.c.l.b16 %v14916_v44  ;;  %v6319_v44 = vunpack.c.l.b16 %v14930_v47 }
 0x899   : > { %v15022_v20 = vmul.f32 %v18038_v45, %v14999_v58  ;;  %v15026_v17 = vmul.f32 %v18040_v49, %v14999_v58  ;;  %v18042_v45 = vld [vmem:[#allocation146_spill] sm:$0xff]  ;;  %v18044_v49 = vld [vmem:[#allocation120_spill] sm:$0xff] }
 0x89a   : > { %6361 = vperm.xlu0 %9905, %v6326_v33   ;;  %6093 = vperm.xlu1 %9906, %v6076_v53   ;;  %v15012_v33 = vmul.f32 %v18036_v43, %v14882_v39  ;;  %v6330_v53 = vunpack.c.h.b16 %v15004_v38 }
 0x89b   : > { %18039 = vst [vmem:[#allocation189_spill] sm:$0xff] %v15022_v20  ;;  %18041 = vst [vmem:[#allocation194_spill] sm:$0xff] %v15026_v17  ;;  %v15036_v43 = vpack.c.bf16 %v15026_v17, %v15022_v20 }
 0x89c   : > { %18037 = vst [vmem:[#allocation168_spill] sm:$0xff] %v15012_v33  ;;  %v15018_v60 = vpack.c.bf16 %v15012_v33, %v15008_v42  ;;  %v15040_v42 = vmul.f32 %v18042_v45, %v14999_v58  ;;  %v15044_v33 = vmul.f32 %v18044_v49, %v14999_v58  ;;  %v18046_v45 = vld [vmem:[#allocation43_spill] sm:$0xff]  ;;  %v18048_v49 = vld [vmem:[#allocation121_spill] sm:$0xff] }
 0x89d   : > { %v15058_v17 = vmul.f32 %v18046_v45, %v14999_v58  ;;  %v15062_v40 = vmul.f32 %v18048_v49, %v14999_v58  ;;  %v18050_v45 = vld [vmem:[#allocation151_spill] sm:$0xff]  ;;  %v18052_v49 = vld [vmem:[#allocation122_spill] sm:$0xff] }
 0x89e   : > { %6367 = vperm.xlu0 %9905, %v6328_v55   ;;  %6099 = vperm.xlu1 %9906, %v6078_v3   ;;  %v6332_v3 = vunpack.c.h.b16 %v15018_v60  ;;  %18043 = vst [vmem:[#allocation172_spill] sm:$0xff] %v15040_v42  ;;  %18045 = vst [vmem:[#allocation175_spill] sm:$0xff] %v15044_v33  ;;  %v15054_v20 = vpack.c.bf16 %v15044_v33, %v15040_v42  ;;  %v15076_v33 = vmul.f32 %v18050_v45, %v14999_v58  ;;  %v18054_v45 = vld [vmem:[#allocation49_spill] sm:$0xff] }
 0x89f   : > { %18047 = vst [vmem:[#allocation202_spill] sm:$0xff] %v15058_v17  ;;  %18049 = vst [vmem:[#allocation182_spill] sm:$0xff] %v15062_v40  ;;  %v15072_v42 = vpack.c.bf16 %v15062_v40, %v15058_v17  ;;  %v15080_v26 = vmul.f32 %v18052_v49, %v14999_v58  ;;  %v15094_v40 = vmul.f32 %v18054_v45, %v14999_v58  ;;  %v18056_v49 = vld [vmem:[#allocation123_spill] sm:$0xff]  ;;  %v18058_v45 = vld [vmem:[#allocation152_spill] sm:$0xff] }
 0x8a0   : > { %18051 = vst [vmem:[#allocation201_spill] sm:$0xff] %v15076_v33  ;;  %v15098_v35 = vmul.f32 %v18056_v49, %v14999_v58  ;;  %v18060_v49 = vld [vmem:[#allocation124_spill] sm:$0xff] }
 0x8a1   : > { %v15028_v39 = vpop.permute.xlu0 %5394  ;;  %v15030_v55 = vpop.permute.xlu1 %5370  ;;  %18053 = vst [vmem:[#allocation186_spill] sm:$0xff] %v15080_v26  ;;  %v15090_v17 = vpack.c.bf16 %v15080_v26, %v15076_v33  ;;  %18055 = vst [vmem:[#allocation55_spill] sm:$0xff] %v15094_v40  ;;  %v15112_v26 = vmul.f32 %v18058_v45, %v14999_v58  ;;  %v15116_v37 = vmul.f32 %v18060_v49, %v14999_v58  ;;  %v18062_v45 = vld [vmem:[#allocation56_spill] sm:$0xff]  ;;  %v18064_v49 = vld [vmem:[#allocation126_spill] sm:$0xff] }
 0x8a2   : > { %6373 = vperm.xlu0 %9905, %v6330_v53   ;;  %6105 = vperm.xlu1 %9906, %v6080_v8   ;;  %v6559_v8 = vunpack.c.h.b16 %v15036_v43  ;;  %18057 = vst [vmem:[#allocation193_spill] sm:$0xff] %v15098_v35  ;;  %v15108_v33 = vpack.c.bf16 %v15098_v35, %v15094_v40  ;;  %v15130_v35 = vmul.f32 %v18062_v45, %v14999_v58 }
 0x8a3   : > { %18059 = vst [vmem:[#allocation196_spill] sm:$0xff] %v15112_v26  ;;  %18061 = vst [vmem:[#allocation185_spill] sm:$0xff] %v15116_v37  ;;  %v15126_v40 = vpack.c.bf16 %v15116_v37, %v15112_v26  ;;  %v15134_v59 = vmul.f32 %v18064_v49, %v14999_v58  ;;  %v18068_v49 = vld [vmem:[#allocation158_spill] sm:$0xff] }
 0x8a4   : > { %18063 = vst [vmem:[#allocation33_spill] sm:$0xff] %v15130_v35  ;;  %v15151_v24 = vmul.f32 %v18068_v49, %v14999_v58  ;;  %v18072_v49 = vld [vmem:[#allocation162_spill] sm:$0xff] }
 0x8a5   : > { %v15046_v2 = vpop.permute.xlu0 %5415  ;;  %v15048_v53 = vpop.permute.xlu1 %5373  ;;  %18065 = vst [vmem:[#allocation203_spill] sm:$0xff] %v15134_v59  ;;  %v6569_v37 = vunpack.c.h.b16 %v15126_v40  ;;  %v15147_v45 = vpack.c.bf16 %v15134_v59, %v15130_v35 }
 0x8a6   : > { %6379 = vperm.xlu0 %9905, %v6332_v3   ;;  %6111 = vperm.xlu1 %9906, %v6082_v50   ;;  %v6561_v50 = vunpack.c.h.b16 %v15054_v20  ;;  %18069 = vst [vmem:[#allocation174_spill] sm:$0xff] %v15151_v24 }
 0x8a7   : > { %v6571_v31 = vunpack.c.h.b16 %v15147_v45 }
 0x8a9   : > { %v15064_v19 = vpop.permute.xlu0 %5614  ;;  %v15066_v3 = vpop.permute.xlu1 %5376 }
 0x8aa   : > { %6578 = vperm.xlu0 %9905, %v6559_v8   ;;  %6117 = vperm.xlu1 %9906, %v6084_v54   ;;  %v6563_v54 = vunpack.c.h.b16 %v15072_v42  ;;  %v5429_v27 = vrot.slane %v15066_v3, %v12660_v41 }
 0x8ad   : > { %v15082_v51 = vpop.permute.xlu0 %5620  ;;  %v15084_v8 = vpop.permute.xlu1 %5379 }
 0x8ae   : > { %6584 = vperm.xlu0 %9905, %v6561_v50   ;;  %6123 = vperm.xlu1 %9906, %v6086_v15   ;;  %v6565_v15 = vunpack.c.h.b16 %v15090_v17 }
 0x8b1   : > { %v15100_v61 = vpop.permute.xlu0 %5626  ;;  %v15102_v50 = vpop.permute.xlu1 %5382 }
 0x8b2   : > { %6590 = vperm.xlu0 %9905, %v6563_v54   ;;  %6129 = vperm.xlu1 %9906, %v6088_v0   ;;  %v6567_v0 = vunpack.c.h.b16 %v15108_v33 }
 0x8b5   : > { %v15118_v12 = vpop.permute.xlu0 %5632  ;;  %v15120_v54 = vpop.permute.xlu1 %5385 }
 0x8b6   : > { %6596 = vperm.xlu0 %9905, %v6565_v15   ;;  %6135 = vperm.xlu1 %9906, %v6090_v63   ;;  %v18066_v63 = vld [vmem:[#allocation34_spill] sm:$0xff] }
 0x8b7   : > { %v18067_v25 = vsub.s32 6, %v18066_v63 }
 0x8b9   : > { %v15136_v34 = vpop.permute.xlu0 %5638  ;;  %v5389_v15 = vpop.permute.xlu1 %5388  ;;  %v15142_v26 = vrot.slane %v14448_v57, %v18067_v25  ;;  %v6321_v25 = vunpack.c.l.b16 %v14944_v32  ;;  %v6323_v32 = vunpack.c.l.b16 %v14958_v7 }
 0x8ba   : > { %6602 = vperm.xlu0 %9905, %v6567_v0   ;;  %6334 = vperm.xlu1 %9906, %v6317_v4   ;;  %v18070_v0 = vld [vmem:[#allocation39_spill] sm:$0xff] }
 0x8bb   : > { %v15155_v4 = vmul.f32 %v18070_v0, %v14999_v58  ;;  %v15167_v59 = vmul.f32 %v18072_v49, %v15142_v26  ;;  %v18074_v58 = vld [vmem:[#allocation132_spill] sm:$0xff]  ;;  %v18077_v49 = vld [vmem:[#allocation71_spill] sm:$0xff] }
 0x8bc   : > { %v15171_v0 = vmul.f32 %v18074_v58, %v15142_v26  ;;  %v18079_v58 = vld [vmem:[#allocation134_spill] sm:$0xff] }
 0x8bd   : > { %18071 = vst [vmem:[#allocation218_spill] sm:$0xff] %v15155_v4  ;;  %v15157_v47 = vpop.permute.xlu0 %5644  ;;  %v5392_v13 = vpop.permute.xlu1 %5391  ;;  %v15163_v35 = vpack.c.bf16 %v15155_v4, %v15151_v24  ;;  %18073 = vst [vmem:[#allocation210_spill] sm:$0xff] %v15167_v59  ;;  %v15183_v4 = vmul.f32 %v18077_v49, %v15142_v26  ;;  %v15187_v6 = vmul.f32 %v18079_v58, %v15142_v26  ;;  %v6325_v58 = vunpack.c.l.b16 %v14972_v46 }
 0x8be   : > { %6608 = vperm.xlu0 %9905, %v6569_v37   ;;  %6340 = vperm.xlu1 %9906, %v6319_v44   ;;  %18075 = vst [vmem:[#allocation188_spill] sm:$0xff] %v15171_v0  ;;  %v15179_v24 = vpack.c.bf16 %v15171_v0, %v15167_v59  ;;  %v5420_v59 = vrot.slane %v15030_v55, %v12650_v28  ;;  %v18082_v0 = vld [vmem:[#allocation44_spill] sm:$0xff] }
 0x8bf   : > { %v6573_v44 = vunpack.c.h.b16 %v15163_v35  ;;  %18078 = vst [vmem:[#allocation192_spill] sm:$0xff] %v15183_v4  ;;  %18080 = vst [vmem:[#allocation198_spill] sm:$0xff] %v15187_v6  ;;  %v5434_v49 = vrot.slane %v15084_v8, %v12663_v11  ;;  %v15202_v48 = vmul.f32 %v18082_v0, %v15142_v26  ;;  %v15209_v3 = vpack.c.bf16 %v15187_v6, %v15183_v4  ;;  %v18084_v55 = vld [vmem:[#allocation136_spill] sm:$0xff] }
 0x8c0   : > { %18076 = vst [vmem:[#allocation207_spill] sm:$0xff] %v15179_v24  ;;  %v5444_v46 = vrot.slane %v15120_v54, %v12670_v36  ;;  %v5454_v6 = vrot.slane %v5392_v13, %v12677_v1 }
 0x8c1   : > { %v15173_v18 = vpop.permute.xlu0 %5650  ;;  %v5398_v37 = vpop.permute.xlu1 %5397  ;;  %18083 = vst [vmem:[#allocation176_spill] sm:$0xff] %v15202_v48 }
 0x8c2   : > { %6614 = vperm.xlu0 %9905, %v6571_v31   ;;  %6346 = vperm.xlu1 %9906, %v6321_v25   ;;  %v5424_v31 = vrot.slane %v15048_v53, %v12653_v30  ;;  %v5439_v53 = vrot.slane %v15102_v50, %v12667_v56 }
 0x8c4   : > { %v5425_v8 = vsel %vm2734_vm1, %v5424_v31, %v5420_v59  ;;  %v18086_v59 = vld [vmem:[#allocation77_spill] sm:$0xff] }
 0x8c5   : > { %v15191_v25 = vpop.permute.xlu0 %5656  ;;  %v5401_v7 = vpop.permute.xlu1 %5400  ;;  %v5430_v50 = vsel %vm2741_vm2, %v5429_v27, %v5425_v8  ;;  %v15227_v31 = vmul.f32 %v18086_v59, %v15142_v26  ;;  %v5464_v8 = vrot.slane %v5398_v37, %v12696_v62 }
 0x8c6   : > { %18081 = vst [vmem:[#allocation208_spill] sm:$0xff] %v15191_v25  ;;  %6620 = vperm.xlu0 %9905, %v6573_v44   ;;  %6352 = vperm.xlu1 %9906, %v6323_v32   ;;  %v6800_v25 = vunpack.c.h.b16 %v15179_v24  ;;  %v15213_v32 = vmul.f32 %v18084_v55, %v15142_v26  ;;  %v5449_v24 = vrot.slane %v5389_v15, %v12673_v9  ;;  %v6327_v55 = vunpack.c.l.b16 %v14986_v29  ;;  %v18088_v15 = vld [vmem:[#allocation138_spill] sm:$0xff] }
 0x8c7   : > { %v5435_v4 = vsel %vm2748_vm3, %v5434_v49, %v5430_v50  ;;  %18087 = vst [vmem:[#allocation187_spill] sm:$0xff] %v15227_v31  ;;  %v18091_v50 = vld [vmem:[#allocation79_spill] sm:$0xff] }
 0x8c8   : > { %v5440_v54 = vsel %vm2755_vm4, %v5439_v53, %v5435_v4  ;;  %v15233_v27 = vpack.c.bf16 %v15213_v32, %v15202_v48  ;;  %v6329_v4 = vunpack.c.l.b16 %v15004_v38  ;;  %v15248_v59 = vmul.f32 %v18091_v50, %v15142_v26 }
 0x8c9   : > { %v15218_v0 = vpop.permute.xlu0 %5855  ;;  %v5404_v44 = vpop.permute.xlu1 %5403  ;;  %v5445_v13 = vsel %vm18089_vm0, %v5444_v46, %v5440_v54  ;;  %v5459_v54 = vrot.slane %v15028_v39, %v12680_v10  ;;  %v6331_v50 = vunpack.c.l.b16 %v15018_v60  ;;  %vm18100_vm0 = vcmask 786112  }
 0x8ca   : > { %18085 = vst [vmem:[#allocation119_spill] sm:$0xff] %v15218_v0  ;;  %6819 = vperm.xlu0 %9905, %v6800_v25   ;;  %6358 = vperm.xlu1 %9906, %v6325_v58   ;;  %v6802_v0 = vunpack.c.h.b16 %v15209_v3  ;;  %v15237_v25 = vmul.f32 %v18088_v15, %v15142_v26  ;;  %v5450_v58 = vsel %vm18090_vm11, %v5449_v24, %v5445_v13  ;;  %18092 = vst [vmem:[#allocation125_spill] sm:$0xff] %v15248_v59  ;;  %v18093_v15 = vld [vmem:[#allocation161_spill] sm:$0xff]  ;;  %vm18116_vm11 = vcmask 392512  }
 0x8cb   : > { %v5455_v53 = vsel %vm2776_vm7, %v5454_v6, %v5450_v58  ;;  %v15252_v46 = vmul.f32 %v18093_v15, %v15142_v26  ;;  %v5469_v24 = vrot.slane %v5401_v7, %v12703_v23  ;;  %v5474_v38 = vrot.slane %v5404_v44, %v12714_v16  ;;  %v18095_v15 = vld [vmem:[#allocation81_spill] sm:$0xff] }
 0x8cc   : > { %v15260_v6 = vpack.c.bf16 %v15237_v25, %v15227_v31  ;;  %v5460_v13 = vsel %vm2783_vm8, %v5459_v54, %v5455_v53  ;;  %v15272_v31 = vmul.f32 %v18095_v15, %v15142_v26  ;;  %v18101_v15 = vld [vmem:[#allocation54_spill] sm:$0xff] }
 0x8cd   : > { %v15240_v49 = vpop.permute.xlu0 %5861  ;;  %v5407_v29 = vpop.permute.xlu1 %5406  ;;  %v5465_v39 = vsel %vm18094_vm5, %v5464_v8, %v5460_v13  ;;  %v15278_v53 = vpack.c.bf16 %v15252_v46, %v15248_v59  ;;  %v18113_v59 = vld [vmem:[#allocation93_spill] sm:$0xff]  ;;  %vm18119_vm5 = vcmask 458112  }
 0x8ce   : > { %6825 = vperm.xlu0 %9905, %v6802_v0   ;;  %6364 = vperm.xlu1 %9906, %v6327_v55   ;;  %v6804_v0 = vunpack.c.h.b16 %v15233_v27  ;;  %v5479_v58 = vrot.slane %v5407_v29, %v12717_v22  ;;  %18096 = vst [vmem:[#allocation197_spill] sm:$0xff] %v15272_v31  ;;  %v5470_v44 = vsel %vm18097_vm10, %v5469_v24, %v5465_v39  ;;  %v6806_v48 = vunpack.c.h.b16 %v15260_v6  ;;  %v18098_v29 = vld [vmem:[#allocation144_spill] sm:$0xff] }
 0x8cf   : > { %v5475_v8 = vsel %vm18100_vm0, %v5474_v38, %v5470_v44  ;;  %v5494_v24 = vrot.slane %v15046_v2, %v17790_v14  ;;  %v6558_v39 = vunpack.c.l.b16 %v15036_v43  ;;  %v6808_v44 = vunpack.c.h.b16 %v15278_v53 }
 0x8d0   : > { %vm18126_vm10 = vcmask 654912   ;;  %vm18129_vm0 = vcmask 720512  }
 0x8d1   : > { %v15263_v37 = vpop.permute.xlu0 %5867  ;;  %v5410_v55 = vpop.permute.xlu1 %5409 }
 0x8d2   : > { %6831 = vperm.xlu0 %9905, %v6804_v0   ;;  %6370 = vperm.xlu1 %9906, %v6329_v4   ;;  %v5484_v7 = vrot.slane %v5410_v55, %v12726_v21  ;;  %v15282_v4 = vmul.f32 %v18098_v29, %v15142_v26  ;;  %v5480_v0 = vsel %vm2811_vm12, %v5479_v58, %v5475_v8  ;;  %v9995_v8 = vld [vmem:[#allocation4 + $0x80] sm:$0xff]  }
 0x8d3   : > { %v15295_v29 = vmul.f32 %v18101_v15, %v15142_v26 }
 0x8d4   : > { %18099 = vst [vmem:[#allocation112_spill] sm:$0xff] %v15282_v4  ;;  %v5485_v13 = vsel %vm2818_vm13, %v5484_v7, %v5480_v0  ;;  %v15301_v58 = vpack.c.bf16 %v15282_v4, %v15272_v31 }
 0x8d5   : > { %v15285_v54 = vpop.permute.xlu0 %5873  ;;  %v5413_v60 = vpop.permute.xlu1 %5412  ;;  %18102 = vst [vmem:[#allocation211_spill] sm:$0xff] %v15295_v29 }
 0x8d6   : > { %v5489_v55 = vrot.slane %v5413_v60, %v17781_v52  ;;  %6837 = vperm.xlu0 %9905, %v6806_v48   ;;  %6376 = vperm.xlu1 %9906, %v6331_v50   ;;  %v18103_v48 = vld [vmem:[#allocation63_spill] sm:$0xff] }
 0x8d7   : > { %v15305_v50 = vmul.f32 %v18103_v48, %v15142_v26  ;;  %v6810_v48 = vunpack.c.h.b16 %v15301_v58 }
 0x8d8   : > { %v5490_v38 = vsel %vm2825_vm14, %v5489_v55, %v5485_v13  ;;  %v6560_v55 = vunpack.c.l.b16 %v15054_v20  ;;  %v18105_v13 = vsub.s32 7, %v18066_v63  ;;  %v5665_v20 = vrot.slane %v15064_v19, %v12653_v30 }
 0x8d9   : > { %18104 = vst [vmem:[#allocation113_spill] sm:$0xff] %v15305_v50  ;;  %v15307_v2 = vpop.permute.xlu0 %5879  ;;  %v5612_v7 = vpop.permute.xlu1 %5611  ;;  %v5495_v43 = vsel %vm2832_vm15, %v5494_v24, %v5490_v38  ;;  %v15320_v31 = vpack.c.bf16 %v15305_v50, %v15295_v29  ;;  %v18106_v24 = vld [vmem:[#allocation87_spill] sm:$0xff]  ;;  %v18108_v38 = vld [vmem:[#allocation150_spill] sm:$0xff] }
 0x8da   : > { %6843 = vperm.xlu0 %9905, %v6808_v44   ;;  %6575 = vperm.xlu1 %9906, %v6558_v39   ;;  %v5496_v60 = vpack.c.b16 %v5495_v43, %v5495_v43  ;;  %v5661_v0 = vrot.slane %v5612_v7, %v12650_v28  ;;  %v15315_v15 = vrot.slane %v14448_v57, %v18105_v13  ;;  %v9996_v7 = vld [vmem:[#allocation4 + $0x88] sm:$0xff]   ;;  %v18110_v13 = vld [vmem:[#allocation66_spill] sm:$0xff] }
 0x8db   : > { %v15324_v39 = vmul.f32 %v18106_v24, %v15142_v26  ;;  %v15328_v44 = vmul.f32 %v18108_v38, %v15142_v26  ;;  %v6562_v26 = vunpack.c.l.b16 %v15072_v42  ;;  %v5675_v42 = vrot.slane %v15082_v51, %v12663_v11 }
 0x8dc   : > { %9587 = vmatmul.mubr.bf16.vlgmr.msra.gmra.mrb[4].mxu1 %v5496_v60  ;;  %v5666_v60 = vsel %vm2734_vm1, %v5665_v20, %v5661_v0  ;;  %v15341_v24 = vmul.f32 %v18110_v13, %v15315_v15  ;;  %v6564_v13 = vunpack.c.l.b16 %v15090_v17  ;;  %v5685_v17 = vrot.slane %v15100_v61, %v12670_v36 }
 0x8dd   : > { %18107 = vst [vmem:[#allocation199_spill] sm:$0xff] %v15324_v39  ;;  %18109 = vst [vmem:[#allocation114_spill] sm:$0xff] %v15328_v44  ;;  %v15332_v57 = vpop.permute.xlu0 %5885  ;;  %v5618_v63 = vpop.permute.xlu1 %5617  ;;  %9611 = vmatpush3.bf16.msra.mxu1 %v9995_v8  ;;  %9626 = vmatprep.mubr.msk.bf16.mxu1 %vm10784_vm9, %v17962_v5  ;;  %v6812_v8 = vunpack.c.h.b16 %v15320_v31  ;;  %v15348_v38 = vpack.c.bf16 %v15328_v44, %v15324_v39 }
 0x8de   : > { %v5670_v43 = vrot.slane %v5618_v63, %v12660_v41  ;;  %6849 = vperm.xlu0 %9905, %v6810_v48   ;;  %6581 = vperm.xlu1 %9906, %v6560_v55   ;;  %v18111_v55 = vld [vmem:[#allocation47_spill] sm:$0xff]  ;;  %v9997_v63 = vld [vmem:[#allocation4 + $0x90] sm:$0xff]  }
 0x8df   : > { %9612 = vmatprep.subr.bf16.mxu1 %v17962_v5  ;;  %v15352_v48 = vmul.f32 %v18111_v55, %v15315_v15  ;;  %v15363_v55 = vmul.f32 %v18113_v59, %v15315_v15  ;;  %v6814_v44 = vunpack.c.h.b16 %v15348_v38 }
 0x8e0   : > { %v5671_v19 = vsel %vm2741_vm2, %v5670_v43, %v5666_v60 }
 0x8e1   : > { %18112 = vst [vmem:[#allocation216_spill] sm:$0xff] %v15352_v48  ;;  %v15356_v0 = vpop.permute.xlu0 %5891  ;;  %v5624_v20 = vpop.permute.xlu1 %5623  ;;  %9613 = vmatpush3.bf16.msra.mxu1 %v9996_v7  ;;  %v5676_v60 = vsel %vm2748_vm3, %v5675_v42, %v5671_v19  ;;  %v15370_v7 = vpack.c.bf16 %v15352_v48, %v15341_v24  ;;  %v9998_v42 = vld [vmem:[#allocation4 + $0x98] sm:$0xff]   ;;  %v18117_v48 = vld [vmem:[#allocation72_spill] sm:$0xff] }
 0x8e2   : > { %v5680_v43 = vrot.slane %v5624_v20, %v12667_v56  ;;  %6855 = vperm.xlu0 %9905, %v6812_v8   ;;  %6587 = vperm.xlu1 %9906, %v6562_v26   ;;  %v18114_v26 = vld [vmem:[#allocation42_spill] sm:$0xff] }
 0x8e3   : > { %9614 = vmatprep.subr.bf16.mxu1 %v17962_v5  ;;  %v15374_v8 = vmul.f32 %v18114_v26, %v15315_v15  ;;  %v15385_v26 = vmul.f32 %v18117_v48, %v15315_v15  ;;  %v7041_v39 = vunpack.c.h.b16 %v15370_v7 }
 0x8e4   : > { %v5681_v51 = vsel %vm2755_vm4, %v5680_v43, %v5676_v60  ;;  %v6566_v60 = vunpack.c.l.b16 %v15108_v33  ;;  %v5695_v33 = vrot.slane %v15118_v12, %v12677_v1 }
 0x8e5   : > { %18115 = vst [vmem:[#allocation115_spill] sm:$0xff] %v15374_v8  ;;  %v15378_v19 = vpop.permute.xlu0 %5897  ;;  %v5630_v59 = vpop.permute.xlu1 %5629  ;;  %9615 = vmatpush3.bf16.msra.mxu1 %v9997_v63  ;;  %v5686_v43 = vsel %vm18116_vm11, %v5685_v17, %v5681_v51  ;;  %18118 = vst [vmem:[#allocation190_spill] sm:$0xff] %v15385_v26  ;;  %v15392_v63 = vpack.c.bf16 %v15374_v8, %v15363_v55  ;;  %v9999_v17 = vld [vmem:[#allocation4 + $0xa0] sm:$0xff]   ;;  %vm18132_vm11 = vcmask 786112  }
 0x8e6   : > { %v5690_v20 = vrot.slane %v5630_v59, %v12673_v9  ;;  %6861 = vperm.xlu0 %9905, %v6814_v44   ;;  %6593 = vperm.xlu1 %9906, %v6564_v13   ;;  %v18120_v44 = vld [vmem:[#allocation53_spill] sm:$0xff]  ;;  %v18122_v8 = vld [vmem:[#allocation74_spill] sm:$0xff] }
 0x8e7   : > { %9616 = vmatprep.subr.bf16.mxu1 %v17962_v5  ;;  %v15396_v13 = vmul.f32 %v18120_v44, %v15315_v15  ;;  %v15407_v44 = vmul.f32 %v18122_v8, %v15315_v15  ;;  %v7043_v50 = vunpack.c.h.b16 %v15392_v63 }
 0x8e8   : > { %v5691_v61 = vsel %vm18119_vm5, %v5690_v20, %v5686_v43  ;;  %v6568_v43 = vunpack.c.l.b16 %v15126_v40  ;;  %v5705_v40 = vrot.slane %v15136_v34, %v12696_v62  ;;  %vm18146_vm5 = vcmask 392512  }
 0x8e9   : > { %18121 = vst [vmem:[#allocation116_spill] sm:$0xff] %v15396_v13  ;;  %v15400_v51 = vpop.permute.xlu0 %6096  ;;  %v5636_v48 = vpop.permute.xlu1 %5635  ;;  %9617 = vmatpush3.bf16.msra.mxu1 %v9998_v42  ;;  %v5696_v20 = vsel %vm2776_vm7, %v5695_v33, %v5691_v61  ;;  %18123 = vst [vmem:[#allocation217_spill] sm:$0xff] %v15407_v44  ;;  %v15414_v42 = vpack.c.bf16 %v15396_v13, %v15385_v26  ;;  %v10000_v33 = vld [vmem:[#allocation4 + $0xa8] sm:$0xff]  }
 0x8ea   : > { %v5700_v59 = vrot.slane %v5636_v48, %v12680_v10  ;;  %7060 = vperm.xlu0 %9905, %v7041_v39   ;;  %6599 = vperm.xlu1 %9906, %v6566_v60   ;;  %v18124_v39 = vld [vmem:[#allocation156_spill] sm:$0xff]  ;;  %v18127_v13 = vld [vmem:[#allocation99_spill] sm:$0xff] }
 0x8eb   : > { %9618 = vmatprep.subr.bf16.mxu1 %v17962_v5  ;;  %v15418_v60 = vmul.f32 %v18124_v39, %v15315_v15  ;;  %v15429_v39 = vmul.f32 %v18127_v13, %v15315_v15  ;;  %v7045_v29 = vunpack.c.h.b16 %v15414_v42 }
 0x8ec   : > { %v5701_v12 = vsel %vm2783_vm8, %v5700_v59, %v5696_v20  ;;  %v6570_v20 = vunpack.c.l.b16 %v15147_v45  ;;  %v5715_v45 = vrot.slane %v15157_v47, %v12714_v16 }
 0x8ed   : > { %18125 = vst [vmem:[#allocation139_spill] sm:$0xff] %v15418_v60  ;;  %v15422_v61 = vpop.permute.xlu0 %6102  ;;  %v5642_v8 = vpop.permute.xlu1 %5641  ;;  %9619 = vmatpush3.bf16.msra.mxu1 %v9999_v17  ;;  %v5706_v59 = vsel %vm18126_vm10, %v5705_v40, %v5701_v12  ;;  %18128 = vst [vmem:[#allocation204_spill] sm:$0xff] %v15429_v39  ;;  %v15436_v17 = vpack.c.bf16 %v15418_v60, %v15407_v44  ;;  %v10001_v40 = vld [vmem:[#allocation4 + $0xb0] sm:$0xff]   ;;  %v18133_v60 = vld [vmem:[#allocation101_spill] sm:$0xff]  ;;  %vm18147_vm10 = vcmask 458112  }
 0x8ee   : > { %v5710_v48 = vrot.slane %v5642_v8, %v12703_v23  ;;  %7066 = vperm.xlu0 %9905, %v7043_v50   ;;  %6605 = vperm.xlu1 %9906, %v6568_v43   ;;  %v18130_v50 = vld [vmem:[#allocation160_spill] sm:$0xff] }
 0x8ef   : > { %9620 = vmatprep.subr.bf16.mxu1 %v17962_v5  ;;  %v15440_v43 = vmul.f32 %v18130_v50, %v15315_v15  ;;  %v15451_v50 = vmul.f32 %v18133_v60, %v15315_v15  ;;  %v7047_v4 = vunpack.c.h.b16 %v15436_v17  ;;  %v18138_v44 = vld [vmem:[#allocation80_spill] sm:$0xff] }
 0x8f0   : > { %v5711_v34 = vsel %vm18129_vm0, %v5710_v48, %v5706_v59  ;;  %v6572_v59 = vunpack.c.l.b16 %v15163_v35  ;;  %v5725_v35 = vrot.slane %v15173_v18, %v12726_v21  ;;  %v15475_v26 = vmul.f32 %v18138_v44, %v15315_v15 }
 0x8f1   : > { %18131 = vst [vmem:[#allocation141_spill] sm:$0xff] %v15440_v43  ;;  %v15444_v12 = vpop.permute.xlu0 %6108  ;;  %v5648_v13 = vpop.permute.xlu1 %5647  ;;  %9621 = vmatpush3.bf16.msra.mxu1 %v10000_v33  ;;  %v5716_v48 = vsel %vm18132_vm11, %v5715_v45, %v5711_v34  ;;  %v15458_v33 = vpack.c.bf16 %v15440_v43, %v15429_v39  ;;  %v10002_v45 = vld [vmem:[#allocation4 + $0xb8] sm:$0xff]   ;;  %v18137_v39 = vld [vmem:[#allocation207_spill] sm:$0xff]  ;;  %vm18150_vm0 = vcmask 654912   ;;  %vm18151_vm11 = vcmask 720512  }
 0x8f2   : > { %v5720_v8 = vrot.slane %v5648_v13, %v12717_v22  ;;  %7072 = vperm.xlu0 %9905, %v7045_v29   ;;  %6611 = vperm.xlu1 %9906, %v6570_v20   ;;  %v18134_v29 = vld [vmem:[#allocation69_spill] sm:$0xff]  ;;  %18139 = vst [vmem:[#allocation143_spill] sm:$0xff] %v15475_v26 }
 0x8f3   : > { %9622 = vmatprep.subr.bf16.mxu1 %v17962_v5  ;;  %v15462_v20 = vmul.f32 %v18134_v29, %v15315_v15  ;;  %v6799_v29 = vunpack.c.l.b16 %v18137_v39 }
 0x8f4   : > { %v5721_v47 = vsel %vm2811_vm12, %v5720_v8, %v5716_v48  ;;  %v18136_v8 = vld [vmem:[#allocation208_spill] sm:$0xff] }
 0x8f5   : > { %18135 = vst [vmem:[#allocation219_spill] sm:$0xff] %v15462_v20  ;;  %v15466_v34 = vpop.permute.xlu0 %6114  ;;  %v5654_v60 = vpop.permute.xlu1 %5653  ;;  %9623 = vmatpush3.bf16.msra.mxu1 %v10001_v40  ;;  %v5735_v48 = vrot.slane %v18136_v8, %v17790_v14  ;;  %v5726_v43 = vsel %vm2818_vm13, %v5725_v35, %v5721_v47  ;;  %v7049_v40 = vunpack.c.h.b16 %v15458_v33  ;;  %v10003_v35 = vld [vmem:[#allocation4 + $0xc0] sm:$0xff]   ;;  %v6801_v8 = vunpack.c.l.b16 %v15209_v3 }
 0x8f6   : > { %v5730_v13 = vrot.slane %v5654_v60, %v17781_v52  ;;  %7078 = vperm.xlu0 %9905, %v7047_v4   ;;  %6617 = vperm.xlu1 %9906, %v6572_v59   ;;  %v15482_v4 = vpack.c.bf16 %v15462_v20, %v15451_v50  ;;  %v18140_v59 = vld [vmem:[#allocation64_spill] sm:$0xff] }
 0x8f7   : > { %9624 = vmatprep.subr.bf16.mxu1 %v17962_v5  ;;  %v15486_v60 = vmul.f32 %v18140_v59, %v15315_v15 }
 0x8f8   : > { %v5731_v18 = vsel %vm2825_vm14, %v5730_v13, %v5726_v43  ;;  %v7051_v59 = vunpack.c.h.b16 %v15482_v4 }
 0x8f9   : > { %18141 = vst [vmem:[#allocation206_spill] sm:$0xff] %v15486_v60  ;;  %v15488_v47 = vpop.permute.xlu0 %6120  ;;  %v5853_v39 = vpop.permute.xlu1 %5852  ;;  %v5736_v44 = vsel %vm2832_vm15, %v5735_v48, %v5731_v18  ;;  %9625 = vmatpush3.bf16.msra.mxu1 %v10002_v45  ;;  %v15497_v20 = vpack.c.bf16 %v15486_v60, %v15475_v26  ;;  %v18142_v48 = vld [vmem:[#allocation82_spill] sm:$0xff]  ;;  %v5916_v26 = vrot.slane %v15240_v49, %v12663_v11 }
 0x8fa   : > { %7084 = vperm.xlu0 %9905, %v7049_v40   ;;  %6816 = vperm.xlu1 %9906, %v6799_v29   ;;  %v5737_v43 = vpack.c.b16 %v5736_v44, %v5736_v44  ;;  %v5902_v13 = vrot.slane %v5853_v39, %v12650_v28  ;;  %v15501_v45 = vmul.f32 %v18142_v48, %v15315_v15  ;;  %v18144_v29 = vld [vmem:[#allocation75_spill] sm:$0xff] }
 0x8fb   : > { %9650 = vmatprep.subr.bf16.mxu1 %v17962_v5  ;;  %v15505_v18 = vmul.f32 %v18144_v29, %v15315_v15  ;;  %v18145_v40 = vld [vmem:[#allocation119_spill] sm:$0xff]  ;;  %v7053_v29 = vunpack.c.h.b16 %v15497_v20  ;;  %v5926_v49 = vrot.slane %v15263_v37, %v12670_v36  ;;  %v5936_v37 = vrot.slane %v15285_v54, %v12677_v1 }
 0x8fc   : > { %9607 = vmatmul.mubr.bf16.vlgmr.msra.gmra.mrb[8].mxu0 %v5737_v43  ;;  %18143 = vst [vmem:[#allocation145_spill] sm:$0xff] %v15501_v45  ;;  %v5906_v3 = vrot.slane %v18145_v40, %v12653_v30  ;;  %v10004_v43 = vld [vmem:[#allocation4 + $0xc8] sm:$0xff]   ;;  %v6803_v40 = vunpack.c.l.b16 %v15233_v27  ;;  %v5946_v54 = vrot.slane %v15307_v2, %v12696_v62  ;;  %v5956_v2 = vrot.slane %v15332_v57, %v12714_v16 }
 0x8fd   : > { %v15509_v39 = vpop.permute.xlu0 %6126  ;;  %v5859_v44 = vpop.permute.xlu1 %5858  ;;  %9631 = vmatpush3.bf16.msra.mxu0 %v10003_v35  ;;  %9646 = vmatprep.mubr.msk.bf16.mxu0 %vm10784_vm9, %v17962_v5  ;;  %v15521_v35 = vpack.c.bf16 %v15505_v18, %v15501_v45  ;;  %v5966_v57 = vrot.slane %v15356_v0, %v12726_v21  ;;  %v7040_v0 = vunpack.c.l.b16 %v15370_v7  ;;  %v6147_v7 = vrot.slane %v15400_v51, %v12653_v30 }
 0x8fe   : > { %v5911_v60 = vrot.slane %v5859_v44, %v12660_v41  ;;  %7090 = vperm.xlu0 %9905, %v7051_v59   ;;  %6822 = vperm.xlu1 %9906, %v6801_v8   ;;  %v5907_v48 = vsel %vm2734_vm1, %v5906_v3, %v5902_v13  ;;  %v10005_v13 = vld [vmem:[#allocation4 + $0xd0] sm:$0xff]   ;;  %v7044_v51 = vunpack.c.l.b16 %v15414_v42  ;;  %v7046_v42 = vunpack.c.l.b16 %v15436_v17 }
 0x8ff   : > { %9632 = vmatprep.subr.bf16.mxu0 %v17962_v5  ;;  %v7055_v3 = vunpack.c.h.b16 %v15521_v35  ;;  %v7048_v17 = vunpack.c.l.b16 %v15458_v33  ;;  %v7050_v33 = vunpack.c.l.b16 %v15482_v4  ;;  %v7052_v4 = vunpack.c.l.b16 %v15497_v20 }
 0x900   : > { %v5912_v15 = vsel %vm2741_vm2, %v5911_v60, %v5907_v48  ;;  %v6805_v48 = vunpack.c.l.b16 %v15260_v6  ;;  %v6807_v6 = vunpack.c.l.b16 %v15278_v53  ;;  %v6809_v53 = vunpack.c.l.b16 %v15301_v58 }
 0x901   : > { %v15525_v44 = vpop.permute.xlu0 %6132  ;;  %v5865_v8 = vpop.permute.xlu1 %5864  ;;  %9633 = vmatpush3.bf16.msra.mxu0 %v10004_v43  ;;  %v5917_v60 = vsel %vm2748_vm3, %v5916_v26, %v5912_v15  ;;  %v6811_v58 = vunpack.c.l.b16 %v15320_v31  ;;  %v6813_v31 = vunpack.c.l.b16 %v15348_v38  ;;  %v7054_v20 = vunpack.c.l.b16 %v15521_v35 }
 0x902   : > { %v5921_v59 = vrot.slane %v5865_v8, %v12667_v56  ;;  %7096 = vperm.xlu0 %9905, %v7053_v29   ;;  %6828 = vperm.xlu1 %9906, %v6803_v40   ;;  %v10006_v8 = vld [vmem:[#allocation4 + $0xd8] sm:$0xff]  }
 0x903   : > { %9634 = vmatprep.subr.bf16.mxu0 %v17962_v5 }
 0x904   : > { %v5922_v27 = vsel %vm2755_vm4, %v5921_v59, %v5917_v60 }
 0x905   : > { %v15535_v45 = vpop.permute.xlu0 %6138  ;;  %v5871_v43 = vpop.permute.xlu1 %5870  ;;  %9635 = vmatpush3.bf16.msra.mxu0 %v10005_v13  ;;  %v5927_v26 = vsel %vm18146_vm5, %v5926_v49, %v5922_v27  ;;  %v10007_v13 = vld [vmem:[#allocation4 + $0xe0] sm:$0xff]   ;;  %vm18153_vm5 = vcmask 786112  }
 0x906   : > { %v5931_v29 = vrot.slane %v5871_v43, %v12673_v9  ;;  %7102 = vperm.xlu0 %9905, %v7055_v3   ;;  %6834 = vperm.xlu1 %9906, %v6805_v48   ;;  %v18148_v3 = vld [vmem:[#allocation65_spill] sm:$0xff] }
 0x907   : > { %9636 = vmatprep.subr.bf16.mxu0 %v17962_v5 }
 0x908   : > { %v5932_v15 = vsel %vm18147_vm10, %v5931_v29, %v5927_v26  ;;  %v18149_v26 = vld [vmem:[#allocation51_spill] sm:$0xff]  ;;  %vm18159_vm10 = vcmask 392512  }
 0x909   : > { %v15544_v40 = vpop.permute.xlu0 %6337  ;;  %v5877_v59 = vpop.permute.xlu1 %5876  ;;  %9637 = vmatpush3.bf16.msra.mxu0 %v10006_v8  ;;  %v5937_v27 = vsel %vm2776_vm7, %v5936_v37, %v5932_v15  ;;  %v10008_v8 = vld [vmem:[#allocation4 + $0xe8] sm:$0xff]  }
 0x90a   : > { %v5941_v60 = vrot.slane %v5877_v59, %v12680_v10  ;;  %7741 = vperm.xlu0 %9905, %v18148_v3   ;;  %6840 = vperm.xlu1 %9906, %v6807_v6   ;;  %v18152_v3 = vld [vmem:[#allocation154_spill] sm:$0xff] }
 0x90b   : > { %9638 = vmatprep.subr.bf16.mxu0 %v17962_v5 }
 0x90c   : > { %v5942_v48 = vsel %vm2783_vm8, %v5941_v60, %v5937_v27 }
 0x90d   : > { %v15554_v49 = vpop.permute.xlu0 %6343  ;;  %v5883_v43 = vpop.permute.xlu1 %5882  ;;  %9639 = vmatpush3.bf16.msra.mxu0 %v10007_v13  ;;  %v5947_v15 = vsel %vm18150_vm0, %v5946_v54, %v5942_v48  ;;  %v10009_v13 = vld [vmem:[#allocation4 + $0xf0] sm:$0xff]   ;;  %vm18160_vm0 = vcmask 458112  }
 0x90e   : > { %v5951_v29 = vrot.slane %v5883_v43, %v12703_v23  ;;  %7747 = vperm.xlu0 %9905, %v18149_v26   ;;  %6846 = vperm.xlu1 %9906, %v6809_v53   ;;  %v10010_v43 = vld [vmem:[#allocation4 + $0xf8] sm:$0xff]   ;;  %v5976_v26 = vrot.slane %v15378_v19, %v17790_v14 }
 0x90f   : > { %9640 = vmatprep.subr.bf16.mxu0 %v17962_v5 }
 0x910   : > { %v5952_v6 = vsel %vm18151_vm11, %v5951_v29, %v5947_v15  ;;  %v18154_v29 = vld [vmem:[#allocation46_spill] sm:$0xff]  ;;  %vm18163_vm11 = vcmask 654912  }
 0x911   : > { %v15564_v37 = vpop.permute.xlu0 %6349  ;;  %v5889_v59 = vpop.permute.xlu1 %5888  ;;  %9641 = vmatpush3.bf16.msra.mxu0 %v10008_v8  ;;  %v5957_v27 = vsel %vm18153_vm5, %v5956_v2, %v5952_v6  ;;  %vm18164_vm5 = vcmask 720512  }
 0x912   : > { %v5961_v60 = vrot.slane %v5889_v59, %v12717_v22  ;;  %7753 = vperm.xlu0 %9905, %v18152_v3   ;;  %6852 = vperm.xlu1 %9906, %v6811_v58   ;;  %v10011_v59 = vld [vmem:[#allocation4 + $0x100] sm:$0xff]   ;;  %v7042_v3 = vunpack.c.l.b16 %v15392_v63 }
 0x913   : > { %9642 = vmatprep.subr.bf16.mxu0 %v17962_v5 }
 0x914   : > { %v5962_v48 = vsel %vm2811_vm12, %v5961_v60, %v5957_v27 }
 0x915   : > { %v15574_v53 = vpop.permute.xlu0 %6355  ;;  %v5895_v54 = vpop.permute.xlu1 %5894  ;;  %9643 = vmatpush3.bf16.msra.mxu0 %v10009_v13  ;;  %v5967_v15 = vsel %vm2818_vm13, %v5966_v57, %v5962_v48  ;;  %v18155_v13 = vld [vmem:[#allocation70_spill] sm:$0xff] }
 0x916   : > { %v5971_v8 = vrot.slane %v5895_v54, %v17781_v52  ;;  %7759 = vperm.xlu0 %9905, %v18154_v29   ;;  %6858 = vperm.xlu1 %9906, %v6813_v31   ;;  %v10012_v31 = vld [vmem:[#allocation4 + $0x108] sm:$0xff]  }
 0x917   : > { %9644 = vmatprep.subr.bf16.mxu0 %v17962_v5  ;;  %v18156_v54 = vld [vmem:[#allocation107_spill] sm:$0xff] }
 0x918   : > { %v5972_v38 = vsel %vm2825_vm14, %v5971_v8, %v5967_v15  ;;  %v6157_v8 = vrot.slane %v15422_v61, %v12663_v11  ;;  %v10013_v15 = vld [vmem:[#allocation4 + $0x110] sm:$0xff]   ;;  %v6167_v61 = vrot.slane %v15444_v12, %v12670_v36  ;;  %v6177_v12 = vrot.slane %v15466_v34, %v12677_v1 }
 0x919   : > { %v15584_v6 = vpop.permute.xlu0 %6361  ;;  %v6094_v58 = vpop.permute.xlu1 %6093  ;;  %v5977_v2 = vsel %vm2832_vm15, %v5976_v26, %v5972_v38  ;;  %9645 = vmatpush3.bf16.msra.mxu0 %v10010_v43  ;;  %v6187_v34 = vrot.slane %v15488_v47, %v12696_v62  ;;  %v6197_v47 = vrot.slane %v15509_v39, %v12714_v16  ;;  %v6207_v39 = vrot.slane %v15525_v44, %v12726_v21 }
 0x91a   : > { %7765 = vperm.xlu0 %9905, %v18155_v13   ;;  %7057 = vperm.xlu1 %9906, %v7040_v0   ;;  %v5978_v60 = vpack.c.b16 %v5977_v2, %v5977_v2  ;;  %v6143_v19 = vrot.slane %v6094_v58, %v12650_v28  ;;  %v18157_v0 = vld [vmem:[#allocation88_spill] sm:$0xff] }
 0x91b   : > { %9670 = vmatprep.subr.bf16.mxu0 %v17962_v5 }
 0x91c   : > { %9627 = vmatmul.mubr.bf16.vlgmr.msra.gmra.mrb[8].mxu1 %v5978_v60  ;;  %v6148_v43 = vsel %vm2734_vm1, %v6147_v7, %v6143_v19  ;;  %v10014_v60 = vld [vmem:[#allocation4 + $0x118] sm:$0xff]  }
 0x91d   : > { %v15593_v27 = vpop.permute.xlu0 %6367  ;;  %v6100_v48 = vpop.permute.xlu1 %6099  ;;  %9651 = vmatpush3.bf16.msra.mxu1 %v10011_v59  ;;  %9666 = vmatprep.mubr.msk.bf16.mxu1 %vm10784_vm9, %v17962_v5 }
 0x91e   : > { %v6152_v57 = vrot.slane %v6100_v48, %v12660_v41  ;;  %7771 = vperm.xlu0 %9905, %v18156_v54   ;;  %7063 = vperm.xlu1 %9906, %v7042_v3   ;;  %v18158_v3 = vld [vmem:[#allocation38_spill] sm:$0xff] }
 0x91f   : > { %9652 = vmatprep.subr.bf16.mxu1 %v17962_v5  ;;  %v10015_v54 = vld [vmem:[#allocation4 + $0x120] sm:$0xff]  }
 0x920   : > { %v6153_v63 = vsel %vm2741_vm2, %v6152_v57, %v6148_v43 }
 0x921   : > { %v15605_v29 = vpop.permute.xlu0 %6373  ;;  %v6106_v26 = vpop.permute.xlu1 %6105  ;;  %9653 = vmatpush3.bf16.msra.mxu1 %v10012_v31  ;;  %v6158_v58 = vsel %vm2748_vm3, %v6157_v8, %v6153_v63  ;;  %v18161_v63 = vld [vmem:[#allocation223_spill] sm:$0xff] }
 0x922   : > { %v6162_v38 = vrot.slane %v6106_v26, %v12667_v56  ;;  %7777 = vperm.xlu0 %9905, %v18157_v0   ;;  %7069 = vperm.xlu1 %9906, %v7044_v51  }
 0x923   : > { %9654 = vmatprep.subr.bf16.mxu1 %v17962_v5 }
 0x924   : > { %v6163_v2 = vsel %vm2755_vm4, %v6162_v38, %v6158_v58  ;;  %v10016_v38 = vld [vmem:[#allocation4 + $0x128] sm:$0xff]   ;;  %v18162_v58 = vld [vmem:[#allocation85_spill] sm:$0xff] }
 0x925   : > { %v15615_v59 = vpop.permute.xlu0 %6379  ;;  %v6112_v13 = vpop.permute.xlu1 %6111  ;;  %9655 = vmatpush3.bf16.msra.mxu1 %v10013_v15  ;;  %v6168_v7 = vsel %vm18159_vm10, %v6167_v61, %v6163_v2  ;;  %vm18166_vm10 = vcmask 786112  }
 0x926   : > { %v6172_v19 = vrot.slane %v6112_v13, %v12673_v9  ;;  %7783 = vperm.xlu0 %9905, %v18158_v3   ;;  %7075 = vperm.xlu1 %9906, %v7046_v42   ;;  %v18165_v3 = vld [vmem:[#allocation148_spill] sm:$0xff] }
 0x927   : > { %9656 = vmatprep.subr.bf16.mxu1 %v17962_v5 }
 0x928   : > { %v6173_v48 = vsel %vm18160_vm0, %v6172_v19, %v6168_v7  ;;  %vm18176_vm0 = vcmask 392512  }
 0x929   : > { %v15625_v31 = vpop.permute.xlu0 %6578  ;;  %v6118_v57 = vpop.permute.xlu1 %6117  ;;  %9657 = vmatpush3.bf16.msra.mxu1 %v10014_v60  ;;  %v6178_v51 = vsel %vm2776_vm7, %v6177_v12, %v6173_v48  ;;  %v10017_v60 = vld [vmem:[#allocation4 + $0x130] sm:$0xff]  }
 0x92a   : > { %v6182_v43 = vrot.slane %v6118_v57, %v12680_v10  ;;  %7789 = vperm.xlu0 %9905, %v18161_v63   ;;  %7081 = vperm.xlu1 %9906, %v7048_v17   ;;  %v10018_v57 = vld [vmem:[#allocation4 + $0x138] sm:$0xff]   ;;  %v6217_v63 = vrot.slane %v15535_v45, %v17790_v14 }
 0x92b   : > { %9658 = vmatprep.subr.bf16.mxu1 %v17962_v5 }
 0x92c   : > { %v6183_v8 = vsel %vm2783_vm8, %v6182_v43, %v6178_v51  ;;  %v18167_v43 = vld [vmem:[#allocation67_spill] sm:$0xff] }
 0x92d   : > { %v15635_v26 = vpop.permute.xlu0 %6584  ;;  %v6124_v15 = vpop.permute.xlu1 %6123  ;;  %9659 = vmatpush3.bf16.msra.mxu1 %v10015_v54  ;;  %v6188_v2 = vsel %vm18163_vm11, %v6187_v34, %v6183_v8  ;;  %v10019_v34 = vld [vmem:[#allocation4 + $0x140] sm:$0xff]   ;;  %vm18177_vm11 = vcmask 458112  }
 0x92e   : > { %v6192_v0 = vrot.slane %v6124_v15, %v12703_v23  ;;  %7795 = vperm.xlu0 %9905, %v18162_v58   ;;  %7087 = vperm.xlu1 %9906, %v7050_v33   ;;  %v18168_v15 = vld [vmem:[#allocation73_spill] sm:$0xff]  ;;  %v6388_v58 = vrot.slane %v15544_v40, %v12653_v30 }
 0x92f   : > { %9660 = vmatprep.subr.bf16.mxu1 %v17962_v5 }
 0x930   : > { %v6193_v42 = vsel %vm18164_vm5, %v6192_v0, %v6188_v2  ;;  %vm18182_vm5 = vcmask 654912  }
 0x931   : > { %v15645_v61 = vpop.permute.xlu0 %6590  ;;  %v6130_v13 = vpop.permute.xlu1 %6129  ;;  %9661 = vmatpush3.bf16.msra.mxu1 %v10016_v38  ;;  %v6198_v7 = vsel %vm18166_vm10, %v6197_v47, %v6193_v42  ;;  %v18169_v38 = vld [vmem:[#allocation40_spill] sm:$0xff]  ;;  %vm18183_vm10 = vcmask 720512  }
 0x932   : > { %v6202_v19 = vrot.slane %v6130_v13, %v12717_v22  ;;  %7801 = vperm.xlu0 %9905, %v18165_v3   ;;  %7093 = vperm.xlu1 %9906, %v7052_v4   ;;  %v10020_v4 = vld [vmem:[#allocation4 + $0x148] sm:$0xff]   ;;  %v18170_v13 = vld [vmem:[#allocation50_spill] sm:$0xff]  ;;  %v6398_v3 = vrot.slane %v15554_v49, %v12663_v11  ;;  %v6408_v49 = vrot.slane %v15564_v37, %v12670_v36 }
 0x933   : > { %9662 = vmatprep.subr.bf16.mxu1 %v17962_v5  ;;  %v6418_v37 = vrot.slane %v15574_v53, %v12677_v1  ;;  %v6428_v53 = vrot.slane %v15584_v6, %v12696_v62  ;;  %v6438_v6 = vrot.slane %v15593_v27, %v12714_v16  ;;  %v6448_v27 = vrot.slane %v15605_v29, %v12726_v21 }
 0x934   : > { %v6203_v48 = vsel %vm2811_vm12, %v6202_v19, %v6198_v7 }
 0x935   : > { %v15655_v17 = vpop.permute.xlu0 %6596  ;;  %v6136_v12 = vpop.permute.xlu1 %6135  ;;  %9663 = vmatpush3.bf16.msra.mxu1 %v10017_v60  ;;  %v6208_v51 = vsel %vm2818_vm13, %v6207_v39, %v6203_v48  ;;  %v18171_v60 = vld [vmem:[#allocation117_spill] sm:$0xff] }
 0x936   : > { %v6212_v54 = vrot.slane %v6136_v12, %v17781_v52  ;;  %7807 = vperm.xlu0 %9905, %v18167_v43   ;;  %7099 = vperm.xlu1 %9906, %v7054_v20   ;;  %v10021_v20 = vld [vmem:[#allocation4 + $0x150] sm:$0xff]   ;;  %v18172_v12 = vld [vmem:[#allocation106_spill] sm:$0xff] }
 0x937   : > { %9664 = vmatprep.subr.bf16.mxu1 %v17962_v5 }
 0x938   : > { %v6213_v35 = vsel %vm2825_vm14, %v6212_v54, %v6208_v51 }
 0x939   : > { %v15664_v44 = vpop.permute.xlu0 %6602  ;;  %v6335_v8 = vpop.permute.xlu1 %6334  ;;  %v6218_v33 = vsel %vm2832_vm15, %v6217_v63, %v6213_v35  ;;  %9665 = vmatpush3.bf16.msra.mxu1 %v10018_v57  ;;  %v18173_v57 = vld [vmem:[#allocation45_spill] sm:$0xff] }
 0x93a   : > { %7813 = vperm.xlu0 %9905, %v18168_v15   ;;  %7738 = vperm.xlu1 %9906, %v18169_v38   ;;  %v6219_v0 = vpack.c.b16 %v6218_v33, %v6218_v33  ;;  %v6384_v45 = vrot.slane %v6335_v8, %v12650_v28  ;;  %v10022_v35 = vld [vmem:[#allocation4 + $0x158] sm:$0xff]   ;;  %v18174_v33 = vld [vmem:[#allocation108_spill] sm:$0xff] }
 0x93b   : > { %9690 = vmatprep.subr.bf16.mxu1 %v17962_v5 }
 0x93c   : > { %9647 = vmatmul.mubr.bf16.vlgmr.msra.gmra.mrb[12].mxu0 %v6219_v0  ;;  %v6389_v19 = vsel %vm2734_vm1, %v6388_v58, %v6384_v45  ;;  %v10023_v58 = vld [vmem:[#allocation4 + $0x160] sm:$0xff]  }
 0x93d   : > { %v15673_v2 = vpop.permute.xlu0 %6608  ;;  %v6341_v42 = vpop.permute.xlu1 %6340  ;;  %9671 = vmatpush3.bf16.msra.mxu0 %v10019_v34  ;;  %9686 = vmatprep.mubr.msk.bf16.mxu0 %vm10784_vm9, %v17962_v5  ;;  %v18175_v34 = vld [vmem:[#allocation59_spill] sm:$0xff] }
 0x93e   : > { %v6393_v47 = vrot.slane %v6341_v42, %v12660_v41  ;;  %7819 = vperm.xlu0 %9905, %v18170_v13   ;;  %7744 = vperm.xlu1 %9906, %v18171_v60  }
 0x93f   : > { %9672 = vmatprep.subr.bf16.mxu0 %v17962_v5 }
 0x940   : > { %v6394_v40 = vsel %vm2741_vm2, %v6393_v47, %v6389_v19  ;;  %v18179_v47 = vld [vmem:[#allocation140_spill] sm:$0xff] }
 0x941   : > { %v15685_v7 = vpop.permute.xlu0 %6614  ;;  %v6347_v48 = vpop.permute.xlu1 %6346  ;;  %9673 = vmatpush3.bf16.msra.mxu0 %v10020_v4  ;;  %v6399_v54 = vsel %vm2748_vm3, %v6398_v3, %v6394_v40  ;;  %v18178_v4 = vld [vmem:[#allocation76_spill] sm:$0xff]  ;;  %v10024_v3 = vld [vmem:[#allocation4 + $0x168] sm:$0xff]  }
 0x942   : > { %v6403_v39 = vrot.slane %v6347_v48, %v12667_v56  ;;  %7825 = vperm.xlu0 %9905, %v18172_v12   ;;  %7750 = vperm.xlu1 %9906, %v18173_v57  }
 0x943   : > { %9674 = vmatprep.subr.bf16.mxu0 %v17962_v5 }
 0x944   : > { %v6404_v43 = vsel %vm2755_vm4, %v6403_v39, %v6399_v54  ;;  %v18181_v39 = vld [vmem:[#allocation89_spill] sm:$0xff] }
 0x945   : > { %v15695_v63 = vpop.permute.xlu0 %6620  ;;  %v6353_v51 = vpop.permute.xlu1 %6352  ;;  %9675 = vmatpush3.bf16.msra.mxu0 %v10021_v20  ;;  %v6409_v15 = vsel %vm18176_vm0, %v6408_v49, %v6404_v43  ;;  %v18180_v20 = vld [vmem:[#allocation184_spill] sm:$0xff]  ;;  %vm18186_vm0 = vcmask 786112  }
 0x946   : > { %v6413_v8 = vrot.slane %v6353_v51, %v12673_v9  ;;  %7831 = vperm.xlu0 %9905, %v18174_v33   ;;  %7756 = vperm.xlu1 %9906, %v18175_v34   ;;  %v10025_v49 = vld [vmem:[#allocation4 + $0x170] sm:$0xff]  }
 0x947   : > { %9676 = vmatprep.subr.bf16.mxu0 %v17962_v5 }
 0x948   : > { %v6414_v38 = vsel %vm18177_vm11, %v6413_v8, %v6409_v15  ;;  %v18185_v8 = vld [vmem:[#allocation95_spill] sm:$0xff]  ;;  %vm18197_vm11 = vcmask 392512  }
 0x949   : > { %v15705_v0 = vpop.permute.xlu0 %6819  ;;  %v6359_v45 = vpop.permute.xlu1 %6358  ;;  %9677 = vmatpush3.bf16.msra.mxu0 %v10022_v35  ;;  %v6419_v13 = vsel %vm2776_vm7, %v6418_v37, %v6414_v38  ;;  %v18184_v35 = vld [vmem:[#allocation84_spill] sm:$0xff]  ;;  %v10026_v37 = vld [vmem:[#allocation4 + $0x178] sm:$0xff]  }
 0x94a   : > { %v6423_v42 = vrot.slane %v6359_v45, %v12680_v10  ;;  %7837 = vperm.xlu0 %9905, %v18178_v4   ;;  %7762 = vperm.xlu1 %9906, %v18179_v47   ;;  %v6458_v4 = vrot.slane %v15615_v59, %v17790_v14 }
 0x94b   : > { %9678 = vmatprep.subr.bf16.mxu0 %v17962_v5 }
 0x94c   : > { %v6424_v60 = vsel %vm2783_vm8, %v6423_v42, %v6419_v13  ;;  %v18188_v42 = vld [vmem:[#allocation52_spill] sm:$0xff] }
 0x94d   : > { %v15715_v19 = vpop.permute.xlu0 %6825  ;;  %v6365_v40 = vpop.permute.xlu1 %6364  ;;  %9679 = vmatpush3.bf16.msra.mxu0 %v10023_v58  ;;  %v6429_v12 = vsel %vm18182_vm5, %v6428_v53, %v6424_v60  ;;  %v18187_v58 = vld [vmem:[#allocation92_spill] sm:$0xff]  ;;  %vm18198_vm5 = vcmask 458112  }
 0x94e   : > { %v6433_v48 = vrot.slane %v6365_v40, %v12703_v23  ;;  %7843 = vperm.xlu0 %9905, %v18180_v20   ;;  %7768 = vperm.xlu1 %9906, %v18181_v39   ;;  %v10027_v40 = vld [vmem:[#allocation4 + $0x180] sm:$0xff]   ;;  %v6629_v39 = vrot.slane %v15625_v31, %v12653_v30 }
 0x94f   : > { %9680 = vmatprep.subr.bf16.mxu0 %v17962_v5 }
 0x950   : > { %v6434_v57 = vsel %vm18183_vm10, %v6433_v48, %v6429_v12  ;;  %v18190_v48 = vld [vmem:[#allocation142_spill] sm:$0xff]  ;;  %vm18203_vm10 = vcmask 654912  }
 0x951   : > { %v15725_v54 = vpop.permute.xlu0 %6831  ;;  %v6371_v43 = vpop.permute.xlu1 %6370  ;;  %9681 = vmatpush3.bf16.msra.mxu0 %v10024_v3  ;;  %v6439_v33 = vsel %vm18186_vm0, %v6438_v6, %v6434_v57  ;;  %v18189_v3 = vld [vmem:[#allocation104_spill] sm:$0xff]  ;;  %v10028_v6 = vld [vmem:[#allocation4 + $0x188] sm:$0xff]   ;;  %vm18204_vm0 = vcmask 720512  }
 0x952   : > { %v6443_v51 = vrot.slane %v6371_v43, %v12717_v22  ;;  %7849 = vperm.xlu0 %9905, %v18184_v35   ;;  %7774 = vperm.xlu1 %9906, %v18185_v8   ;;  %v6639_v8 = vrot.slane %v15635_v26, %v12663_v11  ;;  %v6649_v26 = vrot.slane %v15645_v61, %v12670_v36 }
 0x953   : > { %9682 = vmatprep.subr.bf16.mxu0 %v17962_v5  ;;  %v6659_v61 = vrot.slane %v15655_v17, %v12677_v1  ;;  %v6669_v17 = vrot.slane %v15664_v44, %v12696_v62  ;;  %v6679_v44 = vrot.slane %v15673_v2, %v12714_v16  ;;  %v6689_v2 = vrot.slane %v15685_v7, %v12726_v21 }
 0x954   : > { %v6444_v34 = vsel %vm2811_vm12, %v6443_v51, %v6439_v33  ;;  %v18192_v51 = vld [vmem:[#allocation130_spill] sm:$0xff] }
 0x955   : > { %v15735_v15 = vpop.permute.xlu0 %6837  ;;  %v6377_v38 = vpop.permute.xlu1 %6376  ;;  %9683 = vmatpush3.bf16.msra.mxu0 %v10025_v49  ;;  %v6449_v47 = vsel %vm2818_vm13, %v6448_v27, %v6444_v34  ;;  %v18191_v49 = vld [vmem:[#allocation96_spill] sm:$0xff] }
 0x956   : > { %v6453_v45 = vrot.slane %v6377_v38, %v17781_v52  ;;  %7855 = vperm.xlu0 %9905, %v18187_v58   ;;  %7780 = vperm.xlu1 %9906, %v18188_v42   ;;  %v10029_v27 = vld [vmem:[#allocation4 + $0x190] sm:$0xff]  }
 0x957   : > { %9684 = vmatprep.subr.bf16.mxu0 %v17962_v5 }
 0x958   : > { %v6454_v29 = vsel %vm2825_vm14, %v6453_v45, %v6449_v47  ;;  %v18194_v45 = vld [vmem:[#allocation61_spill] sm:$0xff] }
 0x959   : > { %v15745_v13 = vpop.permute.xlu0 %6843  ;;  %v6576_v60 = vpop.permute.xlu1 %6575  ;;  %v6459_v53 = vsel %vm2832_vm15, %v6458_v4, %v6454_v29  ;;  %9685 = vmatpush3.bf16.msra.mxu0 %v10026_v37  ;;  %v18193_v37 = vld [vmem:[#allocation86_spill] sm:$0xff]  ;;  %v10030_v29 = vld [vmem:[#allocation4 + $0x198] sm:$0xff]  }
 0x95a   : > { %7861 = vperm.xlu0 %9905, %v18189_v3   ;;  %7786 = vperm.xlu1 %9906, %v18190_v48   ;;  %v6460_v20 = vpack.c.b16 %v6459_v53, %v6459_v53  ;;  %v6625_v59 = vrot.slane %v6576_v60, %v12650_v28  ;;  %v18195_v53 = vld [vmem:[#allocation98_spill] sm:$0xff] }
 0x95b   : > { %9710 = vmatprep.subr.bf16.mxu0 %v17962_v5 }
 0x95c   : > { %9667 = vmatmul.mubr.bf16.vlgmr.msra.gmra.mrb[12].mxu1 %v6460_v20  ;;  %v6630_v35 = vsel %vm2734_vm1, %v6629_v39, %v6625_v59  ;;  %v10031_v39 = vld [vmem:[#allocation4 + $0x1a0] sm:$0xff]  }
 0x95d   : > { %v15754_v12 = vpop.permute.xlu0 %6849  ;;  %v6582_v57 = vpop.permute.xlu1 %6581  ;;  %9691 = vmatpush3.bf16.msra.mxu1 %v10027_v40  ;;  %9706 = vmatprep.mubr.msk.bf16.mxu1 %vm10784_vm9, %v17962_v5  ;;  %v18196_v40 = vld [vmem:[#allocation58_spill] sm:$0xff] }
 0x95e   : > { %v6634_v43 = vrot.slane %v6582_v57, %v12660_v41  ;;  %7867 = vperm.xlu0 %9905, %v18191_v49   ;;  %7792 = vperm.xlu1 %9906, %v18192_v51  }
 0x95f   : > { %9692 = vmatprep.subr.bf16.mxu1 %v17962_v5 }
 0x960   : > { %v6635_v31 = vsel %vm2741_vm2, %v6634_v43, %v6630_v35  ;;  %v18200_v43 = vld [vmem:[#allocation62_spill] sm:$0xff] }
 0x961   : > { %v15766_v33 = vpop.permute.xlu0 %6855  ;;  %v6588_v34 = vpop.permute.xlu1 %6587  ;;  %9693 = vmatpush3.bf16.msra.mxu1 %v10028_v6  ;;  %v6640_v58 = vsel %vm2748_vm3, %v6639_v8, %v6635_v31  ;;  %v18199_v6 = vld [vmem:[#allocation229_spill] sm:$0xff]  ;;  %v10032_v8 = vld [vmem:[#allocation4 + $0x1a8] sm:$0xff]  }
 0x962   : > { %v6644_v38 = vrot.slane %v6588_v34, %v12667_v56  ;;  %7873 = vperm.xlu0 %9905, %v18193_v37   ;;  %7798 = vperm.xlu1 %9906, %v18194_v45  }
 0x963   : > { %9694 = vmatprep.subr.bf16.mxu1 %v17962_v5 }
 0x964   : > { %v6645_v42 = vsel %vm2755_vm4, %v6644_v38, %v6640_v58  ;;  %v18202_v38 = vld [vmem:[#allocation48_spill] sm:$0xff] }
 0x965   : > { %v15776_v4 = vpop.permute.xlu0 %6861  ;;  %v6594_v47 = vpop.permute.xlu1 %6593  ;;  %9695 = vmatpush3.bf16.msra.mxu1 %v10029_v27  ;;  %v6650_v3 = vsel %vm18197_vm11, %v6649_v26, %v6645_v42  ;;  %v18201_v27 = vld [vmem:[#allocation228_spill] sm:$0xff]  ;;  %vm18207_vm11 = vcmask 786112  }
 0x966   : > { %v6654_v60 = vrot.slane %v6594_v47, %v12673_v9  ;;  %7879 = vperm.xlu0 %9905, %v18195_v53   ;;  %7804 = vperm.xlu1 %9906, %v18196_v40   ;;  %v10033_v26 = vld [vmem:[#allocation4 + $0x1b0] sm:$0xff]  }
 0x967   : > { %9696 = vmatprep.subr.bf16.mxu1 %v17962_v5 }
 0x968   : > { %v6655_v48 = vsel %vm18198_vm5, %v6654_v60, %v6650_v3  ;;  %v18206_v60 = vld [vmem:[#allocation83_spill] sm:$0xff] }
 0x969   : > { %v15786_v20 = vpop.permute.xlu0 %7060  ;;  %v6600_v59 = vpop.permute.xlu1 %6599  ;;  %9697 = vmatpush3.bf16.msra.mxu1 %v10030_v29  ;;  %v6660_v49 = vsel %vm2776_vm7, %v6659_v61, %v6655_v48  ;;  %v18205_v29 = vld [vmem:[#allocation105_spill] sm:$0xff] }
 0x96a   : > { %v6664_v57 = vrot.slane %v6600_v59, %v12680_v10  ;;  %7885 = vperm.xlu0 %9905, %v18199_v6   ;;  %7810 = vperm.xlu1 %9906, %v18200_v43   ;;  %v10034_v61 = vld [vmem:[#allocation4 + $0x1b8] sm:$0xff]   ;;  %v6699_v6 = vrot.slane %v15695_v63, %v17790_v14 }
 0x96b   : > { %9698 = vmatprep.subr.bf16.mxu1 %v17962_v5 }
 0x96c   : > { %v6665_v51 = vsel %vm2783_vm8, %v6664_v57, %v6660_v49  ;;  %v18209_v57 = vld [vmem:[#allocation57_spill] sm:$0xff] }
 0x96d   : > { %v15796_v35 = vpop.permute.xlu0 %7066  ;;  %v6606_v31 = vpop.permute.xlu1 %6605  ;;  %9699 = vmatpush3.bf16.msra.mxu1 %v10031_v39  ;;  %v6670_v37 = vsel %vm18203_vm10, %v6669_v17, %v6665_v51  ;;  %v18208_v39 = vld [vmem:[#allocation100_spill] sm:$0xff] }
 0x96e   : > { %v6674_v34 = vrot.slane %v6606_v31, %v12703_v23  ;;  %7891 = vperm.xlu0 %9905, %v18201_v27   ;;  %7816 = vperm.xlu1 %9906, %v18202_v38   ;;  %v10035_v31 = vld [vmem:[#allocation4 + $0x1c0] sm:$0xff]   ;;  %v6870_v38 = vrot.slane %v15705_v0, %v12653_v30 }
 0x96f   : > { %9700 = vmatprep.subr.bf16.mxu1 %v17962_v5 }
 0x970   : > { %v6675_v45 = vsel %vm18204_vm0, %v6674_v34, %v6670_v37  ;;  %v18211_v34 = vld [vmem:[#allocation68_spill] sm:$0xff] }
 0x971   : > { %v15806_v58 = vpop.permute.xlu0 %7072  ;;  %v6612_v42 = vpop.permute.xlu1 %6611  ;;  %9701 = vmatpush3.bf16.msra.mxu1 %v10032_v8  ;;  %v6680_v53 = vsel %vm18207_vm11, %v6679_v44, %v6675_v45  ;;  %v18210_v8 = vld [vmem:[#allocation178_spill] sm:$0xff]  ;;  %v10036_v44 = vld [vmem:[#allocation4 + $0x1c8] sm:$0xff]  }
 0x972   : > { %v6684_v47 = vrot.slane %v6612_v42, %v12717_v22  ;;  %7897 = vperm.xlu0 %9905, %v18205_v29   ;;  %7822 = vperm.xlu1 %9906, %v18206_v60   ;;  %v6880_v60 = vrot.slane %v15715_v19, %v12663_v11  ;;  %v6890_v19 = vrot.slane %v15725_v54, %v12670_v36 }
 0x973   : > { %9702 = vmatprep.subr.bf16.mxu1 %v17962_v5  ;;  %v6900_v54 = vrot.slane %v15735_v15, %v12677_v1  ;;  %v6910_v15 = vrot.slane %v15745_v13, %v12696_v62  ;;  %v6920_v13 = vrot.slane %v15754_v12, %v12714_v16  ;;  %v6930_v12 = vrot.slane %v15766_v33, %v12726_v21 }
 0x974   : > { %v6685_v40 = vsel %vm2811_vm12, %v6684_v47, %v6680_v53  ;;  %v18213_v47 = vld [vmem:[#allocation78_spill] sm:$0xff] }
 0x975   : > { %v15816_v3 = vpop.permute.xlu0 %7078  ;;  %v6618_v48 = vpop.permute.xlu1 %6617  ;;  %9703 = vmatpush3.bf16.msra.mxu1 %v10033_v26  ;;  %v6690_v43 = vsel %vm2818_vm13, %v6689_v2, %v6685_v40  ;;  %v18212_v26 = vld [vmem:[#allocation222_spill] sm:$0xff]  ;;  %v10037_v2 = vld [vmem:[#allocation4 + $0x1d0] sm:$0xff]  }
 0x976   : > { %v6694_v59 = vrot.slane %v6618_v48, %v17781_v52  ;;  %7903 = vperm.xlu0 %9905, %v18208_v39   ;;  %7828 = vperm.xlu1 %9906, %v18209_v57  }
 0x977   : > { %9704 = vmatprep.subr.bf16.mxu1 %v17962_v5 }
 0x978   : > { %v6695_v7 = vsel %vm2825_vm14, %v6694_v59, %v6690_v43  ;;  %v18215_v59 = vld [vmem:[#allocation103_spill] sm:$0xff] }
 0x979   : > { %v15826_v49 = vpop.permute.xlu0 %7084  ;;  %v6817_v51 = vpop.permute.xlu1 %6816  ;;  %v6700_v17 = vsel %vm2832_vm15, %v6699_v6, %v6695_v7  ;;  %9705 = vmatpush3.bf16.msra.mxu1 %v10034_v61  ;;  %v18214_v61 = vld [vmem:[#allocation35_spill] sm:$0xff]  ;;  %v10038_v7 = vld [vmem:[#allocation4 + $0x1d8] sm:$0xff]  }
 0x97a   : > { %7909 = vperm.xlu0 %9905, %v18210_v8   ;;  %7834 = vperm.xlu1 %9906, %v18211_v34   ;;  %v6701_v27 = vpack.c.b16 %v6700_v17, %v6700_v17  ;;  %v6866_v63 = vrot.slane %v6817_v51, %v12650_v28  ;;  %v18216_v17 = vld [vmem:[#allocation163_spill] sm:$0xff] }
 0x97c   : > { %9687 = vmatmul.mubr.bf16.vlgmr.msra.gmra.mrb[16].mxu0 %v6701_v27  ;;  %v6871_v29 = vsel %vm2734_vm1, %v6870_v38, %v6866_v63  ;;  %v10039_v38 = vld [vmem:[#allocation4 + $0x1e0] sm:$0xff]  }
 0x97d   : > { %v15834_v37 = vpop.permute.xlu0 %7090  ;;  %v6823_v45 = vpop.permute.xlu1 %6822  ;;  %9711 = vmatpush3.bf16.msra.mxu0 %v10035_v31  ;;  %9726 = vmatprep.mubr.msk.bf16.mxu0 %vm10784_vm9, %v17962_v5  ;;  %v18217_v31 = vld [vmem:[#allocation109_spill] sm:$0xff]  ;;  %vm18218_vm9 = vcmask 392512  }
 0x97e   : > { %v6875_v42 = vrot.slane %v6823_v45, %v12660_v41  ;;  %7915 = vperm.xlu0 %9905, %v18212_v26   ;;  %7840 = vperm.xlu1 %9906, %v18213_v47  }
 0x97f   : > { %9712 = vmatprep.subr.bf16.mxu0 %v17962_v5 }
 0x980   : > { %v6876_v0 = vsel %vm2741_vm2, %v6875_v42, %v6871_v29  ;;  %v18220_v42 = vld [vmem:[#allocation224_spill] sm:$0xff] }
 0x981   : > { %v15846_v53 = vpop.permute.xlu0 %7096  ;;  %v6829_v40 = vpop.permute.xlu1 %6828  ;;  %9713 = vmatpush3.bf16.msra.mxu0 %v10036_v44  ;;  %v6881_v39 = vsel %vm2748_vm3, %v6880_v60, %v6876_v0  ;;  %v18219_v44 = vld [vmem:[#allocation167_spill] sm:$0xff] }
 0x982   : > { %v6885_v48 = vrot.slane %v6829_v40, %v12667_v56  ;;  %7921 = vperm.xlu0 %9905, %v18214_v61   ;;  %7846 = vperm.xlu1 %9906, %v18215_v59   ;;  %v10040_v60 = vld [vmem:[#allocation4 + $0x1e8] sm:$0xff]  }
 0x983   : > { %9714 = vmatprep.subr.bf16.mxu0 %v17962_v5 }
 0x984   : > { %v6886_v57 = vsel %vm2755_vm4, %v6885_v48, %v6881_v39  ;;  %v18222_v48 = vld [vmem:[#allocation225_spill] sm:$0xff] }
 0x985   : > { %v15856_v6 = vpop.permute.xlu0 %7102  ;;  %v6835_v43 = vpop.permute.xlu1 %6834  ;;  %9715 = vmatpush3.bf16.msra.mxu0 %v10037_v2  ;;  %v6891_v8 = vsel %vm18218_vm9, %v6890_v19, %v6886_v57  ;;  %v18221_v2 = vld [vmem:[#allocation165_spill] sm:$0xff]  ;;  %v10041_v19 = vld [vmem:[#allocation4 + $0x1f0] sm:$0xff]  }
 0x986   : > { %v6895_v51 = vrot.slane %v6835_v43, %v12673_v9  ;;  %7927 = vperm.xlu0 %9905, %v18216_v17   ;;  %7852 = vperm.xlu1 %9906, %v18217_v31  }
 0x987   : > { %9716 = vmatprep.subr.bf16.mxu0 %v17962_v5 }
 0x988   : > { %v6896_v34 = vsel %vm18198_vm5, %v6895_v51, %v6891_v8  ;;  %v18224_v51 = vld [vmem:[#allocation226_spill] sm:$0xff] }
 0x989   : > { %v15866_v27 = vpop.permute.xlu0 %7741  ;;  %v6841_v63 = vpop.permute.xlu1 %6840  ;;  %9717 = vmatpush3.bf16.msra.mxu0 %v10038_v7  ;;  %v6901_v26 = vsel %vm2776_vm7, %v6900_v54, %v6896_v34  ;;  %v18223_v7 = vld [vmem:[#allocation169_spill] sm:$0xff] }
 0x98a   : > { %v6905_v45 = vrot.slane %v6841_v63, %v12680_v10  ;;  %7933 = vperm.xlu0 %9905, %v18219_v44   ;;  %7858 = vperm.xlu1 %9906, %v18220_v42   ;;  %v10042_v54 = vld [vmem:[#allocation4 + $0x1f8] sm:$0xff]   ;;  %v6940_v44 = vrot.slane %v15776_v4, %v17790_v14 }
 0x98b   : > { %9718 = vmatprep.subr.bf16.mxu0 %v17962_v5 }
 0x98c   : > { %v6906_v47 = vsel %vm2783_vm8, %v6905_v45, %v6901_v26  ;;  %v18226_v45 = vld [vmem:[#allocation227_spill] sm:$0xff] }
 0x98d   : > { %v15876_v29 = vpop.permute.xlu0 %7747  ;;  %v6847_v0 = vpop.permute.xlu1 %6846  ;;  %9719 = vmatpush3.bf16.msra.mxu0 %v10039_v38  ;;  %v6911_v61 = vsel %vm18203_vm10, %v6910_v15, %v6906_v47  ;;  %v18225_v38 = vld [vmem:[#allocation179_spill] sm:$0xff] }
 0x98e   : > { %v6915_v40 = vrot.slane %v6847_v0, %v12703_v23  ;;  %7939 = vperm.xlu0 %9905, %v18221_v2   ;;  %7864 = vperm.xlu1 %9906, %v18222_v48   ;;  %v18227_v0 = vld [vmem:[#allocation173_spill] sm:$0xff] }
 0x98f   : > { %9720 = vmatprep.subr.bf16.mxu0 %v17962_v5 }
 0x990   : > { %v6916_v59 = vsel %vm18204_vm0, %v6915_v40, %v6911_v61  ;;  %v7111_v61 = vrot.slane %v15786_v20, %v12653_v30  ;;  %v18233_v20 = vld [vmem:[#allocation94_spill] sm:$0xff] }
 0x991   : > { %v15886_v39 = vpop.permute.xlu0 %7753  ;;  %v6853_v57 = vpop.permute.xlu1 %6852  ;;  %9721 = vmatpush3.bf16.msra.mxu0 %v10040_v60  ;;  %v6921_v17 = vsel %vm18207_vm11, %v6920_v13, %v6916_v59  ;;  %v18228_v60 = vld [vmem:[#allocation90_spill] sm:$0xff]  ;;  %v18230_v13 = vld [vmem:[#allocation183_spill] sm:$0xff] }
 0x992   : > { %v6925_v43 = vrot.slane %v6853_v57, %v12717_v22  ;;  %7945 = vperm.xlu0 %9905, %v18223_v7   ;;  %7870 = vperm.xlu1 %9906, %v18224_v51   ;;  %v18231_v57 = vld [vmem:[#allocation102_spill] sm:$0xff] }
 0x993   : > { %9722 = vmatprep.subr.bf16.mxu0 %v17962_v5 }
 0x994   : > { %v6926_v31 = vsel %vm2811_vm12, %v6925_v43, %v6921_v17  ;;  %v7121_v17 = vrot.slane %v15796_v35, %v12663_v11  ;;  %v18235_v35 = vld [vmem:[#allocation181_spill] sm:$0xff] }
 0x995   : > { %v15896_v8 = vpop.permute.xlu0 %7759  ;;  %v6859_v34 = vpop.permute.xlu1 %6858  ;;  %9723 = vmatpush3.bf16.msra.mxu0 %v10041_v19  ;;  %v6931_v42 = vsel %vm2818_vm13, %v6930_v12, %v6926_v31  ;;  %v18232_v12 = vld [vmem:[#allocation170_spill] sm:$0xff] }
 0x996   : > { %v6935_v63 = vrot.slane %v6859_v34, %v17781_v52  ;;  %7951 = vperm.xlu0 %9905, %v18225_v38   ;;  %7876 = vperm.xlu1 %9906, %v18226_v45   ;;  %v7131_v45 = vrot.slane %v15806_v58, %v12670_v36  ;;  %v18237_v58 = vld [vmem:[#allocation97_spill] sm:$0xff] }
 0x997   : > { %9724 = vmatprep.subr.bf16.mxu0 %v17962_v5  ;;  %v18229_v5 = vmov 0  }
 0x998   : > { %v6936_v33 = vsel %vm2825_vm14, %v6935_v63, %v6931_v42  ;;  %v18234_v42 = vld [vmem:[#allocation168_spill] sm:$0xff] }
 0x999   : > { %v15906_v26 = vpop.permute.xlu0 %7765  ;;  %v7058_v47 = vpop.permute.xlu1 %7057  ;;  %v6941_v15 = vsel %vm2832_vm15, %v6940_v44, %v6936_v33  ;;  %9725 = vmatpush3.bf16.msra.mxu0 %v10042_v54 }
 0x99a   : > { %7957 = vperm.xlu0 %9905, %v18227_v0   ;;  %7882 = vperm.xlu1 %9906, %v18228_v60   ;;  %v6942_v40 = vpack.c.b16 %v6941_v15, %v6941_v15  ;;  %v7107_v2 = vrot.slane %v7058_v47, %v12650_v28  ;;  %v7141_v60 = vrot.slane %v15816_v3, %v12677_v1  ;;  %v18239_v3 = vld [vmem:[#allocation91_spill] sm:$0xff] }
 0x99c   : > { %9707 = vmatmul.mubr.bf16.vlgmr.msra.gmra.mrb[16].mxu1 %v6942_v40  ;;  %v7112_v19 = vsel %vm2734_vm1, %v7111_v61, %v7107_v2  ;;  %v18236_v2 = vld [vmem:[#allocation194_spill] sm:$0xff] }
 0x99d   : > { %v15912_v4 = vpop.permute.xlu0 %7771  ;;  %v7064_v48 = vpop.permute.xlu1 %7063  ;;  %7528 = vmatprep.mubr.bf16.mxu1 %v18229_v5 }
 0x99e   : > { %v7116_v59 = vrot.slane %v7064_v48, %v12660_v41  ;;  %7963 = vperm.xlu0 %9905, %v18230_v13   ;;  %7888 = vperm.xlu1 %9906, %v18231_v57   ;;  %v7151_v57 = vrot.slane %v15826_v49, %v12696_v62  ;;  %v18240_v49 = vld [vmem:[#allocation182_spill] sm:$0xff] }
 0x9a0   : > { %v7117_v43 = vsel %vm2741_vm2, %v7116_v59, %v7112_v19 }
 0x9a1   : > { %v15922_v7 = vpop.permute.xlu0 %7777  ;;  %v7070_v51 = vpop.permute.xlu1 %7069  ;;  %v7122_v34 = vsel %vm2748_vm3, %v7121_v17, %v7117_v43  ;;  %v18238_v43 = vld [vmem:[#allocation175_spill] sm:$0xff] }
 0x9a2   : > { %v7126_v31 = vrot.slane %v7070_v51, %v12667_v56  ;;  %7969 = vperm.xlu0 %9905, %v18232_v12   ;;  %7894 = vperm.xlu1 %9906, %v18233_v20  }
 0x9a4   : > { %v7127_v54 = vsel %vm2755_vm4, %v7126_v31, %v7122_v34 }
 0x9a5   : > { %v15931_v63 = vpop.permute.xlu0 %7783  ;;  %v7076_v38 = vpop.permute.xlu1 %7075  ;;  %v7132_v33 = vsel %vm18218_vm9, %v7131_v45, %v7127_v54  ;;  %v7161_v54 = vrot.slane %v15834_v37, %v12714_v16  ;;  %v18243_v37 = vld [vmem:[#allocation191_spill] sm:$0xff]  ;;  %vm18256_vm9 = vcmask 1041409  }
 0x9a6   : > { %v7136_v44 = vrot.slane %v7076_v38, %v12673_v9  ;;  %7975 = vperm.xlu0 %9905, %v18234_v42   ;;  %7900 = vperm.xlu1 %9906, %v18235_v35  }
 0x9a8   : > { %v7137_v47 = vsel %vm18198_vm5, %v7136_v44, %v7132_v33  ;;  %v18241_v44 = vld [vmem:[#allocation230_spill] sm:$0xff]  ;;  %vm18264_vm5 = vcmask 392512  }
 0x9a9   : > { %v15940_v15 = vpop.permute.xlu0 %7789  ;;  %v7082_v0 = vpop.permute.xlu1 %7081  ;;  %v7142_v48 = vsel %vm2776_vm7, %v7141_v60, %v7137_v47 }
 0x9aa   : > { %v7146_v40 = vrot.slane %v7082_v0, %v12680_v10  ;;  %7981 = vperm.xlu0 %9905, %v18236_v2   ;;  %7906 = vperm.xlu1 %9906, %v18237_v58   ;;  %v7171_v0 = vrot.slane %v15846_v53, %v12726_v21  ;;  %v7181_v58 = vrot.slane %v15856_v6, %v17790_v14  ;;  %v18245_v53 = vld [vmem:[#allocation180_spill] sm:$0xff]  ;;  %v18246_v6 = vld [vmem:[#allocation185_spill] sm:$0xff] }
 0x9ac   : > { %v7147_v61 = vsel %vm2783_vm8, %v7146_v40, %v7142_v48  ;;  %v18242_v40 = vld [vmem:[#allocation186_spill] sm:$0xff] }
 0x9ad   : > { %v15949_v59 = vpop.permute.xlu0 %7795  ;;  %v7088_v13 = vpop.permute.xlu1 %7087  ;;  %v7152_v17 = vsel %vm18203_vm10, %v7151_v57, %v7147_v61  ;;  %vm18265_vm10 = vcmask 458112  }
 0x9ae   : > { %v7156_v19 = vrot.slane %v7088_v13, %v12703_v23  ;;  %7987 = vperm.xlu0 %9905, %v18238_v43   ;;  %7912 = vperm.xlu1 %9906, %v18239_v3  }
 0x9af   : > { %v5580_v51 = vpop.f32.mrb[4].mxu1 }
 0x9b0   : > { %v9588_v31 = vpop.f32.mrb[5].mxu1  ;;  %v7157_v12 = vsel %vm18204_vm0, %v7156_v19, %v7152_v17  ;;  %v18244_v19 = vld [vmem:[#allocation193_spill] sm:$0xff]  ;;  %vm18270_vm0 = vcmask 654912  }
 0x9b1   : > { %v15958_v20 = vpop.permute.xlu0 %7801  ;;  %v5583_v34 = vpop.f32.mrb[6].mxu1  ;;  %v7162_v35 = vsel %vm18207_vm11, %v7161_v54, %v7157_v12  ;;  %v18247_v12 = vld [vmem:[#allocation209_spill] sm:$0xff]  ;;  %vm18271_vm11 = vcmask 720512  }
 0x9b2   : > { %v7094_v38 = vpop.permute.xlu1 %7093  ;;  %7993 = vperm.xlu0 %9905, %v18240_v49   ;;  %v9589_v45 = vpop.f32.mrb[7].mxu1  ;;  %7918 = vperm.xlu1 %9906, %v18241_v44   ;;  %v18249_v49 = vld [vmem:[#allocation212_spill] sm:$0xff] }
 0x9b3   : > { %v7166_v42 = vrot.slane %v7094_v38, %v12717_v22  ;;  %v18248_v38 = vld [vmem:[#allocation203_spill] sm:$0xff] }
 0x9b5   : > { %v7167_v33 = vsel %vm2811_vm12, %v7166_v42, %v7162_v35  ;;  %v15967_v47 = vpop.permute.xlu0 %7807  ;;  %v18250_v42 = vld [vmem:[#allocation218_spill] sm:$0xff]  ;;  %v18251_v35 = vld [vmem:[#allocation171_spill] sm:$0xff] }
 0x9b6   : > { %v7100_v60 = vpop.permute.xlu1 %7099  ;;  %7999 = vperm.xlu0 %9905, %v18242_v40   ;;  %7924 = vperm.xlu1 %9906, %v18243_v37   ;;  %v7172_v48 = vsel %vm2818_vm13, %v7171_v0, %v7167_v33 }
 0x9b7   : > { %v7176_v2 = vrot.slane %v7100_v60, %v17781_v52  ;;  %v18253_v60 = vld [vmem:[#allocation200_spill] sm:$0xff] }
 0x9b9   : > { %v7177_v61 = vsel %vm2825_vm14, %v7176_v2, %v7172_v48  ;;  %v15978_v13 = vpop.permute.xlu0 %7813  ;;  %v18254_v2 = vld [vmem:[#allocation198_spill] sm:$0xff] }
 0x9ba   : > { %v15980_v57 = vpop.permute.xlu1 %7738  ;;  %8005 = vperm.xlu0 %9905, %v18244_v19   ;;  %7930 = vperm.xlu1 %9906, %v18245_v53   ;;  %v7182_v43 = vsel %vm2832_vm15, %v7181_v58, %v7177_v61  ;;  %v18255_v58 = vld [vmem:[#allocation214_spill] sm:$0xff] }
 0x9bb   : > { %v7183_v3 = vpack.c.b16 %v7182_v43, %v7182_v43 }
 0x9bd   : > { %9727 = vmatmul.mubr.bf16.vlgmr.msra.gmra.mrb[20].mxu0 %v7183_v3  ;;  %v15985_v17 = vpop.permute.xlu0 %7819 }
 0x9be   : > { %v15987_v31 = vpop.permute.xlu1 %7744  ;;  %8011 = vperm.xlu0 %9905, %v18246_v6   ;;  %7936 = vperm.xlu1 %9906, %v18247_v12  }
 0x9bf   : > { %7569 = vmatprep.mubr.bf16.mxu0 %v18229_v5  ;;  %v18252_v5 = vld [vmem:[#allocation188_spill] sm:$0xff] }
 0x9c1   : > { %v15992_v34 = vpop.permute.xlu0 %7825 }
 0x9c2   : > { %v15994_v54 = vpop.permute.xlu1 %7750  ;;  %8017 = vperm.xlu0 %9905, %v18248_v38   ;;  %7942 = vperm.xlu1 %9906, %v18249_v49   ;;  %v18257_v38 = vld [vmem:[#allocation166_spill] sm:$0xff] }
 0x9c5   : > { %v15998_v45 = vpop.permute.xlu0 %7831 }
 0x9c6   : > { %v16000_v44 = vpop.permute.xlu1 %7756  ;;  %8023 = vperm.xlu0 %9905, %v18250_v42   ;;  %7948 = vperm.xlu1 %9906, %v18251_v35   ;;  %v18258_v35 = vld [vmem:[#allocation213_spill] sm:$0xff] }
 0x9c9   : > { %v16004_v33 = vpop.permute.xlu0 %7837 }
 0x9ca   : > { %v16006_v0 = vpop.permute.xlu1 %7762  ;;  %8029 = vperm.xlu0 %9905, %v18252_v5   ;;  %7954 = vperm.xlu1 %9906, %v18253_v60  }
 0x9cd   : > { %v16010_v40 = vpop.permute.xlu0 %7843 }
 0x9ce   : > { %v16012_v37 = vpop.permute.xlu1 %7768  ;;  %8035 = vperm.xlu0 %9905, %v18254_v2   ;;  %7960 = vperm.xlu1 %9906, %v18255_v58   ;;  %v8207_v58 = vrot.slane %v15940_v15, %v12653_v30  ;;  %v18261_v15 = vld [vmem:[#allocation202_spill] sm:$0xff] }
 0x9cf   : > { %v5821_v48 = vpop.f32.mrb[8].mxu0 }
 0x9d0   : > { %v7281_v61 = vrot.slane %v5821_v48, 7  ;;  %v9608_v19 = vpop.f32.mrb[9].mxu0 }
 0x9d1   : > { %v16016_v53 = vpop.permute.xlu0 %7849  ;;  %v5824_v43 = vpop.f32.mrb[10].mxu0 }
 0x9d2   : > { %v7282_v3 = vsel %vm18256_vm9, %v7281_v61, %v5580_v51  ;;  %v16019_v6 = vpop.permute.xlu1 %7774  ;;  %8041 = vperm.xlu0 %9905, %v15213_v32   ;;  %v9609_v12 = vpop.f32.mrb[11].mxu0  ;;  %7966 = vperm.xlu1 %9906, %v18257_v38   ;;  %v18259_v51 = vld [vmem:[#allocation189_spill] sm:$0xff]  ;;  %vm18272_vm9 = vcmask 1042434  }
 0x9d3   : > { %v8217_v12 = vrot.slane %v15949_v59, %v12663_v11  ;;  %v18263_v59 = vld [vmem:[#allocation201_spill] sm:$0xff] }
 0x9d5   : > { %v16023_v49 = vpop.permute.xlu0 %7855 }
 0x9d6   : > { %v16025_v42 = vpop.permute.xlu1 %7780  ;;  %8047 = vperm.xlu0 %9905, %v15237_v25   ;;  %7972 = vperm.xlu1 %9906, %v18258_v35   ;;  %v18260_v25 = vld [vmem:[#allocation172_spill] sm:$0xff] }
 0x9d9   : > { %v16029_v5 = vpop.permute.xlu0 %7861 }
 0x9da   : > { %v7787_v60 = vpop.permute.xlu1 %7786  ;;  %8053 = vperm.xlu0 %9905, %v15252_v46   ;;  %7978 = vperm.xlu1 %9906, %v18259_v51  }
 0x9db   : > { %v8203_v32 = vrot.slane %v7787_v60, %v12650_v28 }
 0x9dd   : > { %v16034_v2 = vpop.permute.xlu0 %7867  ;;  %v8208_v19 = vsel %vm2734_vm1, %v8207_v58, %v8203_v32  ;;  %v8227_v32 = vrot.slane %v15958_v20, %v12670_v36  ;;  %v18267_v20 = vld [vmem:[#allocation55_spill] sm:$0xff] }
 0x9de   : > { %v7793_v48 = vpop.permute.xlu1 %7792  ;;  %8074 = vperm.xlu0 %9905, %v15341_v24   ;;  %7984 = vperm.xlu1 %9906, %v18260_v25  }
 0x9df   : > { %v8212_v61 = vrot.slane %v7793_v48, %v12660_v41  ;;  %v18262_v48 = vld [vmem:[#allocation190_spill] sm:$0xff] }
 0x9e1   : > { %v8213_v46 = vsel %vm2741_vm2, %v8212_v61, %v8208_v19  ;;  %v16043_v43 = vpop.permute.xlu0 %7873 }
 0x9e2   : > { %v7799_v38 = vpop.permute.xlu1 %7798  ;;  %8080 = vperm.xlu0 %9905, %v15363_v55   ;;  %7990 = vperm.xlu1 %9906, %v18261_v15   ;;  %v8218_v35 = vsel %vm2748_vm3, %v8217_v12, %v8213_v46  ;;  %v8237_v46 = vrot.slane %v15967_v47, %v12677_v1  ;;  %v18269_v47 = vld [vmem:[#allocation196_spill] sm:$0xff] }
 0x9e3   : > { %v8222_v24 = vrot.slane %v7799_v38, %v12667_v56  ;;  %v18266_v38 = vld [vmem:[#allocation217_spill] sm:$0xff] }
 0x9e5   : > { %v8223_v60 = vsel %vm2755_vm4, %v8222_v24, %v8218_v35  ;;  %v16052_v51 = vpop.permute.xlu0 %7879 }
 0x9e6   : > { %v7805_v58 = vpop.permute.xlu1 %7804  ;;  %8086 = vperm.xlu0 %9905, %v18262_v48   ;;  %7996 = vperm.xlu1 %9906, %v18263_v59   ;;  %v8228_v25 = vsel %vm18264_vm5, %v8227_v32, %v8223_v60  ;;  %v8247_v60 = vrot.slane %v15978_v13, %v12696_v62  ;;  %v18268_v48 = vld [vmem:[#allocation204_spill] sm:$0xff]  ;;  %v8257_v13 = vrot.slane %v15985_v17, %v12714_v16  ;;  %vm18275_vm5 = vcmask 786112  }
 0x9e7   : > { %v8232_v55 = vrot.slane %v7805_v58, %v12673_v9  ;;  %v8267_v17 = vrot.slane %v15992_v34, %v12726_v21  ;;  %v8133_v34 = vrot.slane %v15987_v31, %v12660_v41  ;;  %v10048_v31 = vld [vmem:[#allocation17 + $0xc] ss:$16 sps:$4 sm:$0xff]  }
 0x9e8   : > { %7537 = vmatprep.subr.bf16.mxu0 %v10048_v31  ;;  %v10055_v31 = vld [vmem:[#allocation17 + $0x40] ss:$16 sps:$4 sm:$0xff]  }
 0x9e9   : > { %v8233_v61 = vsel %vm18265_vm10, %v8232_v55, %v8228_v25  ;;  %v16061_v19 = vpop.permute.xlu0 %7885  ;;  %vm18284_vm10 = vcmask 392512  }
 0x9ea   : > { %v7811_v12 = vpop.permute.xlu1 %7810  ;;  %8092 = vperm.xlu0 %9905, %v18266_v38   ;;  %8002 = vperm.xlu1 %9906, %v18267_v20   ;;  %v8238_v24 = vsel %vm2776_vm7, %v8237_v46, %v8233_v61 }
 0x9eb   : > { %v8242_v15 = vrot.slane %v7811_v12, %v12680_v10 }
 0x9ed   : > { %v8243_v35 = vsel %vm2783_vm8, %v8242_v15, %v8238_v24  ;;  %v16070_v58 = vpop.permute.xlu0 %7891 }
 0x9ee   : > { %v7817_v32 = vpop.permute.xlu1 %7816  ;;  %8098 = vperm.xlu0 %9905, %v18268_v48   ;;  %8008 = vperm.xlu1 %9906, %v18269_v47   ;;  %v8248_v25 = vsel %vm18270_vm0, %v8247_v60, %v8243_v35  ;;  %v18273_v48 = vld [vmem:[#allocation112_spill] sm:$0xff]  ;;  %v18274_v47 = vld [vmem:[#allocation33_spill] sm:$0xff]  ;;  %vm18285_vm0 = vcmask 458112  }
 0x9ef   : > { %v8252_v59 = vrot.slane %v7817_v32, %v12703_v23  ;;  %v6062_v55 = vpop.f32.mrb[8].mxu1 }
 0x9f0   : > { %v7283_v12 = vrot.slane %v6062_v55, 6  ;;  %v9628_v38 = vpop.f32.mrb[9].mxu1 }
 0x9f1   : > { %v8253_v61 = vsel %vm18271_vm11, %v8252_v59, %v8248_v25  ;;  %v16079_v46 = vpop.permute.xlu0 %7897  ;;  %v6065_v20 = vpop.f32.mrb[10].mxu1  ;;  %vm18286_vm11 = vmmov %vm18284_vm10 }
 0x9f2   : > { %v16084_v15 = vsel %vm18272_vm9, %v7283_v12, %v7282_v3  ;;  %v7823_v24 = vpop.permute.xlu1 %7822  ;;  %8059 = vperm.xlu0 %9905, %v18273_v48   ;;  %v9629_v32 = vpop.f32.mrb[11].mxu1  ;;  %8014 = vperm.xlu1 %9906, %v18274_v47   ;;  %v8258_v60 = vsel %vm18275_vm5, %v8257_v13, %v8253_v61  ;;  %v18276_v3 = vld [vmem:[#allocation211_spill] sm:$0xff]  ;;  %v18277_v12 = vld [vmem:[#allocation174_spill] sm:$0xff]  ;;  %v8277_v20 = vrot.slane %v15998_v45, %v17790_v14  ;;  %vm18288_vm9 = vmmov %vm18285_vm0  ;;  %vm18290_vm5 = vcmask 654912  }
 0x9f3   : > { %v8262_v35 = vrot.slane %v7823_v24, %v12717_v22  ;;  %v8124_v61 = vrot.slane %v15980_v57, %v12650_v28  ;;  %v10043_v45 = vld [vmem:[#allocation17] ss:$16 sps:$4 sm:$0xff]   ;;  %v8128_v57 = vrot.slane %v15866_v27, %v12653_v30 }
 0x9f5   : > { %v8263_v59 = vsel %vm2811_vm12, %v8262_v35, %v8258_v60  ;;  %v16091_v55 = vpop.permute.xlu0 %7903  ;;  %v18278_v35 = vld [vmem:[#allocation113_spill] sm:$0xff]  ;;  %v18279_v60 = vld [vmem:[#allocation210_spill] sm:$0xff] }
 0x9f6   : > { %v7829_v25 = vpop.permute.xlu1 %7828  ;;  %8062 = vperm.xlu0 %9905, %v18276_v3   ;;  %8020 = vperm.xlu1 %9906, %v18277_v12   ;;  %v8268_v24 = vsel %vm2818_vm13, %v8267_v17, %v8263_v59  ;;  %v10045_v59 = vld [vmem:[#allocation17 + $0x4] ss:$16 sps:$4 sm:$0xff]   ;;  %v8286_v17 = vrot.slane %v16004_v33, %v12653_v30  ;;  %v10046_v3 = vld [vmem:[#allocation17 + $0x8] ss:$16 sps:$4 sm:$0xff]   ;;  %v8129_v12 = vsel %vm2734_vm1, %v8128_v57, %v8124_v61 }
 0x9f7   : > { %v8272_v38 = vrot.slane %v7829_v25, %v17781_v52  ;;  %7496 = vmatprep.subr.bf16.mxu1 %v10045_v59  ;;  %v8134_v27 = vsel %vm2741_vm2, %v8133_v34, %v8129_v12  ;;  %v8143_v33 = vrot.slane %v15994_v54, %v12667_v56  ;;  %v10054_v59 = vld [vmem:[#allocation17 + $0x2c] ss:$16 sps:$4 sm:$0xff]   ;;  %v8138_v61 = vrot.slane %v15876_v29, %v12663_v11  ;;  %v10057_v12 = vld [vmem:[#allocation17 + $0x44] ss:$16 sps:$4 sm:$0xff]  }
 0x9f8   : > { %7497 = vmatpush1.bf16.msra.mxu1 %v10043_v45  ;;  %7538 = vmatpush1.bf16.msra.mxu0 %v10046_v3  ;;  %v10052_v45 = vld [vmem:[#allocation17 + $0x28] ss:$16 sps:$4 sm:$0xff]   ;;  %v8296_v34 = vrot.slane %v16010_v40, %v12663_v11  ;;  %v8153_v3 = vrot.slane %v16000_v44, %v12673_v9 }
 0x9f9   : > { %v8273_v13 = vsel %vm2825_vm14, %v8272_v38, %v8268_v24  ;;  %v16104_v48 = vpop.permute.xlu0 %7909  ;;  %v10049_v24 = vld [vmem:[#allocation17 + $0x20] ss:$16 sps:$4 sm:$0xff]   ;;  %7539 = vmatprep.subr.bf16.mxu0 %v10054_v59  ;;  %v8139_v54 = vsel %vm2748_vm3, %v8138_v61, %v8134_v27  ;;  %v18283_v40 = vld [vmem:[#allocation176_spill] sm:$0xff] }
 0x9fa   : > { %v16109_v32 = vsel %vm2832_vm15, %v8277_v20, %v8273_v13  ;;  %v7835_v47 = vpop.permute.xlu1 %7834  ;;  %8065 = vperm.xlu0 %9905, %v18278_v35   ;;  %8026 = vperm.xlu1 %9906, %v18279_v60   ;;  %v10051_v13 = vld [vmem:[#allocation17 + $0x24] ss:$16 sps:$4 sm:$0xff]   ;;  %v18281_v60 = vld [vmem:[#allocation192_spill] sm:$0xff]  ;;  %v8144_v29 = vsel %vm2755_vm4, %v8143_v33, %v8139_v54  ;;  %v8306_v33 = vrot.slane %v16016_v53, %v12670_v36 }
 0x9fb   : > { %v8282_v25 = vrot.slane %v7835_v47, %v12650_v28  ;;  %v18280_v47 = vld [vmem:[#allocation199_spill] sm:$0xff]  ;;  %7498 = vmatprep.subr.bf16.mxu1 %v10051_v13  ;;  %v10060_v27 = vld [vmem:[#allocation17 + $0x4c] ss:$16 sps:$4 sm:$0xff]  }
 0x9fc   : > { %7499 = vmatpush1.bf16.msra.mxu1 %v10049_v24  ;;  %7540 = vmatpush1.bf16.msra.mxu0 %v10052_v45  ;;  %v8163_v45 = vrot.slane %v16006_v0, %v12680_v10  ;;  %v18287_v53 = vld [vmem:[#allocation187_spill] sm:$0xff] }
 0x9fd   : > { %v8287_v38 = vsel %vm2734_vm1, %v8286_v17, %v8282_v25  ;;  %v16120_v20 = vpop.permute.xlu0 %7915  ;;  %7500 = vmatprep.subr.bf16.mxu1 %v10057_v12  ;;  %7541 = vmatprep.subr.bf16.mxu0 %v10060_v27  ;;  %v10066_v12 = vld [vmem:[#allocation17 + $0x6c] ss:$16 sps:$4 sm:$0xff]   ;;  %v8173_v27 = vrot.slane %v16012_v37, %v12703_v23 }
 0x9fe   : > { %v7841_v35 = vpop.permute.xlu1 %7840  ;;  %8068 = vperm.xlu0 %9905, %v18280_v47   ;;  %8032 = vperm.xlu1 %9906, %v18281_v60   ;;  %v18282_v47 = vld [vmem:[#allocation114_spill] sm:$0xff] }
 0x9ff   : > { %v8291_v57 = vrot.slane %v7841_v35, %v12660_v41  ;;  %v10058_v60 = vld [vmem:[#allocation17 + $0x48] ss:$16 sps:$4 sm:$0xff]  }
 0xa00   : > { %7501 = vmatpush1.bf16.msra.mxu1 %v10055_v31  ;;  %7542 = vmatpush1.bf16.msra.mxu0 %v10058_v60  ;;  %v18289_v60 = vld [vmem:[#allocation125_spill] sm:$0xff] }
 0xa01   : > { %v8292_v17 = vsel %vm2741_vm2, %v8291_v57, %v8287_v38  ;;  %v16134_v25 = vpop.permute.xlu0 %7921  ;;  %v8148_v38 = vrot.slane %v15886_v39, %v12670_v36  ;;  %v10061_v57 = vld [vmem:[#allocation17 + $0x60] ss:$16 sps:$4 sm:$0xff]   ;;  %7543 = vmatprep.subr.bf16.mxu0 %v10066_v12 }
 0xa02   : > { %v8297_v13 = vsel %vm2748_vm3, %v8296_v34, %v8292_v17  ;;  %v7847_v35 = vpop.permute.xlu1 %7846  ;;  %8071 = vperm.xlu0 %9905, %v18282_v47   ;;  %8038 = vperm.xlu1 %9906, %v18283_v40   ;;  %v10063_v34 = vld [vmem:[#allocation17 + $0x64] ss:$16 sps:$4 sm:$0xff]   ;;  %v10067_v47 = vld [vmem:[#allocation17 + $0x80] ss:$16 sps:$4 sm:$0xff]  }
 0xa03   : > { %v8301_v24 = vrot.slane %v7847_v35, %v12667_v56  ;;  %v8149_v44 = vsel %vm18284_vm10, %v8148_v38, %v8144_v29  ;;  %v8158_v29 = vrot.slane %v15896_v8, %v12677_v1  ;;  %7502 = vmatprep.subr.bf16.mxu1 %v10063_v34  ;;  %v10069_v40 = vld [vmem:[#allocation17 + $0x84] ss:$16 sps:$4 sm:$0xff]   ;;  %vm18291_vm10 = vcmask 720512  }
 0xa04   : > { %v8154_v39 = vsel %vm18285_vm0, %v8153_v3, %v8149_v44  ;;  %v8316_v3 = vrot.slane %v16023_v49, %v12677_v1  ;;  %7503 = vmatpush1.bf16.msra.mxu1 %v10061_v57  ;;  %v10072_v49 = vld [vmem:[#allocation17 + $0x8c] ss:$16 sps:$4 sm:$0xff]   ;;  %v8326_v57 = vrot.slane %v16029_v5, %v12696_v62  ;;  %vm18292_vm0 = vmmov %vm18290_vm5 }
 0xa05   : > { %v8302_v59 = vsel %vm2755_vm4, %v8301_v24, %v8297_v13  ;;  %v16149_v61 = vpop.permute.xlu0 %7927  ;;  %v10064_v13 = vld [vmem:[#allocation17 + $0x68] ss:$16 sps:$4 sm:$0xff]   ;;  %v8159_v0 = vsel %vm2776_vm7, %v8158_v29, %v8154_v39  ;;  %7504 = vmatprep.subr.bf16.mxu1 %v10069_v40  ;;  %v18293_v29 = vld [vmem:[#allocation197_spill] sm:$0xff]  ;;  %v10078_v5 = vld [vmem:[#allocation17 + $0xac] ss:$16 sps:$4 sm:$0xff]  }
 0xa06   : > { %v8307_v54 = vsel %vm18286_vm11, %v8306_v33, %v8302_v59  ;;  %v7853_v17 = vpop.permute.xlu1 %7852  ;;  %8119 = vperm.xlu0 %9905, %v15505_v18   ;;  %8044 = vperm.xlu1 %9906, %v18287_v53   ;;  %v8164_v8 = vsel %vm2783_vm8, %v8163_v45, %v8159_v0  ;;  %v8168_v33 = vrot.slane %v15906_v26, %v12696_v62  ;;  %v10070_v59 = vld [vmem:[#allocation17 + $0x88] ss:$16 sps:$4 sm:$0xff]   ;;  %v10073_v45 = vld [vmem:[#allocation17 + $0xa0] ss:$16 sps:$4 sm:$0xff]   ;;  %vm18294_vm11 = vcmask 786112  }
 0xa07   : > { %v8311_v31 = vrot.slane %v7853_v17, %v12673_v9  ;;  %7544 = vmatpush1.bf16.msra.mxu0 %v10064_v13  ;;  %v8183_v17 = vrot.slane %v16019_v6, %v12717_v22  ;;  %v10076_v0 = vld [vmem:[#allocation17 + $0xa8] ss:$16 sps:$4 sm:$0xff]  }
 0xa08   : > { %7545 = vmatprep.subr.bf16.mxu0 %v10072_v49  ;;  %v8169_v37 = vsel %vm18290_vm5, %v8168_v33, %v8164_v8  ;;  %7505 = vmatpush1.bf16.msra.mxu1 %v10067_v47  ;;  %vm18296_vm5 = vmmov %vm18294_vm11 }
 0xa09   : > { %v8312_v35 = vsel %vm18288_vm9, %v8311_v31, %v8307_v54  ;;  %v16164_v18 = vpop.permute.xlu0 %7933  ;;  %v10075_v54 = vld [vmem:[#allocation17 + $0xa4] ss:$16 sps:$4 sm:$0xff]   ;;  %v8174_v26 = vsel %vm18291_vm10, %v8173_v27, %v8169_v37  ;;  %v8178_v31 = vrot.slane %v15912_v4, %v12714_v16  ;;  %vm18295_vm9 = vmmov %vm18291_vm10  ;;  %v8346_v37 = vrot.slane %v16043_v43, %v12726_v21 }
 0xa0a   : > { %v8317_v38 = vsel %vm2776_vm7, %v8316_v3, %v8312_v35  ;;  %v7859_v24 = vpop.permute.xlu1 %7858  ;;  %8050 = vperm.xlu1 %9906, %v18289_v60   ;;  %7506 = vmatprep.subr.bf16.mxu1 %v10075_v54  ;;  %v8336_v35 = vrot.slane %v16034_v2, %v12714_v16  ;;  %vm18299_vm10 = vcmask 1041409  }
 0xa0b   : > { %v8321_v44 = vrot.slane %v7859_v24, %v12680_v10  ;;  %7546 = vmatpush1.bf16.msra.mxu0 %v10070_v59  ;;  %v8179_v40 = vsel %vm18294_vm11, %v8178_v31, %v8174_v26  ;;  %v8193_v24 = vrot.slane %v16025_v42, %v17781_v52  ;;  %v8188_v59 = vrot.slane %v15922_v7, %v12726_v21  ;;  %v10079_v7 = vld [vmem:[#allocation17 + $0xc0] ss:$16 sps:$4 sm:$0xff]   ;;  %v10087_v31 = vld [vmem:[#allocation17 + $0xe4] ss:$16 sps:$4 sm:$0xff]  }
 0xa0c   : > { %7547 = vmatprep.subr.bf16.mxu0 %v10078_v5  ;;  %7507 = vmatpush1.bf16.msra.mxu1 %v10073_v45  ;;  %v8184_v4 = vsel %vm2811_vm12, %v8183_v17, %v8179_v40  ;;  %v18298_v17 = vld [vmem:[#allocation115_spill] sm:$0xff]  ;;  %v10084_v5 = vld [vmem:[#allocation17 + $0xcc] ss:$16 sps:$4 sm:$0xff]   ;;  %vm18304_vm11 = vcmask 392512  }
 0xa0d   : > { %v8322_v34 = vsel %vm2783_vm8, %v8321_v44, %v8317_v38  ;;  %v16178_v39 = vpop.permute.xlu0 %7939  ;;  %v18297_v44 = vld [vmem:[#allocation216_spill] sm:$0xff]  ;;  %v8189_v42 = vsel %vm2818_vm13, %v8188_v59, %v8184_v4  ;;  %v8365_v4 = vrot.slane %v16061_v19, %v12653_v30  ;;  %v8375_v19 = vrot.slane %v16070_v58, %v12663_v11 }
 0xa0e   : > { %v8327_v53 = vsel %vm18292_vm0, %v8326_v57, %v8322_v34  ;;  %v7865_v12 = vpop.permute.xlu1 %7864  ;;  %8056 = vperm.xlu1 %9906, %v18293_v29   ;;  %v8194_v45 = vsel %vm2825_vm14, %v8193_v24, %v8189_v42  ;;  %v8198_v29 = vrot.slane %v15931_v63, %v17790_v14  ;;  %vm18301_vm0 = vcmask 1042434  }
 0xa0f   : > { %v8331_v13 = vrot.slane %v7865_v12, %v12703_v23  ;;  %v6303_v3 = vpop.f32.mrb[12].mxu0  ;;  %7548 = vmatpush1.bf16.msra.mxu0 %v10076_v0  ;;  %v10082_v12 = vld [vmem:[#allocation17 + $0xc8] ss:$16 sps:$4 sm:$0xff]  }
 0xa10   : > { %v7285_v47 = vrot.slane %v6303_v3, 5  ;;  %v9648_v6 = vpop.f32.mrb[13].mxu0  ;;  %v10090_v3 = vld [vmem:[#allocation17 + $0xec] ss:$16 sps:$4 sm:$0xff]   ;;  %v8199_v0 = vsel %vm2832_vm15, %v8198_v29, %v8194_v45  ;;  %7549 = vmatprep.subr.bf16.mxu0 %v10084_v5  ;;  %v18303_v45 = vld [vmem:[#allocation141_spill] sm:$0xff]  ;;  %v8395_v29 = vrot.slane %v16091_v55, %v12677_v1  ;;  %v18308_v55 = vld [vmem:[#allocation143_spill] sm:$0xff] }
 0xa11   : > { %v8332_v8 = vsel %vm18295_vm9, %v8331_v13, %v8327_v53  ;;  %v16192_v27 = vpop.permute.xlu0 %7945  ;;  %v6306_v38 = vpop.f32.mrb[14].mxu0  ;;  %v10081_v53 = vld [vmem:[#allocation17 + $0xc4] ss:$16 sps:$4 sm:$0xff]   ;;  %v8356_v13 = vrot.slane %v16052_v51, %v17790_v14  ;;  %v10085_v6 = vld [vmem:[#allocation17 + $0xe0] ss:$16 sps:$4 sm:$0xff]   ;;  %v8753_v63 = vsel %vm18299_vm10, %v16109_v32, %v8199_v0  ;;  %vm18305_vm9 = vcmask 458112  }
 0xa12   : > { %v16199_v60 = vsel %vm3391_vm6, %v7285_v47, %v16084_v15  ;;  %v8337_v2 = vsel %vm18296_vm5, %v8336_v35, %v8332_v8  ;;  %v7871_v49 = vpop.permute.xlu1 %7870  ;;  %v9649_v33 = vpop.f32.mrb[15].mxu0  ;;  %8077 = vperm.xlu1 %9906, %v18297_v44   ;;  %7508 = vmatprep.subr.bf16.mxu1 %v10081_v53  ;;  %v18300_v38 = vld [vmem:[#allocation116_spill] sm:$0xff]  ;;  %v18302_v44 = vld [vmem:[#allocation139_spill] sm:$0xff]  ;;  %v8405_v0 = vrot.slane %v16104_v48, %v12696_v62  ;;  %vm18307_vm5 = vcmask 654912  }
 0xa13   : > { %v8341_v57 = vrot.slane %v7871_v49, %v12717_v22  ;;  %7509 = vmatpush1.bf16.msra.mxu1 %v10079_v7  ;;  %7550 = vmatpush1.bf16.msra.mxu0 %v10082_v12  ;;  %v10088_v51 = vld [vmem:[#allocation17 + $0xe8] ss:$16 sps:$4 sm:$0xff]   ;;  %vm18309_vm10 = vcmask 720512  }
 0xa14   : > { %7510 = vmatprep.subr.bf16.mxu1 %v10087_v31  ;;  %7551 = vmatprep.subr.bf16.mxu0 %v10090_v3 }
 0xa15   : > { %v8342_v15 = vsel %vm2811_vm12, %v8341_v57, %v8337_v2  ;;  %v16210_v34 = vpop.permute.xlu0 %7951 }
 0xa16   : > { %v8347_v54 = vsel %vm2818_vm13, %v8346_v37, %v8342_v15  ;;  %v7877_v26 = vpop.permute.xlu1 %7876  ;;  %8083 = vperm.xlu1 %9906, %v18298_v17  }
 0xa17   : > { %v8351_v43 = vrot.slane %v7877_v26, %v17781_v52  ;;  %7511 = vmatpush1.bf16.msra.mxu1 %v10085_v6  ;;  %7552 = vmatpush1.bf16.msra.mxu0 %v10088_v51  ;;  %v8385_v26 = vrot.slane %v16079_v46, %v12670_v36  ;;  %v18306_v46 = vld [vmem:[#allocation219_spill] sm:$0xff] }
 0xa19   : > { %v8352_v35 = vsel %vm2825_vm14, %v8351_v43, %v8347_v54  ;;  %v16222_v47 = vpop.permute.xlu0 %7957 }
 0xa1a   : > { %v8357_v40 = vsel %vm2832_vm15, %v8356_v13, %v8352_v35  ;;  %v7883_v8 = vpop.permute.xlu1 %7882  ;;  %8089 = vperm.xlu1 %9906, %v18300_v38  }
 0xa1b   : > { %v16231_v24 = vsel %vm18301_vm0, %v8357_v40, %v8753_v63  ;;  %v8361_v2 = vrot.slane %v7883_v8, %v12650_v28  ;;  %v8415_v8 = vrot.slane %v16120_v20, %v12714_v16  ;;  %vm18310_vm0 = vcmask 1044484  }
 0xa1c   : > { %v8425_v20 = vrot.slane %v16134_v25, %v12726_v21  ;;  %v8444_v25 = vrot.slane %v16164_v18, %v12653_v30 }
 0xa1d   : > { %v8366_v49 = vsel %vm2734_vm1, %v8365_v4, %v8361_v2  ;;  %v16235_v32 = vpop.permute.xlu0 %7963 }
 0xa1e   : > { %v7889_v33 = vpop.permute.xlu1 %7888  ;;  %8095 = vperm.xlu1 %9906, %v18302_v44  }
 0xa1f   : > { %v8370_v59 = vrot.slane %v7889_v33, %v12660_v41 }
 0xa21   : > { %v8371_v57 = vsel %vm2741_vm2, %v8370_v59, %v8366_v49  ;;  %v16242_v37 = vpop.permute.xlu0 %7969 }
 0xa22   : > { %v8376_v42 = vsel %vm2748_vm3, %v8375_v19, %v8371_v57  ;;  %v7895_v15 = vpop.permute.xlu1 %7894  ;;  %8101 = vperm.xlu1 %9906, %v18303_v45   ;;  %v18312_v19 = vld [vmem:[#allocation206_spill] sm:$0xff] }
 0xa23   : > { %v8380_v54 = vrot.slane %v7895_v15, %v12667_v56 }
 0xa25   : > { %v8381_v17 = vsel %vm2755_vm4, %v8380_v54, %v8376_v42  ;;  %v16250_v7 = vpop.permute.xlu0 %7975  ;;  %v18313_v54 = vld [vmem:[#allocation145_spill] sm:$0xff] }
 0xa26   : > { %v8386_v58 = vsel %vm18304_vm11, %v8385_v26, %v8381_v17  ;;  %v7901_v53 = vpop.permute.xlu1 %7900  ;;  %8104 = vperm.xlu1 %9906, %v15451_v50   ;;  %vm18311_vm11 = vcmask 786112   ;;  %v8435_v17 = vrot.slane %v16149_v61, %v17790_v14 }
 0xa27   : > { %v8390_v12 = vrot.slane %v7901_v53, %v12673_v9 }
 0xa29   : > { %v8391_v43 = vsel %vm18305_vm9, %v8390_v12, %v8386_v58  ;;  %v16260_v13 = vpop.permute.xlu0 %7981 }
 0xa2a   : > { %v8396_v5 = vsel %vm2776_vm7, %v8395_v29, %v8391_v43  ;;  %v7907_v31 = vpop.permute.xlu1 %7906  ;;  %8107 = vperm.xlu1 %9906, %v18306_v46  }
 0xa2b   : > { %v8400_v3 = vrot.slane %v7907_v31, %v12680_v10 }
 0xa2d   : > { %v8401_v50 = vsel %vm2783_vm8, %v8400_v3, %v8396_v5  ;;  %v16271_v4 = vpop.permute.xlu0 %7987  ;;  %v8454_v3 = vrot.slane %v16178_v39, %v12663_v11  ;;  %v8474_v39 = vrot.slane %v16210_v34, %v12677_v1 }
 0xa2e   : > { %v8406_v35 = vsel %vm18307_vm5, %v8405_v0, %v8401_v50  ;;  %v7913_v6 = vpop.permute.xlu1 %7912  ;;  %8110 = vperm.xlu1 %9906, %v18308_v55  }
 0xa2f   : > { %v8410_v63 = vrot.slane %v7913_v6, %v12703_v23  ;;  %v6544_v40 = vpop.f32.mrb[12].mxu1  ;;  %v8464_v6 = vrot.slane %v16192_v27, %v12670_v36  ;;  %v8484_v27 = vrot.slane %v16222_v47, %v12696_v62 }
 0xa30   : > { %v7287_v38 = vrot.slane %v6544_v40, 4  ;;  %v9668_v51 = vpop.f32.mrb[13].mxu1 }
 0xa31   : > { %v8411_v2 = vsel %vm18309_vm10, %v8410_v63, %v8406_v35  ;;  %v6547_v48 = vpop.f32.mrb[14].mxu1  ;;  %v16284_v26 = vpop.permute.xlu0 %7993 }
 0xa32   : > { %v7288_v49 = vsel %vm18310_vm0, %v7287_v38, %v16199_v60  ;;  %v8416_v33 = vsel %vm18311_vm11, %v8415_v8, %v8411_v2  ;;  %v7919_v44 = vpop.permute.xlu1 %7918  ;;  %v9669_v59 = vpop.f32.mrb[15].mxu1  ;;  %8113 = vperm.xlu1 %9906, %v18312_v19   ;;  %vm18315_vm0 = vcmask 1045509  }
 0xa33   : > { %v8420_v57 = vrot.slane %v7919_v44, %v12717_v22 }
 0xa35   : > { %v8421_v42 = vsel %vm2811_vm12, %v8420_v57, %v8416_v33  ;;  %v16296_v5 = vpop.permute.xlu0 %7999 }
 0xa36   : > { %v8426_v15 = vsel %vm2818_vm13, %v8425_v20, %v8421_v42  ;;  %v7925_v45 = vpop.permute.xlu1 %7924  ;;  %8116 = vperm.xlu1 %9906, %v18313_v54   ;;  %v8494_v42 = vrot.slane %v16235_v32, %v12714_v16 }
 0xa37   : > { %v8430_v60 = vrot.slane %v7925_v45, %v17781_v52 }
 0xa39   : > { %v8431_v58 = vsel %vm2825_vm14, %v8430_v60, %v8426_v15  ;;  %v16304_v35 = vpop.permute.xlu0 %8005 }
 0xa3a   : > { %v8436_v53 = vsel %vm2832_vm15, %v8435_v17, %v8431_v58  ;;  %v7931_v12 = vpop.permute.xlu1 %7930 }
 0xa3b   : > { %v8755_v29 = vsel %vm3391_vm6, %v8436_v53, %v16231_v24  ;;  %v8440_v43 = vrot.slane %v7931_v12, %v12650_v28  ;;  %vm18314_vm6 = vcmask 392512  }
 0xa3d   : > { %v8445_v31 = vsel %vm2734_vm1, %v8444_v25, %v8440_v43  ;;  %v16314_v38 = vpop.permute.xlu0 %8011  ;;  %v8504_v25 = vrot.slane %v16242_v37, %v12726_v21  ;;  %v8523_v37 = vrot.slane %v16260_v13, %v12653_v30 }
 0xa3e   : > { %v7937_v46 = vpop.permute.xlu1 %7936 }
 0xa3f   : > { %v8449_v61 = vrot.slane %v7937_v46, %v12660_v41 }
 0xa41   : > { %v8450_v0 = vsel %vm2741_vm2, %v8449_v61, %v8445_v31  ;;  %v16323_v57 = vpop.permute.xlu0 %8017 }
 0xa42   : > { %v8455_v50 = vsel %vm2748_vm3, %v8454_v3, %v8450_v0  ;;  %v7943_v18 = vpop.permute.xlu1 %7942 }
 0xa43   : > { %v8459_v24 = vrot.slane %v7943_v18, %v12667_v56 }
 0xa45   : > { %v8460_v55 = vsel %vm2755_vm4, %v8459_v24, %v8455_v50  ;;  %v16334_v43 = vpop.permute.xlu0 %8023 }
 0xa46   : > { %v8465_v63 = vsel %vm18314_vm6, %v8464_v6, %v8460_v55  ;;  %v7949_v40 = vpop.permute.xlu1 %7948  ;;  %vm18316_vm6 = vcmask 1044484  }
 0xa47   : > { %v8469_v8 = vrot.slane %v7949_v40, %v12673_v9 }
 0xa49   : > { %v8470_v51 = vsel %vm18305_vm9, %v8469_v8, %v8465_v63  ;;  %v16345_v18 = vpop.permute.xlu0 %8029  ;;  %vm18317_vm9 = vcmask 392512  }
 0xa4a   : > { %v8475_v2 = vsel %vm2776_vm7, %v8474_v39, %v8470_v51  ;;  %v7955_v48 = vpop.permute.xlu1 %7954 }
 0xa4b   : > { %v8479_v33 = vrot.slane %v7955_v48, %v12680_v10 }
 0xa4d   : > { %v8480_v44 = vsel %vm2783_vm8, %v8479_v33, %v8475_v2  ;;  %v16353_v8 = vpop.permute.xlu0 %8035 }
 0xa4e   : > { %v8485_v59 = vsel %vm18307_vm5, %v8484_v27, %v8480_v44  ;;  %v7961_v19 = vpop.permute.xlu1 %7960  ;;  %vm18318_vm5 = vcmask 458112  }
 0xa4f   : > { %v8489_v34 = vrot.slane %v7961_v19, %v12703_v23  ;;  %v6785_v20 = vpop.f32.mrb[16].mxu0 }
 0xa50   : > { %v7289_v15 = vrot.slane %v6785_v20, 3  ;;  %v9688_v45 = vpop.f32.mrb[17].mxu0 }
 0xa51   : > { %v8490_v54 = vsel %vm18309_vm10, %v8489_v34, %v8485_v59  ;;  %v6788_v60 = vpop.f32.mrb[18].mxu0  ;;  %v16362_v44 = vpop.permute.xlu0 %8041  ;;  %v8553_v59 = vrot.slane %v16296_v5, %v12677_v1  ;;  %vm18320_vm10 = vcmask 654912  }
 0xa52   : > { %v7290_v47 = vsel %vm18315_vm0, %v7289_v15, %v7288_v49  ;;  %v8495_v17 = vsel %vm18311_vm11, %v8494_v42, %v8490_v54  ;;  %v7967_v58 = vpop.permute.xlu1 %7966  ;;  %v9689_v53 = vpop.f32.mrb[19].mxu0  ;;  %v8514_v49 = vrot.slane %v16250_v7, %v17790_v14  ;;  %v8533_v7 = vrot.slane %v16271_v4, %v12663_v11  ;;  %v18319_v15 = vld [vmem:[#allocation177_spill] sm:$0xff] }
 0xa53   : > { %v8499_v12 = vrot.slane %v7967_v58, %v12717_v22  ;;  %v8563_v54 = vrot.slane %v16304_v35, %v12696_v62  ;;  %vm18322_vm0 = vcmask 720512   ;;  %vm18323_vm11 = vcmask 1046534  }
 0xa55   : > { %v8500_v32 = vsel %vm2811_vm12, %v8499_v12, %v8495_v17  ;;  %v16376_v60 = vpop.permute.xlu0 %8047 }
 0xa56   : > { %v8505_v31 = vsel %vm2818_vm13, %v8504_v25, %v8500_v32  ;;  %v7973_v46 = vpop.permute.xlu1 %7972  ;;  %v18321_v25 = vld [vmem:[#allocation36_spill] sm:$0xff] }
 0xa57   : > { %v8509_v61 = vrot.slane %v7973_v46, %v17781_v52 }
 0xa59   : > { %v8510_v3 = vsel %vm2825_vm14, %v8509_v61, %v8505_v31  ;;  %v8573_v31 = vrot.slane %v16314_v38, %v12714_v16 }
 0xa5a   : > { %v8515_v0 = vsel %vm2832_vm15, %v8514_v49, %v8510_v3  ;;  %v7979_v50 = vpop.permute.xlu1 %7978 }
 0xa5b   : > { %v8756_v24 = vsel %vm18316_vm6, %v8515_v0, %v8755_v29  ;;  %v8519_v6 = vrot.slane %v7979_v50, %v12650_v28  ;;  %v8543_v29 = vrot.slane %v16284_v26, %v12670_v36  ;;  %v16370_v26 = vld [vmem:[#allocation16] sm:$0x3f]  ;;  %vm18324_vm6 = vcmask 786112  }
 0xa5c   : > { %v616_v45 = vrot.slane %v16370_v26, %v18319_v15 }
 0xa5d   : > { %v8524_v55 = vsel %vm2734_vm1, %v8523_v37, %v8519_v6  ;;  %v16387_v6 = vpop.permute.xlu0 %8053 }
 0xa5e   : > { %v7985_v63 = vpop.permute.xlu1 %7984  ;;  %v916_v32 = vadd.f32 %v18321_v25, %v616_v45 }
 0xa5f   : > { %v8528_v40 = vrot.slane %v7985_v63, %v12660_v41 }
 0xa60   : > { %v9071_v63 = vmul.f32 -1.442695, %v916_v32 }
 0xa61   : > { %v8529_v39 = vsel %vm2741_vm2, %v8528_v40, %v8524_v55  ;;  %v8583_v40 = vrot.slane %v16323_v57, %v12726_v21 }
 0xa62   : > { %v8534_v13 = vsel %vm2748_vm3, %v8533_v7, %v8529_v39  ;;  %v7991_v51 = vpop.permute.xlu1 %7990  ;;  %10349 = vpow2.f32 %v9071_v63 }
 0xa63   : > { %v8538_v2 = vrot.slane %v7991_v51, %v12667_v56  ;;  %v8075_v51 = vpop.permute.xlu0 %8074 }
 0xa65   : > { %v8539_v48 = vsel %vm2755_vm4, %v8538_v2, %v8534_v13 }
 0xa66   : > { %v8544_v33 = vsel %vm18317_vm9, %v8543_v29, %v8539_v48  ;;  %v7997_v27 = vpop.permute.xlu1 %7996  ;;  %vm18325_vm9 = vcmask 1045509  }
 0xa67   : > { %v8548_v4 = vrot.slane %v7997_v27, %v12673_v9  ;;  %v8081_v27 = vpop.permute.xlu0 %8080 }
 0xa69   : > { %v8549_v19 = vsel %vm18318_vm5, %v8548_v4, %v8544_v33  ;;  %vm18326_vm5 = vcmask 1047559  }
 0xa6a   : > { %v8554_v34 = vsel %vm2776_vm7, %v8553_v59, %v8549_v19  ;;  %v8003_v20 = vpop.permute.xlu1 %8002 }
 0xa6b   : > { %v8558_v42 = vrot.slane %v8003_v20, %v12680_v10 }
 0xa6c   : > { %v10350_v4 = vpop.eup %10349 }
 0xa6d   : > { %v8559_v17 = vsel %vm2783_vm8, %v8558_v42, %v8554_v34  ;;  %v1005_v19 = vadd.f32 1.0, %v10350_v4  ;;  %v16402_v34 = vpop.permute.xlu0 %8086 }
 0xa6e   : > { %v8564_v5 = vsel %vm18320_vm10, %v8563_v54, %v8559_v17  ;;  %v8009_v58 = vpop.permute.xlu1 %8008  ;;  %vm18327_vm10 = vcmask 392512  }
 0xa6f   : > { %v8568_v53 = vrot.slane %v8009_v58, %v12703_v23  ;;  %v7026_v12 = vpop.f32.mrb[16].mxu1  ;;  %10351 = vrcp.f32 %v1005_v19 }
 0xa70   : > { %v7291_v46 = vrot.slane %v7026_v12, 2  ;;  %v9708_v61 = vpop.f32.mrb[17].mxu1 }
 0xa71   : > { %v8569_v49 = vsel %vm18322_vm0, %v8568_v53, %v8564_v5  ;;  %v7029_v35 = vpop.f32.mrb[18].mxu1  ;;  %v8602_v61 = vrot.slane %v16345_v18, %v12653_v30  ;;  %vm18328_vm0 = vcmask 458112  }
 0xa72   : > { %v7292_v3 = vsel %vm18323_vm11, %v7291_v46, %v7290_v47  ;;  %v8574_v0 = vsel %vm18324_vm6, %v8573_v31, %v8569_v49  ;;  %v8015_v50 = vpop.permute.xlu1 %8014  ;;  %v9709_v37 = vpop.f32.mrb[19].mxu1  ;;  %v8593_v47 = vrot.slane %v16334_v43, %v17790_v14  ;;  %vm18329_vm11 = vcmask 654912  }
 0xa73   : > { %v8578_v55 = vrot.slane %v8015_v50, %v12717_v22  ;;  %v16404_v43 = vpop.permute.xlu0 %8092  ;;  %vm18330_vm6 = vcmask 720512  }
 0xa75   : > { %v8579_v38 = vsel %vm2811_vm12, %v8578_v55, %v8574_v0 }
 0xa76   : > { %v8584_v7 = vsel %vm2818_vm13, %v8583_v40, %v8579_v38  ;;  %v8021_v39 = vpop.permute.xlu1 %8020 }
 0xa77   : > { %v8588_v13 = vrot.slane %v8021_v39, %v17781_v52  ;;  %v16406_v54 = vpop.permute.xlu0 %8098 }
 0xa79   : > { %v8589_v2 = vsel %vm2825_vm14, %v8588_v13, %v8584_v7  ;;  %v10352_v53 = vpop.eup %10351  ;;  %v8622_v7 = vrot.slane %v16362_v44, %v12670_v36 }
 0xa7a   : > { %v8594_v29 = vsel %vm2832_vm15, %v8593_v47, %v8589_v2  ;;  %v8027_v48 = vpop.permute.xlu1 %8026 }
 0xa7b   : > { %v16400_v33 = vsel %vm18325_vm9, %v8594_v29, %v8756_v24  ;;  %v8598_v12 = vrot.slane %v8027_v48, %v12650_v28  ;;  %v8060_v0 = vpop.permute.xlu0 %8059  ;;  %v8632_v48 = vrot.slane %v16376_v60, %v12677_v1 }
 0xa7d   : > { %v8603_v50 = vsel %vm2734_vm1, %v8602_v61, %v8598_v12 }
 0xa7e   : > { %v8033_v57 = vpop.permute.xlu1 %8032 }
 0xa7f   : > { %v8607_v31 = vrot.slane %v8033_v57, %v12660_v41  ;;  %v8063_v39 = vpop.permute.xlu0 %8062  ;;  %v8677_v57 = vrot.slane %v8075_v51, %v12650_v28 }
 0xa80   : > { %v8657_v12 = vrot.slane %v8063_v39, %v12717_v22 }
 0xa81   : > { %v8608_v37 = vsel %vm2741_vm2, %v8607_v31, %v8603_v50 }
 0xa82   : > { %v8039_v59 = vpop.permute.xlu1 %8038 }
 0xa83   : > { %v8617_v55 = vrot.slane %v8039_v59, %v12667_v56  ;;  %v8066_v59 = vpop.permute.xlu0 %8065 }
 0xa86   : > { %v8045_v20 = vpop.permute.xlu1 %8044 }
 0xa87   : > { %v8627_v18 = vrot.slane %v8045_v20, %v12673_v9 }
 0xa8a   : > { %v8051_v42 = vpop.permute.xlu1 %8050 }
 0xa8b   : > { %v8637_v29 = vrot.slane %v8051_v42, %v12680_v10  ;;  %v8686_v42 = vrot.slane %v8081_v27, %v12660_v41 }
 0xa8e   : > { %v8057_v15 = vpop.permute.xlu1 %8056 }
 0xa8f   : > { %v8647_v20 = vrot.slane %v8057_v15, %v12703_v23 }
 0xa90   : > { %v7267_v45 = vpop.f32.mrb[20].mxu0 }
 0xa91   : > { %v7293_v17 = vrot.slane %v7267_v45, 1  ;;  %v9728_v5 = vpop.f32.mrb[21].mxu0 }
 0xa92   : > { %v7270_v24 = vpop.f32.mrb[22].mxu0  ;;  %v8078_v58 = vpop.permute.xlu1 %8077 }
 0xa93   : > { %v7294_v25 = vsel %vm18326_vm5, %v7293_v17, %v7292_v3  ;;  %v9729_v32 = vpop.f32.mrb[23].mxu0  ;;  %v8612_v3 = vrot.slane %v16353_v8, %v12663_v11  ;;  %v8681_v8 = vrot.slane %v8078_v58, %v12653_v30  ;;  %v8642_v30 = vrot.slane %v16387_v6, %v12696_v62 }
 0xa94   : > { %v7296_v46 = vmul.f32 %v10352_v53, %v7294_v25  ;;  %v8696_v58 = vrot.slane %v16402_v34, %v12667_v56  ;;  %v8069_v53 = vpop.permute.xlu0 %8068  ;;  %v8662_v34 = vrot.slane %v8066_v59, %v12726_v21 }
 0xa95   : > { %v8613_v40 = vsel %vm2748_vm3, %v8612_v3, %v8608_v37  ;;  %v8682_v45 = vsel %vm2734_vm1, %v8681_v8, %v8677_v57  ;;  %vm18331_vm1 = vcmask 786112  }
 0xa96   : > { %v7297_v49 = vpack.c.bf16 %v7296_v46, %v7296_v46  ;;  %v8084_v35 = vpop.permute.xlu1 %8083  ;;  %v8618_v38 = vsel %vm2755_vm4, %v8617_v55, %v8613_v40  ;;  %v8687_v51 = vsel %vm2741_vm2, %v8686_v42, %v8682_v45  ;;  %vm18332_vm2 = vmmov %vm18327_vm10 }
 0xa97   : > { %v8623_v47 = vsel %vm18327_vm10, %v8622_v7, %v8618_v38  ;;  %v8691_v17 = vrot.slane %v8084_v35, %v12663_v11  ;;  %v8652_v11 = vrot.slane %v8060_v0, %v12714_v16  ;;  %v8716_v0 = vrot.slane %v16406_v54, %v12680_v10  ;;  %vm18337_vm9 = vmmov %vm18331_vm1 }
 0xa98   : > { %7529 = vmatmul.mubr.bf16.vlgmr.msra.gmra.mrb[0].mxu1 %v7297_v49  ;;  %7570 = vmatmul.mubr.bf16.vlgmr.msra.gmra.mrb[4].mxu0 %v7297_v49  ;;  %v8628_v2 = vsel %vm18328_vm0, %v8627_v18, %v8623_v47  ;;  %v8072_v46 = vpop.permute.xlu0 %8071 }
 0xa99   : > { %v8633_v19 = vsel %vm2776_vm7, %v8632_v48, %v8628_v2  ;;  %v8692_v24 = vsel %vm2748_vm3, %v8691_v17, %v8687_v51  ;;  %vm18333_vm3 = vmmov %vm18328_vm0  ;;  %v8672_v54 = vrot.slane %v8072_v46, %v17790_v14 }
 0xa9a   : > { %v8090_v63 = vpop.permute.xlu1 %8089  ;;  %v8638_v44 = vsel %vm2783_vm8, %v8637_v29, %v8633_v19  ;;  %v8697_v27 = vsel %vm2755_vm4, %v8696_v58, %v8692_v24  ;;  %vm18334_vm4 = vmmov %vm18329_vm11 }
 0xa9b   : > { %v8643_v28 = vsel %vm18329_vm11, %v8642_v30, %v8638_v44  ;;  %v8701_v15 = vrot.slane %v8090_v63, %v12670_v36  ;;  %v8706_v36 = vrot.slane %v16404_v43, %v12673_v9  ;;  %v8667_v9 = vrot.slane %v8069_v53, %v17781_v52 }
 0xa9c   : > { %v8648_v5 = vsel %vm18330_vm6, %v8647_v20, %v8643_v28 }
 0xa9d   : > { %v8653_v41 = vsel %vm18331_vm1, %v8652_v11, %v8648_v5  ;;  %v8702_v25 = vsel %vm18332_vm2, %v8701_v15, %v8697_v27 }
 0xa9e   : > { %v8096_v13 = vpop.permute.xlu1 %8095  ;;  %v8658_v31 = vsel %vm2811_vm12, %v8657_v12, %v8653_v41  ;;  %v8707_v61 = vsel %vm18333_vm3, %v8706_v36, %v8702_v25 }
 0xa9f   : > { %v8711_v32 = vrot.slane %v8096_v13, %v12677_v1  ;;  %v8663_v1 = vsel %vm2818_vm13, %v8662_v34, %v8658_v31 }
 0xaa0   : > { %v8668_v10 = vsel %vm2825_vm14, %v8667_v9, %v8663_v1 }
 0xaa1   : > { %v8712_v49 = vsel %vm2776_vm7, %v8711_v32, %v8707_v61  ;;  %vm18336_vm7 = vmmov %vm18330_vm6 }
 0xaa2   : > { %v8102_v4 = vpop.permute.xlu1 %8101  ;;  %v8717_v55 = vsel %vm2783_vm8, %v8716_v0, %v8712_v49  ;;  %vm18338_vm8 = vcmask 1046534  }
 0xaa3   : > { %v8721_v35 = vrot.slane %v8102_v4, %v12696_v62 }
 0xaa5   : > { %v8722_v63 = vsel %vm18334_vm4, %v8721_v35, %v8717_v55 }
 0xaa6   : > { %v8105_v60 = vpop.permute.xlu1 %8104 }
 0xaa7   : > { %v8726_v50 = vrot.slane %v8105_v60, %v12703_v23  ;;  %v8120_v23 = vpop.permute.xlu0 %8119 }
 0xaa8   : > { %v8751_v7 = vrot.slane %v8120_v23, %v17790_v14 }
 0xaaa   : > { %v8108_v6 = vpop.permute.xlu1 %8107 }
 0xaab   : > { %v8731_v43 = vrot.slane %v8108_v6, %v12714_v16  ;;  %v8727_v16 = vsel %vm18336_vm7, %v8726_v50, %v8722_v63 }
 0xaad   : > { %v8732_v40 = vsel %vm18337_vm9, %v8731_v43, %v8727_v16 }
 0xaae   : > { %v8111_v56 = vpop.permute.xlu1 %8110 }
 0xaaf   : > { %v8736_v3 = vrot.slane %v8111_v56, %v12717_v22 }
 0xab1   : > { %v8737_v22 = vsel %vm2811_vm12, %v8736_v3, %v8732_v40 }
 0xab2   : > { %v8114_v37 = vpop.permute.xlu1 %8113 }
 0xab3   : > { %v8741_v62 = vrot.slane %v8114_v37, %v12726_v21  ;;  %v8673_v21 = vsel %vm2832_vm15, %v8672_v54, %v8668_v10 }
 0xab4   : > { %v8758_v2 = vsel %vm18338_vm8, %v8673_v21, %v16400_v33 }
 0xab5   : > { %v8742_v39 = vsel %vm2818_vm13, %v8741_v62, %v8737_v22 }
 0xab6   : > { %v8117_v38 = vpop.permute.xlu1 %8116 }
 0xab7   : > { %v8746_v18 = vrot.slane %v8117_v38, %v17781_v52 }
 0xab9   : > { %v8747_v13 = vsel %vm2825_vm14, %v8746_v18, %v8742_v39 }
 0xaba   : > { %v8752_v47 = vsel %vm2832_vm15, %v8751_v7, %v8747_v13 }
 0xabb   : > { %v8759_v29 = vsel %vm18326_vm5, %v8752_v47, %v8758_v2 }
 0xabc   : > { %8761 = vst [vmem:[%s11188_s20] sm:$0xff] %v8759_v29 }
 0xabd   : > { %10638 = shalt.err (!%p10635_p9)
}
 0xabe   : > { %s10639_s20 = scalar_lea.hbm %s16489_s16, 128  ;;  %s10643_s26 = scalar_lea.hbm %s18339_s0, 896 }
 0xabf   : > { %p10640_p7 = scmp.ne.s32.totalorder %s16489_s16, %s10639_s20  ;;  %p10644_p2 = scmp.lt.u32.totalorder %s16489_s16, %s18339_s0 }
 0xac0   : > { %p10645_p5 = scmp.lt.u32.totalorder %s10643_s26, %s10639_s20  ;;  %p10647_p12 = scmp.lt.u32.totalorder %s10639_s20, %s16489_s16 }
 0xac1   : > { %p10641_p1 = pnand %p10640_p7, %p18340_p11 }
 0xac2   : > { %p10646_p13 = por %p10645_p5, %p10644_p2 }
 0xac3   : > { %p10642_p3 = pneg %p10641_p1 }
 0xac4   : > { %p10648_p0 = por %p10647_p12, %p10646_p13 }
 0xac6   : > { %p10649_p6 = pnand %p10648_p0, %p10642_p3 }
 0xac8   : > { %10652 = shalt.err (!%p10649_p6)
}
 0xac9   : > { %9781 = dma.vmem_to_hbm [thread:$0]  (%p18340_p11), %s8797_s22, 128, %s16489_s16, %s8768_s27   ;;  %v7330_v52 = vld [vmem:[%s11163_s21] sm:$0xff]  ;;  %v18342_v48 = vld [vmem:[#allocation195_spill] sm:$0xff]  ;;  %v557_v1 = vld [vmem:[#allocation3] sm:$0xff] }
 0xaca   : > { %v18341_v14 = vld [vmem:[#allocation164_spill] sm:$0xff]  ;;  %v7332_v8 = vunpack.c.l.bf16 %v7330_v52  ;;  %v624_v57 = vrot.slane %v16370_v26, %v18342_v48  ;;  %v7333_v4 = vunpack.c.h.bf16 %v7330_v52  ;;  %v7331_v19 = vld [vmem:[%s11163_s21 + $0x8] sm:$0xff]  ;;  %v18343_v17 = vld [vmem:[#allocation110_spill] sm:$0xff]  ;;  %s8782_s2 = sshll.u32 %s11186_s23, 4  ;;  %s18345_s21 = sshll.u32 %s18335_s19, 7  ;;  %s16528_s2 = int_to_ptr.vmem [resolvable:$true] %s8782_s2 }
 0xacb   : > { %v620_v33 = vrot.slane %v16370_v26, %v18341_v14  ;;  %v632_v30 = vrot.slane %v16370_v26, %v18343_v17  ;;  %v7335_v42 = vunpack.c.h.bf16 %v7331_v19  ;;  %v18344_v27 = vld [vmem:[#allocation215_spill] sm:$0xff]  ;;  %v7334_v25 = vunpack.c.l.bf16 %v7331_v19  ;;  %s18346_s22 = sld [smem:[#allocation234_spill]]  ;;  %s8763_s30 = scalar_lea.sflag [#allocation6], %s11160_s25 }
 0xacc   : > { %v9732_v44 = vadd.f32 %v7333_v4, %v624_v57  ;;  %v628_v12 = vrot.slane %v16370_v26, %v18344_v27  ;;  %s10653_s20 = scalar_lea.vmem %s16528_s2, 128  ;;  %s10786_s29 = smov [#allocation19]  }
 0xacd   : > { %v9730_v59 = vadd.f32 %v7332_v8, %v620_v33  ;;  %v9736_v41 = vadd.f32 %v7335_v42, %v632_v30  ;;  %p10654_p4 = scmp.ne.s32.totalorder %s16528_s2, %s10653_s20  ;;  %s10657_s19 = sshll.u32 %s10786_s29, 4  ;;  %s10658_s19 = int_to_ptr.vmem [resolvable:$false] %s10657_s19 }
 0xace   : > { %v9734_v36 = vadd.f32 %v7334_v25, %v628_v12  ;;  %s10659_s10 = scalar_lea.vmem %s10658_s19, 256  ;;  %p10660_p9 = scmp.lt.s32.totalorder %s16528_s2, %s10658_s19 }
 0xacf   : > { %p10655_p8 = pnand %p10654_p4, %p18340_p11  ;;  %p10661_p7 = scmp.lt.s32.totalorder %s10659_s10, %s10653_s20 }
 0xad1   : > { %s16526_s27 = scalar_lea.hbm %s18346_s22, %s18345_s21  ;;  %p10656_p10 = pneg %p10655_p8 }
 0xad2   : > { %p10662_p1 = por %p10661_p7, %p10660_p9 }
 0xad4   : > { %p10663_p3 = pnand %p10662_p1, %p10656_p10 }
 0xb6b   : > { %v7530_v20 = vpop.f32.mrb[0].mxu1  ;;  %v7571_v45 = vpop.f32.mrb[4].mxu0 }
 0xb6c   : > { %v9731_v60 = vadd.f32 %v9730_v59, %v7530_v20  ;;  %v7532_v28 = vpop.f32.mrb[1].mxu1  ;;  %v7573_v51 = vpop.f32.mrb[5].mxu0  ;;  %v9735_v56 = vadd.f32 %v9734_v36, %v7571_v45 }
 0xb6d   : > { %v9733_v5 = vadd.f32 %v9732_v44, %v7532_v28  ;;  %v7534_v24 = vpop.f32.mrb[2].mxu1  ;;  %v7575_v15 = vpop.f32.mrb[6].mxu0  ;;  %v9737_v32 = vadd.f32 %v9736_v41, %v7573_v51 }
 0xb6e   : > { %v9169_v58 = vmul.f32 -1.442695, %v9731_v60  ;;  %v7535_v11 = vpop.f32.mrb[3].mxu1  ;;  %v7576_v53 = vpop.f32.mrb[7].mxu0 }
 0xb6f   : > { %v9170_v6 = vmul.f32 -1.442695, %v9733_v5  ;;  %v9171_v31 = vmul.f32 -1.442695, %v9737_v32 }
 0xb70   : > { %10353 = vpow2.f32 %v9169_v58 }
 0xb71   : > { %10355 = vpow2.f32 %v9170_v6 }
 0xb72   : > { %10357 = vpow2.f32 %v9171_v31 }
 0xb73   : > { %10359 = vtanh.f32 %v9735_v56 }
 0xb7a   : > { %v10354_v34 = vpop.eup %10353 }
 0xb7b   : > { %v10356_v46 = vpop.eup %10355  ;;  %v7585_v61 = vadd.f32 1.0, %v10354_v34 }
 0xb7c   : > { %v7591_v49 = vadd.f32 1.0, %v10356_v46  ;;  %v10358_v35 = vpop.eup %10357 }
 0xb7d   : > { %10361 = vrcp.f32 %v7585_v61  ;;  %v10360_v0 = vpop.eup %10359  ;;  %v7598_v43 = vadd.f32 1.0, %v10358_v35 }
 0xb7e   : > { %10363 = vrcp.f32 %v7591_v49 }
 0xb7f   : > { %10365 = vrcp.f32 %v7598_v43 }
 0xb87   : > { %v10362_v26 = vpop.eup %10361 }
 0xb88   : > { %v10364_v50 = vpop.eup %10363  ;;  %v7602_v9 = vmul.f32 %v10362_v26, %v10360_v0 }
 0xb89   : > { %v7601_v37 = vmul.f32 %v10364_v50, %v557_v1  ;;  %v10366_v3 = vpop.eup %10365 }
 0xb8b   : > { %v7603_v55 = vadd.f32 %v7602_v9, %v7601_v37 }
 0xb8d   : > { %7607 = vst [vmem:[#allocation3] sm:$0xff] %v7603_v55  ;;  %10367 = vtanh.f32 %v7603_v55 }
 0xb97   : > { %v10368_v63 = vpop.eup %10367 }
 0xb98   : > { %v7605_v62 = vmul.f32 %v10368_v63, %v10366_v3 }
 0xb9a   : > { %7606 = vst [vmem:[#allocation2] sm:$0xff] %v7605_v62  ;;  %7608 = vst [vmem:[%s11186_s23] sm:$0xff] %v7605_v62 }
 0xb9b   : > { %10666 = shalt.err (!%p10663_p3)
}
 0xb9c   : > { %s10667_s25 = scalar_lea.hbm %s16526_s27, 128  ;;  %s10671_s1 = scalar_lea.hbm %s18346_s22, 896 }
 0xb9d   : > { %p10668_p2 = scmp.ne.s32.totalorder %s16526_s27, %s10667_s25  ;;  %p10672_p12 = scmp.lt.u32.totalorder %s16526_s27, %s18346_s22 }
 0xb9e   : > { %p10673_p0 = scmp.lt.u32.totalorder %s10671_s1, %s10667_s25  ;;  %p10675_p4 = scmp.lt.u32.totalorder %s10667_s25, %s16526_s27 }
 0xb9f   : > { %p10669_p5 = pnand %p10668_p2, %p18340_p11 }
 0xba0   : > { %p10674_p6 = por %p10673_p0, %p10672_p12 }
 0xba1   : > { %p10670_p13 = pneg %p10669_p5 }
 0xba2   : > { %p10676_p8 = por %p10675_p4, %p10674_p6 }
 0xba4   : > { %p10677_p10 = pnand %p10676_p8, %p10670_p13 }
 0xba6   : > { %10680 = shalt.err (!%p10677_p10)
}
 0xba7   : > { %9780 = dma.vmem_to_hbm [thread:$0]  (%p18340_p11), %s16528_s2, 128, %s16526_s27, %s8763_s30  }
 0xba8 PF: > { %p9837_p9 = scmp.ge.s32.totalorder %s10763_s18, 2  ;;  %s8808_s16 = sand.u32 1, %s10743_s13  }
 0xba9   : > { %p18347_p7 = scmp.ne.s32.totalorder %s17037_s24, 0  ;;  %s8809_s20 = scalar_lea.sflag [#allocation6], %s8808_s16 }
 0xbab   : > { %p9814_p1 = pnand %p9837_p9, %p18347_p7 }
 0xbad   : > { %10734 = dma.done.wait (!%p9814_p1), %s8809_s20, 128  }
 0xbae   : > { %10736 = vsyncadd (!%p9814_p1), %s8809_s20, 4294967168  ;;  %s8818_s29 = scalar_lea.sflag [#allocation21], %s8808_s16 }
 0xbaf   : > { %10738 = dma.done.wait (!%p9814_p1), %s8818_s29, 128  }
 0xbb0   : > { %10740 = vsyncadd (!%p9814_p1), %s8818_s29, 4294967168  ;;  %s32_s18 = sadd.s32 1, %s10763_s18   ;;  %s18348_s13 = smov %s10747_s14 }
 0xbb1   : > { %p29_p3 = scmp.ge.s32.totalorder %s32_s18, 9   ;;  %s18349_s14 = smov %s10751_s15 }
 0xbb2   : > { %s18350_s15 = smov %s11100_s12  ;;  %s18351_s16 = smov %s10759_s17 }
 0xbb3   : > { %s18352_s17 = smov %s18354_s28  ;;  %31 = sbr.rel (!%p29_p3) target bundleno = 17 (0x11), region = 157 }
 0xbba   :  { %8823 = vsyncpa [#allocation5], 1 }
 0xbbb   :  { %8825 = vsyncpa [#allocation5 + $0x1], 1 }
 0xbbc   :  { %8826 = vsyncpa [#allocation8], 1 }
 0xbbd   :  { %8827 = vsyncpa [#allocation12], 1 }
 0xbbe   :  { %8828 = vsyncpa [#allocation15], 1 }
 0xbbf   :  { %8829 = vsyncpa [#allocation18], 1 }
 0xbc0   :  { %8830 = vsyncpa [#allocation6], 1 }
 0xbc1   :  { %8832 = vsyncpa [#allocation6 + $0x1], 1 }
 0xbc2   :  { %8833 = vsyncpa [#allocation21], 1 }
 0xbc3   :  { %8835 = vsyncpa [#allocation21 + $0x1], 1 }

</bundles_post_ra>
